<compile_context>
chip_gen: v6e
topology: v6e:2x2x1
jax: 0.10.0
libtpu: 0.0.40
codegen_flags: <defaults>
</compile_context>

<pallas_src>
import functools
import math

import jax
import jax.numpy as jnp
from jax.experimental import pallas as pl
from jax.experimental.pallas import tpu as pltpu


def sam_gru_kernel(xh_ref, wg_ref, bg_ref, mem_ref, nbr_ref, ctr_ref,
                   rep_ref, seg_ref, csel_ref, w1_ref, w2_ref, bout_ref,
                   hyy_ref, newmem_ref):
    B, H = hyy_ref.shape
    NM = mem_ref.shape[0]          # flattened grid cells
    BL = nbr_ref.shape[0]          # B * L neighbourhood rows
    CH = 128                       # sublane chunk for gather / write-back

    xh = xh_ref[...]                                   # (B, F+H) = [x_feat | hidden]
    h_prev = xh[:, xh.shape[1] - H:]                   # (B, H)

    # fused gate projection: one matmul, columns ordered [r, i, s, i_n, h_n]
    g = jnp.dot(xh, wg_ref[...], preferred_element_type=jnp.float32) + bg_ref[...]
    gates = jax.nn.sigmoid(g[:, :3 * H])               # one contiguous EUP pass
    resetg = gates[:, :H]
    updateg = gates[:, H:2 * H]
    spatialg = gates[:, 2 * H:3 * H]
    newg = jnp.tanh(g[:, 3 * H:4 * H] + resetg * g[:, 4 * H:5 * H])

    # gather the (B*L, H) nearby-grid rows of the spatial memory with a chunked
    # one-hot matmul (vectorized, MXU) instead of 25 XLA gathers in glue.
    idx = nbr_ref[...]                                 # (B*L, 1) int32 flat row ids
    cs = jnp.zeros((BL, H), jnp.float32)
    for k0 in range(0, NM, CH):
        ksz = min(CH, NM - k0)
        cols = k0 + jax.lax.broadcasted_iota(jnp.int32, (BL, ksz), 1)
        onehot = (cols == idx).astype(jnp.float32)
        cs = cs + jnp.dot(onehot, mem_ref[pl.ds(k0, ksz), :],
                          preferred_element_type=jnp.float32)

    # dot-product attention of newgate over the L nearby grids, vectorized over
    # all B*L rows via constant segment matrices rep (BL,B) / seg (B,BL).
    repng = jnp.dot(rep_ref[...], newg, preferred_element_type=jnp.float32)  # (BL, H)
    scores = jnp.sum(cs * repng, axis=1, keepdims=True)                      # (BL, 1)
    e = jnp.exp(scores - jnp.max(scores, keepdims=True))   # global shift == per-row shift
    num = jnp.dot(seg_ref[...], e * cs, preferred_element_type=jnp.float32)  # (B, H)
    den = jnp.dot(seg_ref[...], e, preferred_element_type=jnp.float32)       # (B, 1)
    mix = num * pl.reciprocal(den, approx=True)

    # Attention.linear_out(concat(mix, newgate)): weight pre-split (W1|W2) so the
    # mathematically identical form needs no in-kernel lane concat.
    att = jnp.tanh(jnp.dot(mix, w1_ref[...], preferred_element_type=jnp.float32)
                   + jnp.dot(newg, w2_ref[...], preferred_element_type=jnp.float32)
                   + bout_ref[...])

    curr = newg + spatialg * att
    hyy = curr + updateg * (h_prev - curr)
    hyy_ref[...] = hyy

    # in-cell memory update: sg * memory[gx, gy] + (1 - sg) * hyy, written back
    # in-kernel (memory aliased in/out), sequential last-wins on duplicate cells.
    center = jnp.dot(csel_ref[...], cs, preferred_element_type=jnp.float32)  # (B, H)
    upd = spatialg * center + (1.0 - spatialg) * hyy

    for n0 in range(0, NM, CH):
        nsz = min(CH, NM - n0)
        blk = mem_ref[pl.ds(n0, nsz), :]
        rid = n0 + jax.lax.broadcasted_iota(jnp.int32, (nsz, 1), 0)
        for b in range(B):                       # static unroll, B small
            blk = jnp.where(rid == ctr_ref[b, 0], upd[b:b + 1, :], blk)
        newmem_ref[pl.ds(n0, nsz), :] = blk


@functools.partial(jax.jit, static_argnames=("spatial_width",), donate_argnums=(2,))
def sam_gru_cell_forward(input_a, hidden, memory, params, spatial_width):
    """Mirrors SAM_GRUCell.forward (incell=True, training). Returns (hyy, new_memory)."""
    B = input_a.shape[0]
    H = hidden.shape[1]
    N, M, _ = memory.shape
    w = spatial_width
    L = (2 * w + 1) ** 2
    BL = B * L
    NM = N * M

    x_feat = input_a[:, :-2]
    grid_idx = input_a[:, -2:].astype(jnp.int32) + w
    ctr = grid_idx[:, 0] * M + grid_idx[:, 1]                           # (B,) flat center

    offs = jnp.array([i * M + j for i in range(-w, w + 1)
                      for j in range(-w, w + 1)], dtype=jnp.int32)      # (L,)
    nbr = (ctr[:, None] + offs[None, :]).reshape(BL, 1)                 # (B*L, 1)
    ctr_smem = ctr[:, None].astype(jnp.int32)                           # (B, 1)

    xh = jnp.concatenate([x_feat, hidden], axis=1)                      # (B, F+H)
    mem_flat = memory.reshape(NM, H)

    # constant segment / selection matrices (no traced deps -> folded at compile time)
    row_b = jnp.repeat(jnp.arange(B, dtype=jnp.int32), L)
    rep = (row_b[:, None] == jnp.arange(B, dtype=jnp.int32)[None, :]).astype(jnp.float32)
    seg = rep.T
    csel = (jnp.arange(B, dtype=jnp.int32)[:, None] * L + L // 2
            == jnp.arange(BL, dtype=jnp.int32)[None, :]).astype(jnp.float32)

    vmem = pltpu.MemorySpace.VMEM
    smem = pltpu.MemorySpace.SMEM
    inputs = (xh, params["w_gate"], params["b_gate"], mem_flat, nbr, ctr_smem,
              rep, seg, csel, params["w1_t"], params["w2_t"], params["b_out"])
    in_specs = [pl.BlockSpec(memory_space=smem if i == 5 else vmem)
                for i in range(len(inputs))]

    hyy, new_mem = pl.pallas_call(
        sam_gru_kernel,
        out_shape=(jax.ShapeDtypeStruct((B, H), jnp.float32),
                   jax.ShapeDtypeStruct((NM, H), jnp.float32)),
        in_specs=in_specs,
        out_specs=(pl.BlockSpec(memory_space=vmem),
                   pl.BlockSpec(memory_space=vmem)),
        input_output_aliases={3: 1},        # spatial memory updated in place
    )(*inputs)
    return hyy, new_mem.reshape(N, M, H)


def reference_forward(input_a, hidden, memory, w_ih, w_hh, b_ih, b_hh,
                      w_out, b_out, w):
    """Pure-JAX mirror of SAM_GRUCell.spatial_gru_cell for correctness checking."""
    x = input_a[:, :-2]
    g = input_a[:, -2:].astype(jnp.int32) + w
    gx, gy = g[:, 0], g[:, 1]
    gi = x @ w_ih.T + b_ih
    gh = hidden @ w_hh.T + b_hh
    i_r, i_i, i_n, i_s = jnp.split(gi, 4, axis=1)
    h_r, h_i, h_n, h_s = jnp.split(gh, 4, axis=1)
    resetgate = jax.nn.sigmoid(i_r + h_r)
    updategate = jax.nn.sigmoid(i_i + h_i)
    spatialgate = jax.nn.sigmoid(i_s + h_s)
    newgate = jnp.tanh(i_n + resetgate * h_n)
    cs = jnp.stack([memory[gx + i, gy + j, :]
                    for i in range(-w, w + 1) for j in range(-w, w + 1)], axis=1)
    scores = jnp.einsum("blh,bh->bl", cs, newgate)
    attn = jax.nn.softmax(scores, axis=1)
    mix = jnp.einsum("bl,blh->bh", attn, cs)
    atten_cs = jnp.tanh(jnp.concatenate([mix, newgate], axis=1) @ w_out.T + b_out)
    curr_state = newgate + spatialgate * atten_cs
    hyy = curr_state + updategate * (hidden - curr_state)
    updates = spatialgate * memory[gx, gy, :] + (1.0 - spatialgate) * hyy
    new_memory = memory.at[gx, gy, :].set(updates)
    return hyy, new_memory


if __name__ == "__main__":
    key = jax.random.PRNGKey(0)

    B = 8
    input_size = 4            # last two columns carry the (grid_x, grid_y) indices
    hidden_size = 32
    grid_size = (16, 16)
    spatial_width = 2         # config.spatial_width
    F = input_size - 2
    H = hidden_size
    N = grid_size[0] + 3 * spatial_width
    M = grid_size[1] + 3 * spatial_width

    keys = jax.random.split(key, 10)
    stdv = 1.0 / math.sqrt(hidden_size)
    u = lambda k, shape: jax.random.uniform(k, shape, jnp.float32, -stdv, stdv)

    # parameters per SAM_GRUCell.__init__ / reset_parameters
    w_ih = u(keys[0], (4 * H, F))          # weight_ih : (4H, input_size - 2)
    w_hh = u(keys[1], (4 * H, H))          # weight_hh : (4H, H)
    b_ih = u(keys[2], (4 * H,))
    b_hh = u(keys[3], (4 * H,))
    w_out = u(keys[4], (H, 2 * H))         # Attention.linear_out weight
    b_out = u(keys[5], (H,))               # Attention.linear_out bias
    memory = 0.1 * jax.random.normal(keys[6], (N, M, H), dtype=jnp.float32)

    coords = jax.random.uniform(keys[7], (B, F), jnp.float32)
    # distinct grid cells so the deterministic in-kernel last-wins write-back and the
    # XLA scatter in the reference agree exactly
    cells = jax.random.choice(keys[8], grid_size[0] * grid_size[1], (B,), replace=False)
    gxy = jnp.stack([cells // grid_size[1], cells % grid_size[1]],
                    axis=1).astype(jnp.float32)
    input_a = jnp.concatenate([coords, gxy], axis=1)                  # (B, input_size)
    hidden = jax.random.normal(keys[9], (B, H), dtype=jnp.float32)

    # --- one-time parameter packing: fused gate weight (F+H, 5H) [r, i, s, i_n, h_n] ---
    wi_r, wi_i, wi_n, wi_s = w_ih[:H], w_ih[H:2 * H], w_ih[2 * H:3 * H], w_ih[3 * H:]
    wh_r, wh_i, wh_n, wh_s = w_hh[:H], w_hh[H:2 * H], w_hh[2 * H:3 * H], w_hh[3 * H:]
    w_gate = jnp.concatenate([
        jnp.concatenate([wi_r.T, wi_i.T, wi_s.T, wi_n.T,
                         jnp.zeros((F, H), jnp.float32)], axis=1),
        jnp.concatenate([wh_r.T, wh_i.T, wh_s.T,
                         jnp.zeros((H, H), jnp.float32), wh_n.T], axis=1),
    ], axis=0)                                                        # (F+H, 5H)
    b_gate = jnp.concatenate([b_ih[:H] + b_hh[:H],
                              b_ih[H:2 * H] + b_hh[H:2 * H],
                              b_ih[3 * H:] + b_hh[3 * H:],
                              b_ih[2 * H:3 * H],
                              b_hh[2 * H:3 * H]])[None, :]            # (1, 5H)
    params = dict(
        w_gate=w_gate,
        b_gate=b_gate,
        w1_t=w_out[:, :H].T,               # (H, H) acts on `mix`
        w2_t=w_out[:, H:].T,               # (H, H) acts on `newgate`
        b_out=b_out[None, :],              # (1, H)
    )

    # reference first: the kernel call donates `memory`
    hyy_ref, new_mem_ref = reference_forward(input_a, hidden, memory, w_ih, w_hh,
                                             b_ih, b_hh, w_out, b_out, spatial_width)

    hyy, new_memory = sam_gru_cell_forward(input_a, hidden, memory, params,
                                           spatial_width)
    jax.block_until_ready((hyy, new_memory))

    assert jnp.allclose(hyy, hyy_ref, atol=2e-3, rtol=2e-3), "hyy mismatch vs reference"
    assert jnp.allclose(new_memory, new_mem_ref, atol=2e-3, rtol=2e-3), \
        "memory update mismatch vs reference"

    print("KERNEL_OK")
</pallas_src>

<mosaic_0001>
module attributes {stable_mosaic.version = 11 : i64} {
  func.func @sam_gru_kernel(%arg0: memref<8x34xf32, #tpu.memory_space<vmem>>, %arg1: memref<34x160xf32, #tpu.memory_space<vmem>>, %arg2: memref<1x160xf32, #tpu.memory_space<vmem>>, %arg3: memref<484x32xf32, #tpu.memory_space<vmem>>, %arg4: memref<200x1xi32, #tpu.memory_space<vmem>>, %arg5: memref<8x1xi32, #tpu.memory_space<smem>>, %arg6: memref<200x8xf32, #tpu.memory_space<vmem>>, %arg7: memref<8x200xf32, #tpu.memory_space<vmem>>, %arg8: memref<8x200xf32, #tpu.memory_space<vmem>>, %arg9: memref<32x32xf32, #tpu.memory_space<vmem>>, %arg10: memref<32x32xf32, #tpu.memory_space<vmem>>, %arg11: memref<1x32xf32, #tpu.memory_space<vmem>>, %arg12: memref<8x32xf32, #tpu.memory_space<vmem>>, %arg13: memref<484x32xf32, #tpu.memory_space<vmem>>) attributes {dimension_semantics = [], scalar_prefetch = 0 : i64, scratch_operands = 0 : i64, tpu.core_type = #tpu.core_type<tc>} {
    %c0 = arith.constant 0 : index
    %c0_0 = arith.constant 0 : index
    %0 = vector.load %arg0[%c0, %c0_0] : memref<8x34xf32, #tpu.memory_space<vmem>>, vector<8x34xf32>
    %1 = vector.extract_strided_slice %0 {offsets = [0, 2], sizes = [8, 32], strides = [1, 1]} : vector<8x34xf32> to vector<8x32xf32>
    %c0_1 = arith.constant 0 : index
    %c0_2 = arith.constant 0 : index
    %2 = vector.load %arg1[%c0_1, %c0_2] : memref<34x160xf32, #tpu.memory_space<vmem>>, vector<34x160xf32>
    %cst = arith.constant dense<0.000000e+00> : vector<8x160xf32>
    %3 = tpu.matmul %0, %2, %cst {dimension_numbers = #tpu.dot_dimension_numbers<[1], [0], [0], [1], [0, 0, 1, 1], [], []>} : vector<8x34xf32>, vector<34x160xf32>, vector<8x160xf32> -> vector<8x160xf32>
    %c0_3 = arith.constant 0 : index
    %c0_4 = arith.constant 0 : index
    %4 = vector.load %arg2[%c0_3, %c0_4] : memref<1x160xf32, #tpu.memory_space<vmem>>, vector<1x160xf32>
    %5 = vector.broadcast %4 : vector<1x160xf32> to vector<8x160xf32>
    %6 = arith.addf %3, %5 : vector<8x160xf32>
    %7 = vector.extract_strided_slice %6 {offsets = [0, 0], sizes = [8, 96], strides = [1, 1]} : vector<8x160xf32> to vector<8x96xf32>
    %8 = arith.negf %7 : vector<8x96xf32>
    %9 = math.exp %8 : vector<8x96xf32>
    %cst_5 = arith.constant 1.000000e+00 : f32
    %10 = vector.broadcast %cst_5 : f32 to vector<8x96xf32>
    %11 = arith.addf %10, %9 : vector<8x96xf32>
    %12 = arith.divf %10, %11 : vector<8x96xf32>
    %13 = vector.extract_strided_slice %12 {offsets = [0, 0], sizes = [8, 32], strides = [1, 1]} : vector<8x96xf32> to vector<8x32xf32>
    %14 = vector.extract_strided_slice %12 {offsets = [0, 32], sizes = [8, 32], strides = [1, 1]} : vector<8x96xf32> to vector<8x32xf32>
    %15 = vector.extract_strided_slice %12 {offsets = [0, 64], sizes = [8, 32], strides = [1, 1]} : vector<8x96xf32> to vector<8x32xf32>
    %16 = vector.extract_strided_slice %6 {offsets = [0, 96], sizes = [8, 32], strides = [1, 1]} : vector<8x160xf32> to vector<8x32xf32>
    %17 = vector.extract_strided_slice %6 {offsets = [0, 128], sizes = [8, 32], strides = [1, 1]} : vector<8x160xf32> to vector<8x32xf32>
    %18 = arith.mulf %13, %17 : vector<8x32xf32>
    %19 = arith.addf %16, %18 : vector<8x32xf32>
    %20 = math.tanh %19 : vector<8x32xf32>
    %c0_6 = arith.constant 0 : index
    %c0_7 = arith.constant 0 : index
    %21 = vector.load %arg4[%c0_6, %c0_7] : memref<200x1xi32, #tpu.memory_space<vmem>>, vector<200x1xi32>
    %cst_8 = arith.constant 0.000000e+00 : f32
    %22 = vector.broadcast %cst_8 : f32 to vector<200x32xf32>
    %23 = tpu.iota {dimensions = array<i32: 1>} : vector<200x128xi32>
    %c0_i32 = arith.constant 0 : i32
    %24 = vector.broadcast %c0_i32 : i32 to vector<200x128xi32>
    %25 = arith.addi %24, %23 : vector<200x128xi32>
    %26 = vector.broadcast %21 : vector<200x1xi32> to vector<200x128xi32>
    %27 = arith.cmpi eq, %25, %26 : vector<200x128xi32>
    %28 = arith.extui %27 : vector<200x128xi1> to vector<200x128xi32>
    %29 = arith.sitofp %28 : vector<200x128xi32> to vector<200x128xf32>
    %c0_9 = arith.constant 0 : index
    %c0_10 = arith.constant 0 : index
    %30 = vector.load %arg3[%c0_9, %c0_10] : memref<484x32xf32, #tpu.memory_space<vmem>>, vector<128x32xf32>
    %cst_11 = arith.constant dense<0.000000e+00> : vector<200x32xf32>
    %31 = tpu.matmul %29, %30, %cst_11 {dimension_numbers = #tpu.dot_dimension_numbers<[1], [0], [0], [1], [0, 0, 1, 1], [], []>} : vector<200x128xf32>, vector<128x32xf32>, vector<200x32xf32> -> vector<200x32xf32>
    %32 = arith.addf %22, %31 : vector<200x32xf32>
    %33 = tpu.iota {dimensions = array<i32: 1>} : vector<200x128xi32>
    %c128_i32 = arith.constant 128 : i32
    %34 = vector.broadcast %c128_i32 : i32 to vector<200x128xi32>
    %35 = arith.addi %34, %33 : vector<200x128xi32>
    %36 = vector.broadcast %21 : vector<200x1xi32> to vector<200x128xi32>
    %37 = arith.cmpi eq, %35, %36 : vector<200x128xi32>
    %38 = arith.extui %37 : vector<200x128xi1> to vector<200x128xi32>
    %39 = arith.sitofp %38 : vector<200x128xi32> to vector<200x128xf32>
    %c128 = arith.constant 128 : index
    %c0_12 = arith.constant 0 : index
    %40 = vector.load %arg3[%c128, %c0_12] : memref<484x32xf32, #tpu.memory_space<vmem>>, vector<128x32xf32>
    %cst_13 = arith.constant dense<0.000000e+00> : vector<200x32xf32>
    %41 = tpu.matmul %39, %40, %cst_13 {dimension_numbers = #tpu.dot_dimension_numbers<[1], [0], [0], [1], [0, 0, 1, 1], [], []>} : vector<200x128xf32>, vector<128x32xf32>, vector<200x32xf32> -> vector<200x32xf32>
    %42 = arith.addf %32, %41 : vector<200x32xf32>
    %43 = tpu.iota {dimensions = array<i32: 1>} : vector<200x128xi32>
    %c256_i32 = arith.constant 256 : i32
    %44 = vector.broadcast %c256_i32 : i32 to vector<200x128xi32>
    %45 = arith.addi %44, %43 : vector<200x128xi32>
    %46 = vector.broadcast %21 : vector<200x1xi32> to vector<200x128xi32>
    %47 = arith.cmpi eq, %45, %46 : vector<200x128xi32>
    %48 = arith.extui %47 : vector<200x128xi1> to vector<200x128xi32>
    %49 = arith.sitofp %48 : vector<200x128xi32> to vector<200x128xf32>
    %c256 = arith.constant 256 : index
    %c0_14 = arith.constant 0 : index
    %50 = vector.load %arg3[%c256, %c0_14] : memref<484x32xf32, #tpu.memory_space<vmem>>, vector<128x32xf32>
    %cst_15 = arith.constant dense<0.000000e+00> : vector<200x32xf32>
    %51 = tpu.matmul %49, %50, %cst_15 {dimension_numbers = #tpu.dot_dimension_numbers<[1], [0], [0], [1], [0, 0, 1, 1], [], []>} : vector<200x128xf32>, vector<128x32xf32>, vector<200x32xf32> -> vector<200x32xf32>
    %52 = arith.addf %42, %51 : vector<200x32xf32>
    %53 = tpu.iota {dimensions = array<i32: 1>} : vector<200x100xi32>
    %c384_i32 = arith.constant 384 : i32
    %54 = vector.broadcast %c384_i32 : i32 to vector<200x100xi32>
    %55 = arith.addi %54, %53 : vector<200x100xi32>
    %56 = vector.broadcast %21 : vector<200x1xi32> to vector<200x100xi32>
    %57 = arith.cmpi eq, %55, %56 : vector<200x100xi32>
    %58 = arith.extui %57 : vector<200x100xi1> to vector<200x100xi32>
    %59 = arith.sitofp %58 : vector<200x100xi32> to vector<200x100xf32>
    %c384 = arith.constant 384 : index
    %c0_16 = arith.constant 0 : index
    %60 = vector.load %arg3[%c384, %c0_16] : memref<484x32xf32, #tpu.memory_space<vmem>>, vector<100x32xf32>
    %cst_17 = arith.constant dense<0.000000e+00> : vector<200x32xf32>
    %61 = tpu.matmul %59, %60, %cst_17 {dimension_numbers = #tpu.dot_dimension_numbers<[1], [0], [0], [1], [0, 0, 1, 1], [], []>} : vector<200x100xf32>, vector<100x32xf32>, vector<200x32xf32> -> vector<200x32xf32>
    %62 = arith.addf %52, %61 : vector<200x32xf32>
    %c0_18 = arith.constant 0 : index
    %c0_19 = arith.constant 0 : index
    %63 = vector.load %arg6[%c0_18, %c0_19] : memref<200x8xf32, #tpu.memory_space<vmem>>, vector<200x8xf32>
    %cst_20 = arith.constant dense<0.000000e+00> : vector<200x32xf32>
    %64 = tpu.matmul %63, %20, %cst_20 {dimension_numbers = #tpu.dot_dimension_numbers<[1], [0], [0], [1], [0, 0, 1, 1], [], []>} : vector<200x8xf32>, vector<8x32xf32>, vector<200x32xf32> -> vector<200x32xf32>
    %65 = arith.mulf %62, %64 : vector<200x32xf32>
    %cst_21 = arith.constant dense<0.000000e+00> : vector<200xf32>
    %66 = vector.multi_reduction <add>, %65, %cst_21 [1] : vector<200x32xf32> to vector<200xf32>
    %67 = vector.shape_cast %66 : vector<200xf32> to vector<200x1xf32>
    %68 = vector.shape_cast %67 : vector<200x1xf32> to vector<1x200x1xf32>
    %cst_22 = arith.constant dense<0xFF800000> : vector<1xf32>
    %69 = vector.multi_reduction <maximumf>, %68, %cst_22 [1, 2] : vector<1x200x1xf32> to vector<1xf32>
    %70 = vector.shape_cast %69 : vector<1xf32> to vector<1x1x1xf32>
    %71 = vector.extract %70[0, 0, 0] : f32 from vector<1x1x1xf32>
    %72 = vector.broadcast %71 : f32 to vector<1x1xf32>
    %73 = vector.broadcast %72 : vector<1x1xf32> to vector<200x1xf32>
    %74 = arith.subf %67, %73 : vector<200x1xf32>
    %75 = math.exp %74 : vector<200x1xf32>
    %c0_23 = arith.constant 0 : index
    %c0_24 = arith.constant 0 : index
    %76 = vector.load %arg7[%c0_23, %c0_24] : memref<8x200xf32, #tpu.memory_space<vmem>>, vector<8x200xf32>
    %77 = vector.broadcast %75 : vector<200x1xf32> to vector<200x32xf32>
    %78 = arith.mulf %77, %62 : vector<200x32xf32>
    %cst_25 = arith.constant dense<0.000000e+00> : vector<8x32xf32>
    %79 = tpu.matmul %76, %78, %cst_25 {dimension_numbers = #tpu.dot_dimension_numbers<[1], [0], [0], [1], [0, 0, 1, 1], [], []>} : vector<8x200xf32>, vector<200x32xf32>, vector<8x32xf32> -> vector<8x32xf32>
    %c0_26 = arith.constant 0 : index
    %c0_27 = arith.constant 0 : index
    %80 = vector.load %arg7[%c0_26, %c0_27] : memref<8x200xf32, #tpu.memory_space<vmem>>, vector<8x200xf32>
    %cst_28 = arith.constant dense<0.000000e+00> : vector<8x1xf32>
    %81 = tpu.matmul %80, %75, %cst_28 {dimension_numbers = #tpu.dot_dimension_numbers<[1], [0], [0], [1], [0, 0, 1, 1], [], []>} : vector<8x200xf32>, vector<200x1xf32>, vector<8x1xf32> -> vector<8x1xf32>
    %82 = tpu.reciprocal %81 {approx = true} : vector<8x1xf32> -> vector<8x1xf32>
    %83 = vector.broadcast %82 : vector<8x1xf32> to vector<8x32xf32>
    %84 = arith.mulf %79, %83 : vector<8x32xf32>
    %c0_29 = arith.constant 0 : index
    %c0_30 = arith.constant 0 : index
    %85 = vector.load %arg9[%c0_29, %c0_30] : memref<32x32xf32, #tpu.memory_space<vmem>>, vector<32x32xf32>
    %cst_31 = arith.constant dense<0.000000e+00> : vector<8x32xf32>
    %86 = tpu.matmul %84, %85, %cst_31 {dimension_numbers = #tpu.dot_dimension_numbers<[1], [0], [0], [1], [0, 0, 1, 1], [], []>} : vector<8x32xf32>, vector<32x32xf32>, vector<8x32xf32> -> vector<8x32xf32>
    %c0_32 = arith.constant 0 : index
    %c0_33 = arith.constant 0 : index
    %87 = vector.load %arg10[%c0_32, %c0_33] : memref<32x32xf32, #tpu.memory_space<vmem>>, vector<32x32xf32>
    %cst_34 = arith.constant dense<0.000000e+00> : vector<8x32xf32>
    %88 = tpu.matmul %20, %87, %cst_34 {dimension_numbers = #tpu.dot_dimension_numbers<[1], [0], [0], [1], [0, 0, 1, 1], [], []>} : vector<8x32xf32>, vector<32x32xf32>, vector<8x32xf32> -> vector<8x32xf32>
    %89 = arith.addf %86, %88 : vector<8x32xf32>
    %c0_35 = arith.constant 0 : index
    %c0_36 = arith.constant 0 : index
    %90 = vector.load %arg11[%c0_35, %c0_36] : memref<1x32xf32, #tpu.memory_space<vmem>>, vector<1x32xf32>
    %91 = vector.broadcast %90 : vector<1x32xf32> to vector<8x32xf32>
    %92 = arith.addf %89, %91 : vector<8x32xf32>
    %93 = math.tanh %92 : vector<8x32xf32>
    %94 = arith.mulf %15, %93 : vector<8x32xf32>
    %95 = arith.addf %20, %94 : vector<8x32xf32>
    %96 = arith.subf %1, %95 : vector<8x32xf32>
    %97 = arith.mulf %14, %96 : vector<8x32xf32>
    %98 = arith.addf %95, %97 : vector<8x32xf32>
    %c0_37 = arith.constant 0 : index
    %c0_38 = arith.constant 0 : index
    %99 = vector.load %arg12[%c0_37, %c0_38] : memref<8x32xf32, #tpu.memory_space<vmem>>, vector<8x32xf32>
    tpu.vector_store %arg12[%c0_37, %c0_38], %98 {strides = array<i32>} : memref<8x32xf32, #tpu.memory_space<vmem>>, vector<8x32xf32>,
    %c0_39 = arith.constant 0 : index
    %c0_40 = arith.constant 0 : index
    %100 = vector.load %arg8[%c0_39, %c0_40] : memref<8x200xf32, #tpu.memory_space<vmem>>, vector<8x200xf32>
    %cst_41 = arith.constant dense<0.000000e+00> : vector<8x32xf32>
    %101 = tpu.matmul %100, %62, %cst_41 {dimension_numbers = #tpu.dot_dimension_numbers<[1], [0], [0], [1], [0, 0, 1, 1], [], []>} : vector<8x200xf32>, vector<200x32xf32>, vector<8x32xf32> -> vector<8x32xf32>
    %102 = arith.mulf %15, %101 : vector<8x32xf32>
    %cst_42 = arith.constant 1.000000e+00 : f32
    %103 = vector.broadcast %cst_42 : f32 to vector<8x32xf32>
    %104 = arith.subf %103, %15 : vector<8x32xf32>
    %105 = arith.mulf %104, %98 : vector<8x32xf32>
    %106 = arith.addf %102, %105 : vector<8x32xf32>
    %c0_43 = arith.constant 0 : index
    %c0_44 = arith.constant 0 : index
    %107 = vector.load %arg3[%c0_43, %c0_44] : memref<484x32xf32, #tpu.memory_space<vmem>>, vector<128x32xf32>
    %108 = tpu.iota {dimensions = array<i32: 0>} : vector<128x1xi32>
    %c0_i32_45 = arith.constant 0 : i32
    %109 = vector.broadcast %c0_i32_45 : i32 to vector<128x1xi32>
    %110 = arith.addi %109, %108 : vector<128x1xi32>
    %c0_46 = arith.constant 0 : index
    %c0_47 = arith.constant 0 : index
    %111 = memref.load %arg5[%c0_46, %c0_47] : memref<8x1xi32, #tpu.memory_space<smem>>
    %112 = vector.broadcast %111 : i32 to vector<128x1xi32>
    %113 = arith.cmpi eq, %110, %112 : vector<128x1xi32>
    %114 = vector.extract_strided_slice %106 {offsets = [0, 0], sizes = [1, 32], strides = [1, 1]} : vector<8x32xf32> to vector<1x32xf32>
    %115 = vector.shape_cast %113 : vector<128x1xi1> to vector<128x1xi1>
    %116 = vector.broadcast %115 : vector<128x1xi1> to vector<128x32xi1>
    %117 = vector.shape_cast %114 : vector<1x32xf32> to vector<1x32xf32>
    %118 = vector.broadcast %117 : vector<1x32xf32> to vector<128x32xf32>
    %119 = arith.select %116, %118, %107 : vector<128x32xi1>, vector<128x32xf32>
    %c1 = arith.constant 1 : index
    %c0_48 = arith.constant 0 : index
    %120 = memref.load %arg5[%c1, %c0_48] : memref<8x1xi32, #tpu.memory_space<smem>>
    %121 = vector.broadcast %120 : i32 to vector<128x1xi32>
    %122 = arith.cmpi eq, %110, %121 : vector<128x1xi32>
    %123 = vector.extract_strided_slice %106 {offsets = [1, 0], sizes = [1, 32], strides = [1, 1]} : vector<8x32xf32> to vector<1x32xf32>
    %124 = vector.shape_cast %122 : vector<128x1xi1> to vector<128x1xi1>
    %125 = vector.broadcast %124 : vector<128x1xi1> to vector<128x32xi1>
    %126 = vector.shape_cast %123 : vector<1x32xf32> to vector<1x32xf32>
    %127 = vector.broadcast %126 : vector<1x32xf32> to vector<128x32xf32>
    %128 = arith.select %125, %127, %119 : vector<128x32xi1>, vector<128x32xf32>
    %c2 = arith.constant 2 : index
    %c0_49 = arith.constant 0 : index
    %129 = memref.load %arg5[%c2, %c0_49] : memref<8x1xi32, #tpu.memory_space<smem>>
    %130 = vector.broadcast %129 : i32 to vector<128x1xi32>
    %131 = arith.cmpi eq, %110, %130 : vector<128x1xi32>
    %132 = vector.extract_strided_slice %106 {offsets = [2, 0], sizes = [1, 32], strides = [1, 1]} : vector<8x32xf32> to vector<1x32xf32>
    %133 = vector.shape_cast %131 : vector<128x1xi1> to vector<128x1xi1>
    %134 = vector.broadcast %133 : vector<128x1xi1> to vector<128x32xi1>
    %135 = vector.shape_cast %132 : vector<1x32xf32> to vector<1x32xf32>
    %136 = vector.broadcast %135 : vector<1x32xf32> to vector<128x32xf32>
    %137 = arith.select %134, %136, %128 : vector<128x32xi1>, vector<128x32xf32>
    %c3 = arith.constant 3 : index
    %c0_50 = arith.constant 0 : index
    %138 = memref.load %arg5[%c3, %c0_50] : memref<8x1xi32, #tpu.memory_space<smem>>
    %139 = vector.broadcast %138 : i32 to vector<128x1xi32>
    %140 = arith.cmpi eq, %110, %139 : vector<128x1xi32>
    %141 = vector.extract_strided_slice %106 {offsets = [3, 0], sizes = [1, 32], strides = [1, 1]} : vector<8x32xf32> to vector<1x32xf32>
    %142 = vector.shape_cast %140 : vector<128x1xi1> to vector<128x1xi1>
    %143 = vector.broadcast %142 : vector<128x1xi1> to vector<128x32xi1>
    %144 = vector.shape_cast %141 : vector<1x32xf32> to vector<1x32xf32>
    %145 = vector.broadcast %144 : vector<1x32xf32> to vector<128x32xf32>
    %146 = arith.select %143, %145, %137 : vector<128x32xi1>, vector<128x32xf32>
    %c4 = arith.constant 4 : index
    %c0_51 = arith.constant 0 : index
    %147 = memref.load %arg5[%c4, %c0_51] : memref<8x1xi32, #tpu.memory_space<smem>>
    %148 = vector.broadcast %147 : i32 to vector<128x1xi32>
    %149 = arith.cmpi eq, %110, %148 : vector<128x1xi32>
    %150 = vector.extract_strided_slice %106 {offsets = [4, 0], sizes = [1, 32], strides = [1, 1]} : vector<8x32xf32> to vector<1x32xf32>
    %151 = vector.shape_cast %149 : vector<128x1xi1> to vector<128x1xi1>
    %152 = vector.broadcast %151 : vector<128x1xi1> to vector<128x32xi1>
    %153 = vector.shape_cast %150 : vector<1x32xf32> to vector<1x32xf32>
    %154 = vector.broadcast %153 : vector<1x32xf32> to vector<128x32xf32>
    %155 = arith.select %152, %154, %146 : vector<128x32xi1>, vector<128x32xf32>
    %c5 = arith.constant 5 : index
    %c0_52 = arith.constant 0 : index
    %156 = memref.load %arg5[%c5, %c0_52] : memref<8x1xi32, #tpu.memory_space<smem>>
    %157 = vector.broadcast %156 : i32 to vector<128x1xi32>
    %158 = arith.cmpi eq, %110, %157 : vector<128x1xi32>
    %159 = vector.extract_strided_slice %106 {offsets = [5, 0], sizes = [1, 32], strides = [1, 1]} : vector<8x32xf32> to vector<1x32xf32>
    %160 = vector.shape_cast %158 : vector<128x1xi1> to vector<128x1xi1>
    %161 = vector.broadcast %160 : vector<128x1xi1> to vector<128x32xi1>
    %162 = vector.shape_cast %159 : vector<1x32xf32> to vector<1x32xf32>
    %163 = vector.broadcast %162 : vector<1x32xf32> to vector<128x32xf32>
    %164 = arith.select %161, %163, %155 : vector<128x32xi1>, vector<128x32xf32>
    %c6 = arith.constant 6 : index
    %c0_53 = arith.constant 0 : index
    %165 = memref.load %arg5[%c6, %c0_53] : memref<8x1xi32, #tpu.memory_space<smem>>
    %166 = vector.broadcast %165 : i32 to vector<128x1xi32>
    %167 = arith.cmpi eq, %110, %166 : vector<128x1xi32>
    %168 = vector.extract_strided_slice %106 {offsets = [6, 0], sizes = [1, 32], strides = [1, 1]} : vector<8x32xf32> to vector<1x32xf32>
    %169 = vector.shape_cast %167 : vector<128x1xi1> to vector<128x1xi1>
    %170 = vector.broadcast %169 : vector<128x1xi1> to vector<128x32xi1>
    %171 = vector.shape_cast %168 : vector<1x32xf32> to vector<1x32xf32>
    %172 = vector.broadcast %171 : vector<1x32xf32> to vector<128x32xf32>
    %173 = arith.select %170, %172, %164 : vector<128x32xi1>, vector<128x32xf32>
    %c7 = arith.constant 7 : index
    %c0_54 = arith.constant 0 : index
    %174 = memref.load %arg5[%c7, %c0_54] : memref<8x1xi32, #tpu.memory_space<smem>>
    %175 = vector.broadcast %174 : i32 to vector<128x1xi32>
    %176 = arith.cmpi eq, %110, %175 : vector<128x1xi32>
    %177 = vector.extract_strided_slice %106 {offsets = [7, 0], sizes = [1, 32], strides = [1, 1]} : vector<8x32xf32> to vector<1x32xf32>
    %178 = vector.shape_cast %176 : vector<128x1xi1> to vector<128x1xi1>
    %179 = vector.broadcast %178 : vector<128x1xi1> to vector<128x32xi1>
    %180 = vector.shape_cast %177 : vector<1x32xf32> to vector<1x32xf32>
    %181 = vector.broadcast %180 : vector<1x32xf32> to vector<128x32xf32>
    %182 = arith.select %179, %181, %173 : vector<128x32xi1>, vector<128x32xf32>
    %c0_55 = arith.constant 0 : index
    %c0_56 = arith.constant 0 : index
    %183 = vector.load %arg13[%c0_55, %c0_56] : memref<484x32xf32, #tpu.memory_space<vmem>>, vector<128x32xf32>
    tpu.vector_store %arg13[%c0_55, %c0_56], %182 {strides = array<i32>} : memref<484x32xf32, #tpu.memory_space<vmem>>, vector<128x32xf32>,
    %c128_57 = arith.constant 128 : index
    %c0_58 = arith.constant 0 : index
    %184 = vector.load %arg3[%c128_57, %c0_58] : memref<484x32xf32, #tpu.memory_space<vmem>>, vector<128x32xf32>
    %185 = tpu.iota {dimensions = array<i32: 0>} : vector<128x1xi32>
    %c128_i32_59 = arith.constant 128 : i32
    %186 = vector.broadcast %c128_i32_59 : i32 to vector<128x1xi32>
    %187 = arith.addi %186, %185 : vector<128x1xi32>
    %c0_60 = arith.constant 0 : index
    %c0_61 = arith.constant 0 : index
    %188 = memref.load %arg5[%c0_60, %c0_61] : memref<8x1xi32, #tpu.memory_space<smem>>
    %189 = vector.broadcast %188 : i32 to vector<128x1xi32>
    %190 = arith.cmpi eq, %187, %189 : vector<128x1xi32>
    %191 = vector.extract_strided_slice %106 {offsets = [0, 0], sizes = [1, 32], strides = [1, 1]} : vector<8x32xf32> to vector<1x32xf32>
    %192 = vector.shape_cast %190 : vector<128x1xi1> to vector<128x1xi1>
    %193 = vector.broadcast %192 : vector<128x1xi1> to vector<128x32xi1>
    %194 = vector.shape_cast %191 : vector<1x32xf32> to vector<1x32xf32>
    %195 = vector.broadcast %194 : vector<1x32xf32> to vector<128x32xf32>
    %196 = arith.select %193, %195, %184 : vector<128x32xi1>, vector<128x32xf32>
    %c1_62 = arith.constant 1 : index
    %c0_63 = arith.constant 0 : index
    %197 = memref.load %arg5[%c1_62, %c0_63] : memref<8x1xi32, #tpu.memory_space<smem>>
    %198 = vector.broadcast %197 : i32 to vector<128x1xi32>
    %199 = arith.cmpi eq, %187, %198 : vector<128x1xi32>
    %200 = vector.extract_strided_slice %106 {offsets = [1, 0], sizes = [1, 32], strides = [1, 1]} : vector<8x32xf32> to vector<1x32xf32>
    %201 = vector.shape_cast %199 : vector<128x1xi1> to vector<128x1xi1>
    %202 = vector.broadcast %201 : vector<128x1xi1> to vector<128x32xi1>
    %203 = vector.shape_cast %200 : vector<1x32xf32> to vector<1x32xf32>
    %204 = vector.broadcast %203 : vector<1x32xf32> to vector<128x32xf32>
    %205 = arith.select %202, %204, %196 : vector<128x32xi1>, vector<128x32xf32>
    %c2_64 = arith.constant 2 : index
    %c0_65 = arith.constant 0 : index
    %206 = memref.load %arg5[%c2_64, %c0_65] : memref<8x1xi32, #tpu.memory_space<smem>>
    %207 = vector.broadcast %206 : i32 to vector<128x1xi32>
    %208 = arith.cmpi eq, %187, %207 : vector<128x1xi32>
    %209 = vector.extract_strided_slice %106 {offsets = [2, 0], sizes = [1, 32], strides = [1, 1]} : vector<8x32xf32> to vector<1x32xf32>
    %210 = vector.shape_cast %208 : vector<128x1xi1> to vector<128x1xi1>
    %211 = vector.broadcast %210 : vector<128x1xi1> to vector<128x32xi1>
    %212 = vector.shape_cast %209 : vector<1x32xf32> to vector<1x32xf32>
    %213 = vector.broadcast %212 : vector<1x32xf32> to vector<128x32xf32>
    %214 = arith.select %211, %213, %205 : vector<128x32xi1>, vector<128x32xf32>
    %c3_66 = arith.constant 3 : index
    %c0_67 = arith.constant 0 : index
    %215 = memref.load %arg5[%c3_66, %c0_67] : memref<8x1xi32, #tpu.memory_space<smem>>
    %216 = vector.broadcast %215 : i32 to vector<128x1xi32>
    %217 = arith.cmpi eq, %187, %216 : vector<128x1xi32>
    %218 = vector.extract_strided_slice %106 {offsets = [3, 0], sizes = [1, 32], strides = [1, 1]} : vector<8x32xf32> to vector<1x32xf32>
    %219 = vector.shape_cast %217 : vector<128x1xi1> to vector<128x1xi1>
    %220 = vector.broadcast %219 : vector<128x1xi1> to vector<128x32xi1>
    %221 = vector.shape_cast %218 : vector<1x32xf32> to vector<1x32xf32>
    %222 = vector.broadcast %221 : vector<1x32xf32> to vector<128x32xf32>
    %223 = arith.select %220, %222, %214 : vector<128x32xi1>, vector<128x32xf32>
    %c4_68 = arith.constant 4 : index
    %c0_69 = arith.constant 0 : index
    %224 = memref.load %arg5[%c4_68, %c0_69] : memref<8x1xi32, #tpu.memory_space<smem>>
    %225 = vector.broadcast %224 : i32 to vector<128x1xi32>
    %226 = arith.cmpi eq, %187, %225 : vector<128x1xi32>
    %227 = vector.extract_strided_slice %106 {offsets = [4, 0], sizes = [1, 32], strides = [1, 1]} : vector<8x32xf32> to vector<1x32xf32>
    %228 = vector.shape_cast %226 : vector<128x1xi1> to vector<128x1xi1>
    %229 = vector.broadcast %228 : vector<128x1xi1> to vector<128x32xi1>
    %230 = vector.shape_cast %227 : vector<1x32xf32> to vector<1x32xf32>
    %231 = vector.broadcast %230 : vector<1x32xf32> to vector<128x32xf32>
    %232 = arith.select %229, %231, %223 : vector<128x32xi1>, vector<128x32xf32>
    %c5_70 = arith.constant 5 : index
    %c0_71 = arith.constant 0 : index
    %233 = memref.load %arg5[%c5_70, %c0_71] : memref<8x1xi32, #tpu.memory_space<smem>>
    %234 = vector.broadcast %233 : i32 to vector<128x1xi32>
    %235 = arith.cmpi eq, %187, %234 : vector<128x1xi32>
    %236 = vector.extract_strided_slice %106 {offsets = [5, 0], sizes = [1, 32], strides = [1, 1]} : vector<8x32xf32> to vector<1x32xf32>
    %237 = vector.shape_cast %235 : vector<128x1xi1> to vector<128x1xi1>
    %238 = vector.broadcast %237 : vector<128x1xi1> to vector<128x32xi1>
    %239 = vector.shape_cast %236 : vector<1x32xf32> to vector<1x32xf32>
    %240 = vector.broadcast %239 : vector<1x32xf32> to vector<128x32xf32>
    %241 = arith.select %238, %240, %232 : vector<128x32xi1>, vector<128x32xf32>
    %c6_72 = arith.constant 6 : index
    %c0_73 = arith.constant 0 : index
    %242 = memref.load %arg5[%c6_72, %c0_73] : memref<8x1xi32, #tpu.memory_space<smem>>
    %243 = vector.broadcast %242 : i32 to vector<128x1xi32>
    %244 = arith.cmpi eq, %187, %243 : vector<128x1xi32>
    %245 = vector.extract_strided_slice %106 {offsets = [6, 0], sizes = [1, 32], strides = [1, 1]} : vector<8x32xf32> to vector<1x32xf32>
    %246 = vector.shape_cast %244 : vector<128x1xi1> to vector<128x1xi1>
    %247 = vector.broadcast %246 : vector<128x1xi1> to vector<128x32xi1>
    %248 = vector.shape_cast %245 : vector<1x32xf32> to vector<1x32xf32>
    %249 = vector.broadcast %248 : vector<1x32xf32> to vector<128x32xf32>
    %250 = arith.select %247, %249, %241 : vector<128x32xi1>, vector<128x32xf32>
    %c7_74 = arith.constant 7 : index
    %c0_75 = arith.constant 0 : index
    %251 = memref.load %arg5[%c7_74, %c0_75] : memref<8x1xi32, #tpu.memory_space<smem>>
    %252 = vector.broadcast %251 : i32 to vector<128x1xi32>
    %253 = arith.cmpi eq, %187, %252 : vector<128x1xi32>
    %254 = vector.extract_strided_slice %106 {offsets = [7, 0], sizes = [1, 32], strides = [1, 1]} : vector<8x32xf32> to vector<1x32xf32>
    %255 = vector.shape_cast %253 : vector<128x1xi1> to vector<128x1xi1>
    %256 = vector.broadcast %255 : vector<128x1xi1> to vector<128x32xi1>
    %257 = vector.shape_cast %254 : vector<1x32xf32> to vector<1x32xf32>
    %258 = vector.broadcast %257 : vector<1x32xf32> to vector<128x32xf32>
    %259 = arith.select %256, %258, %250 : vector<128x32xi1>, vector<128x32xf32>
    %c128_76 = arith.constant 128 : index
    %c0_77 = arith.constant 0 : index
    %260 = vector.load %arg13[%c128_76, %c0_77] : memref<484x32xf32, #tpu.memory_space<vmem>>, vector<128x32xf32>
    tpu.vector_store %arg13[%c128_76, %c0_77], %259 {strides = array<i32>} : memref<484x32xf32, #tpu.memory_space<vmem>>, vector<128x32xf32>,
    %c256_78 = arith.constant 256 : index
    %c0_79 = arith.constant 0 : index
    %261 = vector.load %arg3[%c256_78, %c0_79] : memref<484x32xf32, #tpu.memory_space<vmem>>, vector<128x32xf32>
    %262 = tpu.iota {dimensions = array<i32: 0>} : vector<128x1xi32>
    %c256_i32_80 = arith.constant 256 : i32
    %263 = vector.broadcast %c256_i32_80 : i32 to vector<128x1xi32>
    %264 = arith.addi %263, %262 : vector<128x1xi32>
    %c0_81 = arith.constant 0 : index
    %c0_82 = arith.constant 0 : index
    %265 = memref.load %arg5[%c0_81, %c0_82] : memref<8x1xi32, #tpu.memory_space<smem>>
    %266 = vector.broadcast %265 : i32 to vector<128x1xi32>
    %267 = arith.cmpi eq, %264, %266 : vector<128x1xi32>
    %268 = vector.extract_strided_slice %106 {offsets = [0, 0], sizes = [1, 32], strides = [1, 1]} : vector<8x32xf32> to vector<1x32xf32>
    %269 = vector.shape_cast %267 : vector<128x1xi1> to vector<128x1xi1>
    %270 = vector.broadcast %269 : vector<128x1xi1> to vector<128x32xi1>
    %271 = vector.shape_cast %268 : vector<1x32xf32> to vector<1x32xf32>
    %272 = vector.broadcast %271 : vector<1x32xf32> to vector<128x32xf32>
    %273 = arith.select %270, %272, %261 : vector<128x32xi1>, vector<128x32xf32>
    %c1_83 = arith.constant 1 : index
    %c0_84 = arith.constant 0 : index
    %274 = memref.load %arg5[%c1_83, %c0_84] : memref<8x1xi32, #tpu.memory_space<smem>>
    %275 = vector.broadcast %274 : i32 to vector<128x1xi32>
    %276 = arith.cmpi eq, %264, %275 : vector<128x1xi32>
    %277 = vector.extract_strided_slice %106 {offsets = [1, 0], sizes = [1, 32], strides = [1, 1]} : vector<8x32xf32> to vector<1x32xf32>
    %278 = vector.shape_cast %276 : vector<128x1xi1> to vector<128x1xi1>
    %279 = vector.broadcast %278 : vector<128x1xi1> to vector<128x32xi1>
    %280 = vector.shape_cast %277 : vector<1x32xf32> to vector<1x32xf32>
    %281 = vector.broadcast %280 : vector<1x32xf32> to vector<128x32xf32>
    %282 = arith.select %279, %281, %273 : vector<128x32xi1>, vector<128x32xf32>
    %c2_85 = arith.constant 2 : index
    %c0_86 = arith.constant 0 : index
    %283 = memref.load %arg5[%c2_85, %c0_86] : memref<8x1xi32, #tpu.memory_space<smem>>
    %284 = vector.broadcast %283 : i32 to vector<128x1xi32>
    %285 = arith.cmpi eq, %264, %284 : vector<128x1xi32>
    %286 = vector.extract_strided_slice %106 {offsets = [2, 0], sizes = [1, 32], strides = [1, 1]} : vector<8x32xf32> to vector<1x32xf32>
    %287 = vector.shape_cast %285 : vector<128x1xi1> to vector<128x1xi1>
    %288 = vector.broadcast %287 : vector<128x1xi1> to vector<128x32xi1>
    %289 = vector.shape_cast %286 : vector<1x32xf32> to vector<1x32xf32>
    %290 = vector.broadcast %289 : vector<1x32xf32> to vector<128x32xf32>
    %291 = arith.select %288, %290, %282 : vector<128x32xi1>, vector<128x32xf32>
    %c3_87 = arith.constant 3 : index
    %c0_88 = arith.constant 0 : index
    %292 = memref.load %arg5[%c3_87, %c0_88] : memref<8x1xi32, #tpu.memory_space<smem>>
    %293 = vector.broadcast %292 : i32 to vector<128x1xi32>
    %294 = arith.cmpi eq, %264, %293 : vector<128x1xi32>
    %295 = vector.extract_strided_slice %106 {offsets = [3, 0], sizes = [1, 32], strides = [1, 1]} : vector<8x32xf32> to vector<1x32xf32>
    %296 = vector.shape_cast %294 : vector<128x1xi1> to vector<128x1xi1>
    %297 = vector.broadcast %296 : vector<128x1xi1> to vector<128x32xi1>
    %298 = vector.shape_cast %295 : vector<1x32xf32> to vector<1x32xf32>
    %299 = vector.broadcast %298 : vector<1x32xf32> to vector<128x32xf32>
    %300 = arith.select %297, %299, %291 : vector<128x32xi1>, vector<128x32xf32>
    %c4_89 = arith.constant 4 : index
    %c0_90 = arith.constant 0 : index
    %301 = memref.load %arg5[%c4_89, %c0_90] : memref<8x1xi32, #tpu.memory_space<smem>>
    %302 = vector.broadcast %301 : i32 to vector<128x1xi32>
    %303 = arith.cmpi eq, %264, %302 : vector<128x1xi32>
    %304 = vector.extract_strided_slice %106 {offsets = [4, 0], sizes = [1, 32], strides = [1, 1]} : vector<8x32xf32> to vector<1x32xf32>
    %305 = vector.shape_cast %303 : vector<128x1xi1> to vector<128x1xi1>
    %306 = vector.broadcast %305 : vector<128x1xi1> to vector<128x32xi1>
    %307 = vector.shape_cast %304 : vector<1x32xf32> to vector<1x32xf32>
    %308 = vector.broadcast %307 : vector<1x32xf32> to vector<128x32xf32>
    %309 = arith.select %306, %308, %300 : vector<128x32xi1>, vector<128x32xf32>
    %c5_91 = arith.constant 5 : index
    %c0_92 = arith.constant 0 : index
    %310 = memref.load %arg5[%c5_91, %c0_92] : memref<8x1xi32, #tpu.memory_space<smem>>
    %311 = vector.broadcast %310 : i32 to vector<128x1xi32>
    %312 = arith.cmpi eq, %264, %311 : vector<128x1xi32>
    %313 = vector.extract_strided_slice %106 {offsets = [5, 0], sizes = [1, 32], strides = [1, 1]} : vector<8x32xf32> to vector<1x32xf32>
    %314 = vector.shape_cast %312 : vector<128x1xi1> to vector<128x1xi1>
    %315 = vector.broadcast %314 : vector<128x1xi1> to vector<128x32xi1>
    %316 = vector.shape_cast %313 : vector<1x32xf32> to vector<1x32xf32>
    %317 = vector.broadcast %316 : vector<1x32xf32> to vector<128x32xf32>
    %318 = arith.select %315, %317, %309 : vector<128x32xi1>, vector<128x32xf32>
    %c6_93 = arith.constant 6 : index
    %c0_94 = arith.constant 0 : index
    %319 = memref.load %arg5[%c6_93, %c0_94] : memref<8x1xi32, #tpu.memory_space<smem>>
    %320 = vector.broadcast %319 : i32 to vector<128x1xi32>
    %321 = arith.cmpi eq, %264, %320 : vector<128x1xi32>
    %322 = vector.extract_strided_slice %106 {offsets = [6, 0], sizes = [1, 32], strides = [1, 1]} : vector<8x32xf32> to vector<1x32xf32>
    %323 = vector.shape_cast %321 : vector<128x1xi1> to vector<128x1xi1>
    %324 = vector.broadcast %323 : vector<128x1xi1> to vector<128x32xi1>
    %325 = vector.shape_cast %322 : vector<1x32xf32> to vector<1x32xf32>
    %326 = vector.broadcast %325 : vector<1x32xf32> to vector<128x32xf32>
    %327 = arith.select %324, %326, %318 : vector<128x32xi1>, vector<128x32xf32>
    %c7_95 = arith.constant 7 : index
    %c0_96 = arith.constant 0 : index
    %328 = memref.load %arg5[%c7_95, %c0_96] : memref<8x1xi32, #tpu.memory_space<smem>>
    %329 = vector.broadcast %328 : i32 to vector<128x1xi32>
    %330 = arith.cmpi eq, %264, %329 : vector<128x1xi32>
    %331 = vector.extract_strided_slice %106 {offsets = [7, 0], sizes = [1, 32], strides = [1, 1]} : vector<8x32xf32> to vector<1x32xf32>
    %332 = vector.shape_cast %330 : vector<128x1xi1> to vector<128x1xi1>
    %333 = vector.broadcast %332 : vector<128x1xi1> to vector<128x32xi1>
    %334 = vector.shape_cast %331 : vector<1x32xf32> to vector<1x32xf32>
    %335 = vector.broadcast %334 : vector<1x32xf32> to vector<128x32xf32>
    %336 = arith.select %333, %335, %327 : vector<128x32xi1>, vector<128x32xf32>
    %c256_97 = arith.constant 256 : index
    %c0_98 = arith.constant 0 : index
    %337 = vector.load %arg13[%c256_97, %c0_98] : memref<484x32xf32, #tpu.memory_space<vmem>>, vector<128x32xf32>
    tpu.vector_store %arg13[%c256_97, %c0_98], %336 {strides = array<i32>} : memref<484x32xf32, #tpu.memory_space<vmem>>, vector<128x32xf32>,
    %c384_99 = arith.constant 384 : index
    %c0_100 = arith.constant 0 : index
    %338 = vector.load %arg3[%c384_99, %c0_100] : memref<484x32xf32, #tpu.memory_space<vmem>>, vector<100x32xf32>
    %339 = tpu.iota {dimensions = array<i32: 0>} : vector<100x1xi32>
    %c384_i32_101 = arith.constant 384 : i32
    %340 = vector.broadcast %c384_i32_101 : i32 to vector<100x1xi32>
    %341 = arith.addi %340, %339 : vector<100x1xi32>
    %c0_102 = arith.constant 0 : index
    %c0_103 = arith.constant 0 : index
    %342 = memref.load %arg5[%c0_102, %c0_103] : memref<8x1xi32, #tpu.memory_space<smem>>
    %343 = vector.broadcast %342 : i32 to vector<100x1xi32>
    %344 = arith.cmpi eq, %341, %343 : vector<100x1xi32>
    %345 = vector.extract_strided_slice %106 {offsets = [0, 0], sizes = [1, 32], strides = [1, 1]} : vector<8x32xf32> to vector<1x32xf32>
    %346 = vector.shape_cast %344 : vector<100x1xi1> to vector<100x1xi1>
    %347 = vector.broadcast %346 : vector<100x1xi1> to vector<100x32xi1>
    %348 = vector.shape_cast %345 : vector<1x32xf32> to vector<1x32xf32>
    %349 = vector.broadcast %348 : vector<1x32xf32> to vector<100x32xf32>
    %350 = arith.select %347, %349, %338 : vector<100x32xi1>, vector<100x32xf32>
    %c1_104 = arith.constant 1 : index
    %c0_105 = arith.constant 0 : index
    %351 = memref.load %arg5[%c1_104, %c0_105] : memref<8x1xi32, #tpu.memory_space<smem>>
    %352 = vector.broadcast %351 : i32 to vector<100x1xi32>
    %353 = arith.cmpi eq, %341, %352 : vector<100x1xi32>
    %354 = vector.extract_strided_slice %106 {offsets = [1, 0], sizes = [1, 32], strides = [1, 1]} : vector<8x32xf32> to vector<1x32xf32>
    %355 = vector.shape_cast %353 : vector<100x1xi1> to vector<100x1xi1>
    %356 = vector.broadcast %355 : vector<100x1xi1> to vector<100x32xi1>
    %357 = vector.shape_cast %354 : vector<1x32xf32> to vector<1x32xf32>
    %358 = vector.broadcast %357 : vector<1x32xf32> to vector<100x32xf32>
    %359 = arith.select %356, %358, %350 : vector<100x32xi1>, vector<100x32xf32>
    %c2_106 = arith.constant 2 : index
    %c0_107 = arith.constant 0 : index
    %360 = memref.load %arg5[%c2_106, %c0_107] : memref<8x1xi32, #tpu.memory_space<smem>>
    %361 = vector.broadcast %360 : i32 to vector<100x1xi32>
    %362 = arith.cmpi eq, %341, %361 : vector<100x1xi32>
    %363 = vector.extract_strided_slice %106 {offsets = [2, 0], sizes = [1, 32], strides = [1, 1]} : vector<8x32xf32> to vector<1x32xf32>
    %364 = vector.shape_cast %362 : vector<100x1xi1> to vector<100x1xi1>
    %365 = vector.broadcast %364 : vector<100x1xi1> to vector<100x32xi1>
    %366 = vector.shape_cast %363 : vector<1x32xf32> to vector<1x32xf32>
    %367 = vector.broadcast %366 : vector<1x32xf32> to vector<100x32xf32>
    %368 = arith.select %365, %367, %359 : vector<100x32xi1>, vector<100x32xf32>
    %c3_108 = arith.constant 3 : index
    %c0_109 = arith.constant 0 : index
    %369 = memref.load %arg5[%c3_108, %c0_109] : memref<8x1xi32, #tpu.memory_space<smem>>
    %370 = vector.broadcast %369 : i32 to vector<100x1xi32>
    %371 = arith.cmpi eq, %341, %370 : vector<100x1xi32>
    %372 = vector.extract_strided_slice %106 {offsets = [3, 0], sizes = [1, 32], strides = [1, 1]} : vector<8x32xf32> to vector<1x32xf32>
    %373 = vector.shape_cast %371 : vector<100x1xi1> to vector<100x1xi1>
    %374 = vector.broadcast %373 : vector<100x1xi1> to vector<100x32xi1>
    %375 = vector.shape_cast %372 : vector<1x32xf32> to vector<1x32xf32>
    %376 = vector.broadcast %375 : vector<1x32xf32> to vector<100x32xf32>
    %377 = arith.select %374, %376, %368 : vector<100x32xi1>, vector<100x32xf32>
    %c4_110 = arith.constant 4 : index
    %c0_111 = arith.constant 0 : index
    %378 = memref.load %arg5[%c4_110, %c0_111] : memref<8x1xi32, #tpu.memory_space<smem>>
    %379 = vector.broadcast %378 : i32 to vector<100x1xi32>
    %380 = arith.cmpi eq, %341, %379 : vector<100x1xi32>
    %381 = vector.extract_strided_slice %106 {offsets = [4, 0], sizes = [1, 32], strides = [1, 1]} : vector<8x32xf32> to vector<1x32xf32>
    %382 = vector.shape_cast %380 : vector<100x1xi1> to vector<100x1xi1>
    %383 = vector.broadcast %382 : vector<100x1xi1> to vector<100x32xi1>
    %384 = vector.shape_cast %381 : vector<1x32xf32> to vector<1x32xf32>
    %385 = vector.broadcast %384 : vector<1x32xf32> to vector<100x32xf32>
    %386 = arith.select %383, %385, %377 : vector<100x32xi1>, vector<100x32xf32>
    %c5_112 = arith.constant 5 : index
    %c0_113 = arith.constant 0 : index
    %387 = memref.load %arg5[%c5_112, %c0_113] : memref<8x1xi32, #tpu.memory_space<smem>>
    %388 = vector.broadcast %387 : i32 to vector<100x1xi32>
    %389 = arith.cmpi eq, %341, %388 : vector<100x1xi32>
    %390 = vector.extract_strided_slice %106 {offsets = [5, 0], sizes = [1, 32], strides = [1, 1]} : vector<8x32xf32> to vector<1x32xf32>
    %391 = vector.shape_cast %389 : vector<100x1xi1> to vector<100x1xi1>
    %392 = vector.broadcast %391 : vector<100x1xi1> to vector<100x32xi1>
    %393 = vector.shape_cast %390 : vector<1x32xf32> to vector<1x32xf32>
    %394 = vector.broadcast %393 : vector<1x32xf32> to vector<100x32xf32>
    %395 = arith.select %392, %394, %386 : vector<100x32xi1>, vector<100x32xf32>
    %c6_114 = arith.constant 6 : index
    %c0_115 = arith.constant 0 : index
    %396 = memref.load %arg5[%c6_114, %c0_115] : memref<8x1xi32, #tpu.memory_space<smem>>
    %397 = vector.broadcast %396 : i32 to vector<100x1xi32>
    %398 = arith.cmpi eq, %341, %397 : vector<100x1xi32>
    %399 = vector.extract_strided_slice %106 {offsets = [6, 0], sizes = [1, 32], strides = [1, 1]} : vector<8x32xf32> to vector<1x32xf32>
    %400 = vector.shape_cast %398 : vector<100x1xi1> to vector<100x1xi1>
    %401 = vector.broadcast %400 : vector<100x1xi1> to vector<100x32xi1>
    %402 = vector.shape_cast %399 : vector<1x32xf32> to vector<1x32xf32>
    %403 = vector.broadcast %402 : vector<1x32xf32> to vector<100x32xf32>
    %404 = arith.select %401, %403, %395 : vector<100x32xi1>, vector<100x32xf32>
    %c7_116 = arith.constant 7 : index
    %c0_117 = arith.constant 0 : index
    %405 = memref.load %arg5[%c7_116, %c0_117] : memref<8x1xi32, #tpu.memory_space<smem>>
    %406 = vector.broadcast %405 : i32 to vector<100x1xi32>
    %407 = arith.cmpi eq, %341, %406 : vector<100x1xi32>
    %408 = vector.extract_strided_slice %106 {offsets = [7, 0], sizes = [1, 32], strides = [1, 1]} : vector<8x32xf32> to vector<1x32xf32>
    %409 = vector.shape_cast %407 : vector<100x1xi1> to vector<100x1xi1>
    %410 = vector.broadcast %409 : vector<100x1xi1> to vector<100x32xi1>
    %411 = vector.shape_cast %408 : vector<1x32xf32> to vector<1x32xf32>
    %412 = vector.broadcast %411 : vector<1x32xf32> to vector<100x32xf32>
    %413 = arith.select %410, %412, %404 : vector<100x32xi1>, vector<100x32xf32>
    %c384_118 = arith.constant 384 : index
    %c0_119 = arith.constant 0 : index
    %414 = vector.load %arg13[%c384_118, %c0_119] : memref<484x32xf32, #tpu.memory_space<vmem>>, vector<100x32xf32>
    tpu.vector_store %arg13[%c384_118, %c0_119], %413 {strides = array<i32>} : memref<484x32xf32, #tpu.memory_space<vmem>>, vector<100x32xf32>,
    return
  }
}

</mosaic_0001>

<bundles_post_ra>
// kernel: eq.15
= control target key start
LH: loop header
LB: loop body
LE: loop exit
PB: predicated region body
PF: predicated region fallthrough
CT: control target
= control target key end

     0   :  { %vm9_vm0 = vcmask 23552   ;;  %s79_s12 = smov 125   ;;  %s80_s13 = smov 75   ;;  %vm3_vm1 = vcmask 203776   ;;  %vm13_vm2 = vcmask 179200   ;;  %vm16_vm3 = vcmask 1048552   ;;  %s126_s0 = inlined_call_operand.vmem [shape: s32[8,25], index: 0, kind: input, shape index: {}]   ;;  %s127_s1 = inlined_call_operand.vmem [shape: s32[200], index: 1, kind: output, shape index: {}]  }
   0x1   :  { %v64_v0 = vld [vmem:[%s126_s0 + $0x5] sm:$0x1]   ;;  %v67_v3 = vld [vmem:[%s126_s0 + $0x3] sm:$0x1]   ;;  %v66_v4 = vld [vmem:[%s126_s0 + $0x4] sm:$0x1]  }
   0x2   :  { %v65_v1 = vld [vmem:[%s126_s0 + $0x5] sm:$0x1]   ;;  %26 = vrot.lane.b32.xlu1 %v67_v3, %s80_s13  ;;  %v68_v5 = vld [vmem:[%s126_s0 + $0x2] sm:$0x1]   ;;  %v2_v6 = vld [vmem:[%s126_s0] sm:$0x1]  }
   0x3   :  { %v10_v2 = vsel %vm9_vm0, %v65_v1, %v64_v0  ;;  %4 = vst.msk [vmem:[#allocation0] sm:$0x1] %vm3_vm1, %v2_v6   ;;  %s81_s20 = smov 100   ;;  %s82_s21 = smov 50   ;;  %v69_v7 = vld [vmem:[%s126_s0 + $0x7] sm:$0x1]  }
   0x4   :  { %11 = vrot.lane.b32.xlu0 %v10_v2, %s79_s12  ;;  %v70_v8 = vld [vmem:[%s126_s0 + $0x1] sm:$0x1]   ;;  %s83_s26 = smov 47   ;;  %s84_s27 = smov 25   ;;  %v71_v9 = vld [vmem:[%s126_s0 + $0x6] sm:$0x1]  }
   0x5   :  { %s85_s0 = smov 22   ;;  %vm22_vm4 = vcmask 1023776   ;;  %vm28_vm5 = vcmask 818776   ;;  %vm34_vm6 = vcmask 613776   ;;  %vm40_vm7 = vcmask 589176  }
   0x6   :  { %32 = vrot.lane.b32.xlu1 %v68_v5, %s82_s21  ;;  %vm47_vm8 = vcmask 408776   ;;  %vm53_vm9 = vcmask 384176  }
   0x8   :  { %20 = vrot.lane.b32.xlu0 %v66_v4, %s81_s20 }
   0xa   :  { %45 = vrot.lane.b32.xlu1 %v70_v8, %s84_s27 }
   0xc   :  { %38 = vrot.lane.b32.xlu0 %v69_v7, %s83_s26 }
  0x10   :  { %51 = vrot.lane.b32.xlu0 %v71_v9, %s85_s0 }
  0x74   :  { %v27_v11 = vpop.permute.xlu1 %26  }
  0x76   :  { %v12_v10 = vpop.permute.xlu0 %11  }
  0x77   :  { %15 = vst.msk [vmem:[#allocation0 + $0x1] sm:$0x1] %vm13_vm2, %v12_v10  }
  0x78   :  { %17 = vst.msk [vmem:[#allocation0] sm:$0x1] %vm16_vm3, %v12_v10   ;;  %v33_v13 = vpop.permute.xlu1 %32  }
  0x7a   :  { %v21_v12 = vpop.permute.xlu0 %20  }
  0x7b   :  { %23 = vst.msk [vmem:[#allocation0] sm:$0x1] %vm22_vm4, %v21_v12  }
  0x7c   :  { %29 = vst.msk [vmem:[#allocation0] sm:$0x1] %vm28_vm5, %v27_v11   ;;  %v46_v15 = vpop.permute.xlu1 %45  }
  0x7d   :  { %35 = vst.msk [vmem:[#allocation0] sm:$0x1] %vm34_vm6, %v33_v13  }
  0x7e   :  { %v39_v14 = vpop.permute.xlu0 %38   ;;  %48 = vst.msk [vmem:[#allocation0] sm:$0x1] %vm47_vm8, %v46_v15  }
  0x7f   :  { %42 = vst.msk [vmem:[#allocation0 + $0x1] sm:$0x1] %vm40_vm7, %v39_v14  }
  0x82   :  { %v52_v16 = vpop.permute.xlu0 %51  }
  0x83   :  { %55 = vst.msk [vmem:[#allocation0 + $0x1] sm:$0x1] %vm53_vm9, %v52_v16  }
  0x8a   :  { %v60_v17 = vld [vmem:[#allocation0] sm:$0x3] }
  0x8b   :  { %63 = vst [vmem:[%s127_s1] sm:$0x3] %v60_v17 }

// kernel: sam_gru_cell_forward.1
= control target key start
LH: loop header
LB: loop body
LE: loop exit
PB: predicated region body
PF: predicated region fallthrough
CT: control target
= control target key end

     0   :  { %19 = vsyncpa [#allocation4], 0  ;;  %s12476_s0 = inlined_call_operand.vmem [shape: f32[8,34], index: 0, kind: input, shape index: {}]   ;;  %s12477_s1 = inlined_call_operand.vmem [shape: f32[34,160], index: 1, kind: input, shape index: {}]   ;;  %s12478_s2 = inlined_call_operand.vmem [shape: f32[1,160], index: 2, kind: input, shape index: {}]   ;;  %s12479_s3 = inlined_call_operand.vmem [shape: f32[484,32], index: 3, kind: input, shape index: {}, may-alias: {3,13}]   ;;  %s12480_s4 = inlined_call_operand.vmem [shape: s32[200,1], index: 4, kind: input, shape index: {}]   ;;  %s12481_s5 = inlined_call_operand.vmem [shape: s32[8,1], index: 5, kind: input, shape index: {}]   ;;  %s12482_s6 = inlined_call_operand.vmem [shape: f32[200,8], index: 6, kind: input, shape index: {}]   ;;  %s12483_s7 = inlined_call_operand.vmem [shape: f32[8,200], index: 7, kind: input, shape index: {}]   ;;  %s12484_s8 = inlined_call_operand.vmem [shape: f32[8,200], index: 8, kind: input, shape index: {}]   ;;  %s12485_s9 = inlined_call_operand.vmem [shape: f32[32,32], index: 9, kind: input, shape index: {}]   ;;  %s12486_s10 = inlined_call_operand.vmem [shape: f32[32,32], index: 10, kind: input, shape index: {}]   ;;  %s12487_s11 = inlined_call_operand.vmem [shape: f32[1,32], index: 11, kind: input, shape index: {}]   ;;  %s12488_s12 = inlined_call_operand.hbm [shape: f32[8,32], index: 12, kind: output, shape index: {0}]   ;;  %s12489_s13 = inlined_call_operand.vmem [shape: f32[484,32], index: 13, kind: output, shape index: {1}, may-alias: {3,13}]  }
   0x1   :  { %20 = vsyncpa [#allocation3], 0  ;;  %s37_s27 = sshll.u32 %s12481_s5, 4  ;;  %s38_s27 = int_to_ptr.vmem [resolvable:$true] %s37_s27 }
   0x2   :  { %s6288_s28 = scalar_lea.vmem %s38_s27, 128  ;;  %p6293_p1 = scmp.lt.s32.totalorder %s38_s27, %s38_s27 }
   0x3   :  { %p6289_p0 = scmp.ne.s32.totalorder %s38_s27, %s6288_s28  ;;  %p6294_p2 = scmp.lt.s32.totalorder %s6288_s28, %s6288_s28 }
   0x5   :  { %p6295_p3 = por %p6294_p2, %p6293_p1 }
   0x7   :  { %p6296_p4 = pnand %p6295_p3, %p6289_p0 }
   0x9   :  { %6299 = shalt.err (!%p6296_p4)
}
   0xa   :  { %s6324_s29 = smov [#allocation2]  }
   0xb   :  { %40 = dma.vmem_to_smem %s38_s27, 128, %s6324_s29, [#allocation4]  }
   0xc   :  { %6320 = dma.done.wait [#allocation4], 128  }
   0xd   :  { %6321 = vsyncadd [#allocation4], 4294967168 }
   0xe   :  { %56 = sfence }
   0xf   :  { %v67_v0 = vld [vmem:[%s12477_s1 + $0x48] sm:$0x3]  ;;  %vm84_vm0 = vcmask 1041408   ;;  %v175_v1 = vld [vmem:[%s12480_s4] sm:$0xff]  ;;  %v65_v2 = vld [vmem:[%s12477_s1 + $0x38] sm:$0xff]  ;;  %v6325_v3 = vmov 0  }
  0x10   :  { %6225 = vset.pattern.permute.xlu0 %v6325_v3  ;;  %5230 = vmatprep.subr.msk.mxu0 %vm84_vm0, %v67_v0  ;;  %v66_v4 = vld [vmem:[%s12477_s1 + $0x40] sm:$0x3]  ;;  %v64_v5 = vld [vmem:[%s12477_s1 + $0x30] sm:$0xff]  ;;  %v63_v6 = vld [vmem:[%s12477_s1 + $0x28] sm:$0xff]  ;;  %v12492_v12 = vmov 0.0   ;;  %vm80_vm1 = vcmask 277504  }
  0x11   :  { %203 = vperm.xlu0 %6225, %v175_v1   ;;  %5231 = vmatpush1.msk.msra.mxu0 %vm84_vm0, %v66_v4  ;;  %v176_v7 = vld [vmem:[%s12480_s4 + $0x8] sm:$0xff]  ;;  %v62_v8 = vld [vmem:[%s12477_s1 + $0x20] sm:$0xff]  ;;  %v177_v9 = vld [vmem:[%s12480_s4 + $0x10] sm:$0xff]  ;;  %vm6327_vm2 = vmmov 0   ;;  %vm1312_vm5 = vcmask 1043456   ;;  %s6331_s30 = smov 64  }
  0x12   :  { %115 = vmatprep.subr.mxu0 %v65_v2  ;;  %6226 = vset.pattern.permute.xlu1 %v6325_v3  ;;  %v61_v10 = vld [vmem:[%s12477_s1 + $0x18] sm:$0xff]  ;;  %v60_v11 = vld [vmem:[%s12477_s1 + $0x10] sm:$0xff]  ;;  %v59_v14 = vld [vmem:[%s12477_s1 + $0x8] sm:$0xff]  ;;  %s6332_s16 = smov 34   ;;  %s6333_s26 = smov 30  }
  0x13   :  { %116 = vmatpush1.msra.mxu0 %v64_v5  ;;  %209 = vperm.xlu1 %6226, %v177_v9   ;;  %v178_v13 = vld [vmem:[%s12480_s4 + $0x18] sm:$0xff]  ;;  %v58_v15 = vld [vmem:[%s12477_s1] sm:$0xff]  ;;  %v180_v18 = vld [vmem:[%s12480_s4 + $0x28] sm:$0xff]  ;;  %s8660_s5 = sld [smem:[#allocation2 + $0x200]]  ;;  %s6334_s21 = smov [#allocation5]  }
  0x14   :  { %117 = vmatprep.subr.mxu0 %v63_v6  ;;  %155 = vmatprep.mubr.f32.mxu0 %v12492_v12  ;;  %v179_v16 = vld [vmem:[%s12480_s4 + $0x20] sm:$0xff]  ;;  %v181_v19 = vld [vmem:[%s12480_s4 + $0x30] sm:$0xff]  ;;  %v459_v20 = vld [vmem:[%s12479_s3 + $0xf8] sm:$0xff]  ;;  %v70_v6 = vlaneseq  ;;  %s8700_s17 = sld [smem:[#allocation2 + $0x300]]  ;;  %s5217_s22 = sshll.u32 %s6334_s21, 4  ;;  %s5218_s22 = int_to_ptr.vmem [resolvable:$true] %s5217_s22 }
  0x15   :  { %206 = vperm.xlu0 %6225, %v176_v7   ;;  %118 = vmatpush1.msra.mxu0 %v62_v8  ;;  %v57_v17 = vld [vmem:[%s12476_s0] sm:$0xff]  ;;  %v367_v21 = vld [vmem:[%s12479_s3 + $0x78] sm:$0xff]  ;;  %v458_v22 = vld [vmem:[%s12479_s3 + $0xf0] sm:$0xff]  ;;  %s8712_s18 = sld [smem:[#allocation2 + $0x380]]  ;;  %s6300_s23 = scalar_lea.vmem %s5218_s22, 128 }
  0x16   :  { %119 = vmatprep.subr.mxu0 %v61_v10  ;;  %5691 = vmatprep.subr.mxu1 %v12492_v12  ;;  %v182_v23 = vld [vmem:[%s12480_s4 + $0x38] sm:$0xff]  ;;  %v366_v24 = vld [vmem:[%s12479_s3 + $0x70] sm:$0xff]  ;;  %v457_v25 = vld [vmem:[%s12479_s3 + $0xe8] sm:$0xff]  ;;  %v6652_v7 = vand.u32 127, %v70_v6  ;;  %p6301_p5 = scmp.ne.s32.totalorder %s5218_s22, %s6300_s23  ;;  %p6305_p6 = scmp.lt.s32.totalorder %s5218_s22, %s5218_s22 }
  0x17   :  { %120 = vmatpush1.msra.mxu0 %v60_v11  ;;  %212 = vperm.xlu1 %6226, %v178_v13   ;;  %v183_v26 = vld [vmem:[%s12480_s4 + $0x40] sm:$0xff]  ;;  %v365_v27 = vld [vmem:[%s12479_s3 + $0x68] sm:$0xff]  ;;  %v185_v31 = vld [vmem:[%s12480_s4 + $0x50] sm:$0xff]  ;;  %v6328_v13 = vmov 1.0   ;;  %p6306_p7 = scmp.lt.s32.totalorder %s6300_s23, %s6300_s23 }
  0x18   :  { %121 = vmatprep.subr.mxu0 %v59_v14  ;;  %5723 = vmatprep.mubr.msk.f32.mxu1 %vm6327_vm2, %v12492_v12  ;;  %v184_v28 = vld [vmem:[%s12480_s4 + $0x48] sm:$0xff]  ;;  %v456_v29 = vld [vmem:[%s12479_s3 + $0xe0] sm:$0xff]  ;;  %v455_v32 = vld [vmem:[%s12479_s3 + $0xd8] sm:$0xff]  ;;  %v6655_v8 = vadd.s32 128, %v6652_v7 }
  0x19   :  { %122 = vmatpush1.msra.mxu0 %v58_v15  ;;  %215 = vperm.xlu0 %6225, %v179_v16   ;;  %v364_v30 = vld [vmem:[%s12479_s3 + $0x60] sm:$0xff]  ;;  %v363_v33 = vld [vmem:[%s12479_s3 + $0x58] sm:$0xff]  ;;  %v454_v35 = vld [vmem:[%s12479_s3 + $0xd0] sm:$0xff]  ;;  %p6307_p8 = por %p6306_p7, %p6305_p6 }
  0x1a   :  { %5232 = vmatmul.mubr.msk.f32.vlgmr.msra.gmra.mxu0 %vm80_vm1, %v57_v17  ;;  %5798 = vmatprep.subr.mxu0 %v12492_v12  ;;  %v186_v34 = vld [vmem:[%s12480_s4 + $0x58] sm:$0xff]  ;;  %v187_v36 = vld [vmem:[%s12480_s4 + $0x60] sm:$0xff]  ;;  %v362_v37 = vld [vmem:[%s12479_s3 + $0x50] sm:$0xff] }
  0x1b   :  { %218 = vperm.xlu1 %6226, %v180_v18   ;;  %5692 = vmatpush3.msra.mxu1 %v459_v20  ;;  %v188_v38 = vld [vmem:[%s12480_s4 + $0x68] sm:$0xff]  ;;  %v189_v41 = vld [vmem:[%s12480_s4 + $0x70] sm:$0xff]  ;;  %v452_v42 = vld [vmem:[%s12479_s3 + $0xc0] sm:$0xff]  ;;  %p6308_p9 = pnand %p6307_p8, %p6301_p5 }
  0x1c   :  { %5799 = vmatpush3.msra.mxu0 %v367_v21  ;;  %5693 = vmatprep.subr.mxu1 %v12492_v12  ;;  %v453_v39 = vld [vmem:[%s12479_s3 + $0xc8] sm:$0xff]  ;;  %v360_v43 = vld [vmem:[%s12479_s3 + $0x40] sm:$0xff]  ;;  %v190_v44 = vld [vmem:[%s12480_s4 + $0x78] sm:$0xff] }
  0x1d   :  { %221 = vperm.xlu0 %6225, %v181_v19   ;;  %5800 = vmatprep.subr.mxu0 %v12492_v12  ;;  %v361_v40 = vld [vmem:[%s12479_s3 + $0x48] sm:$0xff]  ;;  %v451_v45 = vld [vmem:[%s12479_s3 + $0xb8] sm:$0xff]  ;;  %v191_v46 = vld [vmem:[%s12480_s4 + $0x80] sm:$0xff] }
  0x1e   :  { %5694 = vmatpush3.msra.mxu1 %v458_v22  ;;  %5801 = vmatpush3.msra.mxu0 %v366_v24  ;;  %v359_v47 = vld [vmem:[%s12479_s3 + $0x38] sm:$0xff]  ;;  %v192_v48 = vld [vmem:[%s12480_s4 + $0x88] sm:$0xff]  ;;  %v450_v49 = vld [vmem:[%s12479_s3 + $0xb0] sm:$0xff] }
  0x1f   :  { %224 = vperm.xlu1 %6226, %v182_v23   ;;  %5695 = vmatprep.subr.mxu1 %v12492_v12  ;;  %v358_v50 = vld [vmem:[%s12479_s3 + $0x30] sm:$0xff]  ;;  %v449_v52 = vld [vmem:[%s12479_s3 + $0xa8] sm:$0xff]  ;;  %v194_v54 = vld [vmem:[%s12480_s4 + $0x98] sm:$0xff] }
  0x20   :  { %5802 = vmatprep.subr.mxu0 %v12492_v12  ;;  %5696 = vmatpush3.msra.mxu1 %v457_v25  ;;  %v193_v51 = vld [vmem:[%s12480_s4 + $0x90] sm:$0xff]  ;;  %v357_v53 = vld [vmem:[%s12479_s3 + $0x28] sm:$0xff]  ;;  %v448_v55 = vld [vmem:[%s12479_s3 + $0xa0] sm:$0xff] }
  0x21   :  { %227 = vperm.xlu0 %6225, %v183_v26   ;;  %5803 = vmatpush3.msra.mxu0 %v365_v27  ;;  %v195_v56 = vld [vmem:[%s12480_s4 + $0xa0] sm:$0xff]  ;;  %v196_v58 = vld [vmem:[%s12480_s4 + $0xa8] sm:$0xff]  ;;  %v447_v59 = vld [vmem:[%s12479_s3 + $0x98] sm:$0xff] }
  0x22   :  { %5697 = vmatprep.subr.mxu1 %v12492_v12  ;;  %5804 = vmatprep.subr.mxu0 %v12492_v12  ;;  %v356_v57 = vld [vmem:[%s12479_s3 + $0x20] sm:$0xff]  ;;  %v355_v60 = vld [vmem:[%s12479_s3 + $0x18] sm:$0xff]  ;;  %v197_v61 = vld [vmem:[%s12480_s4 + $0xb0] sm:$0xff] }
  0x23   :  { %230 = vperm.xlu1 %6226, %v184_v28   ;;  %5698 = vmatpush3.msra.mxu1 %v456_v29  ;;  %v446_v62 = vld [vmem:[%s12479_s3 + $0x90] sm:$0xff]  ;;  %v198_v0 = vld [vmem:[%s12480_s4 + $0xb8] sm:$0xff]  ;;  %v445_v1 = vld [vmem:[%s12479_s3 + $0x88] sm:$0xff] }
  0x24   :  { %5805 = vmatpush3.msra.mxu0 %v364_v30  ;;  %5699 = vmatprep.subr.mxu1 %v12492_v12  ;;  %v354_v63 = vld [vmem:[%s12479_s3 + $0x10] sm:$0xff]  ;;  %v199_v2 = vld [vmem:[%s12480_s4 + $0xc0] sm:$0xff]  ;;  %v353_v3 = vld [vmem:[%s12479_s3 + $0x8] sm:$0xff]  ;;  %s6330_s4 = smov 32  }
  0x25   :  { %233 = vperm.xlu0 %6225, %v185_v31   ;;  %5806 = vmatprep.subr.mxu0 %v12492_v12  ;;  %v444_v4 = vld [vmem:[%s12479_s3 + $0x80] sm:$0xff]  ;;  %v931_v10 = vld [vmem:[%s12479_s3 + $0x178] sm:$0xff]  ;;  %v930_v16 = vld [vmem:[%s12479_s3 + $0x170] sm:$0xff] }
  0x26   :  { %5700 = vmatpush3.msra.mxu1 %v455_v32  ;;  %5807 = vmatpush3.msra.mxu0 %v363_v33  ;;  %v352_v5 = vld [vmem:[%s12479_s3] sm:$0xff]  ;;  %v1234_v17 = vld [vmem:[%s12479_s3 + $0x1d8] sm:$0xff]  ;;  %v929_v19 = vld [vmem:[%s12479_s3 + $0x168] sm:$0xff] }
  0x27   :  { %236 = vperm.xlu1 %6226, %v186_v34   ;;  %5701 = vmatprep.subr.mxu1 %v12492_v12  ;;  %v1235_v11 = vld [vmem:[%s12479_s3 + $0x1e0] sm:$0xf]  ;;  %v1233_v20 = vld [vmem:[%s12479_s3 + $0x1d0] sm:$0xff]  ;;  %v1232_v23 = vld [vmem:[%s12479_s3 + $0x1c8] sm:$0xff] }
  0x28   :  { %5808 = vmatprep.subr.mxu0 %v12492_v12  ;;  %5702 = vmatpush3.msra.mxu1 %v454_v35  ;;  %v928_v22 = vld [vmem:[%s12479_s3 + $0x160] sm:$0xff]  ;;  %v927_v25 = vld [vmem:[%s12479_s3 + $0x158] sm:$0xff]  ;;  %v926_v28 = vld [vmem:[%s12479_s3 + $0x150] sm:$0xff] }
  0x29   :  { %239 = vperm.xlu0 %6225, %v187_v36   ;;  %5809 = vmatpush3.msra.mxu0 %v362_v37  ;;  %v1231_v26 = vld [vmem:[%s12479_s3 + $0x1c0] sm:$0xff]  ;;  %v1230_v29 = vld [vmem:[%s12479_s3 + $0x1b8] sm:$0xff]  ;;  %v925_v31 = vld [vmem:[%s12479_s3 + $0x148] sm:$0xff] }
  0x2a   :  { %5703 = vmatprep.subr.mxu1 %v12492_v12  ;;  %5810 = vmatprep.subr.mxu0 %v12492_v12  ;;  %v1229_v32 = vld [vmem:[%s12479_s3 + $0x1b0] sm:$0xff]  ;;  %v924_v34 = vld [vmem:[%s12479_s3 + $0x140] sm:$0xff]  ;;  %v1228_v35 = vld [vmem:[%s12479_s3 + $0x1a8] sm:$0xff] }
  0x2b   :  { %242 = vperm.xlu1 %6226, %v188_v38   ;;  %5704 = vmatpush3.msra.mxu1 %v453_v39  ;;  %v923_v37 = vld [vmem:[%s12479_s3 + $0x138] sm:$0xff]  ;;  %v1227_v38 = vld [vmem:[%s12479_s3 + $0x1a0] sm:$0xff] }
  0x2c   :  { %5811 = vmatpush3.msra.mxu0 %v361_v40  ;;  %5705 = vmatprep.subr.mxu1 %v12492_v12  ;;  %v922_v40 = vld [vmem:[%s12479_s3 + $0x130] sm:$0xff] }
  0x2d   :  { %245 = vperm.xlu0 %6225, %v189_v41   ;;  %5812 = vmatprep.subr.mxu0 %v12492_v12  ;;  %v1226_v41 = vld [vmem:[%s12479_s3 + $0x198] sm:$0xff] }
  0x2e   :  { %5706 = vmatpush3.msra.mxu1 %v452_v42  ;;  %5813 = vmatpush3.msra.mxu0 %v360_v43  ;;  %v921_v43 = vld [vmem:[%s12479_s3 + $0x128] sm:$0xff] }
  0x2f   :  { %248 = vperm.xlu1 %6226, %v190_v44   ;;  %5707 = vmatprep.subr.mxu1 %v12492_v12  ;;  %v1225_v44 = vld [vmem:[%s12479_s3 + $0x190] sm:$0xff] }
  0x30   :  { %5814 = vmatprep.subr.mxu0 %v12492_v12  ;;  %5708 = vmatpush3.msra.mxu1 %v451_v45 }
  0x31   :  { %251 = vperm.xlu0 %6225, %v191_v46   ;;  %5815 = vmatpush3.msra.mxu0 %v359_v47  ;;  %v920_v46 = vld [vmem:[%s12479_s3 + $0x120] sm:$0xff]  ;;  %v1224_v47 = vld [vmem:[%s12479_s3 + $0x188] sm:$0xff] }
  0x32   :  { %5709 = vmatprep.subr.mxu1 %v12492_v12  ;;  %5816 = vmatprep.subr.mxu0 %v12492_v12 }
  0x33   :  { %254 = vperm.xlu1 %6226, %v192_v48   ;;  %5710 = vmatpush3.msra.mxu1 %v450_v49  ;;  %v919_v49 = vld [vmem:[%s12479_s3 + $0x118] sm:$0xff] }
  0x34   :  { %5817 = vmatpush3.msra.mxu0 %v358_v50  ;;  %5711 = vmatprep.subr.mxu1 %v12492_v12  ;;  %v1223_v50 = vld [vmem:[%s12479_s3 + $0x180] sm:$0xff] }
  0x35   :  { %257 = vperm.xlu0 %6225, %v193_v51   ;;  %5818 = vmatprep.subr.mxu0 %v12492_v12 }
  0x36   :  { %5712 = vmatpush3.msra.mxu1 %v449_v52  ;;  %5819 = vmatpush3.msra.mxu0 %v357_v53  ;;  %v918_v52 = vld [vmem:[%s12479_s3 + $0x110] sm:$0xff] }
  0x37   :  { %260 = vperm.xlu1 %6226, %v194_v54   ;;  %5713 = vmatprep.subr.mxu1 %v12492_v12  ;;  %v917_v54 = vld [vmem:[%s12479_s3 + $0x108] sm:$0xff] }
  0x38   :  { %5820 = vmatprep.subr.mxu0 %v12492_v12  ;;  %5714 = vmatpush3.msra.mxu1 %v448_v55 }
  0x39   :  { %263 = vperm.xlu0 %6225, %v195_v56   ;;  %5821 = vmatpush3.msra.mxu0 %v356_v57  ;;  %v916_v56 = vld [vmem:[%s12479_s3 + $0x100] sm:$0xff] }
  0x3a   :  { %5715 = vmatprep.subr.mxu1 %v12492_v12  ;;  %5822 = vmatprep.subr.mxu0 %v12492_v12 }
  0x3b   :  { %266 = vperm.xlu1 %6226, %v196_v58   ;;  %5716 = vmatpush3.msra.mxu1 %v447_v59  ;;  %v6984_v58 = vshrl.u32 %v70_v6, 7 }
  0x3c   :  { %5823 = vmatpush3.msra.mxu0 %v355_v60  ;;  %5717 = vmatprep.subr.mxu1 %v12492_v12 }
  0x3d   :  { %269 = vperm.xlu0 %6225, %v197_v61   ;;  %5824 = vmatprep.subr.mxu0 %v12492_v12  ;;  %12649 = vst [vmem:[#allocation8_spill] sm:$0xff] %v6984_v58  ;;  %v12491_v60 = vsub.s32 0, %v6984_v58 }
  0x3e   :  { %5718 = vmatpush3.msra.mxu1 %v446_v62  ;;  %5825 = vmatpush3.msra.mxu0 %v354_v63  ;;  %v7004_v62 = vld [vmem:[%s12478_s2] sm:$0x3]  ;;  %s6329_s2 = smov 96  }
  0x3f   :  { %272 = vperm.xlu1 %6226, %v198_v0   ;;  %5719 = vmatprep.subr.mxu1 %v12492_v12  ;;  %v73_v63 = vrot.slane %v7004_v62, %v12491_v60 }
  0x40   :  { %5826 = vmatprep.subr.mxu0 %v12492_v12  ;;  %5720 = vmatpush3.msra.mxu1 %v445_v1 }
  0x41   :  { %275 = vperm.xlu0 %6225, %v199_v2   ;;  %5827 = vmatpush3.msra.mxu0 %v353_v3 }
  0x42   :  { %5721 = vmatprep.subr.mxu1 %v12492_v12  ;;  %5828 = vmatprep.subr.mxu0 %v12492_v12 }
  0x43   :  { %5722 = vmatpush3.msra.mxu1 %v444_v4  ;;  %5829 = vmatpush3.msra.mxu0 %v352_v5 }
  0x44   :  { %5830 = vmatprep.mubr.msk.f32.mxu0 %vm6327_vm2, %v12492_v12  ;;  %5905 = vmatprep.subr.mxu1 %v12492_v12 }
  0x45   :  { %6012 = vmatprep.subr.mxu0 %v12492_v12 }
  0x8c   :  { %v6657_v9 = vpop.permute.xlu0 %203 }
  0x8d   :  { %vm369_vm3 = vcmp.eq.s32.totalorder %v6655_v8, %v6657_v9  ;;  %vm277_vm4 = vcmp.eq.s32.totalorder %v6652_v7, %v6657_v9 }
  0x8e   :  { %5724 = vmatmul.mubr.msk.f32.vlgmr.msra.gmra.mxu1 %vm369_vm3, %v6328_v13  ;;  %5831 = vmatmul.mubr.msk.f32.vlgmr.msra.gmra.mxu0 %vm277_vm4, %v6328_v13  ;;  %v6671_v14 = vpop.permute.xlu1 %209 }
  0x8f   :  { %5726 = vmatprep.mubr.msk.f32.mxu1 %vm6327_vm2, %v12492_v12  ;;  %5833 = vmatprep.mubr.msk.f32.mxu0 %vm6327_vm2, %v12492_v12  ;;  %vm371_vm8 = vcmp.eq.s32.totalorder %v6655_v8, %v6671_v14  ;;  %vm279_vm9 = vcmp.eq.s32.totalorder %v6652_v7, %v6671_v14 }
  0x90   :  { %v6677_v15 = vpop.permute.xlu0 %206  ;;  %5906 = vmatpush3.msra.mxu1 %v931_v10  ;;  %6013 = vmatpush3.msk.msra.mxu0 %vm1312_vm5, %v1235_v11  ;;  %v7071_v10 = vadd.s32 384, %v6652_v7 }
  0x91   :  { %vm370_vm6 = vcmp.eq.s32.totalorder %v6655_v8, %v6677_v15  ;;  %vm278_vm7 = vcmp.eq.s32.totalorder %v6652_v7, %v6677_v15  ;;  %5907 = vmatprep.subr.mxu1 %v12492_v12  ;;  %6014 = vmatprep.subr.mxu0 %v12492_v12 }
  0x92   :  { %5727 = vmatmul.mubr.msk.f32.gmra.mxu1 %vm370_vm6, %v6328_v13  ;;  %5834 = vmatmul.mubr.msk.f32.gmra.mxu0 %vm278_vm7, %v6328_v13  ;;  %v6701_v18 = vpop.permute.xlu1 %212 }
  0x93   :  { %5729 = vmatprep.mubr.msk.f32.mxu1 %vm6327_vm2, %v12492_v12  ;;  %5836 = vmatprep.mubr.msk.f32.mxu0 %vm6327_vm2, %v12492_v12  ;;  %vm372_vm10 = vcmp.eq.s32.totalorder %v6655_v8, %v6701_v18  ;;  %vm280_vm11 = vcmp.eq.s32.totalorder %v6652_v7, %v6701_v18 }
  0x94   :  { %5908 = vmatpush3.msra.mxu1 %v930_v16  ;;  %6015 = vmatpush3.msra.mxu0 %v1234_v17  ;;  %v6721_v21 = vpop.permute.xlu0 %215  ;;  %v7086_v16 = vadd.s32 256, %v6652_v7 }
  0x95   :  { %5909 = vmatprep.subr.mxu1 %v12492_v12  ;;  %6016 = vmatprep.subr.mxu0 %v12492_v12  ;;  %vm373_vm12 = vcmp.eq.s32.totalorder %v6655_v8, %v6721_v21  ;;  %vm281_vm13 = vcmp.eq.s32.totalorder %v6652_v7, %v6721_v21 }
  0x96   :  { %5730 = vmatmul.mubr.msk.f32.gmra.mxu1 %vm371_vm8, %v6328_v13  ;;  %5837 = vmatmul.mubr.msk.f32.gmra.mxu0 %vm279_vm9, %v6328_v13  ;;  %v6741_v24 = vpop.permute.xlu1 %218 }
  0x97   :  { %5732 = vmatprep.mubr.msk.f32.mxu1 %vm6327_vm2, %v12492_v12  ;;  %5839 = vmatprep.mubr.msk.f32.mxu0 %vm6327_vm2, %v12492_v12  ;;  %vm374_vm14 = vcmp.eq.s32.totalorder %v6655_v8, %v6741_v24  ;;  %vm282_vm15 = vcmp.eq.s32.totalorder %v6652_v7, %v6741_v24 }
  0x98   :  { %5910 = vmatpush3.msra.mxu1 %v929_v19  ;;  %6017 = vmatpush3.msra.mxu0 %v1233_v20  ;;  %v6761_v27 = vpop.permute.xlu0 %221 }
  0x99   :  { %5911 = vmatprep.subr.mxu1 %v12492_v12  ;;  %6018 = vmatprep.subr.mxu0 %v12492_v12  ;;  %vm375_vm0 = vcmp.eq.s32.totalorder %v6655_v8, %v6761_v27  ;;  %vm283_vm1 = vcmp.eq.s32.totalorder %v6652_v7, %v6761_v27 }
  0x9a   :  { %5733 = vmatmul.mubr.msk.f32.gmra.mxu1 %vm372_vm10, %v6328_v13  ;;  %5840 = vmatmul.mubr.msk.f32.gmra.mxu0 %vm280_vm11, %v6328_v13  ;;  %v6781_v30 = vpop.permute.xlu1 %224 }
  0x9b   :  { %5735 = vmatprep.mubr.msk.f32.mxu1 %vm6327_vm2, %v12492_v12  ;;  %5842 = vmatprep.mubr.msk.f32.mxu0 %vm6327_vm2, %v12492_v12  ;;  %vm376_vm3 = vcmp.eq.s32.totalorder %v6655_v8, %v6781_v30  ;;  %vm284_vm4 = vcmp.eq.s32.totalorder %v6652_v7, %v6781_v30 }
  0x9c   :  { %5912 = vmatpush3.msra.mxu1 %v928_v22  ;;  %6019 = vmatpush3.msra.mxu0 %v1232_v23  ;;  %v6801_v33 = vpop.permute.xlu0 %227 }
  0x9d   :  { %5913 = vmatprep.subr.mxu1 %v12492_v12  ;;  %6020 = vmatprep.subr.mxu0 %v12492_v12  ;;  %vm377_vm5 = vcmp.eq.s32.totalorder %v6655_v8, %v6801_v33  ;;  %vm285_vm6 = vcmp.eq.s32.totalorder %v6652_v7, %v6801_v33 }
  0x9e   :  { %5736 = vmatmul.mubr.msk.f32.gmra.mxu1 %vm373_vm12, %v6328_v13  ;;  %5843 = vmatmul.mubr.msk.f32.gmra.mxu0 %vm281_vm13, %v6328_v13  ;;  %v6821_v36 = vpop.permute.xlu1 %230 }
  0x9f   :  { %5738 = vmatprep.mubr.msk.f32.mxu1 %vm6327_vm2, %v12492_v12  ;;  %5845 = vmatprep.mubr.msk.f32.mxu0 %vm6327_vm2, %v12492_v12  ;;  %vm378_vm7 = vcmp.eq.s32.totalorder %v6655_v8, %v6821_v36  ;;  %vm286_vm8 = vcmp.eq.s32.totalorder %v6652_v7, %v6821_v36 }
  0xa0   :  { %5914 = vmatpush3.msra.mxu1 %v927_v25  ;;  %6021 = vmatpush3.msra.mxu0 %v1231_v26  ;;  %v6841_v39 = vpop.permute.xlu0 %233 }
  0xa1   :  { %5915 = vmatprep.subr.mxu1 %v12492_v12  ;;  %6022 = vmatprep.subr.mxu0 %v12492_v12  ;;  %vm379_vm9 = vcmp.eq.s32.totalorder %v6655_v8, %v6841_v39  ;;  %vm287_vm10 = vcmp.eq.s32.totalorder %v6652_v7, %v6841_v39 }
  0xa2   :  { %5739 = vmatmul.mubr.msk.f32.gmra.mxu1 %vm374_vm14, %v6328_v13  ;;  %5846 = vmatmul.mubr.msk.f32.gmra.mxu0 %vm282_vm15, %v6328_v13  ;;  %v6861_v42 = vpop.permute.xlu1 %236 }
  0xa3   :  { %5741 = vmatprep.mubr.msk.f32.mxu1 %vm6327_vm2, %v12492_v12  ;;  %5848 = vmatprep.mubr.msk.f32.mxu0 %vm6327_vm2, %v12492_v12  ;;  %vm380_vm11 = vcmp.eq.s32.totalorder %v6655_v8, %v6861_v42  ;;  %vm288_vm12 = vcmp.eq.s32.totalorder %v6652_v7, %v6861_v42 }
  0xa4   :  { %5916 = vmatpush3.msra.mxu1 %v926_v28  ;;  %6023 = vmatpush3.msra.mxu0 %v1230_v29  ;;  %v6881_v45 = vpop.permute.xlu0 %239 }
  0xa5   :  { %5917 = vmatprep.subr.mxu1 %v12492_v12  ;;  %6024 = vmatprep.subr.mxu0 %v12492_v12  ;;  %vm381_vm13 = vcmp.eq.s32.totalorder %v6655_v8, %v6881_v45  ;;  %vm289_vm14 = vcmp.eq.s32.totalorder %v6652_v7, %v6881_v45 }
  0xa6   :  { %5742 = vmatmul.mubr.msk.f32.gmra.mxu1 %vm375_vm0, %v6328_v13  ;;  %5849 = vmatmul.mubr.msk.f32.gmra.mxu0 %vm283_vm1, %v6328_v13  ;;  %v6901_v48 = vpop.permute.xlu1 %242 }
  0xa7   :  { %5744 = vmatprep.mubr.msk.f32.mxu1 %vm6327_vm2, %v12492_v12  ;;  %5851 = vmatprep.mubr.msk.f32.mxu0 %vm6327_vm2, %v12492_v12  ;;  %vm382_vm15 = vcmp.eq.s32.totalorder %v6655_v8, %v6901_v48  ;;  %vm290_vm0 = vcmp.eq.s32.totalorder %v6652_v7, %v6901_v48 }
  0xa8   :  { %5918 = vmatpush3.msra.mxu1 %v925_v31  ;;  %6025 = vmatpush3.msra.mxu0 %v1229_v32  ;;  %v6921_v51 = vpop.permute.xlu0 %245 }
  0xa9   :  { %5919 = vmatprep.subr.mxu1 %v12492_v12  ;;  %6026 = vmatprep.subr.mxu0 %v12492_v12  ;;  %vm383_vm1 = vcmp.eq.s32.totalorder %v6655_v8, %v6921_v51 }
  0xaa   :  { %5745 = vmatmul.mubr.msk.f32.gmra.mxu1 %vm376_vm3, %v6328_v13  ;;  %5852 = vmatmul.mubr.msk.f32.gmra.mxu0 %vm284_vm4, %v6328_v13  ;;  %vm291_vm3 = vcmp.eq.s32.totalorder %v6652_v7, %v6921_v51  ;;  %v6938_v53 = vpop.permute.xlu1 %248 }
  0xab   :  { %5747 = vmatprep.mubr.msk.f32.mxu1 %vm6327_vm2, %v12492_v12  ;;  %5854 = vmatprep.mubr.msk.f32.mxu0 %vm6327_vm2, %v12492_v12  ;;  %vm384_vm4 = vcmp.eq.s32.totalorder %v6655_v8, %v6938_v53 }
  0xac   :  { %5920 = vmatpush3.msra.mxu1 %v924_v34  ;;  %6027 = vmatpush3.msra.mxu0 %v1228_v35  ;;  %v6954_v55 = vpop.permute.xlu0 %251 }
  0xad   :  { %5921 = vmatprep.subr.mxu1 %v12492_v12  ;;  %6028 = vmatprep.subr.mxu0 %v12492_v12 }
  0xae   :  { %5748 = vmatmul.mubr.msk.f32.gmra.mxu1 %vm377_vm5, %v6328_v13  ;;  %5855 = vmatmul.mubr.msk.f32.gmra.mxu0 %vm285_vm6, %v6328_v13  ;;  %vm292_vm5 = vcmp.eq.s32.totalorder %v6652_v7, %v6938_v53  ;;  %vm385_vm6 = vcmp.eq.s32.totalorder %v6655_v8, %v6954_v55  ;;  %v6970_v57 = vpop.permute.xlu1 %254 }
  0xaf   :  { %5750 = vmatprep.mubr.msk.f32.mxu1 %vm6327_vm2, %v12492_v12  ;;  %5857 = vmatprep.mubr.msk.f32.mxu0 %vm6327_vm2, %v12492_v12 }
  0xb0   :  { %5922 = vmatpush3.msra.mxu1 %v923_v37  ;;  %6029 = vmatpush3.msra.mxu0 %v1227_v38  ;;  %v6986_v59 = vpop.permute.xlu0 %257 }
  0xb1   :  { %5923 = vmatprep.subr.mxu1 %v12492_v12  ;;  %6030 = vmatprep.subr.mxu0 %v12492_v12 }
  0xb2   :  { %5751 = vmatmul.mubr.msk.f32.gmra.mxu1 %vm378_vm7, %v6328_v13  ;;  %5858 = vmatmul.mubr.msk.f32.gmra.mxu0 %vm286_vm8, %v6328_v13  ;;  %vm293_vm7 = vcmp.eq.s32.totalorder %v6652_v7, %v6954_v55  ;;  %vm386_vm8 = vcmp.eq.s32.totalorder %v6655_v8, %v6970_v57  ;;  %v6999_v61 = vpop.permute.xlu1 %260 }
  0xb3   :  { %5753 = vmatprep.mubr.msk.f32.mxu1 %vm6327_vm2, %v12492_v12  ;;  %5860 = vmatprep.mubr.msk.f32.mxu0 %vm6327_vm2, %v12492_v12 }
  0xb4   :  { %5924 = vmatpush3.msra.mxu1 %v922_v40  ;;  %6031 = vmatpush3.msra.mxu0 %v1226_v41  ;;  %v7019_v0 = vpop.permute.xlu0 %263 }
  0xb5   :  { %5925 = vmatprep.subr.mxu1 %v12492_v12  ;;  %6032 = vmatprep.subr.mxu0 %v12492_v12 }
  0xb6   :  { %5754 = vmatmul.mubr.msk.f32.gmra.mxu1 %vm379_vm9, %v6328_v13  ;;  %5861 = vmatmul.mubr.msk.f32.gmra.mxu0 %vm287_vm10, %v6328_v13  ;;  %vm294_vm9 = vcmp.eq.s32.totalorder %v6652_v7, %v6970_v57  ;;  %vm387_vm10 = vcmp.eq.s32.totalorder %v6655_v8, %v6986_v59  ;;  %v7033_v3 = vpop.permute.xlu1 %266 }
  0xb7   :  { %5756 = vmatprep.mubr.msk.f32.mxu1 %vm6327_vm2, %v12492_v12  ;;  %5863 = vmatprep.mubr.msk.f32.mxu0 %vm6327_vm2, %v12492_v12 }
  0xb8   :  { %5926 = vmatpush3.msra.mxu1 %v921_v43  ;;  %6033 = vmatpush3.msra.mxu0 %v1225_v44  ;;  %v7046_v5 = vpop.permute.xlu0 %269 }
  0xb9   :  { %5927 = vmatprep.subr.mxu1 %v12492_v12  ;;  %6034 = vmatprep.subr.mxu0 %v12492_v12 }
  0xba   :  { %5757 = vmatmul.mubr.msk.f32.gmra.mxu1 %vm380_vm11, %v6328_v13  ;;  %5864 = vmatmul.mubr.msk.f32.gmra.mxu0 %vm288_vm12, %v6328_v13  ;;  %vm295_vm11 = vcmp.eq.s32.totalorder %v6652_v7, %v6986_v59  ;;  %vm388_vm12 = vcmp.eq.s32.totalorder %v6655_v8, %v6999_v61  ;;  %v7058_v6 = vpop.permute.xlu1 %272 }
  0xbb   :  { %5759 = vmatprep.mubr.msk.f32.mxu1 %vm6327_vm2, %v12492_v12  ;;  %5866 = vmatprep.mubr.msk.f32.mxu0 %vm6327_vm2, %v12492_v12 }
  0xbc   :  { %5928 = vmatpush3.msra.mxu1 %v920_v46  ;;  %6035 = vmatpush3.msra.mxu0 %v1224_v47  ;;  %v7073_v11 = vpop.permute.xlu0 %275 }
  0xbd   :  { %5929 = vmatprep.subr.mxu1 %v12492_v12  ;;  %6036 = vmatprep.subr.mxu0 %v12492_v12 }
  0xbe   :  { %5760 = vmatmul.mubr.msk.f32.gmra.mxu1 %vm381_vm13, %v6328_v13  ;;  %5867 = vmatmul.mubr.msk.f32.gmra.mxu0 %vm289_vm14, %v6328_v13  ;;  %vm296_vm13 = vcmp.eq.s32.totalorder %v6652_v7, %v6999_v61  ;;  %vm389_vm14 = vcmp.eq.s32.totalorder %v6655_v8, %v7019_v0 }
  0xbf   :  { %5762 = vmatprep.mubr.msk.f32.mxu1 %vm6327_vm2, %v12492_v12  ;;  %5869 = vmatprep.mubr.msk.f32.mxu0 %vm6327_vm2, %v12492_v12 }
  0xc0   :  { %5930 = vmatpush3.msra.mxu1 %v919_v49  ;;  %6037 = vmatpush3.msra.mxu0 %v1223_v50 }
  0xc1   :  { %5931 = vmatprep.subr.mxu1 %v12492_v12  ;;  %2065 = vmatprep.subr.mxu0 %v12492_v12 }
  0xc2   :  { %5763 = vmatmul.mubr.msk.f32.gmra.mxu1 %vm382_vm15, %v6328_v13  ;;  %5870 = vmatmul.mubr.msk.f32.gmra.mxu0 %vm290_vm0, %v6328_v13  ;;  %vm297_vm15 = vcmp.eq.s32.totalorder %v6652_v7, %v7019_v0  ;;  %vm390_vm0 = vcmp.eq.s32.totalorder %v6655_v8, %v7033_v3 }
  0xc3   :  { %5765 = vmatprep.mubr.msk.f32.mxu1 %vm6327_vm2, %v12492_v12  ;;  %5872 = vmatprep.mubr.msk.f32.mxu0 %vm6327_vm2, %v12492_v12 }
  0xc4   :  { %5932 = vmatpush3.msra.mxu1 %v918_v52 }
  0xc5   :  { %5933 = vmatprep.subr.mxu1 %v12492_v12 }
  0xc6   :  { %5766 = vmatmul.mubr.msk.f32.gmra.mxu1 %vm383_vm1, %v6328_v13  ;;  %5873 = vmatmul.mubr.msk.f32.gmra.mxu0 %vm291_vm3, %v6328_v13  ;;  %vm298_vm1 = vcmp.eq.s32.totalorder %v6652_v7, %v7033_v3  ;;  %vm391_vm3 = vcmp.eq.s32.totalorder %v6655_v8, %v7046_v5 }
  0xc7   :  { %5768 = vmatprep.mubr.msk.f32.mxu1 %vm6327_vm2, %v12492_v12  ;;  %5875 = vmatprep.mubr.msk.f32.mxu0 %vm6327_vm2, %v12492_v12 }
  0xc8   :  { %5934 = vmatpush3.msra.mxu1 %v917_v54 }
  0xc9   :  { %5935 = vmatprep.subr.mxu1 %v12492_v12 }
  0xca   :  { %5769 = vmatmul.mubr.msk.f32.gmra.mxu1 %vm384_vm4, %v6328_v13  ;;  %5876 = vmatmul.mubr.msk.f32.gmra.mxu0 %vm292_vm5, %v6328_v13  ;;  %vm299_vm4 = vcmp.eq.s32.totalorder %v6652_v7, %v7046_v5  ;;  %vm392_vm5 = vcmp.eq.s32.totalorder %v6655_v8, %v7058_v6 }
  0xcb   :  { %5771 = vmatprep.mubr.msk.f32.mxu1 %vm6327_vm2, %v12492_v12  ;;  %5878 = vmatprep.mubr.msk.f32.mxu0 %vm6327_vm2, %v12492_v12 }
  0xcc   :  { %5936 = vmatpush3.msra.mxu1 %v916_v56 }
  0xcd   :  { %6113 = vmatprep.subr.mxu1 %v12492_v12 }
  0xce   :  { %5772 = vmatmul.mubr.msk.f32.gmra.mxu1 %vm385_vm6, %v6328_v13  ;;  %5879 = vmatmul.mubr.msk.f32.gmra.mxu0 %vm293_vm7, %v6328_v13  ;;  %vm300_vm6 = vcmp.eq.s32.totalorder %v6652_v7, %v7058_v6  ;;  %vm393_vm7 = vcmp.eq.s32.totalorder %v6655_v8, %v7073_v11  ;;  %v12490_v8 = vsub.s32 1, %v6984_v58 }
  0xcf   :  { %5774 = vmatprep.mubr.msk.f32.mxu1 %vm6327_vm2, %v12492_v12  ;;  %5881 = vmatprep.mubr.msk.f32.mxu0 %vm6327_vm2, %v12492_v12 }
  0xd0   :  { %v77_v20 = vrot.slane %v7004_v62, %v12490_v8 }
  0xd2   :  { %5775 = vmatmul.mubr.msk.f32.gmra.mxu1 %vm386_vm8, %v6328_v13  ;;  %5882 = vmatmul.mubr.msk.f32.gmra.mxu0 %vm294_vm9, %v6328_v13  ;;  %vm301_vm8 = vcmp.eq.s32.totalorder %v6652_v7, %v7073_v11  ;;  %vm1148_vm9 = vcmp.eq.s32.totalorder %v7071_v10, %v6657_v9 }
  0xd3   :  { %5777 = vmatprep.mubr.msk.f32.mxu1 %vm6327_vm2, %v12492_v12  ;;  %5884 = vmatprep.mubr.msk.f32.mxu0 %vm6327_vm2, %v12492_v12  ;;  %v5384_v7 = vsel %vm1148_vm9, 1.0, %v12492_v12  ;;  %vm1155_vm9 = vcmp.eq.s32.totalorder %v7071_v10, %v6781_v30 }
  0xd6   :  { %5778 = vmatmul.mubr.msk.f32.gmra.mxu1 %vm387_vm10, %v6328_v13  ;;  %5885 = vmatmul.mubr.msk.f32.gmra.mxu0 %vm295_vm11, %v6328_v13  ;;  %vm841_vm10 = vcmp.eq.s32.totalorder %v7086_v16, %v6657_v9  ;;  %vm1236_vm11 = vcmask 818176  }
  0xd7   :  { %5780 = vmatprep.mubr.msk.f32.mxu1 %vm6327_vm2, %v12492_v12  ;;  %5887 = vmatprep.mubr.msk.f32.mxu0 %vm6327_vm2, %v12492_v12 }
  0xda   :  { %v157_v1 = vpop.f32.mrf.mxu0  ;;  %5781 = vmatmul.mubr.msk.f32.gmra.mxu1 %vm388_vm12, %v6328_v13  ;;  %5888 = vmatmul.mubr.msk.f32.gmra.mxu0 %vm296_vm13, %v6328_v13  ;;  %vm1149_vm12 = vcmp.eq.s32.totalorder %v7071_v10, %v6677_v15  ;;  %vm842_vm13 = vcmp.eq.s32.totalorder %v7086_v16, %v6677_v15 }
  0xdb   :  { %v7023_v2 = vadd.f32 %v157_v1, %v73_v63  ;;  %5783 = vmatprep.mubr.msk.f32.mxu1 %vm6327_vm2, %v12492_v12  ;;  %5890 = vmatprep.mubr.msk.f32.mxu0 %vm6327_vm2, %v12492_v12  ;;  %v5385_v9 = vsel %vm1149_vm12, 1.0, %v12492_v12  ;;  %vm1156_vm12 = vcmp.eq.s32.totalorder %v7071_v10, %v6801_v33 }
  0xdc   :  { %v159_v22 = vpop.f32.mrf.mxu0  ;;  %v5392_v28 = vsel %vm1156_vm12, 1.0, %v12492_v12  ;;  %vm1163_vm12 = vcmp.eq.s32.totalorder %v7071_v10, %v6938_v53 }
  0xdd   :  { %v5233_v4 = vmul.f32 -1.442695, %v7023_v2  ;;  %v160_v23 = vadd.f32 %v159_v22, %v77_v20  ;;  %v5399_v35 = vsel %vm1163_vm12, 1.0, %v12492_v12  ;;  %vm1170_vm12 = vcmp.eq.s32.totalorder %v7071_v10, %v7046_v5 }
  0xde   :  { %5784 = vmatmul.mubr.msk.f32.gmra.mxu1 %vm389_vm14, %v6328_v13  ;;  %5891 = vmatmul.mubr.msk.f32.gmra.mxu0 %vm297_vm15, %v6328_v13  ;;  %vm1150_vm14 = vcmp.eq.s32.totalorder %v7071_v10, %v6671_v14  ;;  %vm843_vm15 = vcmp.eq.s32.totalorder %v7086_v16, %v6671_v14 }
  0xdf   :  { %6227 = vpow2.f32 %v5233_v4  ;;  %5786 = vmatprep.mubr.msk.f32.mxu1 %vm6327_vm2, %v12492_v12  ;;  %5893 = vmatprep.mubr.msk.f32.mxu0 %vm6327_vm2, %v12492_v12  ;;  %v5386_v15 = vsel %vm1150_vm14, 1.0, %v12492_v12  ;;  %vm1157_vm14 = vcmp.eq.s32.totalorder %v7071_v10, %v6821_v36 }
  0xe0   :  { %v5393_v29 = vsel %vm1157_vm14, 1.0, %v12492_v12  ;;  %vm1164_vm14 = vcmp.eq.s32.totalorder %v7071_v10, %v6954_v55 }
  0xe2   :  { %5787 = vmatmul.mubr.msk.f32.gmra.mxu1 %vm390_vm0, %v6328_v13  ;;  %5894 = vmatmul.mubr.msk.f32.gmra.mxu0 %vm298_vm1, %v6328_v13  ;;  %vm1151_vm0 = vcmp.eq.s32.totalorder %v7071_v10, %v6701_v18  ;;  %vm844_vm1 = vcmp.eq.s32.totalorder %v7086_v16, %v6701_v18 }
  0xe3   :  { %5789 = vmatprep.mubr.msk.f32.mxu1 %vm6327_vm2, %v12492_v12  ;;  %5896 = vmatprep.mubr.msk.f32.mxu0 %vm6327_vm2, %v12492_v12  ;;  %v5387_v14 = vsel %vm1151_vm0, 1.0, %v12492_v12  ;;  %vm1158_vm0 = vcmp.eq.s32.totalorder %v7071_v10, %v6841_v39 }
  0xe6   :  { %5790 = vmatmul.mubr.msk.f32.gmra.mxu1 %vm391_vm3, %v6328_v13  ;;  %5897 = vmatmul.mubr.msk.f32.gmra.mxu0 %vm299_vm4, %v6328_v13  ;;  %vm1152_vm3 = vcmp.eq.s32.totalorder %v7071_v10, %v6721_v21  ;;  %vm845_vm4 = vcmp.eq.s32.totalorder %v7086_v16, %v6721_v21 }
  0xe7   :  { %5792 = vmatprep.mubr.msk.f32.mxu1 %vm6327_vm2, %v12492_v12  ;;  %5899 = vmatprep.mubr.msk.f32.mxu0 %vm6327_vm2, %v12492_v12  ;;  %v5388_v18 = vsel %vm1152_vm3, 1.0, %v12492_v12  ;;  %vm1159_vm3 = vcmp.eq.s32.totalorder %v7071_v10, %v6861_v42 }
  0xe8   :  { %v5395_v31 = vsel %vm1159_vm3, 1.0, %v12492_v12  ;;  %vm1166_vm3 = vcmp.eq.s32.totalorder %v7071_v10, %v6986_v59 }
  0xe9   :  { %v5402_v38 = vsel %vm1166_vm3, 1.0, %v12492_v12  ;;  %vm12525_vm3 = vcmask 261120  }
  0xea   :  { %5793 = vmatmul.mubr.msk.f32.gmra.mxu1 %vm392_vm5, %v6328_v13  ;;  %5900 = vmatmul.mubr.msk.f32.gmra.mxu0 %vm300_vm6, %v6328_v13  ;;  %vm1153_vm5 = vcmp.eq.s32.totalorder %v7071_v10, %v6741_v24  ;;  %vm846_vm6 = vcmp.eq.s32.totalorder %v7086_v16, %v6741_v24 }
  0xeb   :  { %5795 = vmatprep.mubr.msk.f32.mxu1 %vm6327_vm2, %v12492_v12  ;;  %5902 = vmatprep.mubr.msk.f32.mxu0 %vm6327_vm2, %v12492_v12  ;;  %v5389_v21 = vsel %vm1153_vm5, 1.0, %v12492_v12  ;;  %vm1160_vm5 = vcmp.eq.s32.totalorder %v7071_v10, %v6881_v45 }
  0xec   :  { %v6228_v17 = vpop.eup %6227  ;;  %v5396_v32 = vsel %vm1160_vm5, 1.0, %v12492_v12  ;;  %vm1167_vm5 = vcmp.eq.s32.totalorder %v7071_v10, %v6999_v61 }
  0xed   :  { %v165_v19 = vadd.f32 1.0, %v6228_v17 }
  0xee   :  { %5796 = vmatmul.mubr.msk.f32.gmra.mxu1 %vm393_vm7, %v6328_v13  ;;  %5903 = vmatmul.mubr.msk.f32.gmra.mxu0 %vm301_vm8, %v6328_v13  ;;  %vm1154_vm7 = vcmp.eq.s32.totalorder %v7071_v10, %v6761_v27  ;;  %vm847_vm8 = vcmp.eq.s32.totalorder %v7086_v16, %v6761_v27  ;;  %v5391_v27 = vsel %vm1155_vm9, 1.0, %v12492_v12  ;;  %vm1162_vm9 = vcmp.eq.s32.totalorder %v7071_v10, %v6921_v51 }
  0xef   :  { %6229 = vrcp.f32 %v165_v19  ;;  %5937 = vmatprep.mubr.msk.f32.mxu1 %vm6327_vm2, %v12492_v12  ;;  %6038 = vmatprep.mubr.msk.f32.mxu0 %vm6327_vm2, %v12492_v12  ;;  %v5390_v24 = vsel %vm1154_vm7, 1.0, %v12492_v12  ;;  %vm1161_vm7 = vcmp.eq.s32.totalorder %v7071_v10, %v6901_v48  ;;  %v5398_v34 = vsel %vm1162_vm9, 1.0, %v12492_v12 }
  0xf0   :  { %vm1169_vm9 = vcmp.eq.s32.totalorder %v7071_v10, %v7033_v3 }
  0xf1   :  { %v5405_v41 = vsel %vm1169_vm9, 1.0, %v12492_v12 }
  0xf2   :  { %5938 = vmatmul.mubr.msk.f32.vlgmr.msra.gmra.mxu1 %vm841_vm10, %v6328_v13  ;;  %6039 = vmatmul.mubr.msk.f32.vlgmr.msra.gmra.mxu0 %vm1236_vm11, %v5384_v7  ;;  %vm848_vm10 = vcmp.eq.s32.totalorder %v7086_v16, %v6781_v30  ;;  %v5394_v30 = vsel %vm1158_vm0, 1.0, %v12492_v12  ;;  %vm857_vm0 = vcmp.eq.s32.totalorder %v7086_v16, %v6954_v55 }
  0xf3   :  { %5940 = vmatprep.mubr.msk.f32.mxu1 %vm6327_vm2, %v12492_v12  ;;  %6041 = vmatprep.mubr.msk.f32.mxu0 %vm6327_vm2, %v12492_v12 }
  0xf6   :  { %5941 = vmatmul.mubr.msk.f32.gmra.mxu1 %vm842_vm13, %v6328_v13  ;;  %6042 = vmatmul.mubr.msk.f32.gmra.mxu0 %vm1236_vm11, %v5385_v9  ;;  %vm849_vm13 = vcmp.eq.s32.totalorder %v7086_v16, %v6801_v33  ;;  %v5397_v33 = vsel %vm1161_vm7, 1.0, %v12492_v12  ;;  %vm1168_vm7 = vcmp.eq.s32.totalorder %v7071_v10, %v7019_v0 }
  0xf7   :  { %5943 = vmatprep.mubr.msk.f32.mxu1 %vm6327_vm2, %v12492_v12  ;;  %6044 = vmatprep.mubr.msk.f32.mxu0 %vm6327_vm2, %v12492_v12  ;;  %v5404_v40 = vsel %vm1168_vm7, 1.0, %v12492_v12 }
  0xfa   :  { %5944 = vmatmul.mubr.msk.f32.gmra.mxu1 %vm843_vm15, %v6328_v13  ;;  %6045 = vmatmul.mubr.msk.f32.gmra.mxu0 %vm1236_vm11, %v5386_v15  ;;  %vm850_vm15 = vcmp.eq.s32.totalorder %v7086_v16, %v6821_v36  ;;  %v5400_v36 = vsel %vm1164_vm14, 1.0, %v12492_v12  ;;  %vm1171_vm14 = vcmp.eq.s32.totalorder %v7071_v10, %v7058_v6 }
  0xfb   :  { %5946 = vmatprep.mubr.msk.f32.mxu1 %vm6327_vm2, %v12492_v12  ;;  %6047 = vmatprep.mubr.msk.f32.mxu0 %vm6327_vm2, %v12492_v12  ;;  %v5407_v43 = vsel %vm1171_vm14, 1.0, %v12492_v12 }
  0xfc   :  { %v7136_v25 = vpop.eup %6229 }
  0xfd   :  { %12650 = vst [vmem:[#allocation9_spill] sm:$0xff] %v7136_v25  ;;  %v168_v26 = vmul.f32 %v7136_v25, %v160_v23 }
  0xfe   :  { %5947 = vmatmul.mubr.msk.f32.gmra.mxu1 %vm844_vm1, %v6328_v13  ;;  %6048 = vmatmul.mubr.msk.f32.gmra.mxu0 %vm1236_vm11, %v5387_v14  ;;  %vm851_vm1 = vcmp.eq.s32.totalorder %v7086_v16, %v6841_v39  ;;  %v5403_v39 = vsel %vm1167_vm5, 1.0, %v12492_v12 }
  0xff   :  { %170 = vrot.lane.b32.xlu1 %v168_v26, %s6329_s2  ;;  %5949 = vmatprep.mubr.msk.f32.mxu1 %vm6327_vm2, %v12492_v12 }
 0x100   :  { %6050 = vmatprep.mubr.msk.f32.mxu0 %vm6327_vm2, %v12492_v12 }
 0x102   :  { %5950 = vmatmul.mubr.msk.f32.gmra.mxu1 %vm845_vm4, %v6328_v13  ;;  %6051 = vmatmul.mubr.msk.f32.gmra.mxu0 %vm1236_vm11, %v5388_v18  ;;  %vm852_vm4 = vcmp.eq.s32.totalorder %v7086_v16, %v6861_v42  ;;  %v5406_v42 = vsel %vm1170_vm12, 1.0, %v12492_v12 }
 0x103   :  { %5952 = vmatprep.mubr.msk.f32.mxu1 %vm6327_vm2, %v12492_v12  ;;  %6053 = vmatprep.mubr.msk.f32.mxu0 %vm6327_vm2, %v12492_v12 }
 0x106   :  { %5953 = vmatmul.mubr.msk.f32.gmra.mxu1 %vm846_vm6, %v6328_v13  ;;  %6054 = vmatmul.mubr.msk.f32.gmra.mxu0 %vm1236_vm11, %v5389_v21  ;;  %vm853_vm6 = vcmp.eq.s32.totalorder %v7086_v16, %v6881_v45 }
 0x107   :  { %5955 = vmatprep.mubr.msk.f32.mxu1 %vm6327_vm2, %v12492_v12  ;;  %6056 = vmatprep.mubr.msk.f32.mxu0 %vm6327_vm2, %v12492_v12 }
 0x10a   :  { %5956 = vmatmul.mubr.msk.f32.gmra.mxu1 %vm847_vm8, %v6328_v13  ;;  %6057 = vmatmul.mubr.msk.f32.gmra.mxu0 %vm1236_vm11, %v5390_v24  ;;  %vm854_vm8 = vcmp.eq.s32.totalorder %v7086_v16, %v6901_v48 }
 0x10b   :  { %5958 = vmatprep.mubr.msk.f32.mxu1 %vm6327_vm2, %v12492_v12  ;;  %6059 = vmatprep.mubr.msk.f32.mxu0 %vm6327_vm2, %v12492_v12 }
 0x10e   :  { %5959 = vmatmul.mubr.msk.f32.gmra.mxu1 %vm848_vm10, %v6328_v13  ;;  %6060 = vmatmul.mubr.msk.f32.gmra.mxu0 %vm1236_vm11, %v5391_v27  ;;  %vm855_vm10 = vcmp.eq.s32.totalorder %v7086_v16, %v6921_v51 }
 0x10f   :  { %5961 = vmatprep.mubr.msk.f32.mxu1 %vm6327_vm2, %v12492_v12  ;;  %6062 = vmatprep.mubr.msk.f32.mxu0 %vm6327_vm2, %v12492_v12 }
 0x112   :  { %5962 = vmatmul.mubr.msk.f32.gmra.mxu1 %vm849_vm13, %v6328_v13  ;;  %6063 = vmatmul.mubr.msk.f32.gmra.mxu0 %vm1236_vm11, %v5392_v28  ;;  %vm856_vm13 = vcmp.eq.s32.totalorder %v7086_v16, %v6938_v53 }
 0x113   :  { %5964 = vmatprep.mubr.msk.f32.mxu1 %vm6327_vm2, %v12492_v12  ;;  %6065 = vmatprep.mubr.msk.f32.mxu0 %vm6327_vm2, %v12492_v12 }
 0x116   :  { %5965 = vmatmul.mubr.msk.f32.gmra.mxu1 %vm850_vm15, %v6328_v13  ;;  %6066 = vmatmul.mubr.msk.f32.gmra.mxu0 %vm1236_vm11, %v5393_v29  ;;  %vm1165_vm15 = vcmp.eq.s32.totalorder %v7071_v10, %v6970_v57 }
 0x117   :  { %5967 = vmatprep.mubr.msk.f32.mxu1 %vm6327_vm2, %v12492_v12  ;;  %6068 = vmatprep.mubr.msk.f32.mxu0 %vm6327_vm2, %v12492_v12  ;;  %v5401_v37 = vsel %vm1165_vm15, 1.0, %v12492_v12  ;;  %vm864_vm15 = vcmp.eq.s32.totalorder %v7086_v16, %v7058_v6 }
 0x11a   :  { %5968 = vmatmul.mubr.msk.f32.gmra.mxu1 %vm851_vm1, %v6328_v13  ;;  %6069 = vmatmul.mubr.msk.f32.gmra.mxu0 %vm1236_vm11, %v5394_v30  ;;  %vm858_vm1 = vcmp.eq.s32.totalorder %v7086_v16, %v6970_v57 }
 0x11b   :  { %5970 = vmatprep.mubr.msk.f32.mxu1 %vm6327_vm2, %v12492_v12  ;;  %6071 = vmatprep.mubr.msk.f32.mxu0 %vm6327_vm2, %v12492_v12 }
 0x11e   :  { %5971 = vmatmul.mubr.msk.f32.gmra.mxu1 %vm852_vm4, %v6328_v13  ;;  %6072 = vmatmul.mubr.msk.f32.gmra.mxu0 %vm1236_vm11, %v5395_v31  ;;  %vm859_vm4 = vcmp.eq.s32.totalorder %v7086_v16, %v6986_v59 }
 0x11f   :  { %5973 = vmatprep.mubr.msk.f32.mxu1 %vm6327_vm2, %v12492_v12  ;;  %6074 = vmatprep.mubr.msk.f32.mxu0 %vm6327_vm2, %v12492_v12 }
 0x122   :  { %5974 = vmatmul.mubr.msk.f32.gmra.mxu1 %vm853_vm6, %v6328_v13  ;;  %6075 = vmatmul.mubr.msk.f32.gmra.mxu0 %vm1236_vm11, %v5396_v32  ;;  %vm860_vm6 = vcmp.eq.s32.totalorder %v7086_v16, %v6999_v61 }
 0x123   :  { %5976 = vmatprep.mubr.msk.f32.mxu1 %vm6327_vm2, %v12492_v12  ;;  %6077 = vmatprep.mubr.msk.f32.mxu0 %vm6327_vm2, %v12492_v12 }
 0x126   :  { %5977 = vmatmul.mubr.msk.f32.gmra.mxu1 %vm854_vm8, %v6328_v13  ;;  %6078 = vmatmul.mubr.msk.f32.gmra.mxu0 %vm1236_vm11, %v5397_v33  ;;  %vm861_vm8 = vcmp.eq.s32.totalorder %v7086_v16, %v7019_v0 }
 0x127   :  { %5979 = vmatprep.mubr.msk.f32.mxu1 %vm6327_vm2, %v12492_v12  ;;  %6080 = vmatprep.mubr.msk.f32.mxu0 %vm6327_vm2, %v12492_v12 }
 0x12a   :  { %5980 = vmatmul.mubr.msk.f32.gmra.mxu1 %vm855_vm10, %v6328_v13  ;;  %6081 = vmatmul.mubr.msk.f32.gmra.mxu0 %vm1236_vm11, %v5398_v34  ;;  %vm862_vm10 = vcmp.eq.s32.totalorder %v7086_v16, %v7033_v3 }
 0x12b   :  { %5982 = vmatprep.mubr.msk.f32.mxu1 %vm6327_vm2, %v12492_v12  ;;  %6083 = vmatprep.mubr.msk.f32.mxu0 %vm6327_vm2, %v12492_v12 }
 0x12e   :  { %5983 = vmatmul.mubr.msk.f32.gmra.mxu1 %vm856_vm13, %v6328_v13  ;;  %6084 = vmatmul.mubr.msk.f32.gmra.mxu0 %vm1236_vm11, %v5399_v35  ;;  %vm863_vm13 = vcmp.eq.s32.totalorder %v7086_v16, %v7046_v5 }
 0x12f   :  { %5985 = vmatprep.mubr.msk.f32.mxu1 %vm6327_vm2, %v12492_v12  ;;  %6086 = vmatprep.mubr.msk.f32.mxu0 %vm6327_vm2, %v12492_v12 }
 0x132   :  { %5986 = vmatmul.mubr.msk.f32.gmra.mxu1 %vm857_vm0, %v6328_v13  ;;  %6087 = vmatmul.mubr.msk.f32.gmra.mxu0 %vm1236_vm11, %v5400_v36  ;;  %vm1172_vm0 = vcmp.eq.s32.totalorder %v7071_v10, %v7073_v11 }
 0x133   :  { %5988 = vmatprep.mubr.msk.f32.mxu1 %vm6327_vm2, %v12492_v12  ;;  %6089 = vmatprep.mubr.msk.f32.mxu0 %vm6327_vm2, %v12492_v12  ;;  %v5408_v49 = vsel %vm1172_vm0, 1.0, %v12492_v12 }
 0x136   :  { %5989 = vmatmul.mubr.msk.f32.gmra.mxu1 %vm858_vm1, %v6328_v13  ;;  %6090 = vmatmul.mubr.msk.f32.gmra.mxu0 %vm1236_vm11, %v5401_v37  ;;  %vm865_vm1 = vcmp.eq.s32.totalorder %v7086_v16, %v7073_v11 }
 0x137   :  { %5991 = vmatprep.mubr.msk.f32.mxu1 %vm6327_vm2, %v12492_v12  ;;  %6092 = vmatprep.mubr.msk.f32.mxu0 %vm6327_vm2, %v12492_v12 }
 0x13a   :  { %5992 = vmatmul.mubr.msk.f32.gmra.mxu1 %vm859_vm4, %v6328_v13  ;;  %6093 = vmatmul.mubr.msk.f32.gmra.mxu0 %vm1236_vm11, %v5402_v38  ;;  %vm2061_vm4 = vcmask 588800  }
 0x13b   :  { %5994 = vmatprep.mubr.msk.f32.mxu1 %vm6327_vm2, %v12492_v12  ;;  %6095 = vmatprep.mubr.msk.f32.mxu0 %vm6327_vm2, %v12492_v12 }
 0x13e   :  { %5995 = vmatmul.mubr.msk.f32.gmra.mxu1 %vm860_vm6, %v6328_v13  ;;  %6096 = vmatmul.mubr.msk.f32.gmra.mxu0 %vm1236_vm11, %v5403_v39 }
 0x13f   :  { %5997 = vmatprep.mubr.msk.f32.mxu1 %vm6327_vm2, %v12492_v12  ;;  %6098 = vmatprep.mubr.msk.f32.mxu0 %vm6327_vm2, %v12492_v12 }
 0x142   :  { %5998 = vmatmul.mubr.msk.f32.gmra.mxu1 %vm861_vm8, %v6328_v13  ;;  %6099 = vmatmul.mubr.msk.f32.gmra.mxu0 %vm1236_vm11, %v5404_v40 }
 0x143   :  { %6000 = vmatprep.mubr.msk.f32.mxu1 %vm6327_vm2, %v12492_v12  ;;  %6101 = vmatprep.mubr.msk.f32.mxu0 %vm6327_vm2, %v12492_v12 }
 0x146   :  { %6001 = vmatmul.mubr.msk.f32.gmra.mxu1 %vm862_vm10, %v6328_v13  ;;  %6102 = vmatmul.mubr.msk.f32.gmra.mxu0 %vm1236_vm11, %v5405_v41 }
 0x147   :  { %6003 = vmatprep.mubr.msk.f32.mxu1 %vm6327_vm2, %v12492_v12  ;;  %6104 = vmatprep.mubr.msk.f32.mxu0 %vm6327_vm2, %v12492_v12 }
 0x14a   :  { %6004 = vmatmul.mubr.msk.f32.gmra.mxu1 %vm863_vm13, %v6328_v13  ;;  %6105 = vmatmul.mubr.msk.f32.gmra.mxu0 %vm1236_vm11, %v5406_v42 }
 0x14b   :  { %6006 = vmatprep.mubr.msk.f32.mxu1 %vm6327_vm2, %v12492_v12  ;;  %6107 = vmatprep.mubr.msk.f32.mxu0 %vm6327_vm2, %v12492_v12 }
 0x14e   :  { %v526_v44 = vpop.f32.mrf.mxu1  ;;  %v716_v45 = vpop.f32.mrf.mxu0  ;;  %6007 = vmatmul.mubr.msk.f32.gmra.mxu1 %vm864_vm15, %v6328_v13  ;;  %6108 = vmatmul.mubr.msk.f32.gmra.mxu0 %vm1236_vm11, %v5407_v43 }
 0x14f   :  { %v7364_v46 = vadd.f32 %v716_v45, %v526_v44  ;;  %6009 = vmatprep.mubr.msk.f32.mxu1 %vm6327_vm2, %v12492_v12  ;;  %6110 = vmatprep.mubr.msk.f32.mxu0 %vm6327_vm2, %v12492_v12 }
 0x150   :  { %v5725_v47 = vpop.f32.mrf.mxu1  ;;  %v5832_v48 = vpop.f32.mrf.mxu0 }
 0x152   :  { %v531_v50 = vpop.f32.mrf.mxu1  ;;  %v721_v51 = vpop.f32.mrf.mxu0  ;;  %6010 = vmatmul.mubr.msk.f32.gmra.mxu1 %vm865_vm1, %v6328_v13  ;;  %6111 = vmatmul.mubr.msk.f32.gmra.mxu0 %vm1236_vm11, %v5408_v49  ;;  %vm1560_vm11 = vcmask 64512  }
 0x153   :  { %v7375_v52 = vadd.f32 %v721_v51, %v531_v50  ;;  %6115 = vmatprep.mubr.msk.f32.mxu1 %vm6327_vm2, %v12492_v12 }
 0x154   :  { %v5728_v53 = vpop.f32.mrf.mxu1  ;;  %v5835_v54 = vpop.f32.mrf.mxu0 }
 0x156   :  { %v536_v55 = vpop.f32.mrf.mxu1  ;;  %v726_v56 = vpop.f32.mrf.mxu0 }
 0x157   :  { %v7379_v57 = vadd.f32 %v726_v56, %v536_v55 }
 0x158   :  { %v5731_v59 = vpop.f32.mrf.mxu1  ;;  %v5838_v61 = vpop.f32.mrf.mxu0 }
 0x15a   :  { %v541_v62 = vpop.f32.mrf.mxu1  ;;  %v731_v63 = vpop.f32.mrf.mxu0 }
 0x15b   :  { %v7381_v0 = vadd.f32 %v731_v63, %v541_v62 }
 0x15c   :  { %v5734_v13 = vpop.f32.mrf.mxu1  ;;  %v5841_v1 = vpop.f32.mrf.mxu0 }
 0x15e   :  { %v546_v3 = vpop.f32.mrf.mxu1  ;;  %v736_v4 = vpop.f32.mrf.mxu0 }
 0x15f   :  { %v7383_v5 = vadd.f32 %v736_v4, %v546_v3 }
 0x160   :  { %v5737_v6 = vpop.f32.mrf.mxu1  ;;  %v5844_v10 = vpop.f32.mrf.mxu0 }
 0x162   :  { %v551_v11 = vpop.f32.mrf.mxu1  ;;  %v741_v16 = vpop.f32.mrf.mxu0 }
 0x163   :  { %v7385_v17 = vadd.f32 %v741_v16, %v551_v11 }
 0x164   :  { %v5740_v19 = vpop.f32.mrf.mxu1  ;;  %v5847_v7 = vpop.f32.mrf.mxu0 }
 0x166   :  { %v556_v9 = vpop.f32.mrf.mxu1  ;;  %v746_v20 = vpop.f32.mrf.mxu0 }
 0x167   :  { %v7387_v15 = vadd.f32 %v746_v20, %v556_v9 }
 0x168   :  { %v5743_v22 = vpop.f32.mrf.mxu1  ;;  %v5850_v23 = vpop.f32.mrf.mxu0 }
 0x16a   :  { %v561_v14 = vpop.f32.mrf.mxu1  ;;  %v751_v26 = vpop.f32.mrf.mxu0 }
 0x16b   :  { %v7389_v18 = vadd.f32 %v751_v26, %v561_v14 }
 0x16c   :  { %v5746_v21 = vpop.f32.mrf.mxu1  ;;  %v5853_v24 = vpop.f32.mrf.mxu0 }
 0x16e   :  { %v566_v27 = vpop.f32.mrf.mxu1  ;;  %v756_v28 = vpop.f32.mrf.mxu0 }
 0x16f   :  { %v7391_v29 = vadd.f32 %v756_v28, %v566_v27 }
 0x170   :  { %v5749_v30 = vpop.f32.mrf.mxu1  ;;  %v5856_v31 = vpop.f32.mrf.mxu0 }
 0x171   :  { %v171_v32 = vpop.permute.xlu1 %170 }
 0x172   :  { %v173_v33 = vadd.f32 %v171_v32, %v7023_v2  ;;  %v571_v34 = vpop.f32.mrf.mxu1  ;;  %v761_v35 = vpop.f32.mrf.mxu0 }
 0x173   :  { %v7394_v36 = vadd.f32 %v761_v35, %v571_v34 }
 0x174   :  { %6231 = vtanh.f32 %v173_v33  ;;  %v5752_v37 = vpop.f32.mrf.mxu1  ;;  %v5859_v38 = vpop.f32.mrf.mxu0 }
 0x176   :  { %v576_v39 = vpop.f32.mrf.mxu1  ;;  %v766_v40 = vpop.f32.mrf.mxu0 }
 0x177   :  { %v7396_v41 = vadd.f32 %v766_v40, %v576_v39 }
 0x178   :  { %v5755_v42 = vpop.f32.mrf.mxu1  ;;  %v5862_v43 = vpop.f32.mrf.mxu0 }
 0x17a   :  { %v581_v44 = vpop.f32.mrf.mxu1  ;;  %v771_v45 = vpop.f32.mrf.mxu0 }
 0x17b   :  { %v7398_v47 = vadd.f32 %v771_v45, %v581_v44 }
 0x17c   :  { %v5758_v48 = vpop.f32.mrf.mxu1  ;;  %v5865_v49 = vpop.f32.mrf.mxu0 }
 0x17e   :  { %v586_v2 = vpop.f32.mrf.mxu1  ;;  %v776_v50 = vpop.f32.mrf.mxu0 }
 0x17f   :  { %v7400_v51 = vadd.f32 %v776_v50, %v586_v2 }
 0x180   :  { %v5761_v53 = vpop.f32.mrf.mxu1  ;;  %v5868_v54 = vpop.f32.mrf.mxu0 }
 0x181   :  { %v7402_v55 = vpop.eup %6231 }
 0x182   :  { %12651 = vst [vmem:[#allocation10_spill] sm:$0xff] %v7402_v55  ;;  %v591_v56 = vpop.f32.mrf.mxu1  ;;  %v781_v59 = vpop.f32.mrf.mxu0  ;;  %1557 = vrot.lane.b32.xlu0 %v7402_v55, %s6330_s4 }
 0x183   :  { %v7406_v61 = vadd.f32 %v781_v59, %v591_v56 }
 0x184   :  { %v5764_v62 = vpop.f32.mrf.mxu1  ;;  %v5871_v63 = vpop.f32.mrf.mxu0 }
 0x186   :  { %v596_v13 = vpop.f32.mrf.mxu1  ;;  %v786_v1 = vpop.f32.mrf.mxu0 }
 0x187   :  { %v7408_v3 = vadd.f32 %v786_v1, %v596_v13 }
 0x188   :  { %v5767_v4 = vpop.f32.mrf.mxu1  ;;  %v5874_v6 = vpop.f32.mrf.mxu0 }
 0x18a   :  { %v601_v10 = vpop.f32.mrf.mxu1  ;;  %v791_v11 = vpop.f32.mrf.mxu0 }
 0x18b   :  { %v7410_v16 = vadd.f32 %v791_v11, %v601_v10 }
 0x18c   :  { %v5770_v19 = vpop.f32.mrf.mxu1  ;;  %v5877_v7 = vpop.f32.mrf.mxu0 }
 0x18e   :  { %v606_v9 = vpop.f32.mrf.mxu1  ;;  %v796_v20 = vpop.f32.mrf.mxu0 }
 0x18f   :  { %v7412_v22 = vadd.f32 %v796_v20, %v606_v9 }
 0x190   :  { %v5773_v23 = vpop.f32.mrf.mxu1  ;;  %v5880_v14 = vpop.f32.mrf.mxu0 }
 0x192   :  { %v611_v26 = vpop.f32.mrf.mxu1  ;;  %v801_v21 = vpop.f32.mrf.mxu0 }
 0x193   :  { %v7414_v24 = vadd.f32 %v801_v21, %v611_v26 }
 0x194   :  { %v5776_v27 = vpop.f32.mrf.mxu1  ;;  %v5883_v28 = vpop.f32.mrf.mxu0 }
 0x196   :  { %v616_v30 = vpop.f32.mrf.mxu1  ;;  %v806_v31 = vpop.f32.mrf.mxu0 }
 0x197   :  { %v7416_v32 = vadd.f32 %v806_v31, %v616_v30 }
 0x198   :  { %v5779_v33 = vpop.f32.mrf.mxu1  ;;  %v5886_v34 = vpop.f32.mrf.mxu0 }
 0x19a   :  { %v621_v35 = vpop.f32.mrf.mxu1  ;;  %v811_v37 = vpop.f32.mrf.mxu0 }
 0x19b   :  { %v7418_v38 = vadd.f32 %v811_v37, %v621_v35 }
 0x19c   :  { %v5782_v39 = vpop.f32.mrf.mxu1  ;;  %v5889_v40 = vpop.f32.mrf.mxu0 }
 0x19e   :  { %v626_v42 = vpop.f32.mrf.mxu1  ;;  %v816_v43 = vpop.f32.mrf.mxu0 }
 0x19f   :  { %v7420_v44 = vadd.f32 %v816_v43, %v626_v42 }
 0x1a0   :  { %v5785_v45 = vpop.f32.mrf.mxu1  ;;  %v5892_v48 = vpop.f32.mrf.mxu0 }
 0x1a2   :  { %v631_v49 = vpop.f32.mrf.mxu1  ;;  %v821_v2 = vpop.f32.mrf.mxu0 }
 0x1a3   :  { %v7422_v50 = vadd.f32 %v821_v2, %v631_v49 }
 0x1a4   :  { %v5788_v53 = vpop.f32.mrf.mxu1  ;;  %v5895_v54 = vpop.f32.mrf.mxu0 }
 0x1a6   :  { %v636_v56 = vpop.f32.mrf.mxu1  ;;  %v826_v59 = vpop.f32.mrf.mxu0 }
 0x1a7   :  { %v7424_v62 = vadd.f32 %v826_v59, %v636_v56 }
 0x1a8   :  { %v5791_v63 = vpop.f32.mrf.mxu1  ;;  %v5898_v13 = vpop.f32.mrf.mxu0 }
 0x1aa   :  { %v641_v1 = vpop.f32.mrf.mxu1  ;;  %v831_v4 = vpop.f32.mrf.mxu0 }
 0x1ab   :  { %v7426_v6 = vadd.f32 %v831_v4, %v641_v1 }
 0x1ac   :  { %v5794_v10 = vpop.f32.mrf.mxu1  ;;  %v5901_v11 = vpop.f32.mrf.mxu0 }
 0x1ae   :  { %v646_v19 = vpop.f32.mrf.mxu1  ;;  %v836_v7 = vpop.f32.mrf.mxu0 }
 0x1af   :  { %v7428_v9 = vadd.f32 %v836_v7, %v646_v19 }
 0x1b0   :  { %v5797_v20 = vpop.f32.mrf.mxu1  ;;  %v5904_v23 = vpop.f32.mrf.mxu0 }
 0x1b2   :  { %v998_v14 = vpop.f32.mrf.mxu1  ;;  %v1382_v26 = vpop.f32.mrf.mxu0 }
 0x1b3   :  { %v1122_v21 = vadd.f32 %v998_v14, %v7364_v46 }
 0x1b4   :  { %v5939_v27 = vpop.f32.mrf.mxu1  ;;  %v6040_v28 = vpop.f32.mrf.mxu0 }
 0x1b5   :  { %v7431_v30 = vadd.f32 %v1382_v26, %v1122_v21 }
 0x1b6   :  { %v1003_v31 = vpop.f32.mrf.mxu1  ;;  %v1387_v33 = vpop.f32.mrf.mxu0 }
 0x1b7   :  { %v1123_v34 = vadd.f32 %v1003_v31, %v7375_v52 }
 0x1b8   :  { %v5942_v35 = vpop.f32.mrf.mxu1  ;;  %v6043_v37 = vpop.f32.mrf.mxu0 }
 0x1b9   :  { %v7434_v39 = vadd.f32 %v1387_v33, %v1123_v34 }
 0x1ba   :  { %v1008_v40 = vpop.f32.mrf.mxu1  ;;  %v1392_v42 = vpop.f32.mrf.mxu0 }
 0x1bb   :  { %v1124_v43 = vadd.f32 %v1008_v40, %v7379_v57 }
 0x1bc   :  { %v5945_v45 = vpop.f32.mrf.mxu1  ;;  %v6046_v48 = vpop.f32.mrf.mxu0 }
 0x1bd   :  { %v7437_v49 = vadd.f32 %v1392_v42, %v1124_v43 }
 0x1be   :  { %v1013_v46 = vpop.f32.mrf.mxu1  ;;  %v1397_v2 = vpop.f32.mrf.mxu0 }
 0x1bf   :  { %v1125_v53 = vadd.f32 %v1013_v46, %v7381_v0 }
 0x1c0   :  { %v5948_v54 = vpop.f32.mrf.mxu1  ;;  %v6049_v56 = vpop.f32.mrf.mxu0 }
 0x1c1   :  { %v7440_v59 = vadd.f32 %v1397_v2, %v1125_v53 }
 0x1c2   :  { %v1018_v52 = vpop.f32.mrf.mxu1  ;;  %v1402_v63 = vpop.f32.mrf.mxu0 }
 0x1c3   :  { %v1126_v13 = vadd.f32 %v1018_v52, %v7383_v5 }
 0x1c4   :  { %v5951_v1 = vpop.f32.mrf.mxu1  ;;  %v6052_v4 = vpop.f32.mrf.mxu0 }
 0x1c5   :  { %v7443_v10 = vadd.f32 %v1402_v63, %v1126_v13 }
 0x1c6   :  { %v1023_v57 = vpop.f32.mrf.mxu1  ;;  %v1407_v11 = vpop.f32.mrf.mxu0 }
 0x1c7   :  { %v1127_v19 = vadd.f32 %v1023_v57, %v7385_v17 }
 0x1c8   :  { %v5954_v7 = vpop.f32.mrf.mxu1  ;;  %v6055_v20 = vpop.f32.mrf.mxu0 }
 0x1c9   :  { %v7446_v23 = vadd.f32 %v1407_v11, %v1127_v19 }
 0x1ca   :  { %v7448_v0 = vpop.f32.mrf.mxu1  ;;  %v7450_v14 = vpop.f32.mrf.mxu0 }
 0x1cc   :  { %v5957_v26 = vpop.f32.mrf.mxu1  ;;  %v6058_v21 = vpop.f32.mrf.mxu0 }
 0x1ce   :  { %v7452_v27 = vpop.f32.mrf.mxu1  ;;  %v7454_v5 = vpop.f32.mrf.mxu0 }
 0x1d0   :  { %v5960_v28 = vpop.f32.mrf.mxu1  ;;  %v6061_v31 = vpop.f32.mrf.mxu0 }
 0x1d2   :  { %v7456_v33 = vpop.f32.mrf.mxu1  ;;  %v7458_v34 = vpop.f32.mrf.mxu0 }
 0x1d4   :  { %v5963_v17 = vpop.f32.mrf.mxu1  ;;  %v6064_v35 = vpop.f32.mrf.mxu0 }
 0x1d6   :  { %v7460_v37 = vpop.f32.mrf.mxu1  ;;  %v7462_v40 = vpop.f32.mrf.mxu0 }
 0x1d8   :  { %v5966_v42 = vpop.f32.mrf.mxu1  ;;  %v6067_v43 = vpop.f32.mrf.mxu0 }
 0x1da   :  { %v1048_v45 = vpop.f32.mrf.mxu1  ;;  %v7464_v48 = vpop.f32.mrf.mxu0 }
 0x1dc   :  { %v5969_v46 = vpop.f32.mrf.mxu1  ;;  %v6070_v2 = vpop.f32.mrf.mxu0 }
 0x1de   :  { %v1053_v53 = vpop.f32.mrf.mxu1  ;;  %v1437_v54 = vpop.f32.mrf.mxu0 }
 0x1e0   :  { %v5972_v56 = vpop.f32.mrf.mxu1  ;;  %v6073_v52 = vpop.f32.mrf.mxu0 }
 0x1e2   :  { %v1058_v63 = vpop.f32.mrf.mxu1  ;;  %v1442_v13 = vpop.f32.mrf.mxu0 }
 0x1e4   :  { %v5975_v1 = vpop.f32.mrf.mxu1  ;;  %v6076_v4 = vpop.f32.mrf.mxu0 }
 0x1e6   :  { %v1063_v57 = vpop.f32.mrf.mxu1  ;;  %v1447_v11 = vpop.f32.mrf.mxu0 }
 0x1e7   :  { %v1135_v56 = vadd.f32 %v1063_v57, %v7406_v61  ;;  %v1134_v61 = vadd.f32 %v1058_v63, %v7400_v51 }
 0x1e8   :  { %v5978_v19 = vpop.f32.mrf.mxu1  ;;  %v6079_v7 = vpop.f32.mrf.mxu0 }
 0x1e9   :  { %v1531_v7 = vld [vmem:[%s12482_s6] sm:$0xff] }
 0x1ea   :  { %v1068_v20 = vpop.f32.mrf.mxu1  ;;  %v1452_v26 = vpop.f32.mrf.mxu0 }
 0x1eb   :  { %v1136_v52 = vadd.f32 %v1068_v20, %v7408_v3  ;;  %v7488_v3 = vadd.f32 %v1447_v11, %v1135_v56  ;;  %v1132_v11 = vadd.f32 %v1048_v45, %v7396_v41 }
 0x1ec   :  { %v5981_v21 = vpop.f32.mrf.mxu1  ;;  %v6082_v28 = vpop.f32.mrf.mxu0 }
 0x1ed   :  { %v7490_v57 = vadd.f32 %v1452_v26, %v1136_v52  ;;  %v7508_v26 = vadd.f32 %v1442_v13, %v1134_v61  ;;  %v1130_v13 = vadd.f32 %v7456_v33, %v7391_v29  ;;  %v7531_v52 = vadd.f32 %v7464_v48, %v1132_v11 }
 0x1ee   :  { %v1073_v31 = vpop.f32.mrf.mxu1  ;;  %v1457_v17 = vpop.f32.mrf.mxu0 }
 0x1ef   :  { %v1137_v35 = vadd.f32 %v1073_v31, %v7410_v16 }
 0x1f0   :  { %v5984_v42 = vpop.f32.mrf.mxu1  ;;  %v6085_v43 = vpop.f32.mrf.mxu0 }
 0x1f1   :  { %v7473_v1 = vadd.f32 %v1457_v17, %v1137_v35  ;;  %v1532_v17 = vld [vmem:[%s12482_s6 + $0x8] sm:$0xff]  ;;  %v1133_v35 = vadd.f32 %v1053_v53, %v7398_v47  ;;  %v1533_v47 = vld [vmem:[%s12482_s6 + $0x10] sm:$0xff]  ;;  %v1131_v53 = vadd.f32 %v7460_v37, %v7394_v36 }
 0x1f2   :  { %v7467_v46 = vpop.f32.mrf.mxu1  ;;  %v7469_v2 = vpop.f32.mrf.mxu0 }
 0x1f3   :  { %v7519_v56 = vadd.f32 %v1437_v54, %v1133_v35  ;;  %v1534_v54 = vld [vmem:[%s12482_s6 + $0x18] sm:$0xff]  ;;  %v7543_v29 = vadd.f32 %v7462_v40, %v1131_v53  ;;  %v1535_v40 = vld [vmem:[%s12482_s6 + $0x20] sm:$0xff] }
 0x1f4   :  { %v5987_v4 = vpop.f32.mrf.mxu1  ;;  %v6088_v19 = vpop.f32.mrf.mxu0 }
 0x1f5   :  { %v7478_v16 = vpop.permute.xlu0 %1557  ;;  %v1129_v4 = vadd.f32 %v7452_v27, %v7389_v18  ;;  %v1128_v19 = vadd.f32 %v7448_v0, %v7387_v15 }
 0x1f6   :  { %12652 = vst [vmem:[#allocation11_spill] sm:$0xff] %v7478_v16  ;;  %6114 = vmatpush3.msra.mxu1 %v7478_v16  ;;  %v7481_v21 = vpop.f32.mrf.mxu1  ;;  %v7483_v28 = vpop.f32.mrf.mxu0 }
 0x1f7   :  { %6116 = vmatmul.mubr.msk.f32.vlgmr.msra.gmra.mxu1 %vm1560_vm11, %v1531_v7  ;;  %2409 = vmatprep.subr.mxu1 %v12492_v12  ;;  %v7555_v7 = vadd.f32 %v7458_v34, %v1130_v13  ;;  %v7565_v61 = vadd.f32 %v7454_v5, %v1129_v4  ;;  %v7571_v34 = vadd.f32 %v7450_v14, %v1128_v19  ;;  %v1536_v5 = vld [vmem:[%s12482_s6 + $0x28] sm:$0xff] }
 0x1f8   :  { %2410 = vmatpush1.msra.mxu1 %v7473_v1  ;;  %v5990_v20 = vpop.f32.mrf.mxu1  ;;  %v6091_v31 = vpop.f32.mrf.mxu0  ;;  %6118 = vmatprep.mubr.msk.f32.mxu1 %vm6327_vm2, %v12492_v12 }
 0x1f9   :  { %2411 = vmatprep.subr.mxu1 %v12492_v12 }
 0x1fa   :  { %2412 = vmatpush1.msra.mxu1 %v7490_v57  ;;  %v7501_v51 = vpop.f32.mrf.mxu1  ;;  %v7503_v63 = vpop.f32.mrf.mxu0 }
 0x1fb   :  { %6119 = vmatmul.mubr.msk.f32.gmra.mxu1 %vm1560_vm11, %v1532_v17  ;;  %2413 = vmatprep.subr.mxu1 %v12492_v12 }
 0x1fc   :  { %2414 = vmatpush1.msra.mxu1 %v7488_v3  ;;  %v5993_v42 = vpop.f32.mrf.mxu1  ;;  %v6094_v43 = vpop.f32.mrf.mxu0  ;;  %6121 = vmatprep.mubr.msk.f32.mxu1 %vm6327_vm2, %v12492_v12 }
 0x1fd   :  { %2415 = vmatprep.subr.mxu1 %v12492_v12  ;;  %v1537_v42 = vld [vmem:[%s12482_s6 + $0x30] sm:$0xff] }
 0x1fe   :  { %2416 = vmatpush1.msra.mxu1 %v7508_v26  ;;  %v7522_v41 = vpop.f32.mrf.mxu1  ;;  %v7524_v45 = vpop.f32.mrf.mxu0 }
 0x1ff   :  { %6122 = vmatmul.mubr.msk.f32.gmra.mxu1 %vm1560_vm11, %v1533_v47  ;;  %2417 = vmatprep.subr.mxu1 %v12492_v12 }
 0x200   :  { %2418 = vmatpush1.msra.mxu1 %v7519_v56  ;;  %v5996_v36 = vpop.f32.mrf.mxu1  ;;  %v6097_v37 = vpop.f32.mrf.mxu0  ;;  %6124 = vmatprep.mubr.msk.f32.mxu1 %vm6327_vm2, %v12492_v12 }
 0x201   :  { %2419 = vmatprep.subr.mxu1 %v12492_v12  ;;  %v1538_v36 = vld [vmem:[%s12482_s6 + $0x38] sm:$0xff] }
 0x202   :  { %2420 = vmatpush1.msra.mxu1 %v7531_v52  ;;  %v7546_v33 = vpop.f32.mrf.mxu1  ;;  %v7548_v48 = vpop.f32.mrf.mxu0 }
 0x203   :  { %6125 = vmatmul.mubr.msk.f32.gmra.mxu1 %vm1560_vm11, %v1534_v54  ;;  %2421 = vmatprep.subr.mxu1 %v12492_v12 }
 0x204   :  { %2422 = vmatpush1.msra.mxu1 %v7543_v29  ;;  %v5999_v18 = vpop.f32.mrf.mxu1  ;;  %v6100_v27 = vpop.f32.mrf.mxu0  ;;  %6127 = vmatprep.mubr.msk.f32.mxu1 %vm6327_vm2, %v12492_v12 }
 0x205   :  { %2423 = vmatprep.subr.mxu1 %v12492_v12  ;;  %v1539_v18 = vld [vmem:[%s12482_s6 + $0x40] sm:$0xff] }
 0x206   :  { %2424 = vmatpush1.msra.mxu1 %v7555_v7  ;;  %v1103_v15 = vpop.f32.mrf.mxu1  ;;  %v1487_v0 = vpop.f32.mrf.mxu0 }
 0x207   :  { %6128 = vmatmul.mubr.msk.f32.gmra.mxu1 %vm1560_vm11, %v1535_v40  ;;  %2425 = vmatprep.subr.mxu1 %v12492_v12 }
 0x208   :  { %2426 = vmatpush1.msra.mxu1 %v7565_v61  ;;  %v6002_v20 = vpop.f32.mrf.mxu1  ;;  %v6103_v31 = vpop.f32.mrf.mxu0  ;;  %6130 = vmatprep.mubr.msk.f32.mxu1 %vm6327_vm2, %v12492_v12 }
 0x209   :  { %2427 = vmatprep.subr.mxu1 %v12492_v12 }
 0x20a   :  { %2428 = vmatpush1.msra.mxu1 %v7571_v34  ;;  %v1108_v17 = vpop.f32.mrf.mxu1  ;;  %v1492_v35 = vpop.f32.mrf.mxu0 }
 0x20b   :  { %6131 = vmatmul.mubr.msk.f32.gmra.mxu1 %vm1560_vm11, %v1536_v5  ;;  %2429 = vmatprep.subr.mxu1 %v12492_v12  ;;  %v1540_v5 = vld [vmem:[%s12482_s6 + $0x48] sm:$0xff] }
 0x20c   :  { %2430 = vmatpush1.msra.mxu1 %v7446_v23  ;;  %v6005_v14 = vpop.f32.mrf.mxu1  ;;  %v6106_v11 = vpop.f32.mrf.mxu0  ;;  %6133 = vmatprep.mubr.msk.f32.mxu1 %vm6327_vm2, %v12492_v12 }
 0x20d   :  { %2431 = vmatprep.subr.mxu1 %v12492_v12  ;;  %v1550_v14 = vld [vmem:[%s12482_s6 + $0x98] sm:$0xff]  ;;  %v1551_v11 = vld [vmem:[%s12482_s6 + $0xa0] sm:$0xff] }
 0x20e   :  { %2432 = vmatpush1.msra.mxu1 %v7443_v10  ;;  %v1113_v43 = vpop.f32.mrf.mxu1  ;;  %v1497_v47 = vpop.f32.mrf.mxu0 }
 0x20f   :  { %6134 = vmatmul.mubr.msk.f32.gmra.mxu1 %vm1560_vm11, %v1537_v42  ;;  %2433 = vmatprep.subr.mxu1 %v12492_v12  ;;  %v1145_v19 = vadd.f32 %v1113_v43, %v7426_v6  ;;  %v1143_v6 = vadd.f32 %v1103_v15, %v7422_v50  ;;  %v1141_v50 = vadd.f32 %v7522_v41, %v7418_v38  ;;  %v1552_v42 = vld [vmem:[%s12482_s6 + $0xa8] sm:$0xff]  ;;  %v1553_v43 = vld [vmem:[%s12482_s6 + $0xb0] sm:$0xff] }
 0x210   :  { %2434 = vmatpush1.msra.mxu1 %v7440_v59  ;;  %v6008_v53 = vpop.f32.mrf.mxu1  ;;  %v6109_v13 = vpop.f32.mrf.mxu0  ;;  %6136 = vmatprep.mubr.msk.f32.mxu1 %vm6327_vm2, %v12492_v12  ;;  %v1139_v38 = vadd.f32 %v7481_v21, %v7414_v24  ;;  %v1544_v21 = vld [vmem:[%s12482_s6 + $0x68] sm:$0xff] }
 0x211   :  { %2435 = vmatprep.subr.mxu1 %v12492_v12  ;;  %v7619_v31 = vadd.f32 %v1497_v47, %v1145_v19  ;;  %v7637_v15 = vadd.f32 %v1487_v0, %v1143_v6  ;;  %v7657_v41 = vadd.f32 %v7524_v45, %v1141_v50  ;;  %v1548_v45 = vld [vmem:[%s12482_s6 + $0x88] sm:$0xff]  ;;  %v1549_v0 = vld [vmem:[%s12482_s6 + $0x90] sm:$0xff]  ;;  %v1554_v47 = vld [vmem:[%s12482_s6 + $0xb8] sm:$0xff] }
 0x212   :  { %2436 = vmatpush1.msra.mxu1 %v7437_v49  ;;  %v1118_v37 = vpop.f32.mrf.mxu1  ;;  %v1502_v54 = vpop.f32.mrf.mxu0  ;;  %v7675_v24 = vadd.f32 %v7483_v28, %v1139_v38  ;;  %v1546_v28 = vld [vmem:[%s12482_s6 + $0x78] sm:$0xff]  ;;  %v1555_v53 = vld [vmem:[%s12482_s6 + $0xc0] sm:$0xff] }
 0x213   :  { %v1146_v4 = vadd.f32 %v1118_v37, %v7428_v9  ;;  %6137 = vmatmul.mubr.msk.f32.gmra.mxu1 %vm1560_vm11, %v1538_v36  ;;  %2437 = vmatprep.subr.mxu1 %v12492_v12  ;;  %v1144_v9 = vadd.f32 %v1108_v17, %v7424_v62  ;;  %v1142_v62 = vadd.f32 %v7546_v33, %v7420_v44  ;;  %v1541_v44 = vld [vmem:[%s12482_s6 + $0x50] sm:$0xff] }
 0x214   :  { %2438 = vmatpush1.msra.mxu1 %v7434_v39  ;;  %6139 = vmatprep.mubr.msk.f32.mxu1 %vm6327_vm2, %v12492_v12  ;;  %v6011_v27 = vpop.f32.mrf.mxu1  ;;  %v6112_v40 = vpop.f32.mrf.mxu0  ;;  %v1140_v33 = vadd.f32 %v7501_v51, %v7416_v32  ;;  %v1542_v32 = vld [vmem:[%s12482_s6 + $0x58] sm:$0xff]  ;;  %v1138_v51 = vadd.f32 %v7467_v46, %v7412_v22  ;;  %12653 = vst [vmem:[#allocation12_spill] sm:$0xff] %v7675_v24  ;;  %v1543_v22 = vld [vmem:[%s12482_s6 + $0x60] sm:$0xff] }
 0x215   :  { %v7611_v20 = vadd.f32 %v1502_v54, %v1146_v4  ;;  %2439 = vmatprep.subr.mxu1 %v12492_v12  ;;  %v7630_v17 = vadd.f32 %v1492_v35, %v1144_v9  ;;  %v7649_v35 = vadd.f32 %v7548_v48, %v1142_v62 }
 0x216   :  { %2440 = vmatpush1.msra.mxu1 %v7431_v30  ;;  %v7669_v48 = vadd.f32 %v7503_v63, %v1140_v33  ;;  %v7685_v46 = vadd.f32 %v7469_v2, %v1138_v51  ;;  %v1545_v2 = vld [vmem:[%s12482_s6 + $0x70] sm:$0xff]  ;;  %v1547_v63 = vld [vmem:[%s12482_s6 + $0x80] sm:$0xff] }
 0x217   :  { %6140 = vmatmul.mubr.msk.f32.gmra.mxu1 %vm1560_vm11, %v1539_v18  ;;  %2455 = vmatprep.subr.mxu1 %v12492_v12 }
 0x218   :  { %2456 = vmatpush2.msra.mxu1 %v7611_v20  ;;  %6142 = vmatprep.mubr.msk.f32.mxu1 %vm6327_vm2, %v12492_v12  ;;  %12654 = vst [vmem:[#allocation13_spill] sm:$0xff] %v7685_v46 }
 0x219   :  { %2457 = vmatprep.subr.mxu1 %v12492_v12 }
 0x21a   :  { %2458 = vmatpush2.msra.mxu1 %v7619_v31 }
 0x21b   :  { %6143 = vmatmul.mubr.msk.f32.gmra.mxu1 %vm1560_vm11, %v1540_v5  ;;  %2459 = vmatprep.subr.mxu1 %v12492_v12 }
 0x21c   :  { %2460 = vmatpush2.msra.mxu1 %v7630_v17  ;;  %6145 = vmatprep.mubr.msk.f32.mxu1 %vm6327_vm2, %v12492_v12 }
 0x21d   :  { %2461 = vmatprep.subr.mxu1 %v12492_v12 }
 0x21e   :  { %2462 = vmatpush2.msra.mxu1 %v7637_v15 }
 0x21f   :  { %6146 = vmatmul.mubr.msk.f32.gmra.mxu1 %vm1560_vm11, %v1541_v44  ;;  %2463 = vmatprep.subr.mxu1 %v12492_v12 }
 0x220   :  { %2464 = vmatpush2.msra.mxu1 %v7649_v35  ;;  %6148 = vmatprep.mubr.msk.f32.mxu1 %vm6327_vm2, %v12492_v12 }
 0x221   :  { %2465 = vmatprep.subr.mxu1 %v12492_v12 }
 0x222   :  { %2466 = vmatpush2.msra.mxu1 %v7657_v41 }
 0x223   :  { %6149 = vmatmul.mubr.msk.f32.gmra.mxu1 %vm1560_vm11, %v1542_v32  ;;  %2467 = vmatprep.subr.mxu1 %v12492_v12 }
 0x224   :  { %2468 = vmatpush2.msra.mxu1 %v7669_v48  ;;  %6151 = vmatprep.mubr.msk.f32.mxu1 %vm6327_vm2, %v12492_v12 }
 0x225   :  { %2469 = vmatprep.subr.mxu1 %v12492_v12 }
 0x226   :  { %2470 = vmatpush2.msra.mxu1 %v7675_v24 }
 0x227   :  { %6152 = vmatmul.mubr.msk.f32.gmra.mxu1 %vm1560_vm11, %v1543_v22  ;;  %2471 = vmatprep.subr.mxu1 %v12492_v12 }
 0x228   :  { %2472 = vmatpush2.msra.mxu1 %v7685_v46  ;;  %6154 = vmatprep.mubr.msk.f32.mxu1 %vm6327_vm2, %v12492_v12 }
 0x22b   :  { %6155 = vmatmul.mubr.msk.f32.gmra.mxu1 %vm1560_vm11, %v1544_v21 }
 0x22c   :  { %6157 = vmatprep.mubr.msk.f32.mxu1 %vm6327_vm2, %v12492_v12 }
 0x22f   :  { %6158 = vmatmul.mubr.msk.f32.gmra.mxu1 %vm1560_vm11, %v1545_v2 }
 0x230   :  { %6160 = vmatprep.mubr.msk.f32.mxu1 %vm6327_vm2, %v12492_v12 }
 0x233   :  { %6161 = vmatmul.mubr.msk.f32.gmra.mxu1 %vm1560_vm11, %v1546_v28 }
 0x234   :  { %6163 = vmatprep.mubr.msk.f32.mxu1 %vm6327_vm2, %v12492_v12 }
 0x237   :  { %6164 = vmatmul.mubr.msk.f32.gmra.mxu1 %vm1560_vm11, %v1547_v63 }
 0x238   :  { %6166 = vmatprep.mubr.msk.f32.mxu1 %vm6327_vm2, %v12492_v12 }
 0x23b   :  { %6167 = vmatmul.mubr.msk.f32.gmra.mxu1 %vm1560_vm11, %v1548_v45 }
 0x23c   :  { %6169 = vmatprep.mubr.msk.f32.mxu1 %vm6327_vm2, %v12492_v12 }
 0x23f   :  { %6170 = vmatmul.mubr.msk.f32.gmra.mxu1 %vm1560_vm11, %v1549_v0 }
 0x240   :  { %6172 = vmatprep.mubr.msk.f32.mxu1 %vm6327_vm2, %v12492_v12 }
 0x243   :  { %6173 = vmatmul.mubr.msk.f32.gmra.mxu1 %vm1560_vm11, %v1550_v14 }
 0x244   :  { %6175 = vmatprep.mubr.msk.f32.mxu1 %vm6327_vm2, %v12492_v12 }
 0x247   :  { %6176 = vmatmul.mubr.msk.f32.gmra.mxu1 %vm1560_vm11, %v1551_v11 }
 0x248   :  { %6178 = vmatprep.mubr.msk.f32.mxu1 %vm6327_vm2, %v12492_v12 }
 0x24b   :  { %6179 = vmatmul.mubr.msk.f32.gmra.mxu1 %vm1560_vm11, %v1552_v42 }
 0x24c   :  { %6181 = vmatprep.mubr.msk.f32.mxu1 %vm6327_vm2, %v12492_v12 }
 0x24f   :  { %6182 = vmatmul.mubr.msk.f32.gmra.mxu1 %vm1560_vm11, %v1553_v43 }
 0x250   :  { %6184 = vmatprep.mubr.msk.f32.mxu1 %vm6327_vm2, %v12492_v12 }
 0x253   :  { %6185 = vmatmul.mubr.msk.f32.gmra.mxu1 %vm1560_vm11, %v1554_v47 }
 0x254   :  { %6187 = vmatprep.mubr.msk.f32.mxu1 %vm6327_vm2, %v12492_v12 }
 0x257   :  { %6188 = vmatmul.mubr.msk.f32.gmra.mxu1 %vm1560_vm11, %v1555_v53 }
 0x2b7   :  { %v1702_v13 = vpop.f32.mrf.mxu1 }
 0x2b8   :  { %v1826_v36 = vmul.f32 %v1702_v13, %v7431_v30 }
 0x2b9   :  { %v6117_v37 = vpop.f32.mrf.mxu1 }
 0x2ba   :  { %v1852_v54 = vsel %vm12525_vm3, %v1826_v36, 0.0 }
 0x2bb   :  { %1853 = vadd.xlane.f32.xlu1 %v1852_v54  ;;  %v1707_v4 = vpop.f32.mrf.mxu1 }
 0x2bc   :  { %v1827_v19 = vmul.f32 %v1707_v4, %v7434_v39 }
 0x2bd   :  { %v6120_v18 = vpop.f32.mrf.mxu1 }
 0x2be   :  { %v1855_v27 = vsel %vm12525_vm3, %v1827_v19, 0.0 }
 0x2bf   :  { %1856 = vadd.xlane.f32.xlu0 %v1855_v27  ;;  %v1712_v40 = vpop.f32.mrf.mxu1 }
 0x2c0   :  { %v1828_v9 = vmul.f32 %v1712_v40, %v7437_v49 }
 0x2c1   :  { %v6123_v6 = vpop.f32.mrf.mxu1 }
 0x2c2   :  { %v1858_v5 = vsel %vm12525_vm3, %v1828_v9, 0.0 }
 0x2c3   :  { %1859 = vadd.xlane.f32.xlu1 %v1858_v5  ;;  %v1717_v62 = vpop.f32.mrf.mxu1 }
 0x2c4   :  { %v1829_v50 = vmul.f32 %v1717_v62, %v7440_v59 }
 0x2c5   :  { %v6126_v44 = vpop.f32.mrf.mxu1 }
 0x2c6   :  { %v1861_v33 = vsel %vm12525_vm3, %v1829_v50, 0.0 }
 0x2c7   :  { %1862 = vadd.xlane.f32.xlu0 %v1861_v33  ;;  %v1722_v38 = vpop.f32.mrf.mxu1 }
 0x2c8   :  { %v1830_v32 = vmul.f32 %v1722_v38, %v7443_v10 }
 0x2c9   :  { %v6129_v51 = vpop.f32.mrf.mxu1 }
 0x2ca   :  { %v1864_v22 = vsel %vm12525_vm3, %v1830_v32, 0.0 }
 0x2cb   :  { %1865 = vadd.xlane.f32.xlu0 %v1864_v22  ;;  %v1727_v21 = vpop.f32.mrf.mxu1 }
 0x2cc   :  { %v1831_v2 = vmul.f32 %v1727_v21, %v7446_v23 }
 0x2cd   :  { %v6132_v28 = vpop.f32.mrf.mxu1 }
 0x2ce   :  { %v1867_v63 = vsel %vm12525_vm3, %v1831_v2, 0.0 }
 0x2cf   :  { %1868 = vadd.xlane.f32.xlu1 %v1867_v63  ;;  %v1732_v45 = vpop.f32.mrf.mxu1 }
 0x2d0   :  { %v1832_v0 = vmul.f32 %v1732_v45, %v7571_v34 }
 0x2d1   :  { %v6135_v14 = vpop.f32.mrf.mxu1 }
 0x2d2   :  { %v1870_v11 = vsel %vm12525_vm3, %v1832_v0, 0.0 }
 0x2d3   :  { %1871 = vadd.xlane.f32.xlu0 %v1870_v11  ;;  %v1737_v42 = vpop.f32.mrf.mxu1 }
 0x2d4   :  { %v1833_v43 = vmul.f32 %v1737_v42, %v7565_v61 }
 0x2d5   :  { %v6138_v47 = vpop.f32.mrf.mxu1 }
 0x2d6   :  { %v1873_v53 = vsel %vm12525_vm3, %v1833_v43, 0.0 }
 0x2d7   :  { %1874 = vadd.xlane.f32.xlu1 %v1873_v53  ;;  %v1742_v13 = vpop.f32.mrf.mxu1 }
 0x2d8   :  { %v1834_v36 = vmul.f32 %v1742_v13, %v7555_v7 }
 0x2d9   :  { %v6141_v37 = vpop.f32.mrf.mxu1 }
 0x2da   :  { %v1876_v54 = vsel %vm12525_vm3, %v1834_v36, 0.0 }
 0x2db   :  { %1877 = vadd.xlane.f32.xlu0 %v1876_v54  ;;  %v1747_v4 = vpop.f32.mrf.mxu1 }
 0x2dc   :  { %v1835_v19 = vmul.f32 %v1747_v4, %v7543_v29 }
 0x2dd   :  { %v6144_v18 = vpop.f32.mrf.mxu1 }
 0x2de   :  { %v1879_v27 = vsel %vm12525_vm3, %v1835_v19, 0.0 }
 0x2df   :  { %1880 = vadd.xlane.f32.xlu1 %v1879_v27  ;;  %v1752_v40 = vpop.f32.mrf.mxu1 }
 0x2e0   :  { %v1836_v9 = vmul.f32 %v1752_v40, %v7531_v52 }
 0x2e1   :  { %v6147_v6 = vpop.f32.mrf.mxu1 }
 0x2e2   :  { %v1882_v5 = vsel %vm12525_vm3, %v1836_v9, 0.0 }
 0x2e3   :  { %1883 = vadd.xlane.f32.xlu0 %v1882_v5  ;;  %v1757_v62 = vpop.f32.mrf.mxu1 }
 0x2e4   :  { %v1837_v50 = vmul.f32 %v1757_v62, %v7519_v56 }
 0x2e5   :  { %v6150_v44 = vpop.f32.mrf.mxu1 }
 0x2e6   :  { %v1885_v33 = vsel %vm12525_vm3, %v1837_v50, 0.0 }
 0x2e7   :  { %1886 = vadd.xlane.f32.xlu1 %v1885_v33  ;;  %v1762_v38 = vpop.f32.mrf.mxu1 }
 0x2e8   :  { %v1838_v32 = vmul.f32 %v1762_v38, %v7508_v26 }
 0x2e9   :  { %v6153_v51 = vpop.f32.mrf.mxu1 }
 0x2ea   :  { %v1888_v22 = vsel %vm12525_vm3, %v1838_v32, 0.0 }
 0x2eb   :  { %1889 = vadd.xlane.f32.xlu0 %v1888_v22  ;;  %v1767_v21 = vpop.f32.mrf.mxu1 }
 0x2ec   :  { %v1839_v2 = vmul.f32 %v1767_v21, %v7488_v3 }
 0x2ed   :  { %v6156_v28 = vpop.f32.mrf.mxu1 }
 0x2ee   :  { %v1891_v63 = vsel %vm12525_vm3, %v1839_v2, 0.0 }
 0x2ef   :  { %1892 = vadd.xlane.f32.xlu1 %v1891_v63  ;;  %v1772_v45 = vpop.f32.mrf.mxu1 }
 0x2f0   :  { %v1840_v0 = vmul.f32 %v1772_v45, %v7490_v57 }
 0x2f1   :  { %v6159_v14 = vpop.f32.mrf.mxu1 }
 0x2f2   :  { %v1894_v11 = vsel %vm12525_vm3, %v1840_v0, 0.0 }
 0x2f3   :  { %1895 = vadd.xlane.f32.xlu0 %v1894_v11  ;;  %v1777_v42 = vpop.f32.mrf.mxu1 }
 0x2f4   :  { %v1841_v43 = vmul.f32 %v1777_v42, %v7473_v1 }
 0x2f5   :  { %v6162_v47 = vpop.f32.mrf.mxu1 }
 0x2f6   :  { %v1897_v53 = vsel %vm12525_vm3, %v1841_v43, 0.0 }
 0x2f7   :  { %1898 = vadd.xlane.f32.xlu1 %v1897_v53  ;;  %v1782_v13 = vpop.f32.mrf.mxu1 }
 0x2f8   :  { %v1842_v36 = vmul.f32 %v1782_v13, %v7685_v46 }
 0x2f9   :  { %v6165_v37 = vpop.f32.mrf.mxu1 }
 0x2fa   :  { %v1900_v54 = vsel %vm12525_vm3, %v1842_v36, 0.0 }
 0x2fb   :  { %1901 = vadd.xlane.f32.xlu0 %v1900_v54  ;;  %v1787_v4 = vpop.f32.mrf.mxu1 }
 0x2fc   :  { %v1843_v19 = vmul.f32 %v1787_v4, %v7675_v24 }
 0x2fd   :  { %v6168_v18 = vpop.f32.mrf.mxu1 }
 0x2fe   :  { %v1903_v27 = vsel %vm12525_vm3, %v1843_v19, 0.0 }
 0x2ff   :  { %1904 = vadd.xlane.f32.xlu1 %v1903_v27  ;;  %v1792_v40 = vpop.f32.mrf.mxu1 }
 0x300   :  { %v1844_v9 = vmul.f32 %v1792_v40, %v7669_v48 }
 0x301   :  { %v6171_v6 = vpop.f32.mrf.mxu1 }
 0x302   :  { %v1906_v5 = vsel %vm12525_vm3, %v1844_v9, 0.0 }
 0x303   :  { %1907 = vadd.xlane.f32.xlu0 %v1906_v5  ;;  %v1797_v62 = vpop.f32.mrf.mxu1 }
 0x304   :  { %v1845_v50 = vmul.f32 %v1797_v62, %v7657_v41 }
 0x305   :  { %v6174_v44 = vpop.f32.mrf.mxu1 }
 0x306   :  { %v1909_v33 = vsel %vm12525_vm3, %v1845_v50, 0.0 }
 0x307   :  { %1910 = vadd.xlane.f32.xlu1 %v1909_v33  ;;  %v1802_v38 = vpop.f32.mrf.mxu1 }
 0x308   :  { %v1846_v32 = vmul.f32 %v1802_v38, %v7649_v35 }
 0x309   :  { %v6177_v51 = vpop.f32.mrf.mxu1 }
 0x30a   :  { %v1912_v22 = vsel %vm12525_vm3, %v1846_v32, 0.0 }
 0x30b   :  { %1913 = vadd.xlane.f32.xlu0 %v1912_v22  ;;  %v1807_v21 = vpop.f32.mrf.mxu1 }
 0x30c   :  { %v1847_v2 = vmul.f32 %v1807_v21, %v7637_v15 }
 0x30d   :  { %v6180_v28 = vpop.f32.mrf.mxu1 }
 0x30e   :  { %v1915_v63 = vsel %vm12525_vm3, %v1847_v2, 0.0 }
 0x30f   :  { %1916 = vadd.xlane.f32.xlu1 %v1915_v63  ;;  %v1812_v45 = vpop.f32.mrf.mxu1 }
 0x310   :  { %v1848_v0 = vmul.f32 %v1812_v45, %v7630_v17 }
 0x311   :  { %v6183_v14 = vpop.f32.mrf.mxu1 }
 0x312   :  { %v1918_v11 = vsel %vm12525_vm3, %v1848_v0, 0.0 }
 0x313   :  { %1919 = vadd.xlane.f32.xlu0 %v1918_v11  ;;  %v1817_v42 = vpop.f32.mrf.mxu1 }
 0x314   :  { %v1849_v43 = vmul.f32 %v1817_v42, %v7619_v31 }
 0x315   :  { %v6186_v47 = vpop.f32.mrf.mxu1 }
 0x316   :  { %v1921_v53 = vsel %vm12525_vm3, %v1849_v43, 0.0 }
 0x317   :  { %1922 = vadd.xlane.f32.xlu1 %v1921_v53  ;;  %v1822_v13 = vpop.f32.mrf.mxu1 }
 0x318   :  { %v1850_v36 = vmul.f32 %v1822_v13, %v7611_v20 }
 0x319   :  { %v6189_v37 = vpop.f32.mrf.mxu1 }
 0x31a   :  { %v1924_v54 = vsel %vm12525_vm3, %v1850_v36, 0.0 }
 0x31b   :  { %1925 = vadd.xlane.f32.xlu0 %v1924_v54 }
 0x344   :  { %v7815_v19 = vpop.xlane.xlu1 %1853 }
 0x348   :  { %v7813_v4 = vpop.xlane.xlu0 %1856 }
 0x34c   :  { %v7819_v27 = vpop.xlane.xlu1 %1859 }
 0x350   :  { %v7817_v18 = vpop.xlane.xlu0 %1862 }
 0x354   :  { %v7821_v40 = vpop.xlane.xlu0 %1865 }
 0x355   :  { %v1927_v45 = vmax.f32 %v7815_v19, %v7821_v40 }
 0x358   :  { %v7823_v9 = vpop.xlane.xlu1 %1868 }
 0x359   :  { %v1928_v42 = vmax.f32 %v7813_v4, %v7823_v9 }
 0x35c   :  { %v7825_v6 = vpop.xlane.xlu0 %1871 }
 0x35d   :  { %v1929_v43 = vmax.f32 %v7819_v27, %v7825_v6 }
 0x360   :  { %v7827_v5 = vpop.xlane.xlu1 %1874 }
 0x361   :  { %v1930_v0 = vmax.f32 %v7817_v18, %v7827_v5 }
 0x364   :  { %v7829_v62 = vpop.xlane.xlu0 %1877 }
 0x365   :  { %v1931_v47 = vmax.f32 %v1927_v45, %v7829_v62 }
 0x368   :  { %v7831_v50 = vpop.xlane.xlu1 %1880 }
 0x369   :  { %v1932_v13 = vmax.f32 %v1928_v42, %v7831_v50 }
 0x36c   :  { %v7833_v44 = vpop.xlane.xlu0 %1883 }
 0x36d   :  { %v1933_v36 = vmax.f32 %v1929_v43, %v7833_v44 }
 0x370   :  { %v7835_v33 = vpop.xlane.xlu1 %1886 }
 0x371   :  { %v1934_v53 = vmax.f32 %v1930_v0, %v7835_v33 }
 0x374   :  { %v1890_v38 = vpop.xlane.xlu0 %1889 }
 0x375   :  { %v1935_v37 = vmax.f32 %v1931_v47, %v1890_v38 }
 0x378   :  { %v1893_v32 = vpop.xlane.xlu1 %1892 }
 0x379   :  { %v1936_v12 = vmax.f32 %v1932_v13, %v1893_v32 }
 0x37c   :  { %v1896_v51 = vpop.xlane.xlu0 %1895 }
 0x37d   :  { %v1937_v58 = vmax.f32 %v1933_v36, %v1896_v51 }
 0x380   :  { %v1899_v22 = vpop.xlane.xlu1 %1898 }
 0x381   :  { %v1938_v54 = vmax.f32 %v1934_v53, %v1899_v22 }
 0x384   :  { %v7837_v21 = vpop.xlane.xlu0 %1901 }
 0x385   :  { %v1939_v55 = vmax.f32 %v1935_v37, %v7837_v21 }
 0x388   :  { %v7839_v2 = vpop.xlane.xlu1 %1904 }
 0x389   :  { %v1940_v45 = vmax.f32 %v1936_v12, %v7839_v2  ;;  %v7879_v12 = vld [vmem:[%s12483_s7 + $0x8] sm:$0xff] }
 0x38a   :  { %5460 = vmatprep.mubr.msk.f32.mxu0 %vm2061_vm4, %v7879_v12 }
 0x38c   :  { %v7841_v28 = vpop.xlane.xlu0 %1907 }
 0x38d   :  { %v1941_v0 = vmax.f32 %v1937_v58, %v7841_v28 }
 0x390   :  { %v7843_v63 = vpop.xlane.xlu1 %1910 }
 0x391   :  { %v1942_v25 = vmax.f32 %v1938_v54, %v7843_v63 }
 0x394   :  { %v7849_v14 = vpop.xlane.xlu0 %1913 }
 0x395   :  { %v1943_v42 = vmax.f32 %v1939_v55, %v7849_v14 }
 0x398   :  { %v7851_v11 = vpop.xlane.xlu1 %1916 }
 0x399   :  { %v1944_v53 = vmax.f32 %v1940_v45, %v7851_v11 }
 0x39c   :  { %v7861_v8 = vpop.xlane.xlu0 %1919 }
 0x39d   :  { %v1945_v16 = vmax.f32 %v1941_v0, %v7861_v8 }
 0x3a0   :  { %v7863_v60 = vpop.xlane.xlu1 %1922 }
 0x3a1   :  { %v1946_v43 = vmax.f32 %v1942_v25, %v7863_v60 }
 0x3a3   :  { %v1949_v36 = vmax.f32 %v1945_v16, %v1946_v43 }
 0x3a4   :  { %v7871_v47 = vpop.xlane.xlu0 %1925 }
 0x3a5   :  { %v1947_v13 = vmax.f32 %v1943_v42, %v7871_v47 }
 0x3a7   :  { %v1948_v37 = vmax.f32 %v1947_v13, %v1944_v53 }
 0x3a9   :  { %v1950_v46 = vmax.f32 %v1948_v37, %v1949_v36 }
 0x3ab   :  { %v1951_v54 = vrot.slane %v1950_v46, 4 }
 0x3ad   :  { %v1952_v24 = vmax.f32 %v1950_v46, %v1951_v54 }
 0x3af   :  { %v1953_v58 = vrot.slane %v1952_v24, 2 }
 0x3b1   :  { %v1954_v25 = vmax.f32 %v1952_v24, %v1953_v58 }
 0x3b3   :  { %v1955_v55 = vrot.slane %v1954_v25, 1 }
 0x3b5   :  { %v1956_v45 = vmax.f32 %v1954_v25, %v1955_v55 }
 0x3b7   :  { %6212 = vpush %v1956_v45 }
 0x3e8   :  { %s6213_s28 = spop %6212 }
 0x3e9   :  { %v7883_v16 = vstv %s6213_s28 }
 0x3ea   :  { %v1974_v0 = vsub.f32 %v1899_v22, %v7883_v16  ;;  %v1973_v46 = vsub.f32 %v1896_v51, %v7883_v16  ;;  %v1972_v42 = vsub.f32 %v1893_v32, %v7883_v16  ;;  %v1971_v43 = vsub.f32 %v1890_v38, %v7883_v16 }
 0x3eb   :  { %v1970_v24 = vsub.f32 %v7835_v33, %v7883_v16  ;;  %v1969_v54 = vsub.f32 %v7833_v44, %v7883_v16  ;;  %v1968_v51 = vsub.f32 %v7831_v50, %v7883_v16  ;;  %v1967_v38 = vsub.f32 %v7829_v62, %v7883_v16 }
 0x3ec   :  { %v2014_v53 = vmul.f32 1.442695, %v1974_v0  ;;  %v2012_v13 = vmul.f32 1.442695, %v1973_v46  ;;  %v2010_v36 = vmul.f32 1.442695, %v1972_v42  ;;  %v1966_v33 = vsub.f32 %v7827_v5, %v7883_v16 }
 0x3ed   :  { %v2008_v37 = vmul.f32 1.442695, %v1971_v43  ;;  %v2006_v22 = vmul.f32 1.442695, %v1970_v24  ;;  %v2004_v32 = vmul.f32 1.442695, %v1969_v54  ;;  %v1965_v44 = vsub.f32 %v7825_v6, %v7883_v16 }
 0x3ee   :  { %6233 = vpow2.f32 %v2014_v53  ;;  %v2002_v58 = vmul.f32 1.442695, %v1968_v51  ;;  %v2000_v25 = vmul.f32 1.442695, %v1967_v38  ;;  %v1998_v55 = vmul.f32 1.442695, %v1966_v33 }
 0x3ef   :  { %6235 = vpow2.f32 %v2012_v13  ;;  %v1964_v50 = vsub.f32 %v7823_v9, %v7883_v16  ;;  %v1996_v45 = vmul.f32 1.442695, %v1965_v44  ;;  %v1963_v62 = vsub.f32 %v7821_v40, %v7883_v16 }
 0x3f0   :  { %6237 = vpow2.f32 %v2010_v36  ;;  %v1962_v6 = vsub.f32 %v7817_v18, %v7883_v16  ;;  %v1961_v53 = vsub.f32 %v7819_v27, %v7883_v16  ;;  %v12655_v36 = vmov 0.0  }
 0x3f1   :  { %6239 = vpow2.f32 %v2008_v37  ;;  %v1994_v42 = vmul.f32 1.442695, %v1964_v50  ;;  %v1992_v40 = vmul.f32 1.442695, %v1963_v62  ;;  %v1960_v24 = vsub.f32 %v7813_v4, %v7883_v16 }
 0x3f2   :  { %6241 = vpow2.f32 %v2006_v22  ;;  %v1990_v18 = vmul.f32 1.442695, %v1962_v6  ;;  %v1988_v27 = vmul.f32 1.442695, %v1961_v53  ;;  %v1959_v54 = vsub.f32 %v7815_v19, %v7883_v16 }
 0x3f3   :  { %6243 = vpow2.f32 %v2004_v32  ;;  %v1986_v4 = vmul.f32 1.442695, %v1960_v24  ;;  %v1983_v51 = vsub.f32 %v7871_v47, %v7883_v16  ;;  %v1982_v38 = vsub.f32 %v7863_v60, %v7883_v16 }
 0x3f4   :  { %6245 = vpow2.f32 %v2002_v58  ;;  %v1984_v19 = vmul.f32 1.442695, %v1959_v54  ;;  %v1981_v33 = vsub.f32 %v7861_v8, %v7883_v16  ;;  %v1980_v44 = vsub.f32 %v7851_v11, %v7883_v16 }
 0x3f5   :  { %6247 = vpow2.f32 %v2000_v25  ;;  %v2032_v47 = vmul.f32 1.442695, %v1983_v51  ;;  %v1979_v50 = vsub.f32 %v7849_v14, %v7883_v16  ;;  %v1978_v62 = vsub.f32 %v7843_v63, %v7883_v16 }
 0x3f6   :  { %6249 = vpow2.f32 %v1998_v55  ;;  %v2026_v11 = vmul.f32 1.442695, %v1980_v44  ;;  %v1975_v53 = vsub.f32 %v7837_v21, %v7883_v16  ;;  %v2212_v44 = vld [vmem:[%s12485_s9] sm:$0xff] }
 0x3f7   :  { %6251 = vpow2.f32 %v1996_v45  ;;  %v2024_v14 = vmul.f32 1.442695, %v1979_v50  ;;  %v2022_v63 = vmul.f32 1.442695, %v1978_v62  ;;  %v2404_v50 = vld [vmem:[%s12484_s8] sm:$0xff] }
 0x3f8   :  { %6253 = vpow2.f32 %v1994_v42  ;;  %v1977_v42 = vsub.f32 %v7841_v28, %v7883_v16  ;;  %v2016_v21 = vmul.f32 1.442695, %v1975_v53  ;;  %v2499_v53 = vld [vmem:[%s12479_s3 + $0x48] sm:$0xff] }
 0x3f9   :  { %6255 = vpow2.f32 %v1992_v40 }
 0x3fa   :  { %6257 = vpow2.f32 %v1990_v18  ;;  %v2020_v28 = vmul.f32 1.442695, %v1977_v42 }
 0x3fb   :  { %v7905_v0 = vpop.eup %6233  ;;  %6259 = vpow2.f32 %v1988_v27 }
 0x3fc   :  { %v7907_v46 = vpop.eup %6235  ;;  %v2051_v5 = vmul.f32 %v7905_v0, %v7473_v1  ;;  %6261 = vpow2.f32 %v1986_v4 }
 0x3fd   :  { %v7913_v43 = vpop.eup %6237  ;;  %v2050_v9 = vmul.f32 %v7907_v46, %v7490_v57  ;;  %6263 = vpow2.f32 %v1984_v19 }
 0x3fe   :  { %2066 = vmatpush1.msra.mxu0 %v2051_v5  ;;  %v7919_v13 = vpop.eup %6239  ;;  %v2049_v1 = vmul.f32 %v7913_v43, %v7488_v3  ;;  %6265 = vpow2.f32 %v2032_v47 }
 0x3ff   :  { %2067 = vmatprep.subr.mxu0 %v12655_v36  ;;  %v7926_v37 = vpop.eup %6241  ;;  %v2048_v57 = vmul.f32 %v7919_v13, %v7508_v26 }
 0x400   :  { %2068 = vmatpush1.msra.mxu0 %v2050_v9  ;;  %v7933_v22 = vpop.eup %6243  ;;  %v2047_v3 = vmul.f32 %v7926_v37, %v7519_v56  ;;  %v1976_v9 = vsub.f32 %v7839_v2, %v7883_v16 }
 0x401   :  { %2069 = vmatprep.subr.mxu0 %v12655_v36  ;;  %v7940_v32 = vpop.eup %6245  ;;  %v2046_v26 = vmul.f32 %v7933_v22, %v7531_v52  ;;  %v2030_v52 = vmul.f32 1.442695, %v1982_v38 }
 0x402   :  { %2070 = vmatpush1.msra.mxu0 %v2049_v1  ;;  %v7947_v58 = vpop.eup %6247  ;;  %v2045_v56 = vmul.f32 %v7940_v32, %v7543_v29  ;;  %v2028_v29 = vmul.f32 1.442695, %v1981_v33  ;;  %v2018_v2 = vmul.f32 1.442695, %v1976_v9  ;;  %v12659_v9 = vld [vmem:[#allocation9_spill] sm:$0xff] }
 0x403   :  { %2071 = vmatprep.subr.mxu0 %v12655_v36  ;;  %v7954_v25 = vpop.eup %6249  ;;  %v2044_v60 = vmul.f32 %v7947_v58, %v7555_v7  ;;  %6267 = vpow2.f32 %v2030_v52 }
 0x404   :  { %2072 = vmatpush1.msra.mxu0 %v2048_v57  ;;  %v7961_v55 = vpop.eup %6251  ;;  %v2043_v8 = vmul.f32 %v7954_v25, %v7565_v61  ;;  %6269 = vpow2.f32 %v2028_v29 }
 0x405   :  { %2073 = vmatprep.subr.mxu0 %v12655_v36  ;;  %v7968_v45 = vpop.eup %6253  ;;  %v2042_v7 = vmul.f32 %v7961_v55, %v7571_v34  ;;  %6271 = vpow2.f32 %v2026_v11 }
 0x406   :  { %2074 = vmatpush1.msra.mxu0 %v2047_v3  ;;  %v7975_v5 = vpop.eup %6255  ;;  %v2041_v61 = vmul.f32 %v7968_v45, %v7446_v23  ;;  %6273 = vpow2.f32 %v2024_v14 }
 0x407   :  { %2075 = vmatprep.subr.mxu0 %v12655_v36  ;;  %v7982_v6 = vpop.eup %6257  ;;  %v2040_v34 = vmul.f32 %v7975_v5, %v7443_v10  ;;  %6275 = vpow2.f32 %v2022_v63 }
 0x408   :  { %2076 = vmatpush1.msra.mxu0 %v2046_v26  ;;  %v7989_v40 = vpop.eup %6259  ;;  %v2039_v23 = vmul.f32 %v7982_v6, %v7440_v59  ;;  %6277 = vpow2.f32 %v2020_v28  ;;  %v2497_v28 = vld [vmem:[%s12479_s3 + $0x38] sm:$0xff] }
 0x409   :  { %2077 = vmatprep.subr.mxu0 %v12655_v36  ;;  %v7996_v1 = vpop.eup %6261  ;;  %v2038_v10 = vmul.f32 %v7989_v40, %v7437_v49  ;;  %6279 = vpow2.f32 %v2018_v2  ;;  %v2505_v2 = vld [vmem:[%s12479_s3 + $0x78] sm:$0xff] }
 0x40a   :  { %2078 = vmatpush1.msra.mxu0 %v2045_v56  ;;  %v8001_v18 = vpop.eup %6263  ;;  %v2037_v59 = vmul.f32 %v7996_v1, %v7434_v39  ;;  %6281 = vpow2.f32 %v2016_v21  ;;  %v12657_v56 = vld [vmem:[#allocation13_spill] sm:$0xff]  ;;  %v3232_v21 = vld [vmem:[%s12479_s3 + $0xa8] sm:$0xff] }
 0x40b   :  { %2079 = vmatprep.subr.mxu0 %v12655_v36  ;;  %v8006_v16 = vpop.eup %6265  ;;  %v2036_v49 = vmul.f32 %v8001_v18, %v7431_v30 }
 0x40c   :  { %2080 = vmatpush1.msra.mxu0 %v2044_v60  ;;  %v2060_v57 = vmul.f32 %v8006_v16, %v7611_v20 }
 0x40d   :  { %2081 = vmatprep.subr.mxu0 %v12655_v36 }
 0x40e   :  { %2082 = vmatpush1.msra.mxu0 %v2043_v8 }
 0x40f   :  { %2083 = vmatprep.subr.mxu0 %v12655_v36 }
 0x410   :  { %2084 = vmatpush1.msra.mxu0 %v2042_v7  ;;  %v8011_v24 = vpop.eup %6267  ;;  %v5464_v7 = vld [vmem:[%s12487_s11] ss:$0 sm:$0xff]  ;;  %s5468_s11 = sld [smem:[#allocation2 + $0x180]] }
 0x411   :  { %2085 = vmatprep.subr.mxu0 %v12655_v36  ;;  %v8016_v39 = vpop.eup %6269  ;;  %v2059_v27 = vmul.f32 %v8011_v24, %v7619_v31 }
 0x412   :  { %2086 = vmatpush1.msra.mxu0 %v2041_v61  ;;  %v8021_v54 = vpop.eup %6271  ;;  %v2058_v30 = vmul.f32 %v8016_v39, %v7630_v17 }
 0x413   :  { %2087 = vmatprep.subr.mxu0 %v12655_v36  ;;  %v8026_v3 = vpop.eup %6273  ;;  %v2057_v20 = vmul.f32 %v8021_v54, %v7637_v15 }
 0x414   :  { %2088 = vmatpush1.msra.mxu0 %v2040_v34  ;;  %v8031_v4 = vpop.eup %6275  ;;  %v2056_v31 = vmul.f32 %v8026_v3, %v7649_v35  ;;  %v12656_v35 = vld [vmem:[#allocation12_spill] sm:$0xff]  ;;  %v2493_v34 = vld [vmem:[%s12479_s3 + $0x18] sm:$0xff] }
 0x415   :  { %2089 = vmatprep.subr.mxu0 %v12655_v36  ;;  %v8036_v51 = vpop.eup %6277  ;;  %v2055_v17 = vmul.f32 %v8031_v4, %v7657_v41  ;;  %v2034_v41 = vld [vmem:[%s12483_s7] sm:$0xff] }
 0x416   :  { %2090 = vmatpush1.msra.mxu0 %v2039_v23  ;;  %v6280_v26 = vpop.eup %6279  ;;  %v2054_v15 = vmul.f32 %v8036_v51, %v7669_v48  ;;  %v2219_v48 = vld [vmem:[%s12486_s10 + $0x18] sm:$0xff]  ;;  %v2495_v23 = vld [vmem:[%s12479_s3 + $0x28] sm:$0xff] }
 0x417   :  { %2091 = vmatprep.subr.mxu0 %v12655_v36  ;;  %v6282_v19 = vpop.eup %6281  ;;  %v2053_v38 = vmul.f32 %v6280_v26, %v12656_v35  ;;  %v3231_v35 = vld [vmem:[%s12479_s3 + $0xa0] sm:$0xff] }
 0x418   :  { %2092 = vmatpush1.msra.mxu0 %v2038_v10  ;;  %v2052_v47 = vmul.f32 %v6282_v19, %v12657_v56  ;;  %v2503_v10 = vld [vmem:[%s12479_s3 + $0x68] sm:$0xff]  ;;  %v3235_v56 = vld [vmem:[%s12479_s3 + $0xc0] sm:$0xff] }
 0x419   :  { %2093 = vmatprep.subr.mxu0 %v12655_v36 }
 0x41a   :  { %2094 = vmatpush1.msra.mxu0 %v2037_v59  ;;  %v3230_v59 = vld [vmem:[%s12479_s3 + $0x98] sm:$0xff] }
 0x41b   :  { %2095 = vmatprep.subr.mxu0 %v12655_v36 }
 0x41c   :  { %2096 = vmatpush1.msra.mxu0 %v2036_v49  ;;  %v3236_v49 = vld [vmem:[%s12479_s3 + $0xc8] sm:$0xff] }
 0x41d   :  { %2111 = vmatprep.subr.mxu0 %v12655_v36 }
 0x41e   :  { %2112 = vmatpush2.msra.mxu0 %v2060_v57  ;;  %v3240_v57 = vld [vmem:[%s12479_s3 + $0xe8] sm:$0xff] }
 0x41f   :  { %2113 = vmatprep.subr.mxu0 %v12655_v36 }
 0x420   :  { %2114 = vmatpush2.msra.mxu0 %v2059_v27  ;;  %v12660_v27 = vld [vmem:[#allocation10_spill] sm:$0xff] }
 0x421   :  { %2115 = vmatprep.subr.mxu0 %v12655_v36 }
 0x422   :  { %2116 = vmatpush2.msra.mxu0 %v2058_v30  ;;  %v2490_v30 = vld [vmem:[%s12479_s3] sm:$0xff] }
 0x423   :  { %2117 = vmatprep.subr.mxu0 %v12655_v36 }
 0x424   :  { %2118 = vmatpush2.msra.mxu0 %v2057_v20  ;;  %v2494_v20 = vld [vmem:[%s12479_s3 + $0x20] sm:$0xff] }
 0x425   :  { %2119 = vmatprep.subr.mxu0 %v12655_v36 }
 0x426   :  { %2120 = vmatpush2.msra.mxu0 %v2056_v31  ;;  %v2498_v31 = vld [vmem:[%s12479_s3 + $0x40] sm:$0xff] }
 0x427   :  { %2121 = vmatprep.subr.mxu0 %v12655_v36 }
 0x428   :  { %2122 = vmatpush2.msra.mxu0 %v2055_v17  ;;  %v2502_v17 = vld [vmem:[%s12479_s3 + $0x60] sm:$0xff] }
 0x429   :  { %2123 = vmatprep.subr.mxu0 %v12655_v36 }
 0x42a   :  { %2124 = vmatpush2.msra.mxu0 %v2054_v15  ;;  %v3227_v15 = vld [vmem:[%s12479_s3 + $0x80] sm:$0xff] }
 0x42b   :  { %2125 = vmatprep.subr.mxu0 %v12655_v36 }
 0x42c   :  { %2126 = vmatpush2.msra.mxu0 %v2053_v38  ;;  %v3233_v38 = vld [vmem:[%s12479_s3 + $0xb0] sm:$0xff] }
 0x42d   :  { %2127 = vmatprep.subr.mxu0 %v12655_v36 }
 0x42e   :  { %2128 = vmatpush2.msra.mxu0 %v2052_v47  ;;  %v3237_v47 = vld [vmem:[%s12479_s3 + $0xd0] sm:$0xff] }
 0x42f   :  { %2135 = vmatprep.subr.mxu0 %v12655_v36  ;;  %2130 = vmatmul.mubr.f32.vlgmr.msra.gmra.mxu0 %v2034_v41 }
 0x430   :  { %2136 = vmatpush1.msra.mxu0 %v7905_v0  ;;  %5461 = vmatprep.mubr.msk.f32.mxu0 %vm2061_vm4, %v7879_v12  ;;  %v2218_v12 = vld [vmem:[%s12486_s10 + $0x10] sm:$0xff]  ;;  %v2217_v0 = vld [vmem:[%s12486_s10 + $0x8] sm:$0xff] }
 0x431   :  { %2137 = vmatprep.subr.mxu0 %v12655_v36 }
 0x432   :  { %2138 = vmatpush1.msra.mxu0 %v7907_v46  ;;  %v2216_v46 = vld [vmem:[%s12486_s10] sm:$0xff] }
 0x433   :  { %2139 = vmatprep.subr.mxu0 %v12655_v36 }
 0x434   :  { %2140 = vmatpush1.msra.mxu0 %v7913_v43  ;;  %v12658_v43 = vld [vmem:[#allocation11_spill] sm:$0xff] }
 0x435   :  { %2141 = vmatprep.subr.mxu0 %v12655_v36 }
 0x436   :  { %2142 = vmatpush1.msra.mxu0 %v7919_v13  ;;  %v2215_v13 = vld [vmem:[%s12485_s9 + $0x18] sm:$0xff] }
 0x437   :  { %2143 = vmatprep.subr.mxu0 %v12655_v36 }
 0x438   :  { %2144 = vmatpush1.msra.mxu0 %v7926_v37  ;;  %v2214_v37 = vld [vmem:[%s12485_s9 + $0x10] sm:$0xff] }
 0x439   :  { %2145 = vmatprep.subr.mxu0 %v12655_v36 }
 0x43a   :  { %2146 = vmatpush1.msra.mxu0 %v7933_v22  ;;  %v2213_v22 = vld [vmem:[%s12485_s9 + $0x8] sm:$0xff] }
 0x43b   :  { %2147 = vmatprep.subr.mxu0 %v12655_v36 }
 0x43c   :  { %2148 = vmatpush1.msra.mxu0 %v7940_v32 }
 0x43d   :  { %2149 = vmatprep.subr.mxu0 %v12655_v36 }
 0x43e   :  { %2150 = vmatpush1.msra.mxu0 %v7947_v58 }
 0x43f   :  { %2151 = vmatprep.subr.mxu0 %v12655_v36 }
 0x440   :  { %2152 = vmatpush1.msra.mxu0 %v7954_v25 }
 0x441   :  { %2153 = vmatprep.subr.mxu0 %v12655_v36 }
 0x442   :  { %2154 = vmatpush1.msra.mxu0 %v7961_v55 }
 0x443   :  { %2155 = vmatprep.subr.mxu0 %v12655_v36 }
 0x444   :  { %2156 = vmatpush1.msra.mxu0 %v7968_v45 }
 0x445   :  { %2157 = vmatprep.subr.mxu0 %v12655_v36 }
 0x446   :  { %2158 = vmatpush1.msra.mxu0 %v7975_v5 }
 0x447   :  { %2159 = vmatprep.subr.mxu0 %v12655_v36 }
 0x448   :  { %2160 = vmatpush1.msra.mxu0 %v7982_v6  ;;  %v2491_v6 = vld [vmem:[%s12479_s3 + $0x8] sm:$0xff] }
 0x449   :  { %2161 = vmatprep.subr.mxu0 %v12655_v36 }
 0x44a   :  { %2162 = vmatpush1.msra.mxu0 %v7989_v40 }
 0x44b   :  { %2163 = vmatprep.subr.mxu0 %v12655_v36 }
 0x44c   :  { %2164 = vmatpush1.msra.mxu0 %v7996_v1  ;;  %v2501_v1 = vld [vmem:[%s12479_s3 + $0x58] sm:$0xff] }
 0x44d   :  { %2165 = vmatprep.subr.mxu0 %v12655_v36 }
 0x44e   :  { %2166 = vmatpush1.msra.mxu0 %v8001_v18  ;;  %v3228_v18 = vld [vmem:[%s12479_s3 + $0x88] sm:$0xff] }
 0x44f   :  { %2181 = vmatprep.subr.mxu0 %v12655_v36 }
 0x450   :  { %2182 = vmatpush2.msra.mxu0 %v8006_v16  ;;  %v3234_v16 = vld [vmem:[%s12479_s3 + $0xb8] sm:$0xff] }
 0x451   :  { %2183 = vmatprep.subr.mxu0 %v12655_v36 }
 0x452   :  { %2184 = vmatpush2.msra.mxu0 %v8011_v24  ;;  %v3238_v24 = vld [vmem:[%s12479_s3 + $0xd8] sm:$0xff] }
 0x453   :  { %2185 = vmatprep.subr.mxu0 %v12655_v36 }
 0x454   :  { %2186 = vmatpush2.msra.mxu0 %v8016_v39 }
 0x455   :  { %2187 = vmatprep.subr.mxu0 %v12655_v36 }
 0x456   :  { %2188 = vmatpush2.msra.mxu0 %v8021_v54 }
 0x457   :  { %2189 = vmatprep.subr.mxu0 %v12655_v36 }
 0x458   :  { %2190 = vmatpush2.msra.mxu0 %v8026_v3  ;;  %v2492_v3 = vld [vmem:[%s12479_s3 + $0x10] sm:$0xff] }
 0x459   :  { %2191 = vmatprep.subr.mxu0 %v12655_v36 }
 0x45a   :  { %2192 = vmatpush2.msra.mxu0 %v8031_v4  ;;  %v2496_v4 = vld [vmem:[%s12479_s3 + $0x30] sm:$0xff] }
 0x45b   :  { %2193 = vmatprep.subr.mxu0 %v12655_v36 }
 0x45c   :  { %2194 = vmatpush2.msra.mxu0 %v8036_v51  ;;  %v2500_v51 = vld [vmem:[%s12479_s3 + $0x50] sm:$0xff] }
 0x45d   :  { %2195 = vmatprep.subr.mxu0 %v12655_v36 }
 0x45e   :  { %2196 = vmatpush2.msra.mxu0 %v6280_v26  ;;  %v2504_v26 = vld [vmem:[%s12479_s3 + $0x70] sm:$0xff] }
 0x45f   :  { %2197 = vmatprep.subr.mxu0 %v12655_v36 }
 0x460   :  { %2198 = vmatpush2.msra.mxu0 %v6282_v19  ;;  %v3229_v19 = vld [vmem:[%s12479_s3 + $0x90] sm:$0xff] }
 0x461   :  { %2200 = vmatmul.mubr.f32.vlgmr.msra.gmra.mxu0 %v2034_v41  ;;  %6190 = vmatprep.subr.mxu0 %v12655_v36  ;;  %v3239_v41 = vld [vmem:[%s12479_s3 + $0xe0] sm:$0xff] }
 0x462   :  { %6191 = vmatpush3.msra.mxu0 %v2219_v48  ;;  %6198 = vmatprep.mubr.msk.f32.mxu0 %vm6327_vm2, %v12655_v36  ;;  %v3241_v48 = vld [vmem:[%s12479_s3 + $0xf0] sm:$0xff] }
 0x463   :  { %6192 = vmatprep.subr.mxu0 %v12655_v36 }
 0x464   :  { %6193 = vmatpush3.msra.mxu0 %v2218_v12  ;;  %v3932_v12 = vld [vmem:[%s12479_s3 + $0x108] sm:$0xff] }
 0x465   :  { %6194 = vmatprep.subr.mxu0 %v12655_v36 }
 0x466   :  { %6195 = vmatpush3.msra.mxu0 %v2217_v0  ;;  %v3934_v0 = vld [vmem:[%s12479_s3 + $0x118] sm:$0xff] }
 0x467   :  { %6196 = vmatprep.subr.mxu0 %v12655_v36 }
 0x468   :  { %6197 = vmatpush3.msra.mxu0 %v2216_v46  ;;  %v3936_v46 = vld [vmem:[%s12479_s3 + $0x128] sm:$0xff] }
 0x469   :  { %6199 = vmatmul.mubr.msk.f32.vlgmr.msra.gmra.mxu0 %vm12525_vm3, %v12658_v43  ;;  %6201 = vmatprep.subr.mxu0 %v12655_v36  ;;  %v3938_v43 = vld [vmem:[%s12479_s3 + $0x138] sm:$0xff] }
 0x46a   :  { %6209 = vmatprep.mubr.msk.f32.mxu0 %vm6327_vm2, %v12655_v36  ;;  %6202 = vmatpush3.msra.mxu0 %v2215_v13  ;;  %v3940_v13 = vld [vmem:[%s12479_s3 + $0x148] sm:$0xff] }
 0x46b   :  { %6203 = vmatprep.subr.mxu0 %v12655_v36 }
 0x46c   :  { %6204 = vmatpush3.msra.mxu0 %v2214_v37  ;;  %v3942_v37 = vld [vmem:[%s12479_s3 + $0x158] sm:$0xff] }
 0x46d   :  { %6205 = vmatprep.subr.mxu0 %v12655_v36 }
 0x46e   :  { %6206 = vmatpush3.msra.mxu0 %v2213_v22  ;;  %v3944_v22 = vld [vmem:[%s12479_s3 + $0x168] sm:$0xff] }
 0x46f   :  { %6207 = vmatprep.subr.mxu0 %v12655_v36  ;;  %v2405_v36 = vld [vmem:[%s12484_s8 + $0x8] sm:$0xff] }
 0x470   :  { %6208 = vmatpush3.msra.mxu0 %v2212_v44  ;;  %5465 = vmatprep.mubr.msk.f32.mxu1 %vm2061_vm4, %v2405_v36  ;;  %v6287_v44 = vld [vmem:[%s12476_s0] sm:$0xff]  ;;  %v3933_v36 = vld [vmem:[%s12479_s3 + $0x110] sm:$0xff] }
 0x471   :  { %2474 = vmatmul.mubr.f32.vlgmr.msra.gmra.mxu1 %v2404_v50  ;;  %v3935_v50 = vld [vmem:[%s12479_s3 + $0x120] sm:$0xff] }
 0x4ef   :  { %v2131_v32 = vpop.f32.mrf.mxu0 }
 0x4f1   :  { %v2133_v58 = vpop.f32.mrf.mxu0 }
 0x4f2   :  { %v4636_v58 = vld [vmem:[%s12479_s3 + $0x188] sm:$0xff] }
 0x521   :  { %v2201_v33 = vpop.f32.mrf.mxu0 }
 0x522   :  { %6283 = vrcp.f32 %v2201_v33  ;;  %v4638_v33 = vld [vmem:[%s12479_s3 + $0x198] sm:$0xff] }
 0x523   :  { %v2203_v25 = vpop.f32.mrf.mxu0 }
 0x524   :  { %v4640_v25 = vld [vmem:[%s12479_s3 + $0x1a8] sm:$0xff] }
 0x529   :  { %v2288_v60 = vpop.f32.mrf.mxu0 }
 0x52b   :  { %v6200_v52 = vpop.f32.mrf.mxu0 }
 0x52f   :  { %v6284_v55 = vpop.eup %6283 }
 0x530   :  { %2208 = vperm.xlu1 %6226, %v6284_v55  }
 0x531   :  { %v2475_v14 = vpop.f32.mrf.mxu1 }
 0x533   :  { %v2477_v42 = vpop.f32.mrf.mxu1 }
 0x5ab   :  { %v2209_v8 = vpop.permute.xlu1 %2208 }
 0x5ac   :  { %v2211_v29 = vmul.f32 %v2209_v8, %v2131_v32  ;;  %v3946_v32 = vld [vmem:[%s12479_s3 + $0x178] sm:$0xff] }
 0x5ad   :  { %v3242_v8 = vld [vmem:[%s12479_s3 + $0xf8] sm:$0xff] }
 0x5ae   :  { %6210 = vmatmul.mubr.msk.f32.vlgmr.msra.gmra.mxu0 %vm12525_vm3, %v2211_v29  ;;  %v3931_v29 = vld [vmem:[%s12479_s3 + $0x100] sm:$0xff] }
 0x66e   :  { %v2361_v45 = vpop.f32.mrf.mxu0 }
 0x66f   :  { %v2362_v11 = vadd.f32 %v2361_v45, %v2288_v60  ;;  %v4642_v60 = vld [vmem:[%s12479_s3 + $0x1b8] sm:$0xff]  ;;  %v3937_v45 = vld [vmem:[%s12479_s3 + $0x130] sm:$0xff] }
 0x670   :  { %v6211_v62 = vpop.f32.mrf.mxu0 }
 0x671   :  { %v2372_v5 = vadd.f32 %v5464_v7, %v2362_v11  ;;  %v3939_v7 = vld [vmem:[%s12479_s3 + $0x140] sm:$0xff]  ;;  %v3941_v62 = vld [vmem:[%s12479_s3 + $0x150] sm:$0xff] }
 0x673   :  { %6285 = vtanh.f32 %v2372_v5  ;;  %v3943_v5 = vld [vmem:[%s12479_s3 + $0x160] sm:$0xff] }
 0x680   :  { %v6286_v61 = vpop.eup %6285 }
 0x681   :  { %2375 = vrot.lane.b32.xlu0 %v6286_v61, %s6331_s30 }
 0x685   :  { %2595 = vrot.lane.b32.xlu0 %v2491_v6, %s6331_s30  ;;  %v4635_v6 = vld [vmem:[%s12479_s3 + $0x180] sm:$0xff] }
 0x689   :  { %2599 = vrot.lane.b32.xlu0 %v2493_v34, %s6331_s30  ;;  %v4637_v34 = vld [vmem:[%s12479_s3 + $0x190] sm:$0xff] }
 0x68d   :  { %2603 = vrot.lane.b32.xlu0 %v2495_v23, %s6331_s30 }
 0x691   :  { %2607 = vrot.lane.b32.xlu0 %v2497_v28, %s6331_s30  ;;  %v4641_v28 = vld [vmem:[%s12479_s3 + $0x1b0] sm:$0xff] }
 0x695   :  { %2611 = vrot.lane.b32.xlu0 %v2499_v53, %s6331_s30  ;;  %v4643_v53 = vld [vmem:[%s12479_s3 + $0x1c0] sm:$0xff] }
 0x699   :  { %2615 = vrot.lane.b32.xlu0 %v2501_v1, %s6331_s30 }
 0x69d   :  { %2619 = vrot.lane.b32.xlu0 %v2503_v10, %s6331_s30  ;;  %v4645_v10 = vld [vmem:[%s12479_s3 + $0x1d0] sm:$0xff] }
 0x6a1   :  { %2623 = vrot.lane.b32.xlu0 %v2505_v2, %s6331_s30 }
 0x6a5   :  { %3327 = vrot.lane.b32.xlu0 %v3228_v18, %s6331_s30 }
 0x6a9   :  { %3331 = vrot.lane.b32.xlu0 %v3230_v59, %s6331_s30  ;;  %v4647_v59 = vld [vmem:[%s12479_s3 + $0x1e0] sm:$0xf] }
 0x6ad   :  { %3335 = vrot.lane.b32.xlu0 %v3232_v21, %s6331_s30 }
 0x6b1   :  { %3339 = vrot.lane.b32.xlu0 %v3234_v16, %s6331_s30 }
 0x6b5   :  { %3343 = vrot.lane.b32.xlu0 %v3236_v49, %s6331_s30 }
 0x6b9   :  { %3347 = vrot.lane.b32.xlu0 %v3238_v24, %s6331_s30 }
 0x6bd   :  { %3351 = vrot.lane.b32.xlu0 %v3240_v57, %s6331_s30 }
 0x6f3   :  { %v2376_v63 = vpop.permute.xlu0 %2375 }
 0x6f4   :  { %v2378_v40 = vmul.f32 %v12659_v9, %v2376_v63 }
 0x6f6   :  { %2380 = vrot.lane.b32.xlu1 %v2378_v40, %s6330_s4  ;;  %v4639_v40 = vld [vmem:[%s12479_s3 + $0x1a0] sm:$0xff] }
 0x6f7   :  { %v8357_v11 = vpop.permute.xlu0 %2595 }
 0x6f8   :  { %12661 = vst [vmem:[#allocation12_spill] sm:$0xff] %v8357_v11 }
 0x6fb   :  { %v8367_v61 = vpop.permute.xlu0 %2599 }
 0x6fc   :  { %12662 = vst [vmem:[#allocation13_spill] sm:$0xff] %v8367_v61 }
 0x6ff   :  { %v8373_v42 = vpop.permute.xlu0 %2603 }
 0x700   :  { %12663 = vst [vmem:[#allocation11_spill] sm:$0xff] %v8373_v42 }
 0x703   :  { %v8383_v63 = vpop.permute.xlu0 %2607 }
 0x704   :  { %12664 = vst [vmem:[#allocation9_spill] sm:$0xff] %v8383_v63 }
 0x707   :  { %v8389_v23 = vpop.permute.xlu0 %2611 }
 0x708   :  { %12665 = vst [vmem:[#allocation10_spill] sm:$0xff] %v8389_v23 }
 0x70b   :  { %v8399_v1 = vpop.permute.xlu0 %2615 }
 0x70c   :  { %12666 = vst [vmem:[#allocation14_spill] sm:$0xff] %v8399_v1 }
 0x70f   :  { %v8407_v18 = vpop.permute.xlu0 %2619 }
 0x710   :  { %12667 = vst [vmem:[#allocation15_spill] sm:$0xff] %v8407_v18 }
 0x713   :  { %v8416_v16 = vpop.permute.xlu0 %2623 }
 0x714   :  { %12669 = vst [vmem:[#allocation17_spill] sm:$0xff] %v8416_v16 }
 0x717   :  { %v8420_v24 = vpop.permute.xlu0 %3327 }
 0x718   :  { %12671 = vst [vmem:[#allocation19_spill] sm:$0xff] %v8420_v24 }
 0x768   :  { %v2381_v39 = vpop.permute.xlu1 %2380 }
 0x769   :  { %v8215_v54 = vadd.f32 %v12660_v27, %v2381_v39  ;;  %v8424_v39 = vpop.permute.xlu0 %3331 }
 0x76a   :  { %12673 = vst [vmem:[#allocation21_spill] sm:$0xff] %v8424_v39 }
 0x76b   :  { %2385 = vrot.lane.b32.xlu1 %v8215_v54, %s6332_s16  ;;  %s8678_s16 = sld [smem:[#allocation2 + $0x280]] }
 0x76f   :  { %2480 = vrot.lane.b32.xlu1 %v2475_v14, %s6331_s30  ;;  %v3945_v14 = vld [vmem:[%s12479_s3 + $0x170] sm:$0xff] }
 0x773   :  { %2593 = vrot.lane.b32.xlu1 %v2490_v30, %s6331_s30  ;;  %v8428_v30 = vpop.permute.xlu0 %3335 }
 0x774   :  { %12675 = vst [vmem:[#allocation23_spill] sm:$0xff] %v8428_v30 }
 0x777   :  { %2597 = vrot.lane.b32.xlu1 %v2492_v3, %s6331_s30 }
 0x77b   :  { %2601 = vrot.lane.b32.xlu1 %v2494_v20, %s6331_s30  ;;  %v8432_v20 = vpop.permute.xlu0 %3339 }
 0x77c   :  { %12677 = vst [vmem:[#allocation25_spill] sm:$0xff] %v8432_v20 }
 0x77f   :  { %2605 = vrot.lane.b32.xlu1 %v2496_v4, %s6331_s30 }
 0x783   :  { %2609 = vrot.lane.b32.xlu1 %v2498_v31, %s6331_s30  ;;  %v8436_v31 = vpop.permute.xlu0 %3343 }
 0x784   :  { %12679 = vst [vmem:[#allocation27_spill] sm:$0xff] %v8436_v31 }
 0x787   :  { %2613 = vrot.lane.b32.xlu1 %v2500_v51, %s6331_s30 }
 0x78b   :  { %2617 = vrot.lane.b32.xlu1 %v2502_v17, %s6331_s30  ;;  %v8440_v17 = vpop.permute.xlu0 %3347 }
 0x78f   :  { %2621 = vrot.lane.b32.xlu1 %v2504_v26, %s6331_s30 }
 0x793   :  { %3325 = vrot.lane.b32.xlu1 %v3227_v15, %s6331_s30  ;;  %v8444_v15 = vpop.permute.xlu0 %3351 }
 0x797   :  { %3329 = vrot.lane.b32.xlu1 %v3229_v19, %s6331_s30 }
 0x79b   :  { %3333 = vrot.lane.b32.xlu1 %v3231_v35, %s6331_s30 }
 0x79f   :  { %3337 = vrot.lane.b32.xlu1 %v3233_v38, %s6331_s30 }
 0x7a3   :  { %3341 = vrot.lane.b32.xlu1 %v3235_v56, %s6331_s30 }
 0x7a7   :  { %3345 = vrot.lane.b32.xlu1 %v3237_v47, %s6331_s30  ;;  %v4644_v47 = vld [vmem:[%s12479_s3 + $0x1c8] sm:$0xff] }
 0x7ab   :  { %3349 = vrot.lane.b32.xlu1 %v3239_v41, %s6331_s30  ;;  %v4646_v41 = vld [vmem:[%s12479_s3 + $0x1d8] sm:$0xff]  ;;  %s2523_s3 = sld [smem:[#allocation2]] }
 0x7af   :  { %3353 = vrot.lane.b32.xlu1 %v3241_v48, %s6331_s30 }
 0x7b3   :  { %4031 = vrot.lane.b32.xlu1 %v3932_v12, %s6331_s30 }
 0x7b7   :  { %4035 = vrot.lane.b32.xlu1 %v3934_v0, %s6331_s30 }
 0x7bb   :  { %4039 = vrot.lane.b32.xlu1 %v3936_v46, %s6331_s30 }
 0x7bf   :  { %4043 = vrot.lane.b32.xlu1 %v3938_v43, %s6331_s30 }
 0x7c3   :  { %4047 = vrot.lane.b32.xlu1 %v3940_v13, %s6331_s30 }
 0x7c7   :  { %4051 = vrot.lane.b32.xlu1 %v3942_v37, %s6331_s30 }
 0x7cb   :  { %4055 = vrot.lane.b32.xlu1 %v3944_v22, %s6331_s30 }
 0x7cf   :  { %4059 = vrot.lane.b32.xlu1 %v3946_v32, %s6331_s30 }
 0x7d3   :  { %4717 = vrot.lane.b32.xlu1 %v4636_v58, %s6331_s30 }
 0x7d7   :  { %4721 = vrot.lane.b32.xlu1 %v4638_v33, %s6331_s30 }
 0x7db   :  { %4725 = vrot.lane.b32.xlu1 %v4640_v25, %s6331_s30 }
 0x7dd   :  { %v2386_v52 = vpop.permute.xlu1 %2385 }
 0x7de   :  { %v2388_v55 = vsub.f32 %v6287_v44, %v2386_v52 }
 0x7df   :  { %4729 = vrot.lane.b32.xlu1 %v4642_v60, %s6331_s30 }
 0x7e0   :  { %2390 = vrot.lane.b32.xlu0 %v2388_v55, %s6333_s26 }
 0x7e1   :  { %v8405_v2 = vpop.permute.xlu1 %2480 }
 0x7e4   :  { %3355 = vrot.lane.b32.xlu0 %v3242_v8, %s6331_s30 }
 0x7e5   :  { %v8413_v21 = vpop.permute.xlu1 %2593 }
 0x7e6   :  { %12668 = vst [vmem:[#allocation16_spill] sm:$0xff] %v8413_v21 }
 0x7e8   :  { %4029 = vrot.lane.b32.xlu0 %v3931_v29, %s6331_s30 }
 0x7e9   :  { %v8418_v49 = vpop.permute.xlu1 %2597 }
 0x7ea   :  { %12670 = vst [vmem:[#allocation18_spill] sm:$0xff] %v8418_v49 }
 0x7ec   :  { %4033 = vrot.lane.b32.xlu0 %v3933_v36, %s6331_s30 }
 0x7ed   :  { %v8422_v57 = vpop.permute.xlu1 %2601 }
 0x7ee   :  { %12672 = vst [vmem:[#allocation20_spill] sm:$0xff] %v8422_v57  ;;  %v8593_v57 = vstv %s5468_s11 }
 0x7f0   :  { %4037 = vrot.lane.b32.xlu0 %v3935_v50, %s6331_s30 }
 0x7f1   :  { %v8426_v27 = vpop.permute.xlu1 %2605 }
 0x7f2   :  { %12674 = vst [vmem:[#allocation22_spill] sm:$0xff] %v8426_v27 }
 0x7f4   :  { %4041 = vrot.lane.b32.xlu0 %v3937_v45, %s6331_s30 }
 0x7f5   :  { %v8430_v3 = vpop.permute.xlu1 %2609 }
 0x7f6   :  { %12676 = vst [vmem:[#allocation24_spill] sm:$0xff] %v8430_v3  ;;  %v8584_v3 = vstv %s2523_s3 }
 0x7f7   :  { %12724 = vst [vmem:[#allocation70_spill] sm:$0xff] %v8584_v3 }
 0x7f8   :  { %4045 = vrot.lane.b32.xlu0 %v3939_v7, %s6331_s30 }
 0x7f9   :  { %v8434_v4 = vpop.permute.xlu1 %2613 }
 0x7fa   :  { %12678 = vst [vmem:[#allocation26_spill] sm:$0xff] %v8434_v4 }
 0x7fc   :  { %4049 = vrot.lane.b32.xlu0 %v3941_v62, %s6331_s30 }
 0x7fd   :  { %v8438_v51 = vpop.permute.xlu1 %2617 }
 0x7fe   :  { %12680 = vst [vmem:[#allocation28_spill] sm:$0xff] %v8438_v51 }
 0x800   :  { %4053 = vrot.lane.b32.xlu0 %v3943_v5, %s6331_s30 }
 0x801   :  { %v8442_v26 = vpop.permute.xlu1 %2621 }
 0x802   :  { %12681 = vst [vmem:[#allocation29_spill] sm:$0xff] %v8442_v26 }
 0x804   :  { %4057 = vrot.lane.b32.xlu0 %v3945_v14, %s6331_s30 }
 0x805   :  { %v8446_v19 = vpop.permute.xlu1 %3325 }
 0x806   :  { %12682 = vst [vmem:[#allocation30_spill] sm:$0xff] %v8446_v19 }
 0x808   :  { %4715 = vrot.lane.b32.xlu0 %v4635_v6, %s6331_s30 }
 0x809   :  { %v8450_v56 = vpop.permute.xlu1 %3329 }
 0x80a   :  { %12683 = vst [vmem:[#allocation31_spill] sm:$0xff] %v8450_v56 }
 0x80c   :  { %4719 = vrot.lane.b32.xlu0 %v4637_v34, %s6331_s30 }
 0x80d   :  { %v8459_v48 = vpop.permute.xlu1 %3333 }
 0x80e   :  { %12684 = vst [vmem:[#allocation32_spill] sm:$0xff] %v8459_v48  ;;  %v2484_v48 = vsub.f32 1.0, %v12659_v9 }
 0x810   :  { %4723 = vrot.lane.b32.xlu0 %v4639_v40, %s6331_s30 }
 0x811   :  { %v8462_v12 = vpop.permute.xlu1 %3337 }
 0x812   :  { %12685 = vst [vmem:[#allocation33_spill] sm:$0xff] %v8462_v12 }
 0x814   :  { %4727 = vrot.lane.b32.xlu0 %v4641_v28, %s6331_s30 }
 0x815   :  { %v8464_v0 = vpop.permute.xlu1 %3341 }
 0x818   :  { %4731 = vrot.lane.b32.xlu0 %v4643_v53, %s6331_s30 }
 0x819   :  { %v8466_v46 = vpop.permute.xlu1 %3345 }
 0x81c   :  { %4735 = vrot.lane.b32.xlu0 %v4645_v10, %s6331_s30 }
 0x81d   :  { %v8468_v43 = vpop.permute.xlu1 %3349 }
 0x820   :  { %4739 = vrot.lane.b32.xlu0 %v4647_v59, %s6331_s30 }
 0x821   :  { %v8470_v13 = vpop.permute.xlu1 %3353 }
 0x825   :  { %v8472_v37 = vpop.permute.xlu1 %4031 }
 0x829   :  { %v8474_v22 = vpop.permute.xlu1 %4035 }
 0x82d   :  { %v8476_v32 = vpop.permute.xlu1 %4039 }
 0x831   :  { %v8478_v58 = vpop.permute.xlu1 %4043 }
 0x832   :  { %12686 = vst [vmem:[#allocation34_spill] sm:$0xff] %v8478_v58 }
 0x835   :  { %v8480_v33 = vpop.permute.xlu1 %4047 }
 0x836   :  { %12687 = vst [vmem:[#allocation35_spill] sm:$0xff] %v8480_v33 }
 0x839   :  { %v8482_v25 = vpop.permute.xlu1 %4051 }
 0x83a   :  { %12688 = vst [vmem:[#allocation36_spill] sm:$0xff] %v8482_v25 }
 0x83d   :  { %v8484_v60 = vpop.permute.xlu1 %4055 }
 0x83e   :  { %12689 = vst [vmem:[#allocation37_spill] sm:$0xff] %v8484_v60 }
 0x841   :  { %v8486_v52 = vpop.permute.xlu1 %4059 }
 0x842   :  { %12690 = vst [vmem:[#allocation38_spill] sm:$0xff] %v8486_v52 }
 0x845   :  { %v8488_v44 = vpop.permute.xlu1 %4717 }
 0x846   :  { %12691 = vst [vmem:[#allocation39_spill] sm:$0xff] %v8488_v44 }
 0x849   :  { %v8490_v55 = vpop.permute.xlu1 %4721 }
 0x84a   :  { %12692 = vst [vmem:[#allocation40_spill] sm:$0xff] %v8490_v55 }
 0x84d   :  { %v8492_v8 = vpop.permute.xlu1 %4725 }
 0x84e   :  { %12693 = vst [vmem:[#allocation41_spill] sm:$0xff] %v8492_v8 }
 0x851   :  { %v8494_v29 = vpop.permute.xlu1 %4729 }
 0x852   :  { %v2391_v35 = vpop.permute.xlu0 %2390  ;;  %12694 = vst [vmem:[#allocation42_spill] sm:$0xff] %v8494_v29 }
 0x853   :  { %v2393_v38 = vmul.f32 %v12659_v9, %v2391_v35 }
 0x855   :  { %2395 = vrot.lane.b32.xlu1 %v2393_v38, %s6331_s30 }
 0x856   :  { %v8499_v45 = vpop.permute.xlu0 %3355 }
 0x859   :  { %4733 = vrot.lane.b32.xlu1 %v4644_v47, %s6331_s30 }
 0x85a   :  { %v8501_v7 = vpop.permute.xlu0 %4029 }
 0x85d   :  { %4737 = vrot.lane.b32.xlu1 %v4646_v41, %s6331_s30  ;;  %v12706_v41 = vld [vmem:[#allocation8_spill] sm:$0xff] }
 0x85e   :  { %v8503_v62 = vpop.permute.xlu0 %4033  ;;  %v8538_v20 = vadd.s32 40, %v12706_v41  ;;  %v8541_v12 = vadd.s32 56, %v12706_v41  ;;  %v8544_v30 = vadd.s32 72, %v12706_v41  ;;  %v8549_v39 = vadd.s32 88, %v12706_v41 }
 0x85f   :  { %v8552_v56 = vadd.s32 104, %v12706_v41  ;;  %v8555_v24 = vadd.s32 120, %v12706_v41  ;;  %v8561_v16 = vadd.s32 16, %v12706_v41  ;;  %v8564_v26 = vadd.s32 32, %v12706_v41 }
 0x860   :  { %12709 = vst [vmem:[#allocation55_spill] sm:$0xff] %v8538_v20  ;;  %12710 = vst [vmem:[#allocation56_spill] sm:$0xff] %v8541_v12  ;;  %v8570_v18 = vadd.s32 64, %v12706_v41  ;;  %v8576_v1 = vadd.s32 80, %v12706_v41  ;;  %v8579_v4 = vadd.s32 96, %v12706_v41  ;;  %v8582_v23 = vadd.s32 112, %v12706_v41 }
 0x861   :  { %12711 = vst [vmem:[#allocation57_spill] sm:$0xff] %v8544_v30  ;;  %12712 = vst [vmem:[#allocation58_spill] sm:$0xff] %v8549_v39  ;;  %v8591_v42 = vadd.s32 128, %v8538_v20  ;;  %v8599_v61 = vadd.s32 128, %v8552_v56  ;;  %v8602_v49 = vadd.s32 128, %v12706_v41  ;;  %v8605_v11 = vadd.s32 128, %v8561_v16 }
 0x862   :  { %v8505_v5 = vpop.permute.xlu0 %4037  ;;  %12713 = vst [vmem:[#allocation59_spill] sm:$0xff] %v8552_v56  ;;  %12714 = vst [vmem:[#allocation60_spill] sm:$0xff] %v8555_v24  ;;  %v8608_v21 = vadd.s32 128, %v8564_v26  ;;  %v8643_v8 = vadd.s32 256, %v8549_v39  ;;  %v8649_v55 = vadd.s32 256, %v12706_v41  ;;  %v8655_v44 = vadd.s32 256, %v8555_v24 }
 0x863   :  { %12716 = vst [vmem:[#allocation62_spill] sm:$0xff] %v8561_v16  ;;  %12717 = vst [vmem:[#allocation63_spill] sm:$0xff] %v8564_v26  ;;  %vm3274_vm7 = vcmp.eq.s32.totalorder %v8599_v61, %v8584_v3  ;;  %v8724_v25 = vadd.s32 384, %v12706_v41  ;;  %v8741_v33 = vadd.s32 384, %v8544_v30  ;;  %v12762_v58 = vsub.s32 0, %v12706_v41 }
 0x864   :  { %12719 = vst [vmem:[#allocation65_spill] sm:$0xff] %v8570_v18  ;;  %12721 = vst [vmem:[#allocation67_spill] sm:$0xff] %v8576_v1  ;;  %vm3965_vm12 = vcmp.eq.s32.totalorder %v8649_v55, %v8584_v3 }
 0x865   :  { %12722 = vst [vmem:[#allocation68_spill] sm:$0xff] %v8579_v4  ;;  %12723 = vst [vmem:[#allocation69_spill] sm:$0xff] %v8582_v23  ;;  %vm4886_vm4 = vcmp.eq.s32.totalorder %v8741_v33, %v8593_v57 }
 0x866   :  { %v8507_v14 = vpop.permute.xlu0 %4041  ;;  %12725 = vst [vmem:[#allocation71_spill] sm:$0xff] %v8591_v42  ;;  %12727 = vst [vmem:[#allocation73_spill] sm:$0xff] %v8599_v61  ;;  %v8614_v42 = vadd.s32 128, %v8570_v18 }
 0x867   :  { %12695 = vst [vmem:[#allocation43_spill] sm:$0xff] %v8507_v14  ;;  %12728 = vst [vmem:[#allocation74_spill] sm:$0xff] %v8602_v49  ;;  %v8622_v49 = vadd.s32 128, %v8579_v4 }
 0x868   :  { %12729 = vst [vmem:[#allocation75_spill] sm:$0xff] %v8605_v11  ;;  %12730 = vst [vmem:[#allocation76_spill] sm:$0xff] %v8608_v21  ;;  %v8625_v11 = vadd.s32 128, %v8582_v23  ;;  %vm3269_vm2 = vcmp.eq.s32.totalorder %v8614_v42, %v8584_v3 }
 0x869   :  { %12732 = vst [vmem:[#allocation78_spill] sm:$0xff] %v8614_v42  ;;  %12734 = vst [vmem:[#allocation80_spill] sm:$0xff] %v8622_v49  ;;  %vm3273_vm8 = vcmp.eq.s32.totalorder %v8622_v49, %v8584_v3 }
 0x86a   :  { %v8509_v6 = vpop.permute.xlu0 %4045  ;;  %12735 = vst [vmem:[#allocation81_spill] sm:$0xff] %v8625_v11  ;;  %12741 = vst [vmem:[#allocation87_spill] sm:$0xff] %v8643_v8  ;;  %vm3275_vm9 = vcmp.eq.s32.totalorder %v8625_v11, %v8584_v3 }
 0x86b   :  { %12696 = vst [vmem:[#allocation44_spill] sm:$0xff] %v8509_v6  ;;  %12744 = vst [vmem:[#allocation90_spill] sm:$0xff] %v8655_v44  ;;  %v8815_v6 = vstv %s8660_s5 }
 0x86c   :  { %12754 = vst [vmem:[#allocation100_spill] sm:$0xff] %v8724_v25  ;;  %12758 = vst [vmem:[#allocation104_spill] sm:$0xff] %v8741_v33 }
 0x86d   :  { %12765 = vst [vmem:[#allocation110_spill] sm:$0xff] %v8815_v6 }
 0x86e   :  { %v8511_v34 = vpop.permute.xlu0 %4049 }
 0x86f   :  { %12697 = vst [vmem:[#allocation45_spill] sm:$0xff] %v8511_v34 }
 0x872   :  { %v8513_v40 = vpop.permute.xlu0 %4053 }
 0x873   :  { %12698 = vst [vmem:[#allocation46_spill] sm:$0xff] %v8513_v40  ;;  %v8721_v40 = vadd.s32 256, %v8582_v23  ;;  %v8738_v23 = vadd.s32 384, %v8564_v26 }
 0x875   :  { %12753 = vst [vmem:[#allocation99_spill] sm:$0xff] %v8721_v40  ;;  %12757 = vst [vmem:[#allocation103_spill] sm:$0xff] %v8738_v23 }
 0x8c7   :  { %v2396_v36 = vpop.permute.xlu1 %2395 }
 0x8c8   :  { %v2398_v50 = vadd.f32 %v2396_v36, %v8215_v54  ;;  %v8515_v54 = vpop.permute.xlu0 %4057  ;;  %v8532_v36 = vadd.s32 8, %v12706_v41 }
 0x8c9   :  { %12699 = vst [vmem:[#allocation47_spill] sm:$0xff] %v8515_v54 }
 0x8ca   :  { %2400 = vrot.lane.b32.xlu0 %v2398_v50, %s6330_s4  ;;  %s5467_s4 = sld [smem:[#allocation2 + $0x100]]  ;;  %12707 = vst [vmem:[#allocation8_spill] sm:$0xff] %v8532_v36  ;;  %v8558_v19 = vadd.s32 128, %v8532_v36  ;;  %v8628_v21 = vadd.s32 256, %v8532_v36  ;;  %v8667_v54 = vadd.s32 384, %v8532_v36  ;;  %v8698_v36 = vadd.s32 256, %v8576_v1 }
 0x8cc   :  { %v8517_v28 = vpop.permute.xlu0 %4715  ;;  %12715 = vst [vmem:[#allocation61_spill] sm:$0xff] %v8558_v19  ;;  %12736 = vst [vmem:[#allocation82_spill] sm:$0xff] %v8628_v21 }
 0x8cd   :  { %12700 = vst [vmem:[#allocation48_spill] sm:$0xff] %v8517_v28  ;;  %v8658_v28 = vadd.s32 256, %v8561_v16  ;;  %12746 = vst [vmem:[#allocation92_spill] sm:$0xff] %v8667_v54 }
 0x8ce   :  { %2485 = vrot.lane.b32.xlu0 %v2398_v50, %s6329_s2  ;;  %s5466_s2 = sld [smem:[#allocation2 + $0x80]]  ;;  %v8535_v50 = vadd.s32 24, %v12706_v41  ;;  %12750 = vst [vmem:[#allocation96_spill] sm:$0xff] %v8698_v36 }
 0x8cf   :  { %12745 = vst [vmem:[#allocation91_spill] sm:$0xff] %v8658_v28 }
 0x8d0   :  { %v8519_v53 = vpop.permute.xlu0 %4719  ;;  %12708 = vst [vmem:[#allocation54_spill] sm:$0xff] %v8535_v50  ;;  %v8573_v51 = vadd.s32 128, %v8535_v50  ;;  %v8588_v27 = vstv %s5467_s4 }
 0x8d1   :  { %12701 = vst [vmem:[#allocation49_spill] sm:$0xff] %v8519_v53  ;;  %v8652_v53 = vadd.s32 256, %v8552_v56  ;;  %v8670_v56 = vadd.s32 384, %v8535_v50  ;;  %vm4832_vm13 = vcmp.eq.s32.totalorder %v8741_v33, %v8588_v27 }
 0x8d2   :  { %12720 = vst [vmem:[#allocation66_spill] sm:$0xff] %v8573_v51  ;;  %v8596_v51 = vadd.s32 128, %v8549_v39 }
 0x8d3   :  { %12743 = vst [vmem:[#allocation89_spill] sm:$0xff] %v8652_v53  ;;  %12747 = vst [vmem:[#allocation93_spill] sm:$0xff] %v8670_v56 }
 0x8d4   :  { %v8521_v10 = vpop.permute.xlu0 %4723  ;;  %v8586_v63 = vstv %s5466_s2  ;;  %12726 = vst [vmem:[#allocation72_spill] sm:$0xff] %v8596_v51  ;;  %vm3272_vm6 = vcmp.eq.s32.totalorder %v8596_v51, %v8584_v3 }
 0x8d5   :  { %12702 = vst [vmem:[#allocation50_spill] sm:$0xff] %v8521_v10  ;;  %v8646_v10 = vadd.s32 128, %v8555_v24  ;;  %v8673_v24 = vadd.s32 256, %v8564_v26  ;;  %v8756_v26 = vadd.s32 384, %v8576_v1  ;;  %vm4778_vm15 = vcmp.eq.s32.totalorder %v8741_v33, %v8586_v63 }
 0x8d6   :  { %vm3404_vm0 = vcmp.eq.s32.totalorder %v8599_v61, %v8586_v63  ;;  %vm4096_vm14 = vcmp.eq.s32.totalorder %v8628_v21, %v8586_v63 }
 0x8d7   :  { %12742 = vst [vmem:[#allocation88_spill] sm:$0xff] %v8646_v10  ;;  %vm3276_vm10 = vcmp.eq.s32.totalorder %v8646_v10, %v8584_v3  ;;  %12761 = vst [vmem:[#allocation107_spill] sm:$0xff] %v8756_v26 }
 0x8d8   :  { %v8523_v59 = vpop.permute.xlu0 %4727 }
 0x8d9   :  { %12703 = vst [vmem:[#allocation51_spill] sm:$0xff] %v8523_v59  ;;  %v8634_v59 = vadd.s32 256, %v8538_v20 }
 0x8db   :  { %12738 = vst [vmem:[#allocation84_spill] sm:$0xff] %v8634_v59 }
 0x8dc   :  { %v8525_v35 = vpop.permute.xlu0 %4731 }
 0x8dd   :  { %12704 = vst [vmem:[#allocation52_spill] sm:$0xff] %v8525_v35  ;;  %v8619_v35 = vadd.s32 128, %v8576_v1  ;;  %v2849_v1 = vsub.s32 3, %v12706_v41 }
 0x8df   :  { %12733 = vst [vmem:[#allocation79_spill] sm:$0xff] %v8619_v35  ;;  %vm3271_vm5 = vcmp.eq.s32.totalorder %v8619_v35, %v8584_v3 }
 0x8e0   :  { %v8527_v38 = vpop.permute.xlu0 %4735 }
 0x8e1   :  { %12705 = vst [vmem:[#allocation53_spill] sm:$0xff] %v8527_v38  ;;  %v2483_v38 = vmul.f32 %v12659_v9, %v8405_v2  ;;  %v8637_v9 = vadd.s32 256, %v8541_v12  ;;  %v8640_v2 = vadd.s32 256, %v8544_v30  ;;  %v2919_v30 = vsub.s32 4, %v12706_v41 }
 0x8e3   :  { %12739 = vst [vmem:[#allocation85_spill] sm:$0xff] %v8637_v9  ;;  %12740 = vst [vmem:[#allocation86_spill] sm:$0xff] %v8640_v2 }
 0x8e4   :  { %v8529_v47 = vpop.permute.xlu0 %4739 }
 0x93c   :  { %v2401_v31 = vpop.permute.xlu0 %2400 }
 0x93d   :  { %2403 = vst.msk [vmem:[#allocation5] sm:$0xff] %vm12525_vm3, %v2401_v31  ;;  %v8567_v31 = vadd.s32 48, %v12706_v41  ;;  %vm4097_vm3 = vcmp.eq.s32.totalorder %v8658_v28, %v8586_v63 }
 0x93f   :  { %12718 = vst [vmem:[#allocation64_spill] sm:$0xff] %v8567_v31  ;;  %v8611_v19 = vadd.s32 128, %v8567_v31  ;;  %v8676_v60 = vadd.s32 256, %v8567_v31 }
 0x940   :  { %v2486_v29 = vpop.permute.xlu0 %2485 }
 0x941   :  { %12731 = vst [vmem:[#allocation77_spill] sm:$0xff] %v8611_v19  ;;  %v8631_v19 = vadd.s32 256, %v8535_v50  ;;  %v2488_v52 = vmul.f32 %v2486_v29, %v2484_v48  ;;  %v8689_v48 = vadd.s32 384, %v8538_v20  ;;  %v8692_v29 = vadd.s32 384, %v8541_v12 }
 0x942   :  { %v8695_v50 = vadd.s32 256, %v8570_v18  ;;  %v8707_v20 = vadd.s32 256, %v8579_v4  ;;  %v8710_v12 = vadd.s32 384, %v8579_v4  ;;  %v8735_v4 = vadd.s32 384, %v8561_v16 }
 0x943   :  { %12737 = vst [vmem:[#allocation83_spill] sm:$0xff] %v8631_v19  ;;  %12748 = vst [vmem:[#allocation94_spill] sm:$0xff] %v8689_v48  ;;  %v8726_v34 = vadd.f32 %v2488_v52, %v2483_v38  ;;  %v8750_v52 = vadd.s32 384, %v8567_v31  ;;  %v8753_v38 = vadd.s32 384, %v8570_v18  ;;  %v2779_v18 = vsub.s32 2, %v12706_v41 }
 0x944   :  { %12749 = vst [vmem:[#allocation95_spill] sm:$0xff] %v8692_v29  ;;  %12751 = vst [vmem:[#allocation97_spill] sm:$0xff] %v8707_v20  ;;  %vm4675_vm1 = vcmp.eq.s32.totalorder %v8710_v12, %v8584_v3  ;;  %v2989_v31 = vsub.s32 5, %v12706_v41  ;;  %v8818_v16 = vstv %s8678_s16  ;;  %v8821_v48 = vstv %s8700_s17 }
 0x945   :  { %12752 = vst [vmem:[#allocation98_spill] sm:$0xff] %v8710_v12  ;;  %12755 = vst [vmem:[#allocation101_spill] sm:$0xff] %v8726_v34  ;;  %v8785_v14 = vrot.slane %v8726_v34, %v12762_v58  ;;  %v8812_v58 = vadd.s32 384, %v8549_v39  ;;  %v12768_v39 = vsub.s32 1, %v12706_v41  ;;  %vm4098_vm11 = vcmp.eq.s32.totalorder %v8631_v19, %v8586_v63 }
 0x946   :  { %12756 = vst [vmem:[#allocation102_spill] sm:$0xff] %v8735_v4  ;;  %12759 = vst [vmem:[#allocation105_spill] sm:$0xff] %v8750_v52 }
 0x947   :  { %12760 = vst [vmem:[#allocation106_spill] sm:$0xff] %v8753_v38  ;;  %12763 = vst [vmem:[#allocation108_spill] sm:$0xff] %v8785_v14  ;;  %v8834_v6 = vrot.slane %v8726_v34, %v12768_v39  ;;  %v8864_v39 = vsel %vm3269_vm2, %v8785_v14, %v8464_v0  ;;  %vm4099_vm2 = vcmp.eq.s32.totalorder %v8673_v24, %v8586_v63 }
 0x948   :  { %12764 = vst [vmem:[#allocation109_spill] sm:$0xff] %v8812_v58  ;;  %12766 = vst [vmem:[#allocation111_spill] sm:$0xff] %v8818_v16  ;;  %v8837_v16 = vrot.slane %v8726_v34, %v2779_v18  ;;  %v8843_v58 = vstv %s8712_s18  ;;  %v8854_v18 = vrot.slane %v8726_v34, %v2919_v30  ;;  %v8886_v30 = vsel %vm3272_vm6, %v8785_v14, %v8440_v17 }
 0x949   :  { %12767 = vst [vmem:[#allocation112_spill] sm:$0xff] %v8821_v48  ;;  %v8840_v48 = vrot.slane %v8726_v34, %v2849_v1  ;;  %12771 = vst [vmem:[#allocation115_spill] sm:$0xff] %v8843_v58  ;;  %v8857_v1 = vrot.slane %v8726_v34, %v2989_v31  ;;  %v8871_v58 = vsel %vm3271_vm5, %v8785_v14, %v8466_v46  ;;  %v4734_v31 = vpop.permute.xlu1 %4733 }
 0x94a   :  { %12769 = vst [vmem:[#allocation113_spill] sm:$0xff] %v8837_v16  ;;  %12772 = vst [vmem:[#allocation116_spill] sm:$0xff] %v8854_v18  ;;  %v8893_v0 = vsel %vm3273_vm8, %v8785_v14, %v8468_v43  ;;  %v8900_v46 = vsel %vm3274_vm7, %v8785_v14, %v8444_v15  ;;  %v8907_v17 = vsel %vm3275_vm9, %v8785_v14, %v8470_v13  ;;  %v12790_v34 = vld [vmem:[#allocation94_spill] sm:$0xff] }
 0x94b   :  { %12770 = vst [vmem:[#allocation114_spill] sm:$0xff] %v8840_v48  ;;  %12773 = vst [vmem:[#allocation117_spill] sm:$0xff] %v8857_v1  ;;  %vm4100_vm5 = vcmp.eq.s32.totalorder %v8634_v59, %v8586_v63  ;;  %vm4101_vm8 = vcmp.eq.s32.totalorder %v8676_v60, %v8586_v63  ;;  %v8922_v15 = vsel %vm3276_vm10, %v8785_v14, %v8499_v45 }
 0x94c   :  { %v8929_v43 = vsel %vm3965_vm12, %v8785_v14, %v8501_v7  ;;  %v8936_v13 = vsel %vm4675_vm1, %v8785_v14, %v8529_v47  ;;  %vm12775_vm9 = vcmp.eq.s32.totalorder %v8741_v33, %v8584_v3  ;;  %vm4104_vm10 = vcmp.eq.s32.totalorder %v8640_v2, %v8586_v63  ;;  %v12795_v33 = vld [vmem:[#allocation46_spill] sm:$0xff] }
 0x94d   :  { %12774 = vst [vmem:[#allocation118_spill] sm:$0xff] %v8936_v13  ;;  %v4763_v45 = vsel %vm12775_vm9, %v8785_v14, %v4734_v31  ;;  %vm12776_vm1 = vcmp.eq.s32.totalorder %v8628_v21, %v8584_v3  ;;  %vm12777_vm9 = vcmp.eq.s32.totalorder %v8658_v28, %v8584_v3  ;;  %vm12778_vm7 = vcmp.eq.s32.totalorder %v8631_v19, %v8584_v3 }
 0x94e   :  { %v8955_v7 = vsel %vm12776_vm1, %v8785_v14, %v8472_v37  ;;  %v8962_v47 = vsel %vm12777_vm9, %v8785_v14, %v8503_v62  ;;  %v8969_v31 = vsel %vm12778_vm7, %v8785_v14, %v8474_v22  ;;  %v4817_v37 = vsel %vm4778_vm15, %v8834_v6, %v4763_v45  ;;  %v12781_v45 = vld [vmem:[#allocation43_spill] sm:$0xff] }
 0x94f   :  { %vm4108_vm1 = vcmp.eq.s32.totalorder %v8652_v53, %v8586_v63  ;;  %vm12779_vm7 = vcmp.eq.s32.totalorder %v8673_v24, %v8584_v3  ;;  %vm12780_vm15 = vcmp.eq.s32.totalorder %v8634_v59, %v8584_v3  ;;  %vm12782_vm6 = vcmp.eq.s32.totalorder %v8676_v60, %v8584_v3  ;;  %v12915_v59 = vld [vmem:[#allocation106_spill] sm:$0xff] }
 0x950   :  { %v8988_v22 = vsel %vm12779_vm7, %v8785_v14, %v8505_v5  ;;  %v8995_v62 = vsel %vm12780_vm15, %v8785_v14, %v8476_v32  ;;  %v9002_v1 = vsel %vm12782_vm6, %v8785_v14, %v12781_v45  ;;  %v4871_v5 = vsel %vm4832_vm13, %v8837_v16, %v4817_v37  ;;  %v12783_v32 = vld [vmem:[#allocation34_spill] sm:$0xff]  ;;  %v12785_v37 = vld [vmem:[#allocation44_spill] sm:$0xff]  ;;  %v12787_v16 = vld [vmem:[#allocation35_spill] sm:$0xff] }
 0x951   :  { %vm4770_vm7 = vcmp.eq.s32.totalorder %v8667_v54, %v8586_v63  ;;  %vm12784_vm6 = vcmp.eq.s32.totalorder %v8637_v9, %v8584_v3  ;;  %vm12786_vm13 = vcmp.eq.s32.totalorder %v8695_v50, %v8584_v3  ;;  %vm12788_vm12 = vcmp.eq.s32.totalorder %v8640_v2, %v8584_v3  ;;  %v12797_v2 = vld [vmem:[#allocation37_spill] sm:$0xff] }
 0x952   :  { %v9021_v45 = vsel %vm12784_vm6, %v8785_v14, %v12783_v32  ;;  %v9028_v18 = vsel %vm12786_vm13, %v8785_v14, %v12785_v37  ;;  %v9035_v13 = vsel %vm12788_vm12, %v8785_v14, %v12787_v16  ;;  %v9041_v32 = vsel %vm4886_vm4, %v8840_v48, %v4871_v5  ;;  %v12791_v16 = vld [vmem:[#allocation45_spill] sm:$0xff]  ;;  %v12793_v5 = vld [vmem:[#allocation36_spill] sm:$0xff] }
 0x953   :  { %12789 = vst [vmem:[#allocation43_spill] sm:$0xff] %v9041_v32  ;;  %vm12792_vm12 = vcmp.eq.s32.totalorder %v8698_v36, %v8584_v3  ;;  %vm12794_vm4 = vcmp.eq.s32.totalorder %v8643_v8, %v8584_v3  ;;  %vm12796_vm13 = vcmp.eq.s32.totalorder %v8707_v20, %v8584_v3  ;;  %vm12801_vm9 = vcmp.eq.s32.totalorder %v8721_v40, %v8584_v3  ;;  %v12802_v20 = vld [vmem:[#allocation38_spill] sm:$0xff]  ;;  %v12810_v40 = vld [vmem:[#allocation109_spill] sm:$0xff] }
 0x954   :  { %v9056_v37 = vsel %vm12792_vm12, %v8785_v14, %v12791_v16  ;;  %v9063_v32 = vsel %vm12794_vm4, %v8785_v14, %v12793_v5  ;;  %v9070_v48 = vsel %vm12796_vm13, %v8785_v14, %v12795_v33  ;;  %vm12798_vm12 = vcmp.eq.s32.totalorder %v8652_v53, %v8584_v3  ;;  %v12800_v5 = vld [vmem:[#allocation47_spill] sm:$0xff]  ;;  %v12804_v53 = vld [vmem:[#allocation48_spill] sm:$0xff] }
 0x955   :  { %v9077_v16 = vsel %vm12798_vm12, %v8785_v14, %v12797_v2  ;;  %v9088_v33 = vsel %vm12801_vm9, %v8785_v14, %v12800_v5  ;;  %vm12803_vm13 = vcmp.eq.s32.totalorder %v8655_v44, %v8584_v3  ;;  %vm12805_vm12 = vcmp.eq.s32.totalorder %v8724_v25, %v8584_v3  ;;  %v12812_v44 = vld [vmem:[#allocation49_spill] sm:$0xff]  ;;  %v12814_v25 = vld [vmem:[#allocation40_spill] sm:$0xff] }
 0x956   :  { %12799 = vst [vmem:[#allocation34_spill] sm:$0xff] %v9077_v16  ;;  %v9095_v2 = vsel %vm12803_vm13, %v8785_v14, %v12802_v20  ;;  %v9102_v12 = vsel %vm12805_vm12, %v8785_v14, %v12804_v53  ;;  %v12807_v16 = vld [vmem:[#allocation39_spill] sm:$0xff]  ;;  %vm12808_vm9 = vcmp.eq.s32.totalorder %v8667_v54, %v8584_v3  ;;  %v12811_v20 = vld [vmem:[#allocation8_spill] sm:$0xff]  ;;  %vm12813_vm12 = vcmp.eq.s32.totalorder %v8735_v4, %v8584_v3  ;;  %v12816_v54 = vld [vmem:[#allocation50_spill] sm:$0xff] }
 0x957   :  { %12806 = vst [vmem:[#allocation44_spill] sm:$0xff] %v9102_v12  ;;  %v9109_v5 = vsel %vm12808_vm9, %v8785_v14, %v12807_v16  ;;  %v9122_v53 = vsel %vm12813_vm12, %v8785_v14, %v12812_v44  ;;  %vm12815_vm9 = vcmp.eq.s32.totalorder %v8670_v56, %v8584_v3  ;;  %vm12817_vm13 = vcmp.eq.s32.totalorder %v8738_v23, %v8584_v3  ;;  %v12818_v12 = vld [vmem:[#allocation41_spill] sm:$0xff]  ;;  %v12822_v56 = vld [vmem:[#allocation62_spill] sm:$0xff] }
 0x958   :  { %12809 = vst [vmem:[#allocation35_spill] sm:$0xff] %v9109_v5  ;;  %v9129_v16 = vsel %vm12815_vm9, %v8785_v14, %v12814_v25  ;;  %v9136_v5 = vsel %vm12817_vm13, %v8785_v14, %v12816_v54  ;;  %vm12819_vm12 = vcmp.eq.s32.totalorder %v12790_v34, %v8584_v3  ;;  %v12824_v54 = vld [vmem:[#allocation51_spill] sm:$0xff]  ;;  %vm12825_vm6 = vcmp.eq.s32.totalorder %v8750_v52, %v8584_v3  ;;  %v12828_v25 = vld [vmem:[#allocation52_spill] sm:$0xff] }
 0x959   :  { %v9143_v44 = vsel %vm12819_vm12, %v8785_v14, %v12818_v12  ;;  %v9158_v34 = vsel %vm12825_vm6, %v8785_v14, %v12824_v54  ;;  %v12826_v12 = vld [vmem:[#allocation42_spill] sm:$0xff]  ;;  %vm12827_vm12 = vcmp.eq.s32.totalorder %v8692_v29, %v8584_v3  ;;  %vm12829_vm9 = vcmp.eq.s32.totalorder %v8753_v38, %v8584_v3  ;;  %v12834_v29 = vld [vmem:[#allocation56_spill] sm:$0xff] }
 0x95a   :  { %12820 = vst [vmem:[#allocation45_spill] sm:$0xff] %v9143_v44  ;;  %v9165_v44 = vsel %vm12827_vm12, %v8785_v14, %v12826_v12  ;;  %v9172_v23 = vsel %vm12829_vm9, %v8785_v14, %v12828_v25  ;;  %vm12831_vm6 = vcmp.eq.s32.totalorder %v8614_v42, %v8586_v63  ;;  %v12833_v12 = vld [vmem:[#allocation55_spill] sm:$0xff]  ;;  %v12835_v38 = vld [vmem:[#allocation64_spill] sm:$0xff]  ;;  %v12836_v25 = vld [vmem:[#allocation53_spill] sm:$0xff]  ;;  %vm12837_vm15 = vcmp.eq.s32.totalorder %v8756_v26, %v8584_v3 }
 0x95b   :  { %12830 = vst [vmem:[#allocation36_spill] sm:$0xff] %v9172_v23  ;;  %v9179_v54 = vsel %vm12831_vm6, %v8834_v6, %v8864_v39  ;;  %v9194_v23 = vsel %vm12837_vm15, %v8785_v14, %v12836_v25  ;;  %vm12838_vm6 = vcmp.eq.s32.totalorder %v8619_v35, %v8586_v63  ;;  %vm12840_vm4 = vcmp.eq.s32.totalorder %v8596_v51, %v8586_v63 }
 0x95c   :  { %12832 = vst [vmem:[#allocation46_spill] sm:$0xff] %v9179_v54  ;;  %v9201_v39 = vsel %vm12838_vm6, %v8834_v6, %v8871_v58  ;;  %v9208_v54 = vsel %vm12840_vm4, %v8834_v6, %v8886_v30  ;;  %vm12842_vm15 = vcmp.eq.s32.totalorder %v8622_v49, %v8586_v63  ;;  %vm4888_vm9 = vcmp.eq.s32.totalorder %v12810_v40, %v8593_v57  ;;  %v12844_v58 = vld [vmem:[#allocation57_spill] sm:$0xff] }
 0x95d   :  { %12839 = vst [vmem:[#allocation37_spill] sm:$0xff] %v9201_v39  ;;  %12841 = vst [vmem:[#allocation47_spill] sm:$0xff] %v9208_v54  ;;  %v9215_v25 = vsel %vm12842_vm15, %v8834_v6, %v8893_v0  ;;  %v12845_v39 = vld [vmem:[#allocation65_spill] sm:$0xff]  ;;  %v9232_v0 = vsel %vm3404_vm0, %v8834_v6, %v8900_v46  ;;  %vm12848_vm15 = vcmp.eq.s32.totalorder %v8625_v11, %v8586_v63 }
 0x95e   :  { %12843 = vst [vmem:[#allocation38_spill] sm:$0xff] %v9215_v25  ;;  %vm2533_vm4 = vcmp.eq.s32.totalorder %v12845_v39, %v8584_v3  ;;  %12847 = vst [vmem:[#allocation48_spill] sm:$0xff] %v9232_v0  ;;  %v9239_v25 = vsel %vm12848_vm15, %v8834_v6, %v8907_v17  ;;  %vm12850_vm6 = vcmp.eq.s32.totalorder %v8646_v10, %v8586_v63  ;;  %v12854_v0 = vld [vmem:[#allocation58_spill] sm:$0xff]  ;;  %v12855_v17 = vld [vmem:[#allocation59_spill] sm:$0xff] }
 0x95f   :  { %12849 = vst [vmem:[#allocation39_spill] sm:$0xff] %v9239_v25  ;;  %v9246_v54 = vsel %vm12850_vm6, %v8834_v6, %v8922_v15  ;;  %vm12852_vm0 = vcmp.eq.s32.totalorder %v8649_v55, %v8586_v63  ;;  %vm2536_vm13 = vcmp.eq.s32.totalorder %v12854_v0, %v8584_v3  ;;  %vm2538_vm15 = vcmp.eq.s32.totalorder %v12855_v17, %v8584_v3  ;;  %v12856_v25 = vld [vmem:[#allocation68_spill] sm:$0xff]  ;;  %v12857_v30 = vld [vmem:[#allocation69_spill] sm:$0xff] }
 0x960   :  { %12851 = vst [vmem:[#allocation8_spill] sm:$0xff] %v9246_v54  ;;  %v9253_v46 = vsel %vm12852_vm0, %v8834_v6, %v8929_v43  ;;  %vm2537_vm12 = vcmp.eq.s32.totalorder %v12856_v25, %v8584_v3  ;;  %vm2539_vm6 = vcmp.eq.s32.totalorder %v12857_v30, %v8584_v3  ;;  %v9268_v15 = vsel %vm4096_vm14, %v8834_v6, %v8955_v7  ;;  %v12865_v54 = vld [vmem:[#allocation75_spill] sm:$0xff] }
 0x961   :  { %12853 = vst [vmem:[#allocation49_spill] sm:$0xff] %v9253_v46  ;;  %12858 = vst [vmem:[#allocation40_spill] sm:$0xff] %v9268_v15  ;;  %v9275_v43 = vsel %vm4097_vm3, %v8834_v6, %v8962_v47  ;;  %v9282_v46 = vsel %vm4098_vm11, %v8834_v6, %v8969_v31  ;;  %v9289_v7 = vsel %vm4099_vm2, %v8834_v6, %v8988_v22  ;;  %v12862_v15 = vld [vmem:[#allocation60_spill] sm:$0xff]  ;;  %v12863_v47 = vld [vmem:[#allocation61_spill] sm:$0xff] }
 0x962   :  { %12859 = vst [vmem:[#allocation50_spill] sm:$0xff] %v9275_v43  ;;  %12860 = vst [vmem:[#allocation41_spill] sm:$0xff] %v9282_v46  ;;  %vm2540_vm14 = vcmp.eq.s32.totalorder %v12862_v15, %v8584_v3  ;;  %v12864_v43 = vld [vmem:[#allocation74_spill] sm:$0xff]  ;;  %v9304_v31 = vsel %vm4100_vm5, %v8834_v6, %v8995_v62  ;;  %v9311_v22 = vsel %vm4101_vm8, %v8834_v6, %v9002_v1  ;;  %v12902_v46 = vld [vmem:[#allocation103_spill] sm:$0xff] }
 0x963   :  { %12861 = vst [vmem:[#allocation62_spill] sm:$0xff] %v9289_v7  ;;  %vm3261_vm0 = vcmp.eq.s32.totalorder %v12864_v43, %v8584_v3  ;;  %12866 = vst [vmem:[#allocation51_spill] sm:$0xff] %v9304_v31  ;;  %vm12868_vm2 = vcmp.eq.s32.totalorder %v8637_v9, %v8586_v63  ;;  %vm12870_vm5 = vcmp.eq.s32.totalorder %v8695_v50, %v8586_v63  ;;  %v12872_v1 = vld [vmem:[#allocation86_spill] sm:$0xff]  ;;  %v12891_v31 = vld [vmem:[#allocation100_spill] sm:$0xff] }
 0x964   :  { %12867 = vst [vmem:[#allocation42_spill] sm:$0xff] %v9311_v22  ;;  %v9318_v7 = vsel %vm12868_vm2, %v8834_v6, %v9021_v45  ;;  %v9325_v62 = vsel %vm12870_vm5, %v8834_v6, %v9028_v18  ;;  %vm2659_vm8 = vcmp.eq.s32.totalorder %v12706_v41, %v8586_v63  ;;  %v9340_v45 = vsel %vm4104_vm10, %v8834_v6, %v9035_v13  ;;  %v12890_v22 = vld [vmem:[#allocation44_spill] sm:$0xff]  ;;  %v12982_v30 = vld [vmem:[#allocation31_spill] sm:$0xff] }
 0x965   :  { %12869 = vst [vmem:[#allocation52_spill] sm:$0xff] %v9318_v7  ;;  %12871 = vst [vmem:[#allocation55_spill] sm:$0xff] %v9325_v62  ;;  %vm12874_vm5 = vcmp.eq.s32.totalorder %v8698_v36, %v8586_v63  ;;  %vm12876_vm11 = vcmp.eq.s32.totalorder %v8643_v8, %v8586_v63  ;;  %v12878_v7 = vld [vmem:[#allocation97_spill] sm:$0xff]  ;;  %vm3467_vm3 = vcmp.eq.s32.totalorder %v8619_v35, %v8588_v27  ;;  %v12998_v43 = vld [vmem:[#allocation48_spill] sm:$0xff] }
 0x966   :  { %12873 = vst [vmem:[#allocation56_spill] sm:$0xff] %v9340_v45  ;;  %v9347_v18 = vsel %vm12874_vm5, %v8834_v6, %v9056_v37  ;;  %v9354_v62 = vsel %vm12876_vm11, %v8834_v6, %v9063_v32  ;;  %vm12879_vm10 = vcmp.eq.s32.totalorder %v12878_v7, %v8586_v63  ;;  %v12881_v32 = vld [vmem:[#allocation34_spill] sm:$0xff]  ;;  %vm12954_vm2 = vcmp.eq.s32.totalorder %v12834_v29, %v8584_v3 }
 0x967   :  { %12875 = vst [vmem:[#allocation64_spill] sm:$0xff] %v9347_v18  ;;  %12877 = vst [vmem:[#allocation53_spill] sm:$0xff] %v9354_v62  ;;  %v9361_v13 = vsel %vm12879_vm10, %v8834_v6, %v9070_v48  ;;  %v9376_v62 = vsel %vm4108_vm1, %v8834_v6, %v12881_v32  ;;  %v12884_v48 = vld [vmem:[#allocation99_spill] sm:$0xff]  ;;  %v12887_v18 = vld [vmem:[#allocation90_spill] sm:$0xff]  ;;  %vm12892_vm1 = vcmp.eq.s32.totalorder %v12891_v31, %v8586_v63 }
 0x968   :  { %12880 = vst [vmem:[#allocation57_spill] sm:$0xff] %v9361_v13  ;;  %12883 = vst [vmem:[#allocation65_spill] sm:$0xff] %v9376_v62  ;;  %vm12885_vm10 = vcmp.eq.s32.totalorder %v12884_v48, %v8586_v63  ;;  %vm12888_vm5 = vcmp.eq.s32.totalorder %v12887_v18, %v8586_v63  ;;  %v9397_v32 = vsel %vm12892_vm1, %v8834_v6, %v12890_v22  ;;  %v4738_v62 = vpop.permute.xlu1 %4737  ;;  %v12945_v31 = vld [vmem:[#allocation113_spill] sm:$0xff]  ;;  %v13011_v17 = vld [vmem:[#allocation40_spill] sm:$0xff] }
 0x969   :  { %v9383_v13 = vsel %vm12885_vm10, %v8834_v6, %v9088_v33  ;;  %v9390_v45 = vsel %vm12888_vm5, %v8834_v6, %v9095_v2  ;;  %12893 = vst [vmem:[#allocation44_spill] sm:$0xff] %v9397_v32  ;;  %v12894_v33 = vld [vmem:[#allocation35_spill] sm:$0xff]  ;;  %vm12897_vm1 = vcmp.eq.s32.totalorder %v8735_v4, %v8586_v63  ;;  %vm12934_vm5 = vcmp.eq.s32.totalorder %v12810_v40, %v8586_v63  ;;  %v13008_v25 = vld [vmem:[#allocation49_spill] sm:$0xff] }
 0x96a   :  { %12886 = vst [vmem:[#allocation58_spill] sm:$0xff] %v9383_v13  ;;  %12889 = vst [vmem:[#allocation34_spill] sm:$0xff] %v9390_v45  ;;  %v9412_v22 = vsel %vm4770_vm7, %v8834_v6, %v12894_v33  ;;  %v9419_v32 = vsel %vm12897_vm1, %v8834_v6, %v9122_v53  ;;  %v12899_v45 = vld [vmem:[#allocation93_spill] sm:$0xff]  ;;  %vm12903_vm7 = vcmp.eq.s32.totalorder %v12902_v46, %v8586_v63  ;;  %v12942_v2 = vld [vmem:[#allocation63_spill] sm:$0xff] }
 0x96b   :  { %12896 = vst [vmem:[#allocation35_spill] sm:$0xff] %v9412_v22  ;;  %12898 = vst [vmem:[#allocation119_spill] sm:$0xff] %v9419_v32  ;;  %vm12900_vm10 = vcmp.eq.s32.totalorder %v12899_v45, %v8586_v63  ;;  %v9433_v33 = vsel %vm12903_vm7, %v8834_v6, %v9136_v5  ;;  %v12905_v53 = vld [vmem:[#allocation45_spill] sm:$0xff]  ;;  %vm12909_vm7 = vcmp.eq.s32.totalorder %v8750_v52, %v8586_v63  ;;  %v12914_v22 = vld [vmem:[#allocation36_spill] sm:$0xff] }
 0x96c   :  { %v9426_v13 = vsel %vm12900_vm10, %v8834_v6, %v9129_v16  ;;  %12904 = vst [vmem:[#allocation121_spill] sm:$0xff] %v9433_v33  ;;  %v12906_v16 = vld [vmem:[#allocation94_spill] sm:$0xff]  ;;  %v9455_v5 = vsel %vm12909_vm7, %v8834_v6, %v9158_v34  ;;  %v12911_v33 = vld [vmem:[#allocation95_spill] sm:$0xff]  ;;  %v12918_v34 = vsub.s32 6, %v12706_v41  ;;  %vm12943_vm10 = vcmp.eq.s32.totalorder %v12942_v2, %v8584_v3 }
 0x96d   :  { %12901 = vst [vmem:[#allocation120_spill] sm:$0xff] %v9426_v13  ;;  %vm12907_vm11 = vcmp.eq.s32.totalorder %v12906_v16, %v8586_v63  ;;  %12910 = vst [vmem:[#allocation122_spill] sm:$0xff] %v9455_v5  ;;  %vm12912_vm1 = vcmp.eq.s32.totalorder %v12911_v33, %v8586_v63  ;;  %v12924_v5 = vld [vmem:[#allocation98_spill] sm:$0xff] }
 0x96e   :  { %v9448_v13 = vsel %vm12907_vm11, %v8834_v6, %v12905_v53  ;;  %v9462_v32 = vsel %vm12912_vm1, %v8834_v6, %v9165_v44  ;;  %vm12916_vm11 = vcmp.eq.s32.totalorder %v12915_v59, %v8586_v63  ;;  %v12919_v44 = vld [vmem:[#allocation101_spill] sm:$0xff]  ;;  %vm12925_vm7 = vcmp.eq.s32.totalorder %v12924_v5, %v8586_v63  ;;  %v12956_v16 = vld [vmem:[#allocation114_spill] sm:$0xff] }
 0x96f   :  { %12908 = vst [vmem:[#allocation45_spill] sm:$0xff] %v9448_v13  ;;  %12913 = vst [vmem:[#allocation123_spill] sm:$0xff] %v9462_v32  ;;  %v9469_v53 = vsel %vm12916_vm11, %v8834_v6, %v12914_v22  ;;  %v9482_v32 = vrot.slane %v12919_v44, %v12918_v34  ;;  %vm12921_vm11 = vcmp.eq.s32.totalorder %v8756_v26, %v8586_v63 }
 0x970   :  { %12917 = vst [vmem:[#allocation36_spill] sm:$0xff] %v9469_v53  ;;  %v9489_v22 = vsel %vm12921_vm11, %v8834_v6, %v9194_v23  ;;  %v12923_v53 = vld [vmem:[#allocation118_spill] sm:$0xff]  ;;  %vm12927_vm1 = vcmp.eq.s32.totalorder %v12810_v40, %v8584_v3  ;;  %v12928_v23 = vsub.s32 7, %v12706_v41  ;;  %vm12946_vm11 = vcmp.eq.s32.totalorder %v12810_v40, %v8588_v27 }
 0x971   :  { %12920 = vst [vmem:[#allocation101_spill] sm:$0xff] %v9482_v32  ;;  %12922 = vst [vmem:[#allocation124_spill] sm:$0xff] %v9489_v22  ;;  %v9496_v13 = vsel %vm12925_vm7, %v8834_v6, %v12923_v53  ;;  %v4765_v34 = vsel %vm12927_vm1, %v8785_v14, %v4738_v62  ;;  %v12930_v32 = vld [vmem:[#allocation16_spill] sm:$0xff]  ;;  %vm12931_vm7 = vcmp.eq.s32.totalorder %v12706_v41, %v8584_v3  ;;  %v12963_v40 = vld [vmem:[#allocation26_spill] sm:$0xff] }
 0x972   :  { %12926 = vst [vmem:[#allocation118_spill] sm:$0xff] %v9496_v13  ;;  %v9513_v53 = vrot.slane %v12919_v44, %v12928_v23  ;;  %v2641_v62 = vsel %vm12931_vm7, %v8785_v14, %v12930_v32  ;;  %v12932_v13 = vld [vmem:[#allocation12_spill] sm:$0xff]  ;;  %vm12933_vm1 = vcmp.eq.s32.totalorder %v12811_v20, %v8584_v3  ;;  %v4819_v37 = vsel %vm12934_vm5, %v8834_v6, %v4765_v34  ;;  %v12935_v32 = vld [vmem:[#allocation18_spill] sm:$0xff]  ;;  %v12937_v44 = vld [vmem:[#allocation13_spill] sm:$0xff] }
 0x973   :  { %v2642_v22 = vsel %vm12933_vm1, %v8785_v14, %v12932_v13  ;;  %vm12936_vm1 = vcmp.eq.s32.totalorder %v12822_v56, %v8584_v3  ;;  %v12938_v34 = vld [vmem:[#allocation54_spill] sm:$0xff]  ;;  %v4873_v48 = vsel %vm12946_vm11, %v12945_v31, %v4819_v37  ;;  %vm12951_vm11 = vcmp.eq.s32.totalorder %v12835_v38, %v8584_v3 }
 0x974   :  { %12929 = vst [vmem:[#allocation125_spill] sm:$0xff] %v9513_v53  ;;  %v2643_v13 = vsel %vm12936_vm1, %v8785_v14, %v12935_v32  ;;  %vm12939_vm5 = vcmp.eq.s32.totalorder %v12938_v34, %v8584_v3  ;;  %v12941_v53 = vld [vmem:[#allocation20_spill] sm:$0xff]  ;;  %v12947_v32 = vld [vmem:[#allocation11_spill] sm:$0xff]  ;;  %v12950_v37 = vld [vmem:[#allocation22_spill] sm:$0xff]  ;;  %vm12967_vm1 = vcmp.eq.s32.totalorder %v12811_v20, %v8586_v63  ;;  %vm2662_vm7 = vcmp.eq.s32.totalorder %v12938_v34, %v8586_v63 }
 0x975   :  { %v9547_v23 = vsel %vm12939_vm5, %v8785_v14, %v12937_v44  ;;  %v9554_v18 = vsel %vm12943_vm10, %v8785_v14, %v12941_v53  ;;  %vm4825_vm5 = vcmp.eq.s32.totalorder %v8735_v4, %v8588_v27  ;;  %vm12948_vm10 = vcmp.eq.s32.totalorder %v12833_v12, %v8584_v3 }
 0x976   :  { %12940 = vst [vmem:[#allocation16_spill] sm:$0xff] %v9547_v23  ;;  %12944 = vst [vmem:[#allocation12_spill] sm:$0xff] %v9554_v18  ;;  %v9573_v53 = vsel %vm12948_vm10, %v8785_v14, %v12947_v32  ;;  %v9580_v44 = vsel %vm12951_vm11, %v8785_v14, %v12950_v37  ;;  %v12953_v18 = vld [vmem:[#allocation9_spill] sm:$0xff]  ;;  %v9593_v32 = vsel %vm4888_vm9, %v12956_v16, %v4873_v48  ;;  %v12960_v48 = vld [vmem:[#allocation10_spill] sm:$0xff] }
 0x977   :  { %12949 = vst [vmem:[#allocation18_spill] sm:$0xff] %v9573_v53  ;;  %12952 = vst [vmem:[#allocation13_spill] sm:$0xff] %v9580_v44  ;;  %v9587_v23 = vsel %vm12954_vm2, %v8785_v14, %v12953_v18  ;;  %vm4829_vm11 = vcmp.eq.s32.totalorder %v8750_v52, %v8588_v27  ;;  %v12958_v18 = vld [vmem:[#allocation24_spill] sm:$0xff]  ;;  %vm12961_vm9 = vcmp.eq.s32.totalorder %v12844_v58, %v8584_v3  ;;  %v12973_v53 = vld [vmem:[#allocation29_spill] sm:$0xff] }
 0x978   :  { %12955 = vst [vmem:[#allocation54_spill] sm:$0xff] %v9587_v23  ;;  %12957 = vst [vmem:[#allocation20_spill] sm:$0xff] %v9593_v32  ;;  %v9608_v37 = vsel %vm2533_vm4, %v8785_v14, %v12958_v18  ;;  %v9615_v32 = vsel %vm12961_vm9, %v8785_v14, %v12960_v48  ;;  %v12964_v23 = vld [vmem:[#allocation67_spill] sm:$0xff]  ;;  %v2712_v18 = vsel %vm12967_vm1, %v8834_v6, %v2642_v22  ;;  %v12968_v48 = vld [vmem:[#allocation14_spill] sm:$0xff] }
 0x979   :  { %12959 = vst [vmem:[#allocation63_spill] sm:$0xff] %v9608_v37  ;;  %12962 = vst [vmem:[#allocation113_spill] sm:$0xff] %v9615_v32  ;;  %vm12965_vm2 = vcmp.eq.s32.totalorder %v12964_v23, %v8584_v3  ;;  %vm2800_vm4 = vcmp.eq.s32.totalorder %v12811_v20, %v8593_v57  ;;  %vm2663_vm9 = vcmp.eq.s32.totalorder %v12942_v2, %v8586_v63  ;;  %v12969_v22 = vld [vmem:[#allocation28_spill] sm:$0xff]  ;;  %v12971_v32 = vld [vmem:[#allocation15_spill] sm:$0xff] }
 0x97a   :  { %v9622_v44 = vsel %vm12965_vm2, %v8785_v14, %v12963_v40  ;;  %vm4835_vm10 = vcmp.eq.s32.totalorder %v12924_v5, %v8588_v27  ;;  %v9641_v40 = vsel %vm2536_vm13, %v8785_v14, %v12968_v48  ;;  %v9655_v37 = vsel %vm2538_vm15, %v8785_v14, %v12971_v32 }
 0x97b   :  { %12966 = vst [vmem:[#allocation11_spill] sm:$0xff] %v9622_v44  ;;  %v9648_v44 = vsel %vm2537_vm12, %v8785_v14, %v12969_v22  ;;  %12972 = vst [vmem:[#allocation9_spill] sm:$0xff] %v9655_v37  ;;  %v9662_v48 = vsel %vm2539_vm6, %v8785_v14, %v12973_v53  ;;  %vm2664_vm13 = vcmp.eq.s32.totalorder %v12833_v12, %v8586_v63  ;;  %v12975_v22 = vld [vmem:[#allocation17_spill] sm:$0xff] }
 0x97c   :  { %12970 = vst [vmem:[#allocation22_spill] sm:$0xff] %v9648_v44  ;;  %12974 = vst [vmem:[#allocation114_spill] sm:$0xff] %v9662_v48  ;;  %vm2666_vm12 = vcmp.eq.s32.totalorder %v12834_v29, %v8586_v63  ;;  %vm2665_vm1 = vcmp.eq.s32.totalorder %v12835_v38, %v8586_v63  ;;  %v9675_v32 = vsel %vm2540_vm14, %v8785_v14, %v12975_v22  ;;  %v12977_v44 = vld [vmem:[#allocation30_spill] sm:$0xff]  ;;  %v12979_v48 = vld [vmem:[#allocation19_spill] sm:$0xff] }
 0x97d   :  { %12976 = vst [vmem:[#allocation24_spill] sm:$0xff] %v9675_v32  ;;  %v9682_v53 = vsel %vm3261_vm0, %v8785_v14, %v12977_v44  ;;  %vm12980_vm15 = vcmp.eq.s32.totalorder %v12863_v47, %v8584_v3  ;;  %vm12983_vm6 = vcmp.eq.s32.totalorder %v12865_v54, %v8584_v3  ;;  %v12985_v32 = vld [vmem:[#allocation110_spill] sm:$0xff]  ;;  %v9710_v44 = vsel %vm2659_vm8, %v8834_v6, %v2641_v62  ;;  %v12990_v62 = vld [vmem:[#allocation111_spill] sm:$0xff]  ;;  %v13001_v47 = vld [vmem:[#allocation112_spill] sm:$0xff] }
 0x97e   :  { %12978 = vst [vmem:[#allocation10_spill] sm:$0xff] %v9682_v53  ;;  %v9689_v37 = vsel %vm12980_vm15, %v8785_v14, %v12979_v48  ;;  %v9696_v22 = vsel %vm12983_vm6, %v8785_v14, %v12982_v30  ;;  %vm2870_vm14 = vcmp.eq.s32.totalorder %v12811_v20, %v12985_v32  ;;  %vm12986_vm6 = vcmp.eq.s32.totalorder %v12822_v56, %v8586_v63  ;;  %v12995_v54 = vld [vmem:[#allocation38_spill] sm:$0xff] }
 0x97f   :  { %12981 = vst [vmem:[#allocation26_spill] sm:$0xff] %v9689_v37  ;;  %12984 = vst [vmem:[#allocation67_spill] sm:$0xff] %v9696_v22  ;;  %v9716_v30 = vsel %vm12986_vm6, %v8834_v6, %v2643_v13  ;;  %vm12987_vm0 = vcmp.eq.s32.totalorder %v12811_v20, %v8588_v27  ;;  %v12988_v22 = vld [vmem:[#allocation46_spill] sm:$0xff]  ;;  %vm12989_vm2 = vcmp.eq.s32.totalorder %v8614_v42, %v8588_v27  ;;  %v12991_v13 = vld [vmem:[#allocation37_spill] sm:$0xff] }
 0x980   :  { %v9722_v48 = vsel %vm12987_vm0, %v12945_v31, %v2712_v18  ;;  %v9729_v53 = vsel %vm12989_vm2, %v12945_v31, %v12988_v22  ;;  %v9744_v18 = vsel %vm3467_vm3, %v12945_v31, %v12991_v13  ;;  %v12992_v22 = vld [vmem:[#allocation47_spill] sm:$0xff]  ;;  %vm12993_vm2 = vcmp.eq.s32.totalorder %v8596_v51, %v8588_v27 }
 0x981   :  { %v9751_v37 = vsel %vm12993_vm2, %v12945_v31, %v12992_v22  ;;  %vm12996_vm6 = vcmp.eq.s32.totalorder %v8622_v49, %v8588_v27  ;;  %vm12999_vm3 = vcmp.eq.s32.totalorder %v8599_v61, %v8588_v27  ;;  %vm13003_vm8 = vcmp.eq.s32.totalorder %v8625_v11, %v8588_v27  ;;  %v13062_v61 = vld [vmem:[#allocation100_spill] sm:$0xff]  ;;  %v13065_v49 = vld [vmem:[#allocation35_spill] sm:$0xff] }
 0x982   :  { %12994 = vst [vmem:[#allocation14_spill] sm:$0xff] %v9751_v37  ;;  %v9758_v14 = vsel %vm12996_vm6, %v12945_v31, %v12995_v54  ;;  %v9765_v13 = vsel %vm12999_vm3, %v12945_v31, %v12998_v43  ;;  %v13002_v54 = vld [vmem:[#allocation39_spill] sm:$0xff]  ;;  %v13005_v43 = vld [vmem:[#allocation8_spill] sm:$0xff]  ;;  %vm13006_vm3 = vcmp.eq.s32.totalorder %v8646_v10, %v8588_v27  ;;  %vm13009_vm15 = vcmp.eq.s32.totalorder %v8649_v55, %v8588_v27  ;;  %v13050_v37 = vld [vmem:[#allocation89_spill] sm:$0xff] }
 0x983   :  { %12997 = vst [vmem:[#allocation28_spill] sm:$0xff] %v9758_v14  ;;  %13000 = vst [vmem:[#allocation15_spill] sm:$0xff] %v9765_v13  ;;  %v9780_v22 = vsel %vm13003_vm8, %v12945_v31, %v13002_v54  ;;  %v9787_v15 = vsel %vm13006_vm3, %v12945_v31, %v13005_v43  ;;  %v9794_v3 = vsel %vm13009_vm15, %v12945_v31, %v13008_v25  ;;  %v13015_v25 = vld [vmem:[#allocation50_spill] sm:$0xff]  ;;  %v13018_v43 = vld [vmem:[#allocation41_spill] sm:$0xff] }
 0x984   :  { %13004 = vst [vmem:[#allocation29_spill] sm:$0xff] %v9780_v22  ;;  %13007 = vst [vmem:[#allocation17_spill] sm:$0xff] %v9787_v15  ;;  %vm13012_vm8 = vcmp.eq.s32.totalorder %v8628_v21, %v8588_v27  ;;  %v13014_v22 = vld [vmem:[#allocation115_spill] sm:$0xff]  ;;  %vm13019_vm3 = vcmp.eq.s32.totalorder %v8631_v19, %v8588_v27  ;;  %vm13022_vm15 = vcmp.eq.s32.totalorder %v8673_v24, %v8588_v27  ;;  %v13025_v14 = vld [vmem:[#allocation84_spill] sm:$0xff] }
 0x985   :  { %13010 = vst [vmem:[#allocation30_spill] sm:$0xff] %v9794_v3  ;;  %v9801_v54 = vsel %vm13012_vm8, %v12945_v31, %v13011_v17  ;;  %vm13016_vm8 = vcmp.eq.s32.totalorder %v8658_v28, %v8588_v27  ;;  %v13021_v3 = vld [vmem:[#allocation62_spill] sm:$0xff]  ;;  %v13024_v13 = vld [vmem:[#allocation51_spill] sm:$0xff]  ;;  %vm13029_vm2 = vcmp.eq.s32.totalorder %v8676_v60, %v8588_v27  ;;  %vm13035_vm0 = vcmp.eq.s32.totalorder %v8695_v50, %v8588_v27 }
 0x986   :  { %13013 = vst [vmem:[#allocation19_spill] sm:$0xff] %v9801_v54  ;;  %v9818_v17 = vsel %vm13016_vm8, %v12945_v31, %v13015_v25  ;;  %v9825_v54 = vsel %vm13019_vm3, %v12945_v31, %v13018_v43  ;;  %v9832_v15 = vsel %vm13022_vm15, %v12945_v31, %v13021_v3  ;;  %vm13026_vm8 = vcmp.eq.s32.totalorder %v13025_v14, %v8588_v27  ;;  %v13028_v3 = vld [vmem:[#allocation42_spill] sm:$0xff] }
 0x987   :  { %13017 = vst [vmem:[#allocation31_spill] sm:$0xff] %v9818_v17  ;;  %13020 = vst [vmem:[#allocation110_spill] sm:$0xff] %v9825_v54  ;;  %v9839_v25 = vsel %vm13026_vm8, %v12945_v31, %v13024_v13  ;;  %v9854_v43 = vsel %vm13029_vm2, %v12945_v31, %v13028_v3  ;;  %v13031_v13 = vld [vmem:[#allocation52_spill] sm:$0xff]  ;;  %vm13032_vm8 = vcmp.eq.s32.totalorder %v8637_v9, %v8588_v27  ;;  %v13078_v28 = vld [vmem:[#allocation94_spill] sm:$0xff] }
 0x988   :  { %13023 = vst [vmem:[#allocation46_spill] sm:$0xff] %v9832_v15  ;;  %13027 = vst [vmem:[#allocation111_spill] sm:$0xff] %v9839_v25  ;;  %v9861_v25 = vsel %vm13032_vm8, %v12945_v31, %v13031_v13  ;;  %v13034_v15 = vld [vmem:[#allocation55_spill] sm:$0xff]  ;;  %v13037_v17 = vld [vmem:[#allocation56_spill] sm:$0xff]  ;;  %vm13038_vm2 = vcmp.eq.s32.totalorder %v12872_v1, %v8588_v27  ;;  %vm13041_vm3 = vcmp.eq.s32.totalorder %v8698_v36, %v8588_v27 }
 0x989   :  { %13030 = vst [vmem:[#allocation37_spill] sm:$0xff] %v9854_v43  ;;  %13033 = vst [vmem:[#allocation47_spill] sm:$0xff] %v9861_v25  ;;  %v9868_v54 = vsel %vm13035_vm0, %v12945_v31, %v13034_v15  ;;  %v9875_v3 = vsel %vm13038_vm2, %v12945_v31, %v13037_v17  ;;  %v13040_v15 = vld [vmem:[#allocation64_spill] sm:$0xff]  ;;  %v13043_v17 = vld [vmem:[#allocation53_spill] sm:$0xff]  ;;  %vm13044_vm2 = vcmp.eq.s32.totalorder %v8643_v8, %v8588_v27 }
 0x98a   :  { %13036 = vst [vmem:[#allocation38_spill] sm:$0xff] %v9868_v54  ;;  %13039 = vst [vmem:[#allocation48_spill] sm:$0xff] %v9875_v3  ;;  %v9890_v13 = vsel %vm13041_vm3, %v12945_v31, %v13040_v15  ;;  %v9897_v3 = vsel %vm13044_vm2, %v12945_v31, %v13043_v17  ;;  %v13046_v54 = vld [vmem:[#allocation57_spill] sm:$0xff]  ;;  %vm13047_vm6 = vcmp.eq.s32.totalorder %v12878_v7, %v8588_v27  ;;  %v13054_v17 = vld [vmem:[#allocation99_spill] sm:$0xff] }
 0x98b   :  { %13042 = vst [vmem:[#allocation112_spill] sm:$0xff] %v9890_v13  ;;  %13045 = vst [vmem:[#allocation39_spill] sm:$0xff] %v9897_v3  ;;  %v9904_v25 = vsel %vm13047_vm6, %v12945_v31, %v13046_v54  ;;  %v13049_v43 = vld [vmem:[#allocation65_spill] sm:$0xff]  ;;  %vm13051_vm3 = vcmp.eq.s32.totalorder %v13050_v37, %v8588_v27  ;;  %vm3534_vm0 = vcmp.eq.s32.totalorder %v8596_v51, %v8593_v57  ;;  %v13053_v54 = vld [vmem:[#allocation58_spill] sm:$0xff] }
 0x98c   :  { %13048 = vst [vmem:[#allocation8_spill] sm:$0xff] %v9904_v25  ;;  %v9911_v15 = vsel %vm13051_vm3, %v12945_v31, %v13049_v43  ;;  %vm13055_vm15 = vcmp.eq.s32.totalorder %v13054_v17, %v8588_v27  ;;  %v13057_v43 = vld [vmem:[#allocation34_spill] sm:$0xff]  ;;  %v13061_v13 = vld [vmem:[#allocation44_spill] sm:$0xff]  ;;  %vm13063_vm2 = vcmp.eq.s32.totalorder %v13062_v61, %v8588_v27  ;;  %vm13075_vm6 = vcmp.eq.s32.totalorder %v12902_v46, %v8588_v27 }
 0x98d   :  { %13052 = vst [vmem:[#allocation49_spill] sm:$0xff] %v9911_v15  ;;  %v9926_v25 = vsel %vm13055_vm15, %v12945_v31, %v13053_v54  ;;  %v13058_v15 = vld [vmem:[#allocation90_spill] sm:$0xff]  ;;  %v9940_v11 = vsel %vm13063_vm2, %v12945_v31, %v13061_v13  ;;  %v13066_v51 = vld [vmem:[#allocation92_spill] sm:$0xff]  ;;  %v13069_v13 = vld [vmem:[#allocation119_spill] sm:$0xff]  ;;  %vm4230_vm2 = vcmp.eq.s32.totalorder %v8631_v19, %v8593_v57  ;;  %vm4235_vm8 = vcmp.eq.s32.totalorder %v8695_v50, %v8593_v57 }
 0x98e   :  { %13056 = vst [vmem:[#allocation40_spill] sm:$0xff] %v9926_v25  ;;  %vm13059_vm3 = vcmp.eq.s32.totalorder %v13058_v15, %v8588_v27  ;;  %13064 = vst [vmem:[#allocation50_spill] sm:$0xff] %v9940_v11  ;;  %vm13067_vm15 = vcmp.eq.s32.totalorder %v13066_v51, %v8588_v27  ;;  %v13074_v11 = vld [vmem:[#allocation121_spill] sm:$0xff] }
 0x98f   :  { %v9933_v3 = vsel %vm13059_vm3, %v12945_v31, %v13057_v43  ;;  %v9947_v54 = vsel %vm13067_vm15, %v12945_v31, %v13065_v49  ;;  %vm3538_vm3 = vcmp.eq.s32.totalorder %v8646_v10, %v8593_v57  ;;  %v9962_v43 = vsel %vm4825_vm5, %v12945_v31, %v13069_v13  ;;  %v13071_v49 = vld [vmem:[#allocation120_spill] sm:$0xff]  ;;  %v13077_v25 = vld [vmem:[#allocation45_spill] sm:$0xff]  ;;  %v13166_v10 = vld [vmem:[#allocation111_spill] sm:$0xff] }
 0x990   :  { %13060 = vst [vmem:[#allocation115_spill] sm:$0xff] %v9933_v3  ;;  %13068 = vst [vmem:[#allocation41_spill] sm:$0xff] %v9947_v54  ;;  %vm13072_vm15 = vcmp.eq.s32.totalorder %v12899_v45, %v8588_v27  ;;  %v9976_v3 = vsel %vm13075_vm6, %v12945_v31, %v13074_v11  ;;  %vm13079_vm5 = vcmp.eq.s32.totalorder %v13078_v28, %v8588_v27  ;;  %v13081_v11 = vld [vmem:[#allocation122_spill] sm:$0xff]  ;;  %v13105_v51 = vld [vmem:[#allocation117_spill] sm:$0xff] }
 0x991   :  { %13070 = vst [vmem:[#allocation62_spill] sm:$0xff] %v9962_v43  ;;  %v9969_v54 = vsel %vm13072_vm15, %v12945_v31, %v13071_v49  ;;  %13076 = vst [vmem:[#allocation42_spill] sm:$0xff] %v9976_v3  ;;  %v9983_v13 = vsel %vm13079_vm5, %v12945_v31, %v13077_v25  ;;  %v9998_v49 = vsel %vm4829_vm11, %v12945_v31, %v13081_v11  ;;  %v13083_v25 = vld [vmem:[#allocation123_spill] sm:$0xff]  ;;  %v13086_v3 = vld [vmem:[#allocation36_spill] sm:$0xff] }
 0x992   :  { %13073 = vst [vmem:[#allocation51_spill] sm:$0xff] %v9969_v54  ;;  %13080 = vst [vmem:[#allocation52_spill] sm:$0xff] %v9983_v13  ;;  %vm13084_vm5 = vcmp.eq.s32.totalorder %v12911_v33, %v8588_v27  ;;  %vm13087_vm15 = vcmp.eq.s32.totalorder %v12915_v59, %v8588_v27  ;;  %v13089_v43 = vld [vmem:[#allocation124_spill] sm:$0xff]  ;;  %vm13090_vm11 = vcmp.eq.s32.totalorder %v8756_v26, %v8588_v27 }
 0x993   :  { %13082 = vst [vmem:[#allocation55_spill] sm:$0xff] %v9998_v49  ;;  %v10005_v13 = vsel %vm13084_vm5, %v12945_v31, %v13083_v25  ;;  %v10012_v54 = vsel %vm13087_vm15, %v12945_v31, %v13086_v3  ;;  %v10019_v11 = vsel %vm13090_vm11, %v12945_v31, %v13089_v43  ;;  %vm4234_vm6 = vcmp.eq.s32.totalorder %v8637_v9, %v8593_v57  ;;  %v13092_v3 = vld [vmem:[#allocation16_spill] sm:$0xff] }
 0x994   :  { %13085 = vst [vmem:[#allocation56_spill] sm:$0xff] %v10005_v13  ;;  %13088 = vst [vmem:[#allocation64_spill] sm:$0xff] %v10012_v54  ;;  %vm4236_vm5 = vcmp.eq.s32.totalorder %v12872_v1, %v8593_v57  ;;  %v2714_v25 = vsel %vm2662_vm7, %v8834_v6, %v13092_v3  ;;  %v13093_v43 = vld [vmem:[#allocation12_spill] sm:$0xff]  ;;  %v13094_v54 = vld [vmem:[#allocation118_spill] sm:$0xff]  ;;  %v2852_v49 = vsel %vm2800_vm4, %v12956_v16, %v9722_v48 }
 0x995   :  { %13091 = vst [vmem:[#allocation53_spill] sm:$0xff] %v10019_v11  ;;  %v2715_v11 = vsel %vm2663_vm9, %v8834_v6, %v13093_v43  ;;  %v10044_v13 = vsel %vm4835_vm10, %v12945_v31, %v13094_v54  ;;  %vm4238_vm7 = vcmp.eq.s32.totalorder %v8643_v8, %v8593_v57  ;;  %vm4240_vm11 = vcmp.eq.s32.totalorder %v13050_v37, %v8593_v57  ;;  %v13096_v54 = vld [vmem:[#allocation18_spill] sm:$0xff]  ;;  %v13097_v43 = vld [vmem:[#allocation13_spill] sm:$0xff]  ;;  %v13179_v19 = vld [vmem:[#allocation112_spill] sm:$0xff] }
 0x996   :  { %13095 = vst [vmem:[#allocation57_spill] sm:$0xff] %v10044_v13  ;;  %vm4239_vm9 = vcmp.eq.s32.totalorder %v12878_v7, %v8593_v57  ;;  %v2716_v3 = vsel %vm2664_vm13, %v8834_v6, %v13096_v54  ;;  %v2717_v48 = vsel %vm2665_vm1, %v8834_v6, %v13097_v43  ;;  %v13098_v13 = vld [vmem:[#allocation54_spill] sm:$0xff]  ;;  %v13099_v7 = vld [vmem:[#allocation116_spill] sm:$0xff]  ;;  %v13100_v54 = vld [vmem:[#allocation63_spill] sm:$0xff]  ;;  %vm13104_vm4 = vcmp.eq.s32.totalorder %v12706_v41, %v8588_v27 }
 0x997   :  { %v2718_v37 = vsel %vm2666_vm12, %v8834_v6, %v13098_v13  ;;  %v2922_v17 = vsel %vm2870_vm14, %v13099_v7, %v2852_v49  ;;  %vm13101_vm12 = vcmp.eq.s32.totalorder %v12845_v39, %v8586_v63  ;;  %v13102_v43 = vld [vmem:[#allocation113_spill] sm:$0xff]  ;;  %vm13103_vm14 = vcmp.eq.s32.totalorder %v12844_v58, %v8586_v63 }
 0x998   :  { %v2719_v13 = vsel %vm13101_vm12, %v8834_v6, %v13100_v54  ;;  %v2720_v49 = vsel %vm13103_vm14, %v8834_v6, %v13102_v43  ;;  %v2781_v7 = vsel %vm13104_vm4, %v12945_v31, %v9710_v44  ;;  %vm13106_vm1 = vcmp.eq.s32.totalorder %v12811_v20, %v12990_v62  ;;  %v13110_v43 = vld [vmem:[#allocation101_spill] sm:$0xff]  ;;  %v13203_v8 = vld [vmem:[#allocation62_spill] sm:$0xff] }
 0x999   :  { %v2992_v4 = vsel %vm13106_vm1, %v13105_v51, %v2922_v17  ;;  %vm13107_vm4 = vcmp.eq.s32.totalorder %v12822_v56, %v8588_v27  ;;  %vm13108_vm1 = vcmp.eq.s32.totalorder %v12938_v34, %v8588_v27  ;;  %vm13109_vm13 = vcmp.eq.s32.totalorder %v12942_v2, %v8588_v27 }
 0x99a   :  { %v2783_v44 = vsel %vm13107_vm4, %v12945_v31, %v9716_v30  ;;  %v2784_v17 = vsel %vm13108_vm1, %v12945_v31, %v2714_v25  ;;  %v2785_v54 = vsel %vm13109_vm13, %v12945_v31, %v2715_v11  ;;  %vm13111_vm10 = vcmp.eq.s32.totalorder %v12811_v20, %v13001_v47  ;;  %v13112_v30 = vld [vmem:[#allocation11_spill] sm:$0xff] }
 0x99b   :  { %v3062_v51 = vsel %vm13111_vm10, %v13110_v43, %v2992_v4  ;;  %vm13113_vm13 = vcmp.eq.s32.totalorder %v12964_v23, %v8586_v63  ;;  %vm13114_vm10 = vcmp.eq.s32.totalorder %v12833_v12, %v8588_v27  ;;  %vm13115_vm4 = vcmp.eq.s32.totalorder %v12834_v29, %v8588_v27  ;;  %v13116_v43 = vld [vmem:[#allocation125_spill] sm:$0xff] }
 0x99c   :  { %v10143_v11 = vsel %vm13113_vm13, %v8834_v6, %v13112_v30  ;;  %v2786_v4 = vsel %vm13114_vm10, %v12945_v31, %v2716_v3  ;;  %v2788_v25 = vsel %vm13115_vm4, %v12945_v31, %v2718_v37  ;;  %vm13117_vm1 = vcmp.eq.s32.totalorder %v12811_v20, %v13014_v22 }
 0x99d   :  { %v3132_v5 = vsel %vm13117_vm1, %v13116_v43, %v3062_v51  ;;  %vm13118_vm13 = vcmp.eq.s32.totalorder %v12854_v0, %v8586_v63  ;;  %vm13119_vm10 = vcmp.eq.s32.totalorder %v12835_v38, %v8588_v27  ;;  %vm13120_vm4 = vcmp.eq.s32.totalorder %v12845_v39, %v8588_v27 }
 0x99e   :  { %v10162_v30 = vsel %vm13118_vm13, %v8834_v6, %v9641_v40  ;;  %v10168_v3 = vsel %vm13119_vm10, %v12945_v31, %v2717_v48  ;;  %v10174_v37 = vsel %vm13120_vm4, %v12945_v31, %v2719_v13  ;;  %vm13122_vm1 = vcmp.eq.s32.totalorder %v12844_v58, %v8588_v27  ;;  %3165 = vrot.lane.b32.xlu0 %v3132_v5, %s6331_s30 }
 0x99f   :  { %13121 = vst [vmem:[#allocation65_spill] sm:$0xff] %v10174_v37  ;;  %v10180_v51 = vsel %vm13122_vm1, %v12945_v31, %v2720_v49  ;;  %vm13123_vm14 = vcmp.eq.s32.totalorder %v12706_v41, %v8593_v57  ;;  %vm13124_vm1 = vcmp.eq.s32.totalorder %v12822_v56, %v8593_v57  ;;  %vm13125_vm10 = vcmp.eq.s32.totalorder %v12938_v34, %v8593_v57  ;;  %v13144_v37 = vld [vmem:[#allocation81_spill] sm:$0xff] }
 0x9a0   :  { %v10195_v20 = vsel %vm13123_vm14, %v12956_v16, %v2781_v7  ;;  %v10201_v5 = vsel %vm13124_vm1, %v12956_v16, %v2783_v44  ;;  %v10207_v40 = vsel %vm13125_vm10, %v12956_v16, %v2784_v17  ;;  %vm13126_vm4 = vcmp.eq.s32.totalorder %v12942_v2, %v8593_v57  ;;  %v13133_v17 = vld [vmem:[#allocation14_spill] sm:$0xff] }
 0x9a1   :  { %v10213_v48 = vsel %vm13126_vm4, %v12956_v16, %v2785_v54  ;;  %vm2939_vm14 = vcmp.eq.s32.totalorder %v12706_v41, %v12990_v62  ;;  %vm2941_vm1 = vcmp.eq.s32.totalorder %v12822_v56, %v12990_v62  ;;  %vm13127_vm4 = vcmp.eq.s32.totalorder %v12833_v12, %v8593_v57 }
 0x9a2   :  { %v10231_v7 = vsel %vm13127_vm4, %v12956_v16, %v2786_v4  ;;  %vm13128_vm12 = vcmp.eq.s32.totalorder %v12834_v29, %v8593_v57  ;;  %vm13129_vm10 = vcmp.eq.s32.totalorder %v8614_v42, %v8593_v57  ;;  %vm13131_vm15 = vcmp.eq.s32.totalorder %v8619_v35, %v8593_v57  ;;  %v13135_v4 = vld [vmem:[#allocation28_spill] sm:$0xff]  ;;  %v13143_v42 = vld [vmem:[#allocation29_spill] sm:$0xff] }
 0x9a3   :  { %v10237_v13 = vsel %vm13128_vm12, %v12956_v16, %v2788_v25  ;;  %v10244_v49 = vsel %vm13129_vm10, %v12956_v16, %v9729_v53  ;;  %v10251_v44 = vsel %vm13131_vm15, %v12956_v16, %v9744_v18  ;;  %vm3009_vm4 = vcmp.eq.s32.totalorder %v12706_v41, %v13001_v47  ;;  %v13134_v53 = vld [vmem:[#allocation72_spill] sm:$0xff] }
 0x9a4   :  { %13130 = vst [vmem:[#allocation58_spill] sm:$0xff] %v10244_v49  ;;  %13132 = vst [vmem:[#allocation34_spill] sm:$0xff] %v10251_v44  ;;  %v10264_v54 = vsel %vm3534_vm0, %v12956_v16, %v13133_v17  ;;  %v13136_v18 = vld [vmem:[#allocation80_spill] sm:$0xff]  ;;  %v13139_v44 = vld [vmem:[#allocation15_spill] sm:$0xff]  ;;  %vm13145_vm0 = vcmp.eq.s32.totalorder %v13144_v37, %v8593_v57  ;;  %vm3014_vm12 = vcmp.eq.s32.totalorder %v12833_v12, %v13001_v47 }
 0x9a5   :  { %vm13137_vm15 = vcmp.eq.s32.totalorder %v13136_v18, %v8593_v57  ;;  %v13140_v49 = vld [vmem:[#allocation73_spill] sm:$0xff]  ;;  %v10285_v17 = vsel %vm13145_vm0, %v12956_v16, %v13143_v42  ;;  %vm13153_vm0 = vcmp.eq.s32.totalorder %v8628_v21, %v8593_v57  ;;  %v13156_v18 = vld [vmem:[#allocation91_spill] sm:$0xff]  ;;  %vm2943_vm13 = vcmp.eq.s32.totalorder %v12942_v2, %v12990_v62 }
 0x9a6   :  { %v10271_v25 = vsel %vm13137_vm15, %v12956_v16, %v13135_v4  ;;  %vm13141_vm10 = vcmp.eq.s32.totalorder %v13140_v49, %v8593_v57  ;;  %13146 = vst [vmem:[#allocation35_spill] sm:$0xff] %v10285_v17  ;;  %v13147_v4 = vld [vmem:[#allocation17_spill] sm:$0xff]  ;;  %v13155_v49 = vld [vmem:[#allocation31_spill] sm:$0xff]  ;;  %vm13223_vm15 = vcmp.eq.s32.totalorder %v12911_v33, %v8593_v57 }
 0x9a7   :  { %13138 = vst [vmem:[#allocation44_spill] sm:$0xff] %v10271_v25  ;;  %v10278_v35 = vsel %vm13141_vm10, %v12956_v16, %v13139_v44  ;;  %v10298_v44 = vsel %vm3538_vm3, %v12956_v16, %v13147_v4  ;;  %vm13150_vm10 = vcmp.eq.s32.totalorder %v8649_v55, %v8593_v57  ;;  %v13152_v25 = vld [vmem:[#allocation19_spill] sm:$0xff]  ;;  %vm13157_vm3 = vcmp.eq.s32.totalorder %v13156_v18, %v8593_v57  ;;  %v13169_v18 = vld [vmem:[#allocation37_spill] sm:$0xff] }
 0x9a8   :  { %13142 = vst [vmem:[#allocation100_spill] sm:$0xff] %v10278_v35  ;;  %13148 = vst [vmem:[#allocation119_spill] sm:$0xff] %v10298_v44  ;;  %v13149_v35 = vld [vmem:[#allocation30_spill] sm:$0xff]  ;;  %v10312_v17 = vsel %vm13153_vm0, %v12956_v16, %v13152_v25  ;;  %v10319_v4 = vsel %vm13157_vm3, %v12956_v16, %v13155_v49  ;;  %vm13165_vm3 = vcmp.eq.s32.totalorder %v8673_v24, %v8593_v57  ;;  %v13247_v33 = vld [vmem:[#allocation101_spill] sm:$0xff] }
 0x9a9   :  { %v10305_v42 = vsel %vm13150_vm10, %v12956_v16, %v13149_v35  ;;  %13154 = vst [vmem:[#allocation121_spill] sm:$0xff] %v10312_v17  ;;  %13158 = vst [vmem:[#allocation45_spill] sm:$0xff] %v10319_v4  ;;  %vm2873_vm10 = vcmp.eq.s32.totalorder %v12942_v2, %v12985_v32  ;;  %v13159_v35 = vld [vmem:[#allocation59_spill] sm:$0xff]  ;;  %v13160_v25 = vld [vmem:[#allocation70_spill] sm:$0xff]  ;;  %vm13167_vm0 = vcmp.eq.s32.totalorder %v13025_v14, %v8593_v57 }
 0x9aa   :  { %13151 = vst [vmem:[#allocation120_spill] sm:$0xff] %v10305_v42  ;;  %v13161_v17 = vld [vmem:[#allocation66_spill] sm:$0xff]  ;;  %v10350_v42 = vsel %vm13167_vm0, %v12956_v16, %v13166_v10  ;;  %v13173_v10 = vld [vmem:[#allocation47_spill] sm:$0xff] }
 0x9ab   :  { %v13162_v44 = vld [vmem:[#allocation110_spill] sm:$0xff]  ;;  %13168 = vst [vmem:[#allocation123_spill] sm:$0xff] %v10350_v42  ;;  %v10372_v42 = vsel %vm4234_vm6, %v12956_v16, %v13173_v10  ;;  %vm13180_vm6 = vcmp.eq.s32.totalorder %v8698_v36, %v8593_v57  ;;  %v13189_v36 = vld [vmem:[#allocation40_spill] sm:$0xff] }
 0x9ac   :  { %v10336_v49 = vsel %vm4230_vm2, %v12956_v16, %v13162_v44  ;;  %v13164_v4 = vld [vmem:[#allocation46_spill] sm:$0xff]  ;;  %vm13170_vm2 = vcmp.eq.s32.totalorder %v8676_v60, %v8593_v57  ;;  %13174 = vst [vmem:[#allocation124_spill] sm:$0xff] %v10372_v42  ;;  %v10393_v10 = vsel %vm13180_vm6, %v12956_v16, %v13179_v19  ;;  %v13184_v19 = vld [vmem:[#allocation8_spill] sm:$0xff]  ;;  %vm13216_vm6 = vcmp.eq.s32.totalorder %v13078_v28, %v8593_v57 }
 0x9ad   :  { %13163 = vst [vmem:[#allocation122_spill] sm:$0xff] %v10336_v49  ;;  %v10343_v21 = vsel %vm13165_vm3, %v12956_v16, %v13164_v4  ;;  %v10357_v44 = vsel %vm13170_vm2, %v12956_v16, %v13169_v18  ;;  %vm2946_vm3 = vcmp.eq.s32.totalorder %v12834_v29, %v12990_v62  ;;  %v13172_v4 = vld [vmem:[#allocation68_spill] sm:$0xff]  ;;  %v13175_v18 = vld [vmem:[#allocation38_spill] sm:$0xff]  ;;  %13181 = vst [vmem:[#allocation118_spill] sm:$0xff] %v10393_v10 }
 0x9ae   :  { %13171 = vst [vmem:[#allocation36_spill] sm:$0xff] %v10357_v44  ;;  %vm2671_vm0 = vcmp.eq.s32.totalorder %v13172_v4, %v8586_v63  ;;  %v10379_v49 = vsel %vm4235_vm8, %v12956_v16, %v13175_v18  ;;  %v13177_v44 = vld [vmem:[#allocation48_spill] sm:$0xff]  ;;  %vm2875_vm2 = vcmp.eq.s32.totalorder %v12835_v38, %v12985_v32  ;;  %vm2878_vm8 = vcmp.eq.s32.totalorder %v12844_v58, %v12985_v32  ;;  %v13186_v10 = vld [vmem:[#allocation49_spill] sm:$0xff] }
 0x9af   :  { %13176 = vst [vmem:[#allocation16_spill] sm:$0xff] %v10379_v49  ;;  %v10386_v14 = vsel %vm4236_vm5, %v12956_v16, %v13177_v44  ;;  %v13182_v44 = vld [vmem:[#allocation39_spill] sm:$0xff]  ;;  %v10415_v42 = vsel %vm4239_vm9, %v12956_v16, %v13184_v19  ;;  %v10422_v9 = vsel %vm4240_vm11, %v12956_v16, %v13186_v10  ;;  %vm13194_vm11 = vcmp.eq.s32.totalorder %v13058_v15, %v8593_v57 }
 0x9b0   :  { %13178 = vst [vmem:[#allocation12_spill] sm:$0xff] %v10386_v14  ;;  %v10408_v18 = vsel %vm4238_vm7, %v12956_v16, %v13182_v44  ;;  %v13185_v14 = vld [vmem:[#allocation97_spill] sm:$0xff]  ;;  %13188 = vst [vmem:[#allocation13_spill] sm:$0xff] %v10422_v9  ;;  %v13190_v49 = vld [vmem:[#allocation99_spill] sm:$0xff]  ;;  %vm13210_vm5 = vcmp.eq.s32.totalorder %v12899_v45, %v8593_v57 }
 0x9b1   :  { %13183 = vst [vmem:[#allocation18_spill] sm:$0xff] %v10408_v18  ;;  %vm13191_vm7 = vcmp.eq.s32.totalorder %v13190_v49, %v8593_v57  ;;  %v13193_v19 = vld [vmem:[#allocation115_spill] sm:$0xff]  ;;  %v13196_v9 = vld [vmem:[#allocation50_spill] sm:$0xff]  ;;  %v13199_v18 = vld [vmem:[#allocation41_spill] sm:$0xff] }
 0x9b2   :  { %v10429_v44 = vsel %vm13191_vm7, %v12956_v16, %v13189_v36  ;;  %v10442_v10 = vsel %vm13194_vm11, %v12956_v16, %v13193_v19  ;;  %vm13197_vm7 = vcmp.eq.s32.totalorder %v13062_v61, %v8593_v57  ;;  %v13204_v49 = vld [vmem:[#allocation102_spill] sm:$0xff]  ;;  %v13231_v45 = vld [vmem:[#allocation57_spill] sm:$0xff] }
 0x9b3   :  { %13192 = vst [vmem:[#allocation54_spill] sm:$0xff] %v10429_v44  ;;  %13195 = vst [vmem:[#allocation63_spill] sm:$0xff] %v10442_v10  ;;  %v10449_v36 = vsel %vm13197_vm7, %v12956_v16, %v13196_v9  ;;  %v13200_v44 = vld [vmem:[#allocation92_spill] sm:$0xff]  ;;  %vm13205_vm11 = vcmp.eq.s32.totalorder %v13204_v49, %v8593_v57  ;;  %v13218_v49 = vld [vmem:[#allocation55_spill] sm:$0xff]  ;;  %vm13229_vm7 = vcmp.eq.s32.totalorder %v8756_v26, %v8593_v57 }
 0x9b4   :  { %13198 = vst [vmem:[#allocation113_spill] sm:$0xff] %v10449_v36  ;;  %vm13201_vm9 = vcmp.eq.s32.totalorder %v13200_v44, %v8593_v57  ;;  %v10463_v19 = vsel %vm13205_vm11, %v12956_v16, %v13203_v8  ;;  %v13207_v9 = vld [vmem:[#allocation60_spill] sm:$0xff]  ;;  %v13212_v8 = vld [vmem:[#allocation42_spill] sm:$0xff]  ;;  %vm13213_vm11 = vcmp.eq.s32.totalorder %v12902_v46, %v8593_v57 }
 0x9b5   :  { %v10456_v1 = vsel %vm13201_vm9, %v12956_v16, %v13199_v18  ;;  %13206 = vst [vmem:[#allocation125_spill] sm:$0xff] %v10463_v19  ;;  %v13208_v44 = vld [vmem:[#allocation76_spill] sm:$0xff]  ;;  %v13209_v18 = vld [vmem:[#allocation51_spill] sm:$0xff]  ;;  %v10485_v10 = vsel %vm13213_vm11, %v12956_v16, %v13212_v8  ;;  %v13221_v8 = vld [vmem:[#allocation69_spill] sm:$0xff]  ;;  %vm13236_vm9 = vcmp.eq.s32.totalorder %v12706_v41, %v12985_v32  ;;  %vm13238_vm11 = vcmp.eq.s32.totalorder %v12822_v56, %v12985_v32 }
 0x9b6   :  { %13202 = vst [vmem:[#allocation11_spill] sm:$0xff] %v10456_v1  ;;  %v10478_v1 = vsel %vm13210_vm5, %v12956_v16, %v13209_v18  ;;  %13214 = vst [vmem:[#allocation72_spill] sm:$0xff] %v10485_v10  ;;  %v13215_v19 = vld [vmem:[#allocation52_spill] sm:$0xff]  ;;  %vm13219_vm5 = vcmp.eq.s32.totalorder %v8750_v52, %v8593_v57  ;;  %v13232_v52 = vld [vmem:[#allocation98_spill] sm:$0xff] }
 0x9b7   :  { %13211 = vst [vmem:[#allocation14_spill] sm:$0xff] %v10478_v1  ;;  %v10492_v15 = vsel %vm13216_vm6, %v12956_v16, %v13215_v19  ;;  %v10499_v18 = vsel %vm13219_vm5, %v12956_v16, %v13218_v49  ;;  %v13222_v19 = vld [vmem:[#allocation56_spill] sm:$0xff]  ;;  %vm13226_vm5 = vcmp.eq.s32.totalorder %v12915_v59, %v8593_v57  ;;  %v13228_v1 = vld [vmem:[#allocation53_spill] sm:$0xff]  ;;  %vm2877_vm6 = vcmp.eq.s32.totalorder %v12845_v39, %v12985_v32 }
 0x9b8   :  { %13217 = vst [vmem:[#allocation28_spill] sm:$0xff] %v10492_v15  ;;  %13220 = vst [vmem:[#allocation15_spill] sm:$0xff] %v10499_v18  ;;  %v10514_v15 = vsel %vm13223_vm15, %v12956_v16, %v13222_v19  ;;  %v13225_v49 = vld [vmem:[#allocation64_spill] sm:$0xff]  ;;  %v10528_v18 = vsel %vm13229_vm7, %v12956_v16, %v13228_v1  ;;  %vm13233_vm15 = vcmp.eq.s32.totalorder %v13232_v52, %v8593_v57 }
 0x9b9   :  { %13224 = vst [vmem:[#allocation29_spill] sm:$0xff] %v10514_v15  ;;  %v10521_v28 = vsel %vm13226_vm5, %v12956_v16, %v13225_v49  ;;  %13230 = vst [vmem:[#allocation17_spill] sm:$0xff] %v10528_v18  ;;  %v10535_v19 = vsel %vm13233_vm15, %v12956_v16, %v13231_v45  ;;  %v13235_v1 = vld [vmem:[#allocation116_spill] sm:$0xff]  ;;  %vm13237_vm15 = vcmp.eq.s32.totalorder %v12938_v34, %v12985_v32 }
 0x9ba   :  { %13227 = vst [vmem:[#allocation81_spill] sm:$0xff] %v10521_v28  ;;  %13234 = vst [vmem:[#allocation30_spill] sm:$0xff] %v10535_v19  ;;  %v2921_v49 = vsel %vm13236_vm9, %v13235_v1, %v10195_v20  ;;  %v2924_v45 = vsel %vm13237_vm15, %v13235_v1, %v10207_v40  ;;  %v2923_v19 = vsel %vm13238_vm11, %v13235_v1, %v10201_v5  ;;  %v13240_v20 = vld [vmem:[#allocation117_spill] sm:$0xff] }
 0x9bb   :  { %vm13239_vm7 = vcmp.eq.s32.totalorder %v12833_v12, %v12985_v32  ;;  %vm3083_vm9 = vcmp.eq.s32.totalorder %v12942_v2, %v13014_v22  ;;  %v2991_v5 = vsel %vm2939_vm14, %v13240_v20, %v2921_v49  ;;  %vm13241_vm11 = vcmp.eq.s32.totalorder %v12938_v34, %v12990_v62  ;;  %v13243_v49 = vld [vmem:[#allocation61_spill] sm:$0xff] }
 0x9bc   :  { %v2926_v15 = vsel %vm13239_vm7, %v13235_v1, %v10231_v7  ;;  %v2994_v40 = vsel %vm13241_vm11, %v13240_v20, %v2924_v45  ;;  %v2993_v7 = vsel %vm2941_vm1, %v13240_v20, %v2923_v19  ;;  %vm13242_vm7 = vcmp.eq.s32.totalorder %v12833_v12, %v12990_v62  ;;  %v13244_v45 = vld [vmem:[#allocation71_spill] sm:$0xff] }
 0x9bd   :  { %v2996_v52 = vsel %vm13242_vm7, %v13240_v20, %v2926_v15  ;;  %vm3015_vm15 = vcmp.eq.s32.totalorder %v12835_v38, %v13001_v47  ;;  %vm13245_vm1 = vcmp.eq.s32.totalorder %v12854_v0, %v8588_v27  ;;  %vm13246_vm7 = vcmp.eq.s32.totalorder %v12835_v38, %v8593_v57 }
 0x9be   :  { %v2792_v19 = vsel %vm13245_vm1, %v12945_v31, %v10162_v30  ;;  %v2857_v15 = vsel %vm13246_vm7, %v12956_v16, %v10168_v3  ;;  %v3061_v18 = vsel %vm3009_vm4, %v13247_v33, %v2991_v5  ;;  %vm13248_vm5 = vcmp.eq.s32.totalorder %v12938_v34, %v13001_v47  ;;  %v13249_v30 = vld [vmem:[#allocation74_spill] sm:$0xff] }
 0x9bf   :  { %v3064_v26 = vsel %vm13248_vm5, %v13247_v33, %v2994_v40  ;;  %vm13250_vm4 = vcmp.eq.s32.totalorder %v12844_v58, %v8593_v57  ;;  %vm13251_vm5 = vcmp.eq.s32.totalorder %v12706_v41, %v13014_v22  ;;  %vm13252_vm1 = vcmp.eq.s32.totalorder %v12938_v34, %v13014_v22 }
 0x9c0   :  { %v2860_v3 = vsel %vm13250_vm4, %v12956_v16, %v10180_v51  ;;  %v3131_v5 = vsel %vm13251_vm5, %v13116_v43, %v3061_v18  ;;  %v3134_v40 = vsel %vm13252_vm1, %v13116_v43, %v3064_v26  ;;  %vm13253_vm14 = vcmp.eq.s32.totalorder %v12822_v56, %v13001_v47  ;;  %v13256_v18 = vld [vmem:[#allocation108_spill] sm:$0xff] }
 0x9c1   :  { %v3063_v28 = vsel %vm13253_vm14, %v13247_v33, %v2993_v7  ;;  %vm2879_vm7 = vcmp.eq.s32.totalorder %v12964_v23, %v12985_v32  ;;  %vm2882_vm4 = vcmp.eq.s32.totalorder %v13159_v35, %v12985_v32  ;;  %v10645_v41 = vadd.s32 128, %v12834_v29  ;;  %3163 = vrot.lane.b32.xlu1 %v3131_v5, %s6331_s30  ;;  %3169 = vrot.lane.b32.xlu0 %v3134_v40, %s6331_s30  ;;  %v13258_v7 = vld [vmem:[#allocation9_spill] sm:$0xff] }
 0x9c2   :  { %vm2811_vm1 = vcmp.eq.s32.totalorder %v13172_v4, %v8593_v57  ;;  %v3066_v26 = vsel %vm3014_vm12, %v13247_v33, %v2996_v52  ;;  %v2925_v34 = vsel %vm2873_vm10, %v13235_v1, %v10213_v48  ;;  %vm13254_vm14 = vcmp.eq.s32.totalorder %v12834_v29, %v12985_v32  ;;  %v13255_v52 = vld [vmem:[#allocation21_spill] sm:$0xff] }
 0x9c3   :  { %v2928_v51 = vsel %vm13254_vm14, %v13235_v1, %v10237_v13  ;;  %vm3085_vm5 = vcmp.eq.s32.totalorder %v12835_v38, %v13014_v22  ;;  %vm13257_vm10 = vcmp.eq.s32.totalorder %v13161_v17, %v13160_v25  ;;  %vm13259_vm14 = vcmp.eq.s32.totalorder %v13159_v35, %v8586_v63 }
 0x9c4   :  { %v10676_v48 = vsel %vm13257_vm10, %v13256_v18, %v13255_v52  ;;  %v2724_v13 = vsel %vm13259_vm14, %v8834_v6, %v13258_v7  ;;  %v2995_v5 = vsel %vm2943_vm13, %v13240_v20, %v2925_v34  ;;  %v2998_v40 = vsel %vm2946_vm3, %v13240_v20, %v2928_v51  ;;  %v13260_v52 = vld [vmem:[#allocation77_spill] sm:$0xff]  ;;  %v13261_v7 = vld [vmem:[#allocation22_spill] sm:$0xff] }
 0x9c5   :  { %vm3017_vm10 = vcmp.eq.s32.totalorder %v12845_v39, %v13001_v47  ;;  %vm3020_vm12 = vcmp.eq.s32.totalorder %v12854_v0, %v13001_v47  ;;  %vm3267_vm14 = vcmp.eq.s32.totalorder %v13260_v52, %v13160_v25  ;;  %v2723_v34 = vsel %vm2671_vm0, %v8834_v6, %v13261_v7  ;;  %v13264_v7 = vld [vmem:[#allocation65_spill] sm:$0xff] }
 0x9c6   :  { %vm13262_vm13 = vcmp.eq.s32.totalorder %v12964_v23, %v8588_v27  ;;  %v2927_v59 = vsel %vm2875_vm2, %v13235_v1, %v2857_v15  ;;  %v2930_v10 = vsel %vm2878_vm8, %v13235_v1, %v2860_v3  ;;  %vm13265_vm2 = vcmp.eq.s32.totalorder %v12845_v39, %v8593_v57 }
 0x9c7   :  { %v2791_v51 = vsel %vm13262_vm13, %v12945_v31, %v10143_v11  ;;  %v13263_v11 = vld [vmem:[#allocation75_spill] sm:$0xff]  ;;  %v2859_v15 = vsel %vm13265_vm2, %v12956_v16, %v13264_v7  ;;  %vm13266_vm8 = vcmp.eq.s32.totalorder %v12854_v0, %v8593_v57  ;;  %vm13267_vm0 = vcmp.eq.s32.totalorder %v12822_v56, %v13014_v22  ;;  %v13278_v7 = vld [vmem:[#allocation114_spill] sm:$0xff] }
 0x9c8   :  { %v2862_v3 = vsel %vm13266_vm8, %v12956_v16, %v2792_v19  ;;  %v3133_v46 = vsel %vm13267_vm0, %v13116_v43, %v3063_v28  ;;  %vm13268_vm11 = vcmp.eq.s32.totalorder %v12833_v12, %v13014_v22  ;;  %v10749_v19 = vadd.s32 128, %v12844_v58 }
 0x9c9   :  { %v3136_v36 = vsel %vm13268_vm11, %v13116_v43, %v3066_v26  ;;  %vm13269_vm8 = vcmp.eq.s32.totalorder %v13159_v35, %v8588_v27  ;;  %3167 = vrot.lane.b32.xlu1 %v3133_v46, %s6331_s30  ;;  %vm13270_vm11 = vcmp.eq.s32.totalorder %v12942_v2, %v13001_v47  ;;  %vm13271_vm3 = vcmp.eq.s32.totalorder %v12834_v29, %v13001_v47  ;;  %v13272_v46 = vld [vmem:[#allocation32_spill] sm:$0xff] }
 0x9ca   :  { %v2794_v56 = vsel %vm13269_vm8, %v12945_v31, %v2724_v13  ;;  %3173 = vrot.lane.b32.xlu0 %v3136_v36, %s6331_s30  ;;  %v3065_v28 = vsel %vm13270_vm11, %v13247_v33, %v2995_v5  ;;  %v3068_v12 = vsel %vm13271_vm3, %v13247_v33, %v2998_v40  ;;  %vm13273_vm13 = vcmp.eq.s32.totalorder %v13208_v44, %v13160_v25  ;;  %v13274_v26 = vld [vmem:[#allocation24_spill] sm:$0xff] }
 0x9cb   :  { %v10778_v36 = vsel %vm13273_vm13, %v13256_v18, %v13272_v46  ;;  %vm13275_vm3 = vcmp.eq.s32.totalorder %v13207_v9, %v8586_v63  ;;  %vm13276_vm11 = vcmp.eq.s32.totalorder %v12835_v38, %v12990_v62  ;;  %vm13277_vm2 = vcmp.eq.s32.totalorder %v12844_v58, %v12990_v62 }
 0x9cc   :  { %v2726_v13 = vsel %vm13275_vm3, %v8834_v6, %v13274_v26  ;;  %v2997_v5 = vsel %vm13276_vm11, %v13240_v20, %v2927_v59  ;;  %v3000_v40 = vsel %vm13277_vm2, %v13240_v20, %v2930_v10  ;;  %vm3019_vm13 = vcmp.eq.s32.totalorder %v12964_v23, %v13001_v47 }
 0x9cd   :  { %vm13279_vm11 = vcmp.eq.s32.totalorder %v13221_v8, %v8586_v63  ;;  %vm13280_vm2 = vcmp.eq.s32.totalorder %v13172_v4, %v8588_v27  ;;  %v2929_v46 = vsel %vm2877_vm6, %v13235_v1, %v2859_v15  ;;  %vm13281_vm0 = vcmp.eq.s32.totalorder %v12854_v0, %v12985_v32 }
 0x9ce   :  { %v2725_v59 = vsel %vm13279_vm11, %v8834_v6, %v13278_v7  ;;  %v2793_v10 = vsel %vm13280_vm2, %v12945_v31, %v2723_v34  ;;  %v2932_v26 = vsel %vm13281_vm0, %v13235_v1, %v2862_v3  ;;  %vm2951_vm3 = vcmp.eq.s32.totalorder %v13172_v4, %v12990_v62 }
 0x9cf   :  { %vm13282_vm6 = vcmp.eq.s32.totalorder %v12964_v23, %v8593_v57  ;;  %vm13283_vm0 = vcmp.eq.s32.totalorder %v13159_v35, %v8593_v57  ;;  %v3135_v3 = vsel %vm3083_vm9, %v13116_v43, %v3065_v28  ;;  %vm13284_vm8 = vcmp.eq.s32.totalorder %v12834_v29, %v13014_v22 }
 0x9d0   :  { %v2861_v34 = vsel %vm13282_vm6, %v12956_v16, %v2791_v51  ;;  %v2864_v15 = vsel %vm13283_vm0, %v12956_v16, %v2794_v56  ;;  %v3138_v7 = vsel %vm13284_vm8, %v13116_v43, %v3068_v12  ;;  %vm2883_vm2 = vcmp.eq.s32.totalorder %v13221_v8, %v12985_v32  ;;  %3171 = vrot.lane.b32.xlu1 %v3135_v3, %s6331_s30  ;;  %v13287_v56 = vld [vmem:[#allocation23_spill] sm:$0xff]  ;;  %v13289_v12 = vld [vmem:[#allocation26_spill] sm:$0xff] }
 0x9d1   :  { %vm13285_vm9 = vcmp.eq.s32.totalorder %v13207_v9, %v8588_v27  ;;  %3177 = vrot.lane.b32.xlu0 %v3138_v7, %s6331_s30  ;;  %v3067_v29 = vsel %vm3015_vm15, %v13247_v33, %v2997_v5  ;;  %vm13286_vm8 = vcmp.eq.s32.totalorder %v12844_v58, %v13001_v47  ;;  %vm13288_vm6 = vcmp.eq.s32.totalorder %v13244_v45, %v13160_v25  ;;  %v13293_v3 = vld [vmem:[#allocation10_spill] sm:$0xff] }
 0x9d2   :  { %v2796_v2 = vsel %vm13285_vm9, %v12945_v31, %v2726_v13  ;;  %v3070_v51 = vsel %vm13286_vm8, %v13247_v33, %v3000_v40  ;;  %v10875_v28 = vsel %vm13288_vm6, %v13256_v18, %v13287_v56  ;;  %vm13290_vm15 = vcmp.eq.s32.totalorder %v13243_v49, %v8586_v63 }
 0x9d3   :  { %v3440_v13 = vsel %vm13290_vm15, %v8834_v6, %v13289_v12  ;;  %vm13291_vm8 = vcmp.eq.s32.totalorder %v12845_v39, %v12990_v62  ;;  %vm13292_vm0 = vcmp.eq.s32.totalorder %v12854_v0, %v12990_v62  ;;  %vm3021_vm6 = vcmp.eq.s32.totalorder %v13172_v4, %v13001_v47 }
 0x9d4   :  { %v2999_v5 = vsel %vm13291_vm8, %v13240_v20, %v2929_v46  ;;  %v3002_v40 = vsel %vm13292_vm0, %v13240_v20, %v2932_v26  ;;  %vm3024_vm9 = vcmp.eq.s32.totalorder %v13207_v9, %v13001_v47  ;;  %vm13294_vm8 = vcmp.eq.s32.totalorder %v13249_v30, %v8586_v63 }
 0x9d5   :  { %v3439_v46 = vsel %vm13294_vm8, %v8834_v6, %v13293_v3  ;;  %vm13295_vm0 = vcmp.eq.s32.totalorder %v13221_v8, %v8588_v27  ;;  %v2931_v7 = vsel %vm2879_vm7, %v13235_v1, %v2861_v34  ;;  %v2934_v56 = vsel %vm2882_vm4, %v13235_v1, %v2864_v15 }
 0x9d6   :  { %v2795_v26 = vsel %vm13295_vm0, %v12945_v31, %v2725_v59  ;;  %vm2953_vm11 = vcmp.eq.s32.totalorder %v13221_v8, %v12990_v62  ;;  %vm3656_vm8 = vcmp.eq.s32.totalorder %v13243_v49, %v12990_v62  ;;  %v2863_v59 = vsel %vm2811_vm1, %v12956_v16, %v2793_v10 }
 0x9d7   :  { %vm13296_vm7 = vcmp.eq.s32.totalorder %v13207_v9, %v8593_v57  ;;  %v3137_v15 = vsel %vm3085_vm5, %v13116_v43, %v3067_v29  ;;  %vm13297_vm4 = vcmp.eq.s32.totalorder %v12844_v58, %v13014_v22  ;;  %vm3589_vm15 = vcmp.eq.s32.totalorder %v13249_v30, %v12985_v32 }
 0x9d8   :  { %v2866_v34 = vsel %vm13296_vm7, %v12956_v16, %v2796_v2  ;;  %v3140_v12 = vsel %vm13297_vm4, %v13116_v43, %v3070_v51  ;;  %vm3592_vm1 = vcmp.eq.s32.totalorder %v13161_v17, %v12985_v32  ;;  %vm3525_vm7 = vcmp.eq.s32.totalorder %v13263_v11, %v8593_v57  ;;  %3175 = vrot.lane.b32.xlu1 %v3137_v15, %s6331_s30  ;;  %v13299_v2 = vld [vmem:[#allocation33_spill] sm:$0xff] }
 0x9d9   :  { %vm13298_vm5 = vcmp.eq.s32.totalorder %v13243_v49, %v8588_v27  ;;  %3181 = vrot.lane.b32.xlu0 %v3140_v12, %s6331_s30  ;;  %v3069_v58 = vsel %vm3017_vm10, %v13247_v33, %v2999_v5  ;;  %v3072_v10 = vsel %vm3020_vm12, %v13247_v33, %v3002_v40  ;;  %v10972_v29 = vsel %vm3267_vm14, %v13256_v18, %v13299_v2  ;;  %v13314_v12 = vld [vmem:[#allocation25_spill] sm:$0xff] }
 0x9da   :  { %v3506_v38 = vsel %vm13298_vm5, %v12945_v31, %v3440_v13  ;;  %vm13300_vm12 = vcmp.eq.s32.totalorder %v13161_v17, %v8586_v63  ;;  %vm13301_vm10 = vcmp.eq.s32.totalorder %v12964_v23, %v12990_v62  ;;  %vm13302_vm0 = vcmp.eq.s32.totalorder %v13159_v35, %v12990_v62 }
 0x9db   :  { %v3442_v51 = vsel %vm13300_vm12, %v8834_v6, %v10676_v48  ;;  %v3001_v13 = vsel %vm13301_vm10, %v13240_v20, %v2931_v7  ;;  %v3004_v5 = vsel %vm13302_vm0, %v13240_v20, %v2934_v56  ;;  %v13303_v48 = vld [vmem:[#allocation67_spill] sm:$0xff]  ;;  %vm13304_vm12 = vcmp.eq.s32.totalorder %v13263_v11, %v8586_v63 }
 0x9dc   :  { %v3441_v40 = vsel %vm13304_vm12, %v8834_v6, %v13303_v48  ;;  %vm13305_vm10 = vcmp.eq.s32.totalorder %v13249_v30, %v8588_v27  ;;  %vm13306_vm0 = vcmp.eq.s32.totalorder %v13172_v4, %v12985_v32  ;;  %vm13307_vm4 = vcmp.eq.s32.totalorder %v13207_v9, %v12985_v32 }
 0x9dd   :  { %v3505_v3 = vsel %vm13305_vm10, %v12945_v31, %v3439_v46  ;;  %v2933_v7 = vsel %vm13306_vm0, %v13235_v1, %v2863_v59  ;;  %v2936_v56 = vsel %vm13307_vm4, %v13235_v1, %v2866_v34  ;;  %vm13308_vm10 = vcmp.eq.s32.totalorder %v13221_v8, %v8593_v57 }
 0x9de   :  { %v2865_v46 = vsel %vm13308_vm10, %v12956_v16, %v2795_v26  ;;  %vm13309_vm0 = vcmp.eq.s32.totalorder %v13243_v49, %v8593_v57  ;;  %vm13310_vm4 = vcmp.eq.s32.totalorder %v12845_v39, %v13014_v22  ;;  %vm13311_vm12 = vcmp.eq.s32.totalorder %v12854_v0, %v13014_v22 }
 0x9df   :  { %v3572_v59 = vsel %vm13309_vm0, %v12956_v16, %v3506_v38  ;;  %v3139_v34 = vsel %vm13310_vm4, %v13116_v43, %v3069_v58  ;;  %v3142_v15 = vsel %vm13311_vm12, %v13116_v43, %v3072_v10  ;;  %vm3591_vm14 = vcmp.eq.s32.totalorder %v13263_v11, %v12985_v32 }
 0x9e0   :  { %vm13312_vm4 = vcmp.eq.s32.totalorder %v13161_v17, %v8588_v27  ;;  %3179 = vrot.lane.b32.xlu1 %v3139_v34, %s6331_s30  ;;  %3185 = vrot.lane.b32.xlu0 %v3142_v15, %s6331_s30  ;;  %v3071_v0 = vsel %vm3019_vm13, %v13247_v33, %v3001_v13  ;;  %vm13313_vm12 = vcmp.eq.s32.totalorder %v13159_v35, %v13001_v47 }
 0x9e1   :  { %v3508_v39 = vsel %vm13312_vm4, %v12945_v31, %v3442_v51  ;;  %v3074_v26 = vsel %vm13313_vm12, %v13247_v33, %v3004_v5  ;;  %vm3093_vm5 = vcmp.eq.s32.totalorder %v13221_v8, %v13014_v22  ;;  %vm3788_vm4 = vcmp.eq.s32.totalorder %v13243_v49, %v13014_v22 }
 0x9e2   :  { %vm13315_vm10 = vcmp.eq.s32.totalorder %v10645_v41, %v13160_v25  ;;  %vm13316_vm13 = vcmp.eq.s32.totalorder %v13244_v45, %v8586_v63  ;;  %v3003_v10 = vsel %vm2951_vm3, %v13240_v20, %v2933_v7  ;;  %vm13317_vm12 = vcmp.eq.s32.totalorder %v13207_v9, %v12990_v62 }
 0x9e3   :  { %v3380_v38 = vsel %vm13315_vm10, %v13256_v18, %v13314_v12  ;;  %v3444_v58 = vsel %vm13316_vm13, %v8834_v6, %v10875_v28  ;;  %v3006_v2 = vsel %vm13317_vm12, %v13240_v20, %v2936_v56  ;;  %vm13318_vm13 = vcmp.eq.s32.totalorder %v13208_v44, %v8586_v63  ;;  %v13326_v56 = vld [vmem:[#allocation27_spill] sm:$0xff] }
 0x9e4   :  { %v3443_v28 = vsel %vm13318_vm13, %v8834_v6, %v10778_v36  ;;  %vm13319_vm3 = vcmp.eq.s32.totalorder %v13263_v11, %v8588_v27  ;;  %v2935_v13 = vsel %vm2883_vm2, %v13235_v1, %v2865_v46  ;;  %vm13320_vm12 = vcmp.eq.s32.totalorder %v13243_v49, %v12985_v32 }
 0x9e5   :  { %v3507_v51 = vsel %vm13319_vm3, %v12945_v31, %v3441_v40  ;;  %v3638_v5 = vsel %vm13320_vm12, %v13235_v1, %v3572_v59  ;;  %vm13321_vm3 = vcmp.eq.s32.totalorder %v13249_v30, %v8593_v57  ;;  %vm13322_vm2 = vcmp.eq.s32.totalorder %v13161_v17, %v8593_v57 }
 0x9e6   :  { %v3571_v36 = vsel %vm13321_vm3, %v12956_v16, %v3505_v3  ;;  %v3574_v48 = vsel %vm13322_vm2, %v12956_v16, %v3508_v39  ;;  %vm13323_vm12 = vcmp.eq.s32.totalorder %v12964_v23, %v13014_v22  ;;  %vm13324_vm10 = vcmp.eq.s32.totalorder %v13159_v35, %v13014_v22 }
 0x9e7   :  { %v3141_v40 = vsel %vm13323_vm12, %v13116_v43, %v3071_v0  ;;  %v3144_v7 = vsel %vm13324_vm10, %v13116_v43, %v3074_v26  ;;  %vm3593_vm13 = vcmp.eq.s32.totalorder %v13208_v44, %v12985_v32  ;;  %vm3596_vm3 = vcmp.eq.s32.totalorder %v10645_v41, %v12985_v32 }
 0x9e8   :  { %vm3529_vm2 = vcmp.eq.s32.totalorder %v13260_v52, %v8593_v57  ;;  %vm13325_vm12 = vcmp.eq.s32.totalorder %v13244_v45, %v8588_v27  ;;  %3183 = vrot.lane.b32.xlu1 %v3141_v40, %s6331_s30  ;;  %3189 = vrot.lane.b32.xlu0 %v3144_v7, %s6331_s30  ;;  %v3073_v35 = vsel %vm3021_vm6, %v13247_v33, %v3003_v10 }
 0x9e9   :  { %v3510_v23 = vsel %vm13325_vm12, %v12945_v31, %v3444_v58  ;;  %v3076_v3 = vsel %vm3024_vm9, %v13247_v33, %v3006_v2  ;;  %vm3787_vm10 = vcmp.eq.s32.totalorder %v13249_v30, %v13014_v22  ;;  %vm3790_vm12 = vcmp.eq.s32.totalorder %v13161_v17, %v13014_v22 }
 0x9ea   :  { %vm13327_vm0 = vcmp.eq.s32.totalorder %v10749_v19, %v13160_v25  ;;  %vm13328_vm6 = vcmp.eq.s32.totalorder %v10645_v41, %v8586_v63  ;;  %v3005_v34 = vsel %vm2953_vm11, %v13240_v20, %v2935_v13  ;;  %v3704_v15 = vsel %vm3656_vm8, %v13240_v20, %v3638_v5 }
 0x9eb   :  { %v3382_v46 = vsel %vm13327_vm0, %v13256_v18, %v13326_v56  ;;  %v3446_v59 = vsel %vm13328_vm6, %v8834_v6, %v3380_v38  ;;  %vm3723_vm9 = vcmp.eq.s32.totalorder %v13263_v11, %v13001_v47  ;;  %vm3726_vm0 = vcmp.eq.s32.totalorder %v13244_v45, %v13001_v47 }
 0x9ec   :  { %vm13329_vm6 = vcmp.eq.s32.totalorder %v13260_v52, %v8586_v63  ;;  %vm13330_vm11 = vcmp.eq.s32.totalorder %v13208_v44, %v8588_v27  ;;  %v3637_v39 = vsel %vm3589_vm15, %v13235_v1, %v3571_v36  ;;  %v3640_v0 = vsel %vm3592_vm1, %v13235_v1, %v3574_v48 }
 0x9ed   :  { %v3445_v25 = vsel %vm13329_vm6, %v8834_v6, %v10972_v29  ;;  %v3509_v18 = vsel %vm13330_vm11, %v12945_v31, %v3443_v28  ;;  %vm3659_vm8 = vcmp.eq.s32.totalorder %v13208_v44, %v12990_v62  ;;  %v3573_v29 = vsel %vm3525_vm7, %v12956_v16, %v3507_v51 }
 0x9ee   :  { %vm13331_vm15 = vcmp.eq.s32.totalorder %v13244_v45, %v8593_v57  ;;  %vm13332_vm1 = vcmp.eq.s32.totalorder %v13172_v4, %v13014_v22  ;;  %vm13333_vm11 = vcmp.eq.s32.totalorder %v13207_v9, %v13014_v22  ;;  %vm13337_vm6 = vcmp.eq.s32.totalorder %v10749_v19, %v8586_v63 }
 0x9ef   :  { %v3576_v26 = vsel %vm13331_vm15, %v12956_v16, %v3510_v23  ;;  %v3143_v12 = vsel %vm13332_vm1, %v13116_v43, %v3073_v35  ;;  %v3146_v38 = vsel %vm13333_vm11, %v13116_v43, %v3076_v3  ;;  %vm13334_vm15 = vcmp.eq.s32.totalorder %v10645_v41, %v8588_v27  ;;  %v13349_v35 = vld [vmem:[#allocation78_spill] sm:$0xff] }
 0x9f0   :  { %v3512_v58 = vsel %vm13334_vm15, %v12945_v31, %v3446_v59  ;;  %3187 = vrot.lane.b32.xlu1 %v3143_v12, %s6331_s30  ;;  %3193 = vrot.lane.b32.xlu0 %v3146_v38, %s6331_s30  ;;  %vm13335_vm1 = vcmp.eq.s32.totalorder %v13221_v8, %v13001_v47  ;;  %vm13336_vm11 = vcmp.eq.s32.totalorder %v13243_v49, %v13001_v47 }
 0x9f1   :  { %v3075_v4 = vsel %vm13335_vm1, %v13247_v33, %v3005_v34  ;;  %v3770_v9 = vsel %vm13336_vm11, %v13247_v33, %v3704_v15  ;;  %v3448_v10 = vsel %vm13337_vm6, %v8834_v6, %v3382_v46  ;;  %vm13338_vm1 = vcmp.eq.s32.totalorder %v13249_v30, %v12990_v62 }
 0x9f2   :  { %v3703_v2 = vsel %vm13338_vm1, %v13240_v20, %v3637_v39  ;;  %vm13339_vm11 = vcmp.eq.s32.totalorder %v13161_v17, %v12990_v62  ;;  %vm3725_vm7 = vcmp.eq.s32.totalorder %v13208_v44, %v13001_v47  ;;  %vm13340_vm6 = vcmp.eq.s32.totalorder %v13260_v52, %v8588_v27 }
 0x9f3   :  { %v3706_v28 = vsel %vm13339_vm11, %v13240_v20, %v3640_v0  ;;  %v3511_v63 = vsel %vm13340_vm6, %v12945_v31, %v3445_v25  ;;  %v3639_v6 = vsel %vm3591_vm14, %v13235_v1, %v3573_v29  ;;  %vm13341_vm1 = vcmp.eq.s32.totalorder %v13244_v45, %v12985_v32 }
 0x9f4   :  { %v3642_v51 = vsel %vm13341_vm1, %v13235_v1, %v3576_v26  ;;  %vm3661_vm11 = vcmp.eq.s32.totalorder %v13260_v52, %v12990_v62  ;;  %vm13342_vm6 = vcmp.eq.s32.totalorder %v13208_v44, %v8593_v57  ;;  %vm13343_vm14 = vcmp.eq.s32.totalorder %v10645_v41, %v8593_v57  ;;  %v13359_v26 = vld [vmem:[#allocation58_spill] sm:$0xff] }
 0x9f5   :  { %v3575_v13 = vsel %vm13342_vm6, %v12956_v16, %v3509_v18  ;;  %v3578_v5 = vsel %vm13343_vm14, %v12956_v16, %v3512_v58  ;;  %v3145_v36 = vsel %vm3093_vm5, %v13116_v43, %v3075_v4  ;;  %v3836_v48 = vsel %vm3788_vm4, %v13116_v43, %v3770_v9  ;;  %v13360_v58 = vld [vmem:[#allocation80_spill] sm:$0xff] }
 0x9f6   :  { %vm13344_vm1 = vcmp.eq.s32.totalorder %v10749_v19, %v8588_v27  ;;  %3191 = vrot.lane.b32.xlu1 %v3145_v36, %s6331_s30  ;;  %3869 = vrot.lane.b32.xlu0 %v3836_v48, %s6331_s30  ;;  %vm13345_vm6 = vcmp.eq.s32.totalorder %v13249_v30, %v13001_v47  ;;  %vm13346_vm5 = vcmp.eq.s32.totalorder %v13161_v17, %v13001_v47  ;;  %v13351_v17 = vld [vmem:[#allocation79_spill] sm:$0xff] }
 0x9f7   :  { %v3514_v40 = vsel %vm13344_vm1, %v12945_v31, %v3448_v10  ;;  %v3769_v8 = vsel %vm13345_vm6, %v13247_v33, %v3703_v2  ;;  %v3772_v49 = vsel %vm13346_vm5, %v13247_v33, %v3706_v28  ;;  %vm3791_vm4 = vcmp.eq.s32.totalorder %v13208_v44, %v13014_v22  ;;  %v13362_v10 = vld [vmem:[#allocation91_spill] sm:$0xff] }
 0x9f8   :  { %vm13347_vm14 = vcmp.eq.s32.totalorder %v13263_v11, %v12990_v62  ;;  %vm13348_vm1 = vcmp.eq.s32.totalorder %v13244_v45, %v12990_v62  ;;  %vm3794_vm6 = vcmp.eq.s32.totalorder %v10645_v41, %v13014_v22  ;;  %vm3727_vm15 = vcmp.eq.s32.totalorder %v13260_v52, %v13001_v47 }
 0x9f9   :  { %v3705_v27 = vsel %vm13347_vm14, %v13240_v20, %v3639_v6  ;;  %v3708_v31 = vsel %vm13348_vm1, %v13240_v20, %v3642_v51  ;;  %vm3730_vm5 = vcmp.eq.s32.totalorder %v10749_v19, %v13001_v47  ;;  %v3641_v7 = vsel %vm3593_vm13, %v13235_v1, %v3575_v13  ;;  %v13364_v51 = vld [vmem:[#allocation35_spill] sm:$0xff] }
 0x9fa   :  { %v3644_v23 = vsel %vm3596_vm3, %v13235_v1, %v3578_v5  ;;  %vm3597_vm14 = vcmp.eq.s32.totalorder %v13349_v35, %v12985_v32  ;;  %vm3600_vm1 = vcmp.eq.s32.totalorder %v13134_v53, %v12985_v32  ;;  %v3577_v3 = vsel %vm3529_vm2, %v12956_v16, %v3511_v63  ;;  %v13363_v63 = vld [vmem:[#allocation34_spill] sm:$0xff] }
 0x9fb   :  { %vm13350_vm13 = vcmp.eq.s32.totalorder %v10749_v19, %v8593_v57  ;;  %v3835_v46 = vsel %vm3787_vm10, %v13116_v43, %v3769_v8  ;;  %v3838_v59 = vsel %vm3790_vm12, %v13116_v43, %v3772_v49  ;;  %v3771_v57 = vsel %vm3723_vm9, %v13247_v33, %v3705_v27  ;;  %v13369_v8 = vld [vmem:[#allocation44_spill] sm:$0xff] }
 0x9fc   :  { %v3580_v56 = vsel %vm13350_vm13, %v12956_v16, %v3514_v40  ;;  %3867 = vrot.lane.b32.xlu1 %v3835_v46, %s6331_s30  ;;  %3873 = vrot.lane.b32.xlu0 %v3838_v59, %s6331_s30  ;;  %v3774_v16 = vsel %vm3726_vm0, %v13247_v33, %v3708_v31  ;;  %vm3599_vm2 = vcmp.eq.s32.totalorder %v13351_v17, %v12985_v32  ;;  %v13370_v27 = vld [vmem:[#allocation120_spill] sm:$0xff] }
 0x9fd   :  { %v3707_v30 = vsel %vm3659_vm8, %v13240_v20, %v3641_v7  ;;  %vm13352_vm10 = vcmp.eq.s32.totalorder %v10645_v41, %v12990_v62  ;;  %vm3603_vm9 = vcmp.eq.s32.totalorder %v13144_v37, %v12985_v32  ;;  %vm13353_vm0 = vcmp.eq.s32.totalorder %v13260_v52, %v12985_v32  ;;  %v13371_v7 = vld [vmem:[#allocation88_spill] sm:$0xff] }
 0x9fe   :  { %v3710_v34 = vsel %vm13352_vm10, %v13240_v20, %v3644_v23  ;;  %v3643_v15 = vsel %vm13353_vm0, %v13235_v1, %v3577_v3  ;;  %vm13354_vm8 = vcmp.eq.s32.totalorder %v10749_v19, %v12985_v32  ;;  %vm3663_vm13 = vcmp.eq.s32.totalorder %v13349_v35, %v12990_v62 }
 0x9ff   :  { %v3646_v25 = vsel %vm13354_vm8, %v13235_v1, %v3580_v56  ;;  %vm3666_vm10 = vcmp.eq.s32.totalorder %v13134_v53, %v12990_v62  ;;  %vm13355_vm12 = vcmp.eq.s32.totalorder %v13263_v11, %v13014_v22  ;;  %vm13356_vm0 = vcmp.eq.s32.totalorder %v13244_v45, %v13014_v22  ;;  %v13372_v56 = vld [vmem:[#allocation82_spill] sm:$0xff] }
 0xa00   :  { %v3837_v18 = vsel %vm13355_vm12, %v13116_v43, %v3771_v57  ;;  %v3840_v39 = vsel %vm13356_vm0, %v13116_v43, %v3774_v16  ;;  %v3773_v11 = vsel %vm3725_vm7, %v13247_v33, %v3707_v30  ;;  %vm13357_vm12 = vcmp.eq.s32.totalorder %v10645_v41, %v13001_v47  ;;  %v13373_v57 = vld [vmem:[#allocation100_spill] sm:$0xff]  ;;  %v13374_v30 = vld [vmem:[#allocation45_spill] sm:$0xff] }
 0xa01   :  { %3871 = vrot.lane.b32.xlu1 %v3837_v18, %s6331_s30  ;;  %3877 = vrot.lane.b32.xlu0 %v3840_v39, %s6331_s30  ;;  %v3776_v45 = vsel %vm13357_vm12, %v13247_v33, %v3710_v34  ;;  %vm3732_vm0 = vcmp.eq.s32.totalorder %v13134_v53, %v13001_v47  ;;  %v3709_v0 = vsel %vm3661_vm11, %v13240_v20, %v3643_v15 }
 0xa02   :  { %vm13358_vm8 = vcmp.eq.s32.totalorder %v10749_v19, %v12990_v62  ;;  %vm3795_vm7 = vcmp.eq.s32.totalorder %v13349_v35, %v13014_v22  ;;  %vm3798_vm3 = vcmp.eq.s32.totalorder %v13134_v53, %v13014_v22  ;;  %vm3731_vm12 = vcmp.eq.s32.totalorder %v13351_v17, %v13001_v47 }
 0xa03   :  { %v3712_v29 = vsel %vm13358_vm8, %v13240_v20, %v3646_v25  ;;  %v3645_v12 = vsel %vm3597_vm14, %v13235_v1, %v13359_v26  ;;  %v3648_v38 = vsel %vm3600_vm1, %v13235_v1, %v10264_v54  ;;  %vm3669_vm11 = vcmp.eq.s32.totalorder %v13144_v37, %v12990_v62  ;;  %v13361_v54 = vld [vmem:[#allocation73_spill] sm:$0xff] }
 0xa04   :  { %vm3601_vm8 = vcmp.eq.s32.totalorder %v13360_v58, %v12985_v32  ;;  %v3839_v4 = vsel %vm3791_vm4, %v13116_v43, %v3773_v11  ;;  %v3842_v9 = vsel %vm3794_vm6, %v13116_v43, %v3776_v45  ;;  %vm4293_vm14 = vcmp.eq.s32.totalorder %v8649_v55, %v12985_v32  ;;  %v13379_v11 = vld [vmem:[#allocation119_spill] sm:$0xff] }
 0xa05   :  { %vm3602_vm1 = vcmp.eq.s32.totalorder %v13361_v54, %v12985_v32  ;;  %3875 = vrot.lane.b32.xlu1 %v3839_v4, %s6331_s30  ;;  %3881 = vrot.lane.b32.xlu0 %v3842_v9, %s6331_s30  ;;  %v3775_v44 = vsel %vm3727_vm15, %v13247_v33, %v3709_v0  ;;  %v3778_v41 = vsel %vm3730_vm5, %v13247_v33, %v3712_v29  ;;  %v13380_v29 = vld [vmem:[#allocation83_spill] sm:$0xff]  ;;  %v13382_v9 = vld [vmem:[#allocation121_spill] sm:$0xff] }
 0xa06   :  { %v3711_v2 = vsel %vm3663_vm13, %v13240_v20, %v3645_v12  ;;  %v3714_v28 = vsel %vm3666_vm10, %v13240_v20, %v3648_v38  ;;  %vm3735_vm15 = vcmp.eq.s32.totalorder %v13144_v37, %v13001_v47  ;;  %vm3667_vm5 = vcmp.eq.s32.totalorder %v13360_v58, %v12990_v62 }
 0xa07   :  { %v3647_v6 = vsel %vm3599_vm2, %v13235_v1, %v13363_v63  ;;  %v3651_v13 = vsel %vm3603_vm9, %v13235_v1, %v13364_v51  ;;  %vm4359_vm13 = vcmp.eq.s32.totalorder %v8649_v55, %v12990_v62  ;;  %vm13365_vm4 = vcmp.eq.s32.totalorder %v13260_v52, %v13014_v22 }
 0xa08   :  { %v3841_v5 = vsel %vm13365_vm4, %v13116_v43, %v3775_v44  ;;  %vm13366_vm2 = vcmp.eq.s32.totalorder %v10749_v19, %v13014_v22  ;;  %vm3801_vm6 = vcmp.eq.s32.totalorder %v13144_v37, %v13014_v22  ;;  %vm13367_vm10 = vcmp.eq.s32.totalorder %v13349_v35, %v13001_v47 }
 0xa09   :  { %v3844_v36 = vsel %vm13366_vm2, %v13116_v43, %v3778_v41  ;;  %3879 = vrot.lane.b32.xlu1 %v3841_v5, %s6331_s30  ;;  %v3777_v52 = vsel %vm13367_vm10, %v13247_v33, %v3711_v2  ;;  %v3780_v19 = vsel %vm3732_vm0, %v13247_v33, %v3714_v28  ;;  %vm4425_vm4 = vcmp.eq.s32.totalorder %v8649_v55, %v13001_v47  ;;  %v13383_v41 = vld [vmem:[#allocation36_spill] sm:$0xff] }
 0xa0a   :  { %3885 = vrot.lane.b32.xlu0 %v3844_v36, %s6331_s30  ;;  %vm13368_vm2 = vcmp.eq.s32.totalorder %v13351_v17, %v12990_v62  ;;  %v3717_v40 = vsel %vm3669_vm11, %v13240_v20, %v3651_v13  ;;  %vm3799_vm10 = vcmp.eq.s32.totalorder %v13360_v58, %v13014_v22  ;;  %vm3734_vm9 = vcmp.eq.s32.totalorder %v13361_v54, %v13001_v47  ;;  %v13387_v13 = vld [vmem:[#allocation122_spill] sm:$0xff]  ;;  %v13388_v36 = vld [vmem:[#allocation16_spill] sm:$0xff] }
 0xa0b   :  { %v3713_v48 = vsel %vm13368_vm2, %v13240_v20, %v3647_v6  ;;  %v3649_v49 = vsel %vm3601_vm8, %v13235_v1, %v13369_v8  ;;  %v4341_v31 = vsel %vm4293_vm14, %v13235_v1, %v13370_v27  ;;  %vm4491_vm0 = vcmp.eq.s32.totalorder %v8649_v55, %v13014_v22  ;;  %v13390_v8 = vld [vmem:[#allocation85_spill] sm:$0xff]  ;;  %v13391_v27 = vld [vmem:[#allocation86_spill] sm:$0xff] }
 0xa0c   :  { %vm3604_vm11 = vcmp.eq.s32.totalorder %v13371_v7, %v12985_v32  ;;  %v3843_v23 = vsel %vm3795_vm7, %v13116_v43, %v3777_v52  ;;  %v3846_v3 = vsel %vm3798_vm3, %v13116_v43, %v3780_v19  ;;  %vm4297_vm8 = vcmp.eq.s32.totalorder %v8673_v24, %v12985_v32  ;;  %v13389_v19 = vld [vmem:[#allocation96_spill] sm:$0xff] }
 0xa0d   :  { %vm4294_vm14 = vcmp.eq.s32.totalorder %v13372_v56, %v12985_v32  ;;  %3883 = vrot.lane.b32.xlu1 %v3843_v23, %s6331_s30  ;;  %v3779_v35 = vsel %vm3731_vm12, %v13247_v33, %v3713_v48  ;;  %v3783_v53 = vsel %vm3735_vm15, %v13247_v33, %v3717_v40  ;;  %vm4361_vm7 = vcmp.eq.s32.totalorder %v13362_v10, %v12990_v62  ;;  %v13392_v23 = vld [vmem:[#allocation123_spill] sm:$0xff] }
 0xa0e   :  { %3889 = vrot.lane.b32.xlu0 %v3846_v3, %s6331_s30  ;;  %v3715_v46 = vsel %vm3667_vm5, %v13240_v20, %v3649_v49  ;;  %v4407_v59 = vsel %vm4359_vm13, %v13240_v20, %v4341_v31  ;;  %vm3670_vm12 = vcmp.eq.s32.totalorder %v13371_v7, %v12990_v62  ;;  %vm4363_vm15 = vcmp.eq.s32.totalorder %v8673_v24, %v12990_v62 }
 0xa0f   :  { %v3650_v16 = vsel %vm3602_vm1, %v13235_v1, %v13373_v57  ;;  %vm13375_vm5 = vcmp.eq.s32.totalorder %v13362_v10, %v12985_v32  ;;  %vm4427_vm13 = vcmp.eq.s32.totalorder %v13362_v10, %v13001_v47  ;;  %vm13376_vm3 = vcmp.eq.s32.totalorder %v13351_v17, %v13014_v22 }
 0xa10   :  { %v4343_v34 = vsel %vm13375_vm5, %v13235_v1, %v13374_v30  ;;  %v3845_v15 = vsel %vm13376_vm3, %v13116_v43, %v3779_v35  ;;  %v3849_v25 = vsel %vm3801_vm6, %v13116_v43, %v3783_v53  ;;  %vm3736_vm1 = vcmp.eq.s32.totalorder %v13371_v7, %v13001_v47  ;;  %v13393_v35 = vld [vmem:[#allocation118_spill] sm:$0xff]  ;;  %v13397_v30 = vld [vmem:[#allocation124_spill] sm:$0xff] }
 0xa11   :  { %3887 = vrot.lane.b32.xlu1 %v3845_v15, %s6331_s30  ;;  %vm13377_vm2 = vcmp.eq.s32.totalorder %v13360_v58, %v13001_v47  ;;  %v4473_v37 = vsel %vm4425_vm4, %v13247_v33, %v4407_v59  ;;  %vm4493_vm6 = vcmp.eq.s32.totalorder %v13362_v10, %v13014_v22  ;;  %vm13378_vm3 = vcmp.eq.s32.totalorder %v13361_v54, %v12990_v62 }
 0xa12   :  { %3895 = vrot.lane.b32.xlu0 %v3849_v25, %s6331_s30  ;;  %v3781_v17 = vsel %vm13377_vm2, %v13247_v33, %v3715_v46  ;;  %v3716_v18 = vsel %vm13378_vm3, %v13240_v20, %v3650_v16  ;;  %v4409_v39 = vsel %vm4361_vm7, %v13240_v20, %v4343_v34  ;;  %vm3802_vm2 = vcmp.eq.s32.totalorder %v13371_v7, %v13014_v22 }
 0xa13   :  { %vm4495_vm5 = vcmp.eq.s32.totalorder %v8673_v24, %v13014_v22  ;;  %vm4426_vm4 = vcmp.eq.s32.totalorder %v13372_v56, %v13001_v47  ;;  %v3652_v45 = vsel %vm3604_vm11, %v13235_v1, %v13379_v11  ;;  %v4345_v0 = vsel %vm4297_vm8, %v13235_v1, %v10343_v21  ;;  %v13381_v21 = vld [vmem:[#allocation84_spill] sm:$0xff] }
 0xa14   :  { %vm4299_vm7 = vcmp.eq.s32.totalorder %v8676_v60, %v12985_v32  ;;  %vm4296_vm3 = vcmp.eq.s32.totalorder %v13380_v29, %v12985_v32  ;;  %v3847_v26 = vsel %vm3799_vm10, %v13116_v43, %v3781_v17  ;;  %v4539_v12 = vsel %vm4491_vm0, %v13116_v43, %v4473_v37  ;;  %v13398_v37 = vld [vmem:[#allocation99_spill] sm:$0xff] }
 0xa15   :  { %vm4301_vm11 = vcmp.eq.s32.totalorder %v8695_v50, %v12985_v32  ;;  %vm4298_vm8 = vcmp.eq.s32.totalorder %v13381_v21, %v12985_v32  ;;  %3891 = vrot.lane.b32.xlu1 %v3847_v26, %s6331_s30  ;;  %v3782_v38 = vsel %vm3734_vm9, %v13247_v33, %v3716_v18  ;;  %v4475_v55 = vsel %vm4427_vm13, %v13247_v33, %v4409_v39  ;;  %v13402_v26 = vld [vmem:[#allocation54_spill] sm:$0xff] }
 0xa16   :  { %4571 = vrot.lane.b32.xlu0 %v4539_v12, %s6331_s30  ;;  %vm4365_vm0 = vcmp.eq.s32.totalorder %v8676_v60, %v12990_v62  ;;  %v3718_v58 = vsel %vm3670_vm12, %v13240_v20, %v3652_v45  ;;  %v4411_v4 = vsel %vm4363_vm15, %v13240_v20, %v4345_v0  ;;  %vm4362_vm9 = vcmp.eq.s32.totalorder %v13380_v29, %v12990_v62  ;;  %v13400_v45 = vld [vmem:[#allocation89_spill] sm:$0xff]  ;;  %v13401_v0 = vld [vmem:[#allocation12_spill] sm:$0xff] }
 0xa17   :  { %vm4367_vm13 = vcmp.eq.s32.totalorder %v8695_v50, %v12990_v62  ;;  %v4342_v44 = vsel %vm4294_vm14, %v13235_v1, %v13382_v9  ;;  %v4347_v2 = vsel %vm4299_vm7, %v13235_v1, %v13383_v41  ;;  %vm4431_vm12 = vcmp.eq.s32.totalorder %v8676_v60, %v13001_v47 }
 0xa18   :  { %vm4428_vm15 = vcmp.eq.s32.totalorder %v13380_v29, %v13001_v47  ;;  %vm13384_vm10 = vcmp.eq.s32.totalorder %v13361_v54, %v13014_v22  ;;  %v4541_v63 = vsel %vm4493_vm6, %v13116_v43, %v4475_v55  ;;  %v3784_v54 = vsel %vm3736_vm1, %v13247_v33, %v3718_v58 }
 0xa19   :  { %v3848_v28 = vsel %vm13384_vm10, %v13116_v43, %v3782_v38  ;;  %vm13385_vm10 = vcmp.eq.s32.totalorder %v8673_v24, %v13001_v47  ;;  %vm4497_vm6 = vcmp.eq.s32.totalorder %v8676_v60, %v13014_v22  ;;  %vm13386_vm7 = vcmp.eq.s32.totalorder %v13372_v56, %v12990_v62 }
 0xa1a   :  { %3893 = vrot.lane.b32.xlu1 %v3848_v28, %s6331_s30  ;;  %4575 = vrot.lane.b32.xlu0 %v4541_v63, %s6331_s30  ;;  %v4477_v10 = vsel %vm13385_vm10, %v13247_v33, %v4411_v4  ;;  %v4408_v6 = vsel %vm13386_vm7, %v13240_v20, %v4342_v44  ;;  %v4413_v51 = vsel %vm4365_vm0, %v13240_v20, %v4347_v2  ;;  %v13404_v44 = vld [vmem:[#allocation18_spill] sm:$0xff]  ;;  %v13405_v2 = vld [vmem:[#allocation113_spill] sm:$0xff] }
 0xa1b   :  { %vm4494_vm1 = vcmp.eq.s32.totalorder %v13380_v29, %v13014_v22  ;;  %vm4499_vm14 = vcmp.eq.s32.totalorder %v8695_v50, %v13014_v22  ;;  %v4344_v5 = vsel %vm4296_vm3, %v13235_v1, %v13387_v13  ;;  %v4349_v52 = vsel %vm4301_vm11, %v13235_v1, %v13388_v36  ;;  %v13408_v36 = vld [vmem:[#allocation103_spill] sm:$0xff] }
 0xa1c   :  { %vm4430_vm0 = vcmp.eq.s32.totalorder %v13381_v21, %v13001_v47  ;;  %vm4303_vm7 = vcmp.eq.s32.totalorder %v13389_v19, %v12985_v32  ;;  %v3850_v48 = vsel %vm3802_vm2, %v13116_v43, %v3784_v54  ;;  %v4543_v40 = vsel %vm4495_vm5, %v13116_v43, %v4477_v10  ;;  %v13406_v10 = vld [vmem:[#allocation102_spill] sm:$0xff] }
 0xa1d   :  { %vm4300_vm3 = vcmp.eq.s32.totalorder %v13390_v8, %v12985_v32  ;;  %vm4305_vm11 = vcmp.eq.s32.totalorder %v13185_v14, %v12985_v32  ;;  %v4474_v49 = vsel %vm4426_vm4, %v13247_v33, %v4408_v6  ;;  %v4479_v24 = vsel %vm4431_vm12, %v13247_v33, %v4413_v51  ;;  %v13407_v51 = vld [vmem:[#allocation90_spill] sm:$0xff] }
 0xa1e   :  { %3897 = vrot.lane.b32.xlu1 %v3850_v48, %s6331_s30  ;;  %4579 = vrot.lane.b32.xlu0 %v4543_v40, %s6331_s30  ;;  %vm4302_vm5 = vcmp.eq.s32.totalorder %v13391_v27, %v12985_v32  ;;  %v4410_v31 = vsel %vm4362_vm9, %v13240_v20, %v4344_v5  ;;  %v4415_v7 = vsel %vm4367_vm13, %v13240_v20, %v4349_v52  ;;  %v13409_v52 = vld [vmem:[#allocation13_spill] sm:$0xff] }
 0xa1f   :  { %vm4496_vm2 = vcmp.eq.s32.totalorder %v13381_v21, %v13014_v22  ;;  %vm4369_vm4 = vcmp.eq.s32.totalorder %v13389_v19, %v12990_v62  ;;  %v4346_v3 = vsel %vm4298_vm8, %v13235_v1, %v13392_v23  ;;  %v4351_v53 = vsel %vm4303_vm7, %v13235_v1, %v13393_v35  ;;  %v13410_v48 = vld [vmem:[#allocation125_spill] sm:$0xff]  ;;  %v13411_v23 = vld [vmem:[#allocation63_spill] sm:$0xff]  ;;  %v13412_v35 = vld [vmem:[#allocation72_spill] sm:$0xff] }
 0xa20   :  { %vm4366_vm9 = vcmp.eq.s32.totalorder %v13390_v8, %v12990_v62  ;;  %vm4371_vm13 = vcmp.eq.s32.totalorder %v13185_v14, %v12990_v62  ;;  %vm13394_vm12 = vcmp.eq.s32.totalorder %v13372_v56, %v13014_v22  ;;  %v4545_v59 = vsel %vm4497_vm6, %v13116_v43, %v4479_v24 }
 0xa21   :  { %v4540_v46 = vsel %vm13394_vm12, %v13116_v43, %v4474_v49  ;;  %vm4435_vm8 = vcmp.eq.s32.totalorder %v13389_v19, %v13001_v47  ;;  %v4476_v56 = vsel %vm4428_vm15, %v13247_v33, %v4410_v31  ;;  %vm13395_vm7 = vcmp.eq.s32.totalorder %v8695_v50, %v13001_v47 }
 0xa22   :  { %4573 = vrot.lane.b32.xlu1 %v4540_v46, %s6331_s30  ;;  %4583 = vrot.lane.b32.xlu0 %v4545_v59, %s6331_s30  ;;  %v4481_v60 = vsel %vm13395_vm7, %v13247_v33, %v4415_v7  ;;  %vm4437_vm6 = vcmp.eq.s32.totalorder %v13185_v14, %v13001_v47  ;;  %vm13396_vm12 = vcmp.eq.s32.totalorder %v13381_v21, %v12990_v62 }
 0xa23   :  { %v4412_v57 = vsel %vm13396_vm12, %v13240_v20, %v4346_v3  ;;  %v4417_v16 = vsel %vm4369_vm4, %v13240_v20, %v4351_v53  ;;  %vm4501_vm10 = vcmp.eq.s32.totalorder %v13389_v19, %v13014_v22  ;;  %vm4498_vm15 = vcmp.eq.s32.totalorder %v13390_v8, %v13014_v22 }
 0xa24   :  { %v4348_v34 = vsel %vm4300_vm3, %v13235_v1, %v13397_v30  ;;  %v4353_v15 = vsel %vm4305_vm11, %v13235_v1, %v10415_v42  ;;  %vm4503_vm4 = vcmp.eq.s32.totalorder %v13185_v14, %v13014_v22  ;;  %vm4368_vm7 = vcmp.eq.s32.totalorder %v13391_v27, %v12990_v62  ;;  %v13399_v42 = vld [vmem:[#allocation87_spill] sm:$0xff] }
 0xa25   :  { %v4542_v25 = vsel %vm4494_vm1, %v13116_v43, %v4476_v56  ;;  %v4547_v17 = vsel %vm4499_vm14, %v13116_v43, %v4481_v60  ;;  %vm4307_vm3 = vcmp.eq.s32.totalorder %v13398_v37, %v12985_v32  ;;  %vm4304_vm11 = vcmp.eq.s32.totalorder %v13399_v42, %v12985_v32  ;;  %v13413_v56 = vld [vmem:[#allocation92_spill] sm:$0xff]  ;;  %v13414_v60 = vld [vmem:[#allocation105_spill] sm:$0xff] }
 0xa26   :  { %4577 = vrot.lane.b32.xlu1 %v4542_v25, %s6331_s30  ;;  %4587 = vrot.lane.b32.xlu0 %v4547_v17, %s6331_s30  ;;  %v4478_v18 = vsel %vm4430_vm0, %v13247_v33, %v4412_v57  ;;  %v4483_v50 = vsel %vm4435_vm8, %v13247_v33, %v4417_v16  ;;  %vm4931_vm14 = vcmp.eq.s32.totalorder %v13062_v61, %v12985_v32  ;;  %v13417_v17 = vld [vmem:[#allocation15_spill] sm:$0xff] }
 0xa27   :  { %v4414_v39 = vsel %vm4366_vm9, %v13240_v20, %v4348_v34  ;;  %v4419_v11 = vsel %vm4371_vm13, %v13240_v20, %v4353_v15  ;;  %vm4434_vm1 = vcmp.eq.s32.totalorder %v13391_v27, %v13001_v47  ;;  %vm4306_vm0 = vcmp.eq.s32.totalorder %v13400_v45, %v12985_v32  ;;  %v13415_v34 = vld [vmem:[#allocation93_spill] sm:$0xff]  ;;  %v13416_v15 = vld [vmem:[#allocation11_spill] sm:$0xff] }
 0xa28   :  { %v4350_v29 = vsel %vm4302_vm5, %v13235_v1, %v13401_v0  ;;  %v4355_v12 = vsel %vm4307_vm3, %v13235_v1, %v13402_v26  ;;  %vm4373_vm9 = vcmp.eq.s32.totalorder %v13398_v37, %v12990_v62  ;;  %vm4370_vm13 = vcmp.eq.s32.totalorder %v13399_v42, %v12990_v62 }
 0xa29   :  { %v4544_v38 = vsel %vm4496_vm2, %v13116_v43, %v4478_v18  ;;  %v4549_v55 = vsel %vm4501_vm10, %v13116_v43, %v4483_v50  ;;  %vm4500_vm5 = vcmp.eq.s32.totalorder %v13391_v27, %v13014_v22  ;;  %vm4985_vm8 = vcmp.eq.s32.totalorder %v13062_v61, %v12990_v62  ;;  %v13418_v50 = vld [vmem:[#allocation106_spill] sm:$0xff] }
 0xa2a   :  { %4581 = vrot.lane.b32.xlu1 %v4544_v38, %s6331_s30  ;;  %4591 = vrot.lane.b32.xlu0 %v4549_v55, %s6331_s30  ;;  %vm13403_vm12 = vcmp.eq.s32.totalorder %v13390_v8, %v13001_v47  ;;  %v4485_v58 = vsel %vm4437_vm6, %v13247_v33, %v4419_v11  ;;  %vm4439_vm2 = vcmp.eq.s32.totalorder %v13398_v37, %v13001_v47 }
 0xa2b   :  { %v4480_v21 = vsel %vm13403_vm12, %v13247_v33, %v4414_v39  ;;  %v4416_v4 = vsel %vm4368_vm7, %v13240_v20, %v4350_v29  ;;  %v4421_v9 = vsel %vm4373_vm9, %v13240_v20, %v4355_v12  ;;  %vm4436_vm10 = vcmp.eq.s32.totalorder %v13399_v42, %v13001_v47  ;;  %v13419_v29 = vld [vmem:[#allocation14_spill] sm:$0xff]  ;;  %v13420_v12 = vld [vmem:[#allocation81_spill] sm:$0xff] }
 0xa2c   :  { %vm5039_vm3 = vcmp.eq.s32.totalorder %v13062_v61, %v13001_v47  ;;  %vm4505_vm12 = vcmp.eq.s32.totalorder %v13398_v37, %v13014_v22  ;;  %v4352_v41 = vsel %vm4304_vm11, %v13235_v1, %v13404_v44  ;;  %vm4502_vm6 = vcmp.eq.s32.totalorder %v13399_v42, %v13014_v22 }
 0xa2d   :  { %v4970_v28 = vsel %vm4931_vm14, %v13235_v1, %v13405_v2  ;;  %v4546_v63 = vsel %vm4498_vm15, %v13116_v43, %v4480_v21  ;;  %v4551_v54 = vsel %vm4503_vm4, %v13116_v43, %v4485_v58  ;;  %vm5093_vm7 = vcmp.eq.s32.totalorder %v13062_v61, %v13014_v22  ;;  %v13421_v58 = vld [vmem:[#allocation94_spill] sm:$0xff] }
 0xa2e   :  { %vm4933_vm11 = vcmp.eq.s32.totalorder %v13406_v10, %v12985_v32  ;;  %4585 = vrot.lane.b32.xlu1 %v4546_v63, %s6331_s30  ;;  %4595 = vrot.lane.b32.xlu0 %v4551_v54, %s6331_s30  ;;  %v4482_v6 = vsel %vm4434_vm1, %v13247_v33, %v4416_v4  ;;  %v4487_v14 = vsel %vm4439_vm2, %v13247_v33, %v4421_v9  ;;  %v13422_v4 = vld [vmem:[#allocation107_spill] sm:$0xff]  ;;  %v13424_v54 = vld [vmem:[#allocation17_spill] sm:$0xff] }
 0xa2f   :  { %vm4308_vm15 = vcmp.eq.s32.totalorder %v13407_v51, %v12985_v32  ;;  %v4418_v13 = vsel %vm4370_vm13, %v13240_v20, %v4352_v41  ;;  %v5024_v5 = vsel %vm4985_vm8, %v13240_v20, %v4970_v28  ;;  %vm4372_vm4 = vcmp.eq.s32.totalorder %v13400_v45, %v12990_v62  ;;  %v13423_v28 = vld [vmem:[#allocation28_spill] sm:$0xff] }
 0xa30   :  { %vm4935_vm14 = vcmp.eq.s32.totalorder %v13408_v36, %v12985_v32  ;;  %v4354_v19 = vsel %vm4306_vm0, %v13235_v1, %v13409_v52  ;;  %v4972_v40 = vsel %vm4933_vm11, %v13235_v1, %v13410_v48  ;;  %vm4987_vm1 = vcmp.eq.s32.totalorder %v13406_v10, %v12990_v62 }
 0xa31   :  { %vm4374_vm9 = vcmp.eq.s32.totalorder %v13407_v51, %v12990_v62  ;;  %v4548_v8 = vsel %vm4500_vm5, %v13116_v43, %v4482_v6  ;;  %v4553_v49 = vsel %vm4505_vm12, %v13116_v43, %v4487_v14  ;;  %vm4438_vm0 = vcmp.eq.s32.totalorder %v13400_v45, %v13001_v47 }
 0xa32   :  { %vm4989_vm13 = vcmp.eq.s32.totalorder %v13408_v36, %v12990_v62  ;;  %4589 = vrot.lane.b32.xlu1 %v4548_v8, %s6331_s30  ;;  %4599 = vrot.lane.b32.xlu0 %v4553_v49, %s6331_s30  ;;  %v4484_v24 = vsel %vm4436_vm10, %v13247_v33, %v4418_v13  ;;  %v5078_v27 = vsel %vm5039_vm3, %v13247_v33, %v5024_v5  ;;  %v3166_v13 = vpop.permute.xlu0 %3165  ;;  %v13426_v5 = vld [vmem:[#allocation98_spill] sm:$0xff] }
 0xa33   :  { %vm5041_vm5 = vcmp.eq.s32.totalorder %v13406_v10, %v13001_v47  ;;  %v4420_v31 = vsel %vm4372_vm4, %v13240_v20, %v4354_v19  ;;  %v5026_v7 = vsel %vm4987_vm1, %v13240_v20, %v4972_v40  ;;  %vm4440_vm8 = vcmp.eq.s32.totalorder %v13407_v51, %v13001_v47  ;;  %v13428_v40 = vld [vmem:[#allocation29_spill] sm:$0xff]  ;;  %v13429_v49 = vld [vmem:[#allocation30_spill] sm:$0xff] }
 0xa34   :  { %vm5043_vm2 = vcmp.eq.s32.totalorder %v13408_v36, %v13001_v47  ;;  %vm4504_vm10 = vcmp.eq.s32.totalorder %v13400_v45, %v13014_v22  ;;  %vm5095_vm12 = vcmp.eq.s32.totalorder %v13406_v10, %v13014_v22  ;;  %v4356_v3 = vsel %vm4308_vm15, %v13235_v1, %v13411_v23 }
 0xa35   :  { %v4974_v53 = vsel %vm4935_vm14, %v13235_v1, %v13412_v35  ;;  %v4550_v46 = vsel %vm4502_vm6, %v13116_v43, %v4484_v24  ;;  %v5132_v59 = vsel %vm5093_vm7, %v13116_v43, %v5078_v27  ;;  %vm4932_vm3 = vcmp.eq.s32.totalorder %v13413_v56, %v12985_v32 }
 0xa36   :  { %vm4937_vm11 = vcmp.eq.s32.totalorder %v13414_v60, %v12985_v32  ;;  %4593 = vrot.lane.b32.xlu1 %v4550_v46, %s6331_s30  ;;  %5158 = vrot.lane.b32.xlu0 %v5132_v59, %s6331_s30  ;;  %v4486_v57 = vsel %vm4438_vm0, %v13247_v33, %v4420_v31  ;;  %v5080_v61 = vsel %vm5041_vm5, %v13247_v33, %v5026_v7  ;;  %v13430_v7 = vld [vmem:[#allocation104_spill] sm:$0xff]  ;;  %v13431_v46 = vld [vmem:[#allocation43_spill] sm:$0xff] }
 0xa37   :  { %vm4506_vm6 = vcmp.eq.s32.totalorder %v13407_v51, %v13014_v22  ;;  %v4422_v16 = vsel %vm4374_vm9, %v13240_v20, %v4356_v3  ;;  %v5028_v30 = vsel %vm4989_vm13, %v13240_v20, %v4974_v53  ;;  %vm5097_vm7 = vcmp.eq.s32.totalorder %v13408_v36, %v13014_v22  ;;  %v13425_v51 = vld [vmem:[#allocation95_spill] sm:$0xff] }
 0xa38   :  { %vm4934_vm15 = vcmp.eq.s32.totalorder %v13415_v34, %v12985_v32  ;;  %v4971_v25 = vsel %vm4932_vm3, %v13235_v1, %v13416_v15  ;;  %vm4986_vm4 = vcmp.eq.s32.totalorder %v13413_v56, %v12990_v62  ;;  %v4976_v37 = vsel %vm4937_vm11, %v13235_v1, %v13417_v17 }
 0xa39   :  { %vm4991_vm14 = vcmp.eq.s32.totalorder %v13414_v60, %v12990_v62  ;;  %v4552_v42 = vsel %vm4504_vm10, %v13116_v43, %v4486_v57  ;;  %v5134_v18 = vsel %vm5095_vm12, %v13116_v43, %v5080_v61  ;;  %vm4988_vm1 = vcmp.eq.s32.totalorder %v13415_v34, %v12990_v62  ;;  %v13432_v57 = vld [vmem:[#allocation109_spill] sm:$0xff] }
 0xa3a   :  { %vm4939_vm9 = vcmp.eq.s32.totalorder %v13418_v50, %v12985_v32  ;;  %4597 = vrot.lane.b32.xlu1 %v4552_v42, %s6331_s30  ;;  %5162 = vrot.lane.b32.xlu0 %v5134_v18, %s6331_s30  ;;  %v4488_v39 = vsel %vm4440_vm8, %v13247_v33, %v4422_v16  ;;  %v5082_v11 = vsel %vm5043_vm2, %v13247_v33, %v5028_v30 }
 0xa3b   :  { %vm5040_vm0 = vcmp.eq.s32.totalorder %v13413_v56, %v13001_v47  ;;  %v5025_v45 = vsel %vm4986_vm4, %v13240_v20, %v4971_v25  ;;  %v5030_v0 = vsel %vm4991_vm14, %v13240_v20, %v4976_v37  ;;  %vm5045_vm13 = vcmp.eq.s32.totalorder %v13414_v60, %v13001_v47 }
 0xa3c   :  { %vm5042_vm5 = vcmp.eq.s32.totalorder %v13415_v34, %v13001_v47  ;;  %vm5094_vm8 = vcmp.eq.s32.totalorder %v13413_v56, %v13014_v22  ;;  %v4973_v26 = vsel %vm4934_vm15, %v13235_v1, %v13419_v29  ;;  %v4978_v38 = vsel %vm4939_vm9, %v13235_v1, %v13420_v12 }
 0xa3d   :  { %vm4993_vm2 = vcmp.eq.s32.totalorder %v13418_v50, %v12990_v62  ;;  %v4554_v55 = vsel %vm4506_vm6, %v13116_v43, %v4488_v39  ;;  %v5136_v21 = vsel %vm5097_vm7, %v13116_v43, %v5082_v11  ;;  %vm4936_vm10 = vcmp.eq.s32.totalorder %v13421_v58, %v12985_v32 }
 0xa3e   :  { %vm4941_vm12 = vcmp.eq.s32.totalorder %v13422_v4, %v12985_v32  ;;  %4601 = vrot.lane.b32.xlu1 %v4554_v55, %s6331_s30  ;;  %5166 = vrot.lane.b32.xlu0 %v5136_v21, %s6331_s30  ;;  %v5079_v9 = vsel %vm5040_vm0, %v13247_v33, %v5025_v45  ;;  %v5084_v44 = vsel %vm5045_vm13, %v13247_v33, %v5030_v0  ;;  %vm13427_vm9 = vcmask 261120  }
 0xa3f   :  { %vm5099_vm3 = vcmp.eq.s32.totalorder %v13414_v60, %v13014_v22  ;;  %v5027_v41 = vsel %vm4988_vm1, %v13240_v20, %v4973_v26  ;;  %vm5096_vm11 = vcmp.eq.s32.totalorder %v13415_v34, %v13014_v22  ;;  %v5032_v2 = vsel %vm4993_vm2, %v13240_v20, %v4978_v38  ;;  %3212 = vst.msk [vmem:[%s12489_s13 + $0x8] sm:$0xff] %vm13427_vm9, %v3166_v13 }
 0xa40   :  { %vm5047_vm6 = vcmp.eq.s32.totalorder %v13418_v50, %v13001_v47  ;;  %v4975_v63 = vsel %vm4936_vm10, %v13235_v1, %v13423_v28  ;;  %vm4990_vm7 = vcmp.eq.s32.totalorder %v13421_v58, %v12990_v62  ;;  %v4980_v10 = vsel %vm4941_vm12, %v13235_v1, %v13424_v54 }
 0xa41   :  { %vm4995_vm15 = vcmp.eq.s32.totalorder %v13422_v4, %v12990_v62  ;;  %v5133_v6 = vsel %vm5094_vm8, %v13116_v43, %v5079_v9  ;;  %v5138_v14 = vsel %vm5099_vm3, %v13116_v43, %v5084_v44  ;;  %vm4938_vm4 = vcmp.eq.s32.totalorder %v13425_v51, %v12985_v32 }
 0xa42   :  { %vm4943_vm14 = vcmp.eq.s32.totalorder %v13426_v5, %v12985_v32  ;;  %5160 = vrot.lane.b32.xlu1 %v5133_v6, %s6331_s30  ;;  %5170 = vrot.lane.b32.xlu0 %v5138_v14, %s6331_s30  ;;  %v5081_v36 = vsel %vm5042_vm5, %v13247_v33, %v5027_v41  ;;  %v5086_v52 = vsel %vm5047_vm6, %v13247_v33, %v5032_v2 }
 0xa43   :  { %vm5101_vm1 = vcmp.eq.s32.totalorder %v13418_v50, %v13014_v22  ;;  %v5029_v19 = vsel %vm4990_vm7, %v13240_v20, %v4975_v63  ;;  %vm5044_vm0 = vcmp.eq.s32.totalorder %v13421_v58, %v13001_v47  ;;  %v5034_v48 = vsel %vm4995_vm15, %v13240_v20, %v4980_v10 }
 0xa44   :  { %vm5049_vm13 = vcmp.eq.s32.totalorder %v13422_v4, %v13001_v47  ;;  %v4977_v8 = vsel %vm4938_vm4, %v13235_v1, %v13428_v40  ;;  %vm4992_vm5 = vcmp.eq.s32.totalorder %v13425_v51, %v12990_v62  ;;  %v4982_v24 = vsel %vm4943_vm14, %v13235_v1, %v13429_v49 }
 0xa45   :  { %vm4997_vm8 = vcmp.eq.s32.totalorder %v13426_v5, %v12990_v62  ;;  %v5135_v27 = vsel %vm5096_vm11, %v13116_v43, %v5081_v36  ;;  %v5140_v31 = vsel %vm5101_vm1, %v13116_v43, %v5086_v52  ;;  %vm5098_vm2 = vcmp.eq.s32.totalorder %v13421_v58, %v13014_v22 }
 0xa46   :  { %vm4940_vm10 = vcmp.eq.s32.totalorder %v13430_v7, %v12985_v32  ;;  %5164 = vrot.lane.b32.xlu1 %v5135_v27, %s6331_s30  ;;  %5174 = vrot.lane.b32.xlu0 %v5140_v31, %s6331_s30  ;;  %v5083_v23 = vsel %vm5044_vm0, %v13247_v33, %v5029_v19  ;;  %v5088_v3 = vsel %vm5049_vm13, %v13247_v33, %v5034_v48 }
 0xa47   :  { %vm5103_vm12 = vcmp.eq.s32.totalorder %v13422_v4, %v13014_v22  ;;  %v5031_v35 = vsel %vm4992_vm5, %v13240_v20, %v4977_v8  ;;  %vm5046_vm3 = vcmp.eq.s32.totalorder %v13425_v51, %v13001_v47  ;;  %v5036_v53 = vsel %vm4997_vm8, %v13240_v20, %v4982_v24 }
 0xa48   :  { %vm5051_vm11 = vcmp.eq.s32.totalorder %v13426_v5, %v13001_v47  ;;  %v4979_v59 = vsel %vm4940_vm10, %v13235_v1, %v13431_v46  ;;  %vm4994_vm6 = vcmp.eq.s32.totalorder %v13430_v7, %v12990_v62  ;;  %v5137_v56 = vsel %vm5098_vm2, %v13116_v43, %v5083_v23 }
 0xa49   :  { %v5142_v60 = vsel %vm5103_vm12, %v13116_v43, %v5088_v3  ;;  %vm5100_vm7 = vcmp.eq.s32.totalorder %v13425_v51, %v13014_v22  ;;  %vm4942_vm15 = vcmp.eq.s32.totalorder %v13432_v57, %v12985_v32  ;;  %v5085_v61 = vsel %vm5046_vm3, %v13247_v33, %v5031_v35  ;;  %v13433_v32 = vld [vmem:[#allocation20_spill] sm:$0xff] }
 0xa4a   :  { %5168 = vrot.lane.b32.xlu1 %v5137_v56, %s6331_s30  ;;  %5178 = vrot.lane.b32.xlu0 %v5142_v60, %s6331_s30  ;;  %v5090_v16 = vsel %vm5051_vm11, %v13247_v33, %v5036_v53  ;;  %vm5105_vm4 = vcmp.eq.s32.totalorder %v13426_v5, %v13014_v22  ;;  %v5033_v30 = vsel %vm4994_vm6, %v13240_v20, %v4979_v59 }
 0xa4b   :  { %vm5048_vm14 = vcmp.eq.s32.totalorder %v13430_v7, %v13001_v47  ;;  %v4981_v34 = vsel %vm4942_vm15, %v13235_v1, %v13433_v32  ;;  %vm4996_vm1 = vcmp.eq.s32.totalorder %v13432_v57, %v12990_v62 }
 0xa4c   :  { %6311 = shalt.err (!%p6308_p9)
}
 0xa4d   :  { %5220 = dma.vmem_to_hbm [thread:$0]  %s5218_s22, 128, %s12488_s12, [#allocation3]   ;;  %v5139_v15 = vsel %vm5100_vm7, %v13116_v43, %v5085_v61  ;;  %v5144_v62 = vsel %vm5105_vm4, %v13116_v43, %v5090_v16  ;;  %v5087_v1 = vsel %vm5048_vm14, %v13247_v33, %v5033_v30  ;;  %vm5102_vm9 = vcmp.eq.s32.totalorder %v13430_v7, %v13014_v22  ;;  %v3164_v17 = vpop.permute.xlu1 %3163  ;;  %v3170_v37 = vpop.permute.xlu0 %3169 }
 0xa4e   :  { %5172 = vrot.lane.b32.xlu1 %v5139_v15, %s6331_s30  ;;  %5182 = vrot.lane.b32.xlu0 %v5144_v62, %s6331_s30  ;;  %v5035_v25 = vsel %vm4996_vm1, %v13240_v20, %v4981_v34  ;;  %vm5050_vm0 = vcmp.eq.s32.totalorder %v13432_v57, %v13001_v47  ;;  %vm13434_vm13 = vcmask 261120   ;;  %v5141_v42 = vsel %vm5102_vm9, %v13116_v43, %v5087_v1 }
 0xa4f   :  { %3211 = vst.msk [vmem:[%s12489_s13] sm:$0xff] %vm13434_vm13, %v3164_v17  ;;  %vm13435_vm5 = vmmov %vm13434_vm13  ;;  %v5089_v20 = vsel %vm5050_vm0, %v13247_v33, %v5035_v25  ;;  %vm5104_vm8 = vcmp.eq.s32.totalorder %v13432_v57, %v13014_v22 }
 0xa50   :  { %3214 = vst.msk [vmem:[%s12489_s13 + $0x18] sm:$0xff] %vm13435_vm5, %v3170_v37  ;;  %vm13436_vm2 = vmmov %vm13435_vm5  ;;  %v5143_v50 = vsel %vm5104_vm8, %v13116_v43, %v5089_v20 }
 0xa51   :  { %v3168_v47 = vpop.permute.xlu1 %3167  ;;  %v3174_v18 = vpop.permute.xlu0 %3173  ;;  %vm13437_vm10 = vmmov %vm13436_vm2 }
 0xa52   :  { %5176 = vrot.lane.b32.xlu1 %v5141_v42, %s6331_s30  ;;  %3213 = vst.msk [vmem:[%s12489_s13 + $0x10] sm:$0xff] %vm13436_vm2, %v3168_v47  ;;  %vm13438_vm12 = vmmov %vm13436_vm2 }
 0xa53   :  { %3216 = vst.msk [vmem:[%s12489_s13 + $0x28] sm:$0xff] %vm13437_vm10, %v3174_v18  ;;  %vm13439_vm3 = vmmov %vm13436_vm2 }
 0xa54   :  { %vm13440_vm11 = vmmov %vm13436_vm2 }
 0xa55   :  { %v3172_v33 = vpop.permute.xlu1 %3171  ;;  %v3178_v39 = vpop.permute.xlu0 %3177  ;;  %vm13441_vm6 = vmmov %vm13436_vm2 }
 0xa56   :  { %5180 = vrot.lane.b32.xlu1 %v5143_v50, %s6331_s30  ;;  %3215 = vst.msk [vmem:[%s12489_s13 + $0x20] sm:$0xff] %vm13438_vm12, %v3172_v33  ;;  %vm13442_vm7 = vmmov %vm13436_vm2 }
 0xa57   :  { %3218 = vst.msk [vmem:[%s12489_s13 + $0x38] sm:$0xff] %vm13439_vm3, %v3178_v39  ;;  %vm13443_vm15 = vmmov %vm13436_vm2 }
 0xa58   :  { %vm13444_vm4 = vmmov %vm13436_vm2 }
 0xa59   :  { %v3176_v22 = vpop.permute.xlu1 %3175  ;;  %v3182_v43 = vpop.permute.xlu0 %3181  ;;  %vm13445_vm14 = vmmov %vm13436_vm2 }
 0xa5a   :  { %3217 = vst.msk [vmem:[%s12489_s13 + $0x30] sm:$0xff] %vm13440_vm11, %v3176_v22  ;;  %vm13446_vm1 = vmmov %vm13436_vm2 }
 0xa5b   :  { %3220 = vst.msk [vmem:[%s12489_s13 + $0x48] sm:$0xff] %vm13441_vm6, %v3182_v43  ;;  %vm13447_vm9 = vmmov %vm13446_vm1 }
 0xa5c   :  { %vm13448_vm0 = vmmov %vm13446_vm1 }
 0xa5d   :  { %v3180_v11 = vpop.permute.xlu1 %3179  ;;  %v3186_v45 = vpop.permute.xlu0 %3185  ;;  %vm13449_vm13 = vmmov %vm13448_vm0 }
 0xa5e   :  { %3219 = vst.msk [vmem:[%s12489_s13 + $0x40] sm:$0xff] %vm13442_vm7, %v3180_v11  ;;  %vm13450_vm5 = vmmov %vm13448_vm0 }
 0xa5f   :  { %3222 = vst.msk [vmem:[%s12489_s13 + $0x58] sm:$0xff] %vm13443_vm15, %v3186_v45  ;;  %vm13451_vm8 = vmmov %vm13448_vm0 }
 0xa60   :  { %vm13452_vm2 = vmmov %vm13448_vm0 }
 0xa61   :  { %v3184_v0 = vpop.permute.xlu1 %3183  ;;  %v3190_v29 = vpop.permute.xlu0 %3189  ;;  %vm13453_vm10 = vmmov %vm13448_vm0 }
 0xa62   :  { %3221 = vst.msk [vmem:[%s12489_s13 + $0x50] sm:$0xff] %vm13444_vm4, %v3184_v0  ;;  %vm13454_vm12 = vmmov %vm13448_vm0 }
 0xa63   :  { %3224 = vst.msk [vmem:[%s12489_s13 + $0x68] sm:$0xff] %vm13445_vm14, %v3190_v29  ;;  %vm13455_vm3 = vmmov %vm13448_vm0 }
 0xa64   :  { %vm13456_vm11 = vmmov %vm13448_vm0 }
 0xa65   :  { %v3188_v26 = vpop.permute.xlu1 %3187  ;;  %v3194_v12 = vpop.permute.xlu0 %3193  ;;  %vm13457_vm6 = vmmov %vm13448_vm0 }
 0xa66   :  { %3223 = vst.msk [vmem:[%s12489_s13 + $0x60] sm:$0xff] %vm13446_vm1, %v3188_v26  ;;  %vm13458_vm7 = vmmov %vm13448_vm0 }
 0xa67   :  { %3226 = vst.msk [vmem:[%s12489_s13 + $0x78] sm:$0xff] %vm13447_vm9, %v3194_v12  ;;  %vm13459_vm15 = vmmov %vm13448_vm0 }
 0xa68   :  { %vm13460_vm4 = vmmov %vm13448_vm0 }
 0xa69   :  { %v3192_v38 = vpop.permute.xlu1 %3191  ;;  %v3870_v55 = vpop.permute.xlu0 %3869  ;;  %vm13461_vm14 = vmmov %vm13448_vm0 }
 0xa6a   :  { %3225 = vst.msk [vmem:[%s12489_s13 + $0x70] sm:$0xff] %vm13448_vm0, %v3192_v38  ;;  %vm13462_vm1 = vmmov %vm13448_vm0 }
 0xa6b   :  { %3916 = vst.msk [vmem:[%s12489_s13 + $0x88] sm:$0xff] %vm13449_vm13, %v3870_v55  ;;  %vm13463_vm9 = vmmov %vm13448_vm0 }
 0xa6c   :  { %vm13464_vm13 = vmmov %vm13448_vm0 }
 0xa6e   :  { %v3868_v21 = vpop.permute.xlu1 %3867  ;;  %v3874_v58 = vpop.permute.xlu0 %3873 }
 0xa6f   :  { %3915 = vst.msk [vmem:[%s12489_s13 + $0x80] sm:$0xff] %vm13450_vm5, %v3868_v21  ;;  %vm13465_vm5 = vmmov %vm13448_vm0 }
 0xa70   :  { %3918 = vst.msk [vmem:[%s12489_s13 + $0x98] sm:$0xff] %vm13451_vm8, %v3874_v58  ;;  %vm13466_vm8 = vmmov %vm13448_vm0 }
 0xa73   :  { %v3872_v4 = vpop.permute.xlu1 %3871  ;;  %v3878_v9 = vpop.permute.xlu0 %3877 }
 0xa74   :  { %3917 = vst.msk [vmem:[%s12489_s13 + $0x90] sm:$0xff] %vm13452_vm2, %v3872_v4  ;;  %vm13467_vm2 = vmmov %vm13448_vm0 }
 0xa75   :  { %3920 = vst.msk [vmem:[%s12489_s13 + $0xa8] sm:$0xff] %vm13453_vm10, %v3878_v9  ;;  %vm13468_vm10 = vmmov %vm13448_vm0 }
 0xa77   :  { %v3876_v44 = vpop.permute.xlu1 %3875  ;;  %v3882_v41 = vpop.permute.xlu0 %3881 }
 0xa78   :  { %3919 = vst.msk [vmem:[%s12489_s13 + $0xa0] sm:$0xff] %vm13454_vm12, %v3876_v44  ;;  %vm13469_vm12 = vmmov %vm13448_vm0 }
 0xa79   :  { %3922 = vst.msk [vmem:[%s12489_s13 + $0xb8] sm:$0xff] %vm13455_vm3, %v3882_v41  ;;  %vm13470_vm3 = vmmov %vm13448_vm0 }
 0xa7b   :  { %v3880_v2 = vpop.permute.xlu1 %3879 }
 0xa7c   :  { %v3886_v28 = vpop.permute.xlu0 %3885  ;;  %3921 = vst.msk [vmem:[%s12489_s13 + $0xb0] sm:$0xff] %vm13456_vm11, %v3880_v2  ;;  %vm13471_vm11 = vmmov %vm13448_vm0 }
 0xa7d   :  { %3924 = vst.msk [vmem:[%s12489_s13 + $0xc8] sm:$0xff] %vm13457_vm6, %v3886_v28  ;;  %vm13472_vm6 = vmmov %vm13448_vm0 }
 0xa7f   :  { %v3884_v63 = vpop.permute.xlu1 %3883 }
 0xa80   :  { %v3890_v54 = vpop.permute.xlu0 %3889  ;;  %3923 = vst.msk [vmem:[%s12489_s13 + $0xc0] sm:$0xff] %vm13458_vm7, %v3884_v63  ;;  %vm13473_vm7 = vmmov %vm13448_vm0 }
 0xa81   :  { %3926 = vst.msk [vmem:[%s12489_s13 + $0xd8] sm:$0xff] %vm13459_vm15, %v3890_v54  ;;  %vm13474_vm15 = vmmov %vm13448_vm0 }
 0xa83   :  { %v3888_v10 = vpop.permute.xlu1 %3887 }
 0xa84   :  { %v3896_v6 = vpop.permute.xlu0 %3895  ;;  %3925 = vst.msk [vmem:[%s12489_s13 + $0xd0] sm:$0xff] %vm13460_vm4, %v3888_v10  ;;  %vm13475_vm4 = vmmov %vm13448_vm0 }
 0xa85   :  { %3929 = vst.msk [vmem:[%s12489_s13 + $0xf0] sm:$0xff] %vm13461_vm14, %v3896_v6  ;;  %vm13476_vm14 = vmmov %vm13448_vm0 }
 0xa87   :  { %v3892_v14 = vpop.permute.xlu1 %3891 }
 0xa88   :  { %v4572_v51 = vpop.permute.xlu0 %4571  ;;  %3927 = vst.msk [vmem:[%s12489_s13 + $0xe0] sm:$0xff] %vm13462_vm1, %v3892_v14  ;;  %vm13477_vm1 = vmmov %vm13448_vm0 }
 0xa89   :  { %4619 = vst.msk [vmem:[%s12489_s13 + $0x100] sm:$0xff] %vm13463_vm9, %v4572_v51  ;;  %vm13478_vm9 = vmmov %vm13448_vm0 }
 0xa8c   :  { %v3894_v13 = vpop.permute.xlu1 %3893  ;;  %v4576_v5 = vpop.permute.xlu0 %4575 }
 0xa8d   :  { %3928 = vst.msk [vmem:[%s12489_s13 + $0xe8] sm:$0xff] %vm13448_vm0, %v3894_v13 }
 0xa8e   :  { %4621 = vst.msk [vmem:[%s12489_s13 + $0x110] sm:$0xff] %vm13464_vm13, %v4576_v5  ;;  %vm13479_vm13 = vmmov %vm13448_vm0 }
 0xa90   :  { %v3898_v36 = vpop.permute.xlu1 %3897  ;;  %v4580_v52 = vpop.permute.xlu0 %4579 }
 0xa91   :  { %3930 = vst.msk [vmem:[%s12489_s13 + $0xf8] sm:$0xff] %vm13465_vm5, %v3898_v36  ;;  %vm13480_vm5 = vmmov %vm13448_vm0 }
 0xa92   :  { %4623 = vst.msk [vmem:[%s12489_s13 + $0x120] sm:$0xff] %vm13466_vm8, %v4580_v52  ;;  %vm13481_vm8 = vmmov %vm13448_vm0 }
 0xa94   :  { %v4574_v19 = vpop.permute.xlu1 %4573  ;;  %v4584_v48 = vpop.permute.xlu0 %4583 }
 0xa95   :  { %4620 = vst.msk [vmem:[%s12489_s13 + $0x108] sm:$0xff] %vm13467_vm2, %v4574_v19  ;;  %vm13482_vm2 = vmmov %vm13448_vm0 }
 0xa96   :  { %4625 = vst.msk [vmem:[%s12489_s13 + $0x130] sm:$0xff] %vm13468_vm10, %v4584_v48  ;;  %vm13483_vm10 = vmmov %vm13448_vm0 }
 0xa98   :  { %v4578_v40 = vpop.permute.xlu1 %4577  ;;  %v4588_v8 = vpop.permute.xlu0 %4587 }
 0xa99   :  { %4622 = vst.msk [vmem:[%s12489_s13 + $0x118] sm:$0xff] %vm13469_vm12, %v4578_v40  ;;  %vm13484_vm12 = vmmov %vm13448_vm0 }
 0xa9a   :  { %4627 = vst.msk [vmem:[%s12489_s13 + $0x140] sm:$0xff] %vm13470_vm3, %v4588_v8  ;;  %vm13485_vm3 = vmmov %vm13448_vm0 }
 0xa9c   :  { %v4582_v49 = vpop.permute.xlu1 %4581  ;;  %v4592_v24 = vpop.permute.xlu0 %4591 }
 0xa9d   :  { %4624 = vst.msk [vmem:[%s12489_s13 + $0x128] sm:$0xff] %vm13471_vm11, %v4582_v49  ;;  %vm13486_vm11 = vmmov %vm13448_vm0 }
 0xa9e   :  { %4629 = vst.msk [vmem:[%s12489_s13 + $0x150] sm:$0xff] %vm13472_vm6, %v4592_v24  ;;  %vm13487_vm6 = vmmov %vm13448_vm0 }
 0xaa0   :  { %v4586_v27 = vpop.permute.xlu1 %4585  ;;  %v4596_v31 = vpop.permute.xlu0 %4595 }
 0xaa1   :  { %4626 = vst.msk [vmem:[%s12489_s13 + $0x138] sm:$0xff] %vm13473_vm7, %v4586_v27  ;;  %vm5209_vm7 = vcmask 257024  }
 0xaa2   :  { %4631 = vst.msk [vmem:[%s12489_s13 + $0x160] sm:$0xff] %vm13474_vm15, %v4596_v31  ;;  %vm13488_vm15 = vmmov %vm13448_vm0 }
 0xaa4   :  { %v4590_v7 = vpop.permute.xlu1 %4589  ;;  %v4600_v23 = vpop.permute.xlu0 %4599 }
 0xaa5   :  { %4628 = vst.msk [vmem:[%s12489_s13 + $0x148] sm:$0xff] %vm13475_vm4, %v4590_v7  ;;  %vm13489_vm4 = vmmov %vm13448_vm0 }
 0xaa6   :  { %4633 = vst.msk [vmem:[%s12489_s13 + $0x170] sm:$0xff] %vm13476_vm14, %v4600_v23  ;;  %vm13490_vm14 = vmmov %vm13448_vm0 }
 0xaa8   :  { %v4594_v3 = vpop.permute.xlu1 %4593  ;;  %v5159_v35 = vpop.permute.xlu0 %5158 }
 0xaa9   :  { %4630 = vst.msk [vmem:[%s12489_s13 + $0x158] sm:$0xff] %vm13477_vm1, %v4594_v3 }
 0xaaa   :  { %5197 = vst.msk [vmem:[%s12489_s13 + $0x180] sm:$0xff] %vm13478_vm9, %v5159_v35 }
 0xaac   :  { %v4598_v53 = vpop.permute.xlu1 %4597  ;;  %v5163_v46 = vpop.permute.xlu0 %5162 }
 0xaad   :  { %4632 = vst.msk [vmem:[%s12489_s13 + $0x168] sm:$0xff] %vm13448_vm0, %v4598_v53 }
 0xaae   :  { %5199 = vst.msk [vmem:[%s12489_s13 + $0x190] sm:$0xff] %vm13479_vm13, %v5163_v46 }
 0xab0   :  { %v4602_v59 = vpop.permute.xlu1 %4601  ;;  %v5167_v56 = vpop.permute.xlu0 %5166 }
 0xab1   :  { %4634 = vst.msk [vmem:[%s12489_s13 + $0x178] sm:$0xff] %vm13480_vm5, %v4602_v59 }
 0xab2   :  { %5201 = vst.msk [vmem:[%s12489_s13 + $0x1a0] sm:$0xff] %vm13481_vm8, %v5167_v56 }
 0xab4   :  { %v5161_v60 = vpop.permute.xlu1 %5160  ;;  %v5171_v57 = vpop.permute.xlu0 %5170 }
 0xab5   :  { %5198 = vst.msk [vmem:[%s12489_s13 + $0x188] sm:$0xff] %vm13482_vm2, %v5161_v60 }
 0xab6   :  { %5203 = vst.msk [vmem:[%s12489_s13 + $0x1b0] sm:$0xff] %vm13483_vm10, %v5171_v57 }
 0xab8   :  { %v5165_v61 = vpop.permute.xlu1 %5164  ;;  %v5175_v16 = vpop.permute.xlu0 %5174 }
 0xab9   :  { %5200 = vst.msk [vmem:[%s12489_s13 + $0x198] sm:$0xff] %vm13484_vm12, %v5165_v61 }
 0xaba   :  { %5205 = vst.msk [vmem:[%s12489_s13 + $0x1c0] sm:$0xff] %vm13485_vm3, %v5175_v16 }
 0xabc   :  { %v5169_v30 = vpop.permute.xlu1 %5168  ;;  %v5179_v32 = vpop.permute.xlu0 %5178 }
 0xabd   :  { %5202 = vst.msk [vmem:[%s12489_s13 + $0x1a8] sm:$0xff] %vm13486_vm11, %v5169_v30 }
 0xabe   :  { %5207 = vst.msk [vmem:[%s12489_s13 + $0x1d0] sm:$0xff] %vm13487_vm6, %v5179_v32 }
 0xac0   :  { %v5173_v34 = vpop.permute.xlu1 %5172  ;;  %v5183_v15 = vpop.permute.xlu0 %5182 }
 0xac1   :  { %5204 = vst.msk [vmem:[%s12489_s13 + $0x1b8] sm:$0xff] %vm13488_vm15, %v5173_v34 }
 0xac2   :  { %5210 = vst.msk [vmem:[%s12489_s13 + $0x1e0] sm:$0xf] %vm5209_vm7, %v5183_v15 }
 0xac4   :  { %v5177_v62 = vpop.permute.xlu1 %5176 }
 0xac5   :  { %5206 = vst.msk [vmem:[%s12489_s13 + $0x1c8] sm:$0xff] %vm13489_vm4, %v5177_v62 }
 0xac8   :  { %v5181_v1 = vpop.permute.xlu1 %5180 }
 0xac9   :  { %5208 = vst.msk [vmem:[%s12489_s13 + $0x1d8] sm:$0xff] %vm13490_vm14, %v5181_v1 }
 0xaca   :  { %6322 = dma.done.wait [#allocation3], 128  }
 0xacb   :  { %6323 = vsyncadd [#allocation3], 4294967168 }
 0xacc   :  { %5228 = vsyncpa [#allocation3], 1 }
 0xacd   :  { %5229 = vsyncpa [#allocation4], 1 }

</bundles_post_ra>
